<compile_context>
chip_gen: v6e
topology: v6e:2x2x1
jax: 0.10.0
libtpu: 0.0.40
codegen_flags: <defaults>
</compile_context>

<pallas_src>
import jax
import jax.numpy as jnp
from jax.experimental import pallas as pl
from jax.experimental.pallas import tpu as pltpu


def _round_up(x, m):
    return (x + m - 1) // m * m


def _default_bf16_epilogue():
    """Packed-bf16 bias/ReLU epilogue only where the VPU has bf16 (v6e/v7x)."""
    try:
        kind = jax.devices()[0].device_kind.lower()
    except Exception:
        return False
    return ("v6" in kind) or ("v7" in kind)


def _make_kernel(bf16_epilogue):
    """Fused 5-layer MLP over one batch tile (all weights resident in VMEM)."""

    def kernel(z_ref,
               w1_ref, b1_ref, w2_ref, b2_ref,
               w3_ref, b3_ref, w4_ref, b4_ref,
               wo_ref, bo_ref, out_ref):
        def layer(x_bf16, w_ref, b_ref):
            # bf16 MXU matmul, f32 accumulate.
            acc = jnp.dot(x_bf16, w_ref[...], preferred_element_type=jnp.float32)
            if bf16_epilogue:
                # v6e/v7x: next matmul consumes bf16 anyway, so cast first and
                # do bias + ReLU packed (2 elems/lane) on the VPU.
                return jnp.maximum(acc.astype(jnp.bfloat16) + b_ref[...], 0.0)
            # v5e path: bias + ReLU in f32, cast only at the MXU input.
            return jnp.maximum(acc + b_ref[...], 0.0).astype(jnp.bfloat16)

        h = layer(z_ref[...], w1_ref, b1_ref)
        h = layer(h, w2_ref, b2_ref)
        h = layer(h, w3_ref, b3_ref)
        h = layer(h, w4_ref, b4_ref)
        # Lane-dense 512 -> 1 head: wo is zero-padded to (512, HEADP) so the
        # writeback is an unmasked (TB, HEADP) store; column 0 is the result.
        out_ref[...] = (
            jnp.dot(h, wo_ref[...], preferred_element_type=jnp.float32)
            + bo_ref[...])

    return kernel


def wgan_discriminator_forward(z, kparams, *, block_b=512):
    """z: (B, z_dim) float array. kparams: dict from prepare_kernel_params."""
    B, z_dim = z.shape
    Zp, H = kparams["w1"].shape
    HEADP = kparams["wo"].shape[1]
    bf16_epilogue = kparams["b1"].dtype == jnp.bfloat16

    # Batch tile: multiple of 128 (MXU-row friendly), capped at block_b.
    TB = min(block_b, _round_up(max(B, 1), 128))
    # Give the grid >= 2 steps when there is enough work so v7x's two
    # TensorCores can both take batch tiles.
    if B <= TB and TB % 256 == 0:
        TB //= 2
    B_pad = _round_up(B, TB)

    # Zero-pad batch to a TB multiple and features to the padded z_dim; cast
    # first-matmul activations to bf16 here.
    z_p = jnp.zeros((B_pad, Zp), jnp.bfloat16)
    z_p = z_p.at[:B, :z_dim].set(z.astype(jnp.bfloat16))

    grid = (B_pad // TB,)

    def tiled(i):      # batch-tiled arrays
        return (i, 0)

    def pinned(i):     # weights/biases: same block every step -> DMA'd once
        return (0, 0)

    kernel = _make_kernel(bf16_epilogue)

    flops = 2 * B_pad * (Zp * H + 3 * H * H + H * HEADP)
    param_bytes = sum(int(v.size) * v.dtype.itemsize for v in kparams.values())
    cost = pl.CostEstimate(
        flops=flops,
        transcendentals=0,
        bytes_accessed=int(z_p.size) * 2 + param_bytes + B_pad * HEADP * 4)

    def run(single_buffer_weights):
        # Pinned (constant index_map) blocks don't need double-buffering.
        pin_kw = ({"pipeline_mode": pl.Buffered(1)}
                  if single_buffer_weights else {})
        in_specs = [
            pl.BlockSpec((TB, Zp), tiled),                # z tile (double-buf)
            pl.BlockSpec((Zp, H), pinned, **pin_kw),      # w1
            pl.BlockSpec((1, H), pinned, **pin_kw),       # b1
            pl.BlockSpec((H, H), pinned, **pin_kw),       # w2
            pl.BlockSpec((1, H), pinned, **pin_kw),       # b2
            pl.BlockSpec((H, H), pinned, **pin_kw),       # w3
            pl.BlockSpec((1, H), pinned, **pin_kw),       # b3
            pl.BlockSpec((H, H), pinned, **pin_kw),       # w4
            pl.BlockSpec((1, H), pinned, **pin_kw),       # b4
            pl.BlockSpec((H, HEADP), pinned, **pin_kw),   # wo (lane-padded)
            pl.BlockSpec((1, HEADP), pinned, **pin_kw),   # bo (lane-padded)
        ]
        out_spec = pl.BlockSpec((TB, HEADP), tiled)
        return pl.pallas_call(
            kernel,
            out_shape=jax.ShapeDtypeStruct((B_pad, HEADP), jnp.float32),
            grid=grid,
            in_specs=in_specs,
            out_specs=out_spec,
            compiler_params=pltpu.CompilerParams(
                dimension_semantics=("parallel",),
                vmem_limit_bytes=32 << 20,
            ),
            cost_estimate=cost,
        )(z_p,
          kparams["w1"], kparams["b1"],
          kparams["w2"], kparams["b2"],
          kparams["w3"], kparams["b3"],
          kparams["w4"], kparams["b4"],
          kparams["wo"], kparams["bo"])

    try:
        out = run(single_buffer_weights=True)
    except Exception:
        # Fallback for JAX versions that reject pl.Buffered(1) on a pinned
        # BlockSpec: default double-buffering (identical results).
        out = run(single_buffer_weights=False)

    # Only column 0 of the lane-padded head slab is real; drop padded rows.
    return out[:B, :1]


def init_params(key, z_dim=10, hidden=512):
    """kaiming_normal_ (fan_in, gain=sqrt(2)) weights, zero biases, all f32.

    Weights stored as (in, out) = PyTorch Linear weight transposed.
    """
    ks = jax.random.split(key, 5)

    def kaiming(k, fan_in, fan_out):
        std = jnp.sqrt(2.0 / fan_in)
        return jax.random.normal(k, (fan_in, fan_out), dtype=jnp.float32) * std

    return {
        "w1": kaiming(ks[0], z_dim, hidden), "b1": jnp.zeros((1, hidden), jnp.float32),
        "w2": kaiming(ks[1], hidden, hidden), "b2": jnp.zeros((1, hidden), jnp.float32),
        "w3": kaiming(ks[2], hidden, hidden), "b3": jnp.zeros((1, hidden), jnp.float32),
        "w4": kaiming(ks[3], hidden, hidden), "b4": jnp.zeros((1, hidden), jnp.float32),
        "wo": kaiming(ks[4], hidden, 1),      "bo": jnp.zeros((1, 1), jnp.float32),
    }


def prepare_kernel_params(params, z_dim_pad=16, head_pad=128, bf16_epilogue=True):
    """Kernel-ready params:
       * matmul weights in bf16, (in, out) layout; w1 zero-padded along z_dim,
       * hidden-layer biases bf16 (packed epilogue) or f32,
       * 512->1 head zero-padded to head_pad lanes for an unmasked writeback:
         wo -> (hidden, head_pad) bf16, bo -> (1, head_pad) f32 (col 0 real).
    """
    z_dim, hidden = params["w1"].shape
    z_dim_pad = max(z_dim_pad, _round_up(z_dim, 8))
    w1p = jnp.zeros((z_dim_pad, hidden), jnp.float32).at[:z_dim].set(params["w1"])
    wo_p = jnp.zeros((hidden, head_pad), jnp.float32).at[:, :1].set(params["wo"])
    bo_p = jnp.zeros((1, head_pad), jnp.float32).at[:, :1].set(params["bo"])
    b_dt = jnp.bfloat16 if bf16_epilogue else jnp.float32
    return {
        "w1": w1p.astype(jnp.bfloat16),
        "w2": params["w2"].astype(jnp.bfloat16),
        "w3": params["w3"].astype(jnp.bfloat16),
        "w4": params["w4"].astype(jnp.bfloat16),
        "b1": params["b1"].astype(b_dt), "b2": params["b2"].astype(b_dt),
        "b3": params["b3"].astype(b_dt), "b4": params["b4"].astype(b_dt),
        "wo": wo_p.astype(jnp.bfloat16),
        "bo": bo_p,
    }


def reference_forward_f32(z, p):
    """Plain-JAX f32 reference mirroring the PyTorch module exactly."""
    h = z
    for w, b in ((p["w1"], p["b1"]), (p["w2"], p["b2"]),
                 (p["w3"], p["b3"]), (p["w4"], p["b4"])):
        h = jnp.maximum(h @ w + b, 0.0)
    return h @ p["wo"] + p["bo"]


def reference_forward_mixed(z, p, bf16_epilogue):
    """Mirrors the kernel's mixed precision exactly (bf16 MXU inputs, f32
    accumulate, bf16 or f32 bias/ReLU epilogue, bf16 MXU head)."""
    h = z.astype(jnp.bfloat16)
    for w, b in ((p["w1"], p["b1"]), (p["w2"], p["b2"]),
                 (p["w3"], p["b3"]), (p["w4"], p["b4"])):
        acc = jnp.dot(h, w.astype(jnp.bfloat16),
                      preferred_element_type=jnp.float32)
        if bf16_epilogue:
            h = jnp.maximum(acc.astype(jnp.bfloat16) + b.astype(jnp.bfloat16), 0.0)
        else:
            h = jnp.maximum(acc + b, 0.0).astype(jnp.bfloat16)
    head = jnp.dot(h, p["wo"].astype(jnp.bfloat16),
                   preferred_element_type=jnp.float32)
    return head + p["bo"]


if __name__ == "__main__":
    key = jax.random.PRNGKey(0)
    k_param, k_z = jax.random.split(key)

    B, Z_DIM, HIDDEN = 8, 10, 512   # hidden=512 is fixed by the module
    params = init_params(k_param, z_dim=Z_DIM, hidden=HIDDEN)
    bf16_ep = _default_bf16_epilogue()
    kparams = prepare_kernel_params(params, bf16_epilogue=bf16_ep)
    z = jax.random.normal(k_z, (B, Z_DIM), dtype=jnp.float32)

    out = wgan_discriminator_forward(z, kparams)
    out = jax.block_until_ready(out)
    assert out.shape == (B, 1), out.shape

    ref_mixed = reference_forward_mixed(z, params, bf16_epilogue=bf16_ep)
    ref_f32 = reference_forward_f32(z, params)
    assert jnp.allclose(out, ref_mixed, atol=2e-2, rtol=2e-2), (
        "mixed-precision reference mismatch",
        float(jnp.max(jnp.abs(out - ref_mixed))))
    assert jnp.allclose(out, ref_f32, atol=2e-1, rtol=2e-1), (
        "f32 reference mismatch",
        float(jnp.max(jnp.abs(out - ref_f32))))

    print("KERNEL_OK")
</pallas_src>

<mosaic_0001>
module attributes {stable_mosaic.version = 11 : i64} {
  func.func @kernel(%arg0: i32, %arg1: memref<128x16xbf16, #tpu.memory_space<vmem>>, %arg2: memref<16x512xbf16, #tpu.memory_space<vmem>>, %arg3: memref<1x512xf32, #tpu.memory_space<vmem>>, %arg4: memref<512x512xbf16, #tpu.memory_space<vmem>>, %arg5: memref<1x512xf32, #tpu.memory_space<vmem>>, %arg6: memref<512x512xbf16, #tpu.memory_space<vmem>>, %arg7: memref<1x512xf32, #tpu.memory_space<vmem>>, %arg8: memref<512x512xbf16, #tpu.memory_space<vmem>>, %arg9: memref<1x512xf32, #tpu.memory_space<vmem>>, %arg10: memref<512x128xbf16, #tpu.memory_space<vmem>>, %arg11: memref<1x128xf32, #tpu.memory_space<vmem>>, %arg12: memref<128x128xf32, #tpu.memory_space<vmem>>) attributes {dimension_semantics = [#tpu.dimension_semantics<parallel>], iteration_bounds = array<i64: 1>, scalar_prefetch = 0 : i64, scratch_operands = 0 : i64, tpu.core_type = #tpu.core_type<tc>, window_params = [{transform_indices = @transform_0, window_bounds = array<i64: 128, 16>}, {pipeline_mode = #tpu.pipeline_mode<synchronous>, transform_indices = @transform_1, window_bounds = array<i64: 16, 512>}, {pipeline_mode = #tpu.pipeline_mode<synchronous>, transform_indices = @transform_2, window_bounds = array<i64: 1, 512>}, {pipeline_mode = #tpu.pipeline_mode<synchronous>, transform_indices = @transform_3, window_bounds = array<i64: 512, 512>}, {pipeline_mode = #tpu.pipeline_mode<synchronous>, transform_indices = @transform_4, window_bounds = array<i64: 1, 512>}, {pipeline_mode = #tpu.pipeline_mode<synchronous>, transform_indices = @transform_5, window_bounds = array<i64: 512, 512>}, {pipeline_mode = #tpu.pipeline_mode<synchronous>, transform_indices = @transform_6, window_bounds = array<i64: 1, 512>}, {pipeline_mode = #tpu.pipeline_mode<synchronous>, transform_indices = @transform_7, window_bounds = array<i64: 512, 512>}, {pipeline_mode = #tpu.pipeline_mode<synchronous>, transform_indices = @transform_8, window_bounds = array<i64: 1, 512>}, {pipeline_mode = #tpu.pipeline_mode<synchronous>, transform_indices = @transform_9, window_bounds = array<i64: 512, 128>}, {pipeline_mode = #tpu.pipeline_mode<synchronous>, transform_indices = @transform_10, window_bounds = array<i64: 1, 128>}, {transform_indices = @transform_11, window_bounds = array<i64: 128, 128>}]} {
    %c0 = arith.constant 0 : index
    %c0_0 = arith.constant 0 : index
    %0 = vector.load %arg1[%c0, %c0_0] : memref<128x16xbf16, #tpu.memory_space<vmem>>, vector<128x16xbf16>
    %c0_1 = arith.constant 0 : index
    %c0_2 = arith.constant 0 : index
    %1 = vector.load %arg2[%c0_1, %c0_2] : memref<16x512xbf16, #tpu.memory_space<vmem>>, vector<16x512xbf16>
    %cst = arith.constant dense<0.000000e+00> : vector<128x512xf32>
    %2 = tpu.matmul %0, %1, %cst {dimension_numbers = #tpu.dot_dimension_numbers<[1], [0], [0], [1], [0, 0, 1, 1], [], []>} : vector<128x16xbf16>, vector<16x512xbf16>, vector<128x512xf32> -> vector<128x512xf32>
    %c0_3 = arith.constant 0 : index
    %c0_4 = arith.constant 0 : index
    %3 = vector.load %arg3[%c0_3, %c0_4] : memref<1x512xf32, #tpu.memory_space<vmem>>, vector<1x512xf32>
    %4 = vector.broadcast %3 : vector<1x512xf32> to vector<128x512xf32>
    %5 = arith.addf %2, %4 : vector<128x512xf32>
    %cst_5 = arith.constant 0.000000e+00 : f32
    %6 = vector.broadcast %cst_5 : f32 to vector<128x512xf32>
    %7 = arith.maximumf %5, %6 : vector<128x512xf32>
    %8 = arith.truncf %7 : vector<128x512xf32> to vector<128x512xbf16>
    %c0_6 = arith.constant 0 : index
    %c0_7 = arith.constant 0 : index
    %9 = vector.load %arg4[%c0_6, %c0_7] : memref<512x512xbf16, #tpu.memory_space<vmem>>, vector<512x512xbf16>
    %cst_8 = arith.constant dense<0.000000e+00> : vector<128x512xf32>
    %10 = tpu.matmul %8, %9, %cst_8 {dimension_numbers = #tpu.dot_dimension_numbers<[1], [0], [0], [1], [0, 0, 1, 1], [], []>} : vector<128x512xbf16>, vector<512x512xbf16>, vector<128x512xf32> -> vector<128x512xf32>
    %c0_9 = arith.constant 0 : index
    %c0_10 = arith.constant 0 : index
    %11 = vector.load %arg5[%c0_9, %c0_10] : memref<1x512xf32, #tpu.memory_space<vmem>>, vector<1x512xf32>
    %12 = vector.broadcast %11 : vector<1x512xf32> to vector<128x512xf32>
    %13 = arith.addf %10, %12 : vector<128x512xf32>
    %cst_11 = arith.constant 0.000000e+00 : f32
    %14 = vector.broadcast %cst_11 : f32 to vector<128x512xf32>
    %15 = arith.maximumf %13, %14 : vector<128x512xf32>
    %16 = arith.truncf %15 : vector<128x512xf32> to vector<128x512xbf16>
    %c0_12 = arith.constant 0 : index
    %c0_13 = arith.constant 0 : index
    %17 = vector.load %arg6[%c0_12, %c0_13] : memref<512x512xbf16, #tpu.memory_space<vmem>>, vector<512x512xbf16>
    %cst_14 = arith.constant dense<0.000000e+00> : vector<128x512xf32>
    %18 = tpu.matmul %16, %17, %cst_14 {dimension_numbers = #tpu.dot_dimension_numbers<[1], [0], [0], [1], [0, 0, 1, 1], [], []>} : vector<128x512xbf16>, vector<512x512xbf16>, vector<128x512xf32> -> vector<128x512xf32>
    %c0_15 = arith.constant 0 : index
    %c0_16 = arith.constant 0 : index
    %19 = vector.load %arg7[%c0_15, %c0_16] : memref<1x512xf32, #tpu.memory_space<vmem>>, vector<1x512xf32>
    %20 = vector.broadcast %19 : vector<1x512xf32> to vector<128x512xf32>
    %21 = arith.addf %18, %20 : vector<128x512xf32>
    %cst_17 = arith.constant 0.000000e+00 : f32
    %22 = vector.broadcast %cst_17 : f32 to vector<128x512xf32>
    %23 = arith.maximumf %21, %22 : vector<128x512xf32>
    %24 = arith.truncf %23 : vector<128x512xf32> to vector<128x512xbf16>
    %c0_18 = arith.constant 0 : index
    %c0_19 = arith.constant 0 : index
    %25 = vector.load %arg8[%c0_18, %c0_19] : memref<512x512xbf16, #tpu.memory_space<vmem>>, vector<512x512xbf16>
    %cst_20 = arith.constant dense<0.000000e+00> : vector<128x512xf32>
    %26 = tpu.matmul %24, %25, %cst_20 {dimension_numbers = #tpu.dot_dimension_numbers<[1], [0], [0], [1], [0, 0, 1, 1], [], []>} : vector<128x512xbf16>, vector<512x512xbf16>, vector<128x512xf32> -> vector<128x512xf32>
    %c0_21 = arith.constant 0 : index
    %c0_22 = arith.constant 0 : index
    %27 = vector.load %arg9[%c0_21, %c0_22] : memref<1x512xf32, #tpu.memory_space<vmem>>, vector<1x512xf32>
    %28 = vector.broadcast %27 : vector<1x512xf32> to vector<128x512xf32>
    %29 = arith.addf %26, %28 : vector<128x512xf32>
    %cst_23 = arith.constant 0.000000e+00 : f32
    %30 = vector.broadcast %cst_23 : f32 to vector<128x512xf32>
    %31 = arith.maximumf %29, %30 : vector<128x512xf32>
    %32 = arith.truncf %31 : vector<128x512xf32> to vector<128x512xbf16>
    %c0_24 = arith.constant 0 : index
    %c0_25 = arith.constant 0 : index
    %33 = vector.load %arg10[%c0_24, %c0_25] : memref<512x128xbf16, #tpu.memory_space<vmem>>, vector<512x128xbf16>
    %cst_26 = arith.constant dense<0.000000e+00> : vector<128x128xf32>
    %34 = tpu.matmul %32, %33, %cst_26 {dimension_numbers = #tpu.dot_dimension_numbers<[1], [0], [0], [1], [0, 0, 1, 1], [], []>} : vector<128x512xbf16>, vector<512x128xbf16>, vector<128x128xf32> -> vector<128x128xf32>
    %c0_27 = arith.constant 0 : index
    %c0_28 = arith.constant 0 : index
    %35 = vector.load %arg11[%c0_27, %c0_28] : memref<1x128xf32, #tpu.memory_space<vmem>>, vector<1x128xf32>
    %36 = vector.broadcast %35 : vector<1x128xf32> to vector<128x128xf32>
    %37 = arith.addf %34, %36 : vector<128x128xf32>
    %c0_29 = arith.constant 0 : index
    %c0_30 = arith.constant 0 : index
    %38 = vector.load %arg12[%c0_29, %c0_30] : memref<128x128xf32, #tpu.memory_space<vmem>>, vector<128x128xf32>
    tpu.vector_store %arg12[%c0_29, %c0_30], %37 {strides = array<i32>} : memref<128x128xf32, #tpu.memory_space<vmem>>, vector<128x128xf32>,
    return
  }
  func.func @transform_0(%arg0: i32) -> (i32, i32) {
    %c0_i32 = arith.constant 0 : i32
    %c0_i32_0 = arith.constant 0 : i32
    return %arg0, %c0_i32 : i32, i32
  }
  func.func @transform_1(%arg0: i32) -> (i32, i32) {
    %c0_i32 = arith.constant 0 : i32
    %c0_i32_0 = arith.constant 0 : i32
    %c0_i32_1 = arith.constant 0 : i32
    return %c0_i32, %c0_i32_0 : i32, i32
  }
  func.func @transform_2(%arg0: i32) -> (i32, i32) {
    %c0_i32 = arith.constant 0 : i32
    %c0_i32_0 = arith.constant 0 : i32
    %c0_i32_1 = arith.constant 0 : i32
    return %c0_i32, %c0_i32_0 : i32, i32
  }
  func.func @transform_3(%arg0: i32) -> (i32, i32) {
    %c0_i32 = arith.constant 0 : i32
    %c0_i32_0 = arith.constant 0 : i32
    %c0_i32_1 = arith.constant 0 : i32
    return %c0_i32, %c0_i32_0 : i32, i32
  }
  func.func @transform_4(%arg0: i32) -> (i32, i32) {
    %c0_i32 = arith.constant 0 : i32
    %c0_i32_0 = arith.constant 0 : i32
    %c0_i32_1 = arith.constant 0 : i32
    return %c0_i32, %c0_i32_0 : i32, i32
  }
  func.func @transform_5(%arg0: i32) -> (i32, i32) {
    %c0_i32 = arith.constant 0 : i32
    %c0_i32_0 = arith.constant 0 : i32
    %c0_i32_1 = arith.constant 0 : i32
    return %c0_i32, %c0_i32_0 : i32, i32
  }
  func.func @transform_6(%arg0: i32) -> (i32, i32) {
    %c0_i32 = arith.constant 0 : i32
    %c0_i32_0 = arith.constant 0 : i32
    %c0_i32_1 = arith.constant 0 : i32
    return %c0_i32, %c0_i32_0 : i32, i32
  }
  func.func @transform_7(%arg0: i32) -> (i32, i32) {
    %c0_i32 = arith.constant 0 : i32
    %c0_i32_0 = arith.constant 0 : i32
    %c0_i32_1 = arith.constant 0 : i32
    return %c0_i32, %c0_i32_0 : i32, i32
  }
  func.func @transform_8(%arg0: i32) -> (i32, i32) {
    %c0_i32 = arith.constant 0 : i32
    %c0_i32_0 = arith.constant 0 : i32
    %c0_i32_1 = arith.constant 0 : i32
    return %c0_i32, %c0_i32_0 : i32, i32
  }
  func.func @transform_9(%arg0: i32) -> (i32, i32) {
    %c0_i32 = arith.constant 0 : i32
    %c0_i32_0 = arith.constant 0 : i32
    %c0_i32_1 = arith.constant 0 : i32
    return %c0_i32, %c0_i32_0 : i32, i32
  }
  func.func @transform_10(%arg0: i32) -> (i32, i32) {
    %c0_i32 = arith.constant 0 : i32
    %c0_i32_0 = arith.constant 0 : i32
    %c0_i32_1 = arith.constant 0 : i32
    return %c0_i32, %c0_i32_0 : i32, i32
  }
  func.func @transform_11(%arg0: i32) -> (i32, i32) {
    %c0_i32 = arith.constant 0 : i32
    %c0_i32_0 = arith.constant 0 : i32
    return %arg0, %c0_i32 : i32, i32
  }
}

module attributes {stable_mosaic.version = 11 : i64} {
  func.func @kernel(%arg0: i32, %arg1: memref<128x16xbf16, #tpu.memory_space<vmem>>, %arg2: memref<16x512xbf16, #tpu.memory_space<vmem>>, %arg3: memref<1x512xf32, #tpu.memory_space<vmem>>, %arg4: memref<512x512xbf16, #tpu.memory_space<vmem>>, %arg5: memref<1x512xf32, #tpu.memory_space<vmem>>, %arg6: memref<512x512xbf16, #tpu.memory_space<vmem>>, %arg7: memref<1x512xf32, #tpu.memory_space<vmem>>, %arg8: memref<512x512xbf16, #tpu.memory_space<vmem>>, %arg9: memref<1x512xf32, #tpu.memory_space<vmem>>, %arg10: memref<512x128xbf16, #tpu.memory_space<vmem>>, %arg11: memref<1x128xf32, #tpu.memory_space<vmem>>, %arg12: memref<128x128xf32, #tpu.memory_space<vmem>>) attributes {dimension_semantics = [#tpu.dimension_semantics<parallel>], iteration_bounds = array<i64: 1>, scalar_prefetch = 0 : i64, scratch_operands = 0 : i64, tpu.core_type = #tpu.core_type<tc>, window_params = [{transform_indices = @transform_0, window_bounds = array<i64: 128, 16>}, {pipeline_mode = #tpu.pipeline_mode<synchronous>, transform_indices = @transform_1, window_bounds = array<i64: 16, 512>}, {pipeline_mode = #tpu.pipeline_mode<synchronous>, transform_indices = @transform_2, window_bounds = array<i64: 1, 512>}, {pipeline_mode = #tpu.pipeline_mode<synchronous>, transform_indices = @transform_3, window_bounds = array<i64: 512, 512>}, {pipeline_mode = #tpu.pipeline_mode<synchronous>, transform_indices = @transform_4, window_bounds = array<i64: 1, 512>}, {pipeline_mode = #tpu.pipeline_mode<synchronous>, transform_indices = @transform_5, window_bounds = array<i64: 512, 512>}, {pipeline_mode = #tpu.pipeline_mode<synchronous>, transform_indices = @transform_6, window_bounds = array<i64: 1, 512>}, {pipeline_mode = #tpu.pipeline_mode<synchronous>, transform_indices = @transform_7, window_bounds = array<i64: 512, 512>}, {pipeline_mode = #tpu.pipeline_mode<synchronous>, transform_indices = @transform_8, window_bounds = array<i64: 1, 512>}, {pipeline_mode = #tpu.pipeline_mode<synchronous>, transform_indices = @transform_9, window_bounds = array<i64: 512, 128>}, {pipeline_mode = #tpu.pipeline_mode<synchronous>, transform_indices = @transform_10, window_bounds = array<i64: 1, 128>}, {transform_indices = @transform_11, window_bounds = array<i64: 128, 128>}]} {
    %c0 = arith.constant 0 : index
    %c0_0 = arith.constant 0 : index
    %0 = vector.load %arg1[%c0, %c0_0] : memref<128x16xbf16, #tpu.memory_space<vmem>>, vector<128x16xbf16>
    %c0_1 = arith.constant 0 : index
    %c0_2 = arith.constant 0 : index
    %1 = vector.load %arg2[%c0_1, %c0_2] : memref<16x512xbf16, #tpu.memory_space<vmem>>, vector<16x512xbf16>
    %cst = arith.constant dense<0.000000e+00> : vector<128x512xf32>
    %2 = tpu.matmul %0, %1, %cst {dimension_numbers = #tpu.dot_dimension_numbers<[1], [0], [0], [1], [0, 0, 1, 1], [], []>} : vector<128x16xbf16>, vector<16x512xbf16>, vector<128x512xf32> -> vector<128x512xf32>
    %c0_3 = arith.constant 0 : index
    %c0_4 = arith.constant 0 : index
    %3 = vector.load %arg3[%c0_3, %c0_4] : memref<1x512xf32, #tpu.memory_space<vmem>>, vector<1x512xf32>
    %4 = vector.broadcast %3 : vector<1x512xf32> to vector<128x512xf32>
    %5 = arith.addf %2, %4 : vector<128x512xf32>
    %cst_5 = arith.constant 0.000000e+00 : f32
    %6 = vector.broadcast %cst_5 : f32 to vector<128x512xf32>
    %7 = arith.maximumf %5, %6 : vector<128x512xf32>
    %8 = arith.truncf %7 : vector<128x512xf32> to vector<128x512xbf16>
    %c0_6 = arith.constant 0 : index
    %c0_7 = arith.constant 0 : index
    %9 = vector.load %arg4[%c0_6, %c0_7] : memref<512x512xbf16, #tpu.memory_space<vmem>>, vector<512x512xbf16>
    %cst_8 = arith.constant dense<0.000000e+00> : vector<128x512xf32>
    %10 = tpu.matmul %8, %9, %cst_8 {dimension_numbers = #tpu.dot_dimension_numbers<[1], [0], [0], [1], [0, 0, 1, 1], [], []>} : vector<128x512xbf16>, vector<512x512xbf16>, vector<128x512xf32> -> vector<128x512xf32>
    %c0_9 = arith.constant 0 : index
    %c0_10 = arith.constant 0 : index
    %11 = vector.load %arg5[%c0_9, %c0_10] : memref<1x512xf32, #tpu.memory_space<vmem>>, vector<1x512xf32>
    %12 = vector.broadcast %11 : vector<1x512xf32> to vector<128x512xf32>
    %13 = arith.addf %10, %12 : vector<128x512xf32>
    %cst_11 = arith.constant 0.000000e+00 : f32
    %14 = vector.broadcast %cst_11 : f32 to vector<128x512xf32>
    %15 = arith.maximumf %13, %14 : vector<128x512xf32>
    %16 = arith.truncf %15 : vector<128x512xf32> to vector<128x512xbf16>
    %c0_12 = arith.constant 0 : index
    %c0_13 = arith.constant 0 : index
    %17 = vector.load %arg6[%c0_12, %c0_13] : memref<512x512xbf16, #tpu.memory_space<vmem>>, vector<512x512xbf16>
    %cst_14 = arith.constant dense<0.000000e+00> : vector<128x512xf32>
    %18 = tpu.matmul %16, %17, %cst_14 {dimension_numbers = #tpu.dot_dimension_numbers<[1], [0], [0], [1], [0, 0, 1, 1], [], []>} : vector<128x512xbf16>, vector<512x512xbf16>, vector<128x512xf32> -> vector<128x512xf32>
    %c0_15 = arith.constant 0 : index
    %c0_16 = arith.constant 0 : index
    %19 = vector.load %arg7[%c0_15, %c0_16] : memref<1x512xf32, #tpu.memory_space<vmem>>, vector<1x512xf32>
    %20 = vector.broadcast %19 : vector<1x512xf32> to vector<128x512xf32>
    %21 = arith.addf %18, %20 : vector<128x512xf32>
    %cst_17 = arith.constant 0.000000e+00 : f32
    %22 = vector.broadcast %cst_17 : f32 to vector<128x512xf32>
    %23 = arith.maximumf %21, %22 : vector<128x512xf32>
    %24 = arith.truncf %23 : vector<128x512xf32> to vector<128x512xbf16>
    %c0_18 = arith.constant 0 : index
    %c0_19 = arith.constant 0 : index
    %25 = vector.load %arg8[%c0_18, %c0_19] : memref<512x512xbf16, #tpu.memory_space<vmem>>, vector<512x512xbf16>
    %cst_20 = arith.constant dense<0.000000e+00> : vector<128x512xf32>
    %26 = tpu.matmul %24, %25, %cst_20 {dimension_numbers = #tpu.dot_dimension_numbers<[1], [0], [0], [1], [0, 0, 1, 1], [], []>} : vector<128x512xbf16>, vector<512x512xbf16>, vector<128x512xf32> -> vector<128x512xf32>
    %c0_21 = arith.constant 0 : index
    %c0_22 = arith.constant 0 : index
    %27 = vector.load %arg9[%c0_21, %c0_22] : memref<1x512xf32, #tpu.memory_space<vmem>>, vector<1x512xf32>
    %28 = vector.broadcast %27 : vector<1x512xf32> to vector<128x512xf32>
    %29 = arith.addf %26, %28 : vector<128x512xf32>
    %cst_23 = arith.constant 0.000000e+00 : f32
    %30 = vector.broadcast %cst_23 : f32 to vector<128x512xf32>
    %31 = arith.maximumf %29, %30 : vector<128x512xf32>
    %32 = arith.truncf %31 : vector<128x512xf32> to vector<128x512xbf16>
    %c0_24 = arith.constant 0 : index
    %c0_25 = arith.constant 0 : index
    %33 = vector.load %arg10[%c0_24, %c0_25] : memref<512x128xbf16, #tpu.memory_space<vmem>>, vector<512x128xbf16>
    %cst_26 = arith.constant dense<0.000000e+00> : vector<128x128xf32>
    %34 = tpu.matmul %32, %33, %cst_26 {dimension_numbers = #tpu.dot_dimension_numbers<[1], [0], [0], [1], [0, 0, 1, 1], [], []>} : vector<128x512xbf16>, vector<512x128xbf16>, vector<128x128xf32> -> vector<128x128xf32>
    %c0_27 = arith.constant 0 : index
    %c0_28 = arith.constant 0 : index
    %35 = vector.load %arg11[%c0_27, %c0_28] : memref<1x128xf32, #tpu.memory_space<vmem>>, vector<1x128xf32>
    %36 = vector.broadcast %35 : vector<1x128xf32> to vector<128x128xf32>
    %37 = arith.addf %34, %36 : vector<128x128xf32>
    %c0_29 = arith.constant 0 : index
    %c0_30 = arith.constant 0 : index
    %38 = vector.load %arg12[%c0_29, %c0_30] : memref<128x128xf32, #tpu.memory_space<vmem>>, vector<128x128xf32>
    tpu.vector_store %arg12[%c0_29, %c0_30], %37 {strides = array<i32>} : memref<128x128xf32, #tpu.memory_space<vmem>>, vector<128x128xf32>,
    return
  }
  func.func @transform_0(%arg0: i32) -> (i32, i32) {
    %c0_i32 = arith.constant 0 : i32
    %c0_i32_0 = arith.constant 0 : i32
    return %arg0, %c0_i32 : i32, i32
  }
  func.func @transform_1(%arg0: i32) -> (i32, i32) {
    %c0_i32 = arith.constant 0 : i32
    %c0_i32_0 = arith.constant 0 : i32
    %c0_i32_1 = arith.constant 0 : i32
    return %c0_i32, %c0_i32_0 : i32, i32
  }
  func.func @transform_2(%arg0: i32) -> (i32, i32) {
    %c0_i32 = arith.constant 0 : i32
    %c0_i32_0 = arith.constant 0 : i32
    %c0_i32_1 = arith.constant 0 : i32
    return %c0_i32, %c0_i32_0 : i32, i32
  }
  func.func @transform_3(%arg0: i32) -> (i32, i32) {
    %c0_i32 = arith.constant 0 : i32
    %c0_i32_0 = arith.constant 0 : i32
    %c0_i32_1 = arith.constant 0 : i32
    return %c0_i32, %c0_i32_0 : i32, i32
  }
  func.func @transform_4(%arg0: i32) -> (i32, i32) {
    %c0_i32 = arith.constant 0 : i32
    %c0_i32_0 = arith.constant 0 : i32
    %c0_i32_1 = arith.constant 0 : i32
    return %c0_i32, %c0_i32_0 : i32, i32
  }
  func.func @transform_5(%arg0: i32) -> (i32, i32) {
    %c0_i32 = arith.constant 0 : i32
    %c0_i32_0 = arith.constant 0 : i32
    %c0_i32_1 = arith.constant 0 : i32
    return %c0_i32, %c0_i32_0 : i32, i32
  }
  func.func @transform_6(%arg0: i32) -> (i32, i32) {
    %c0_i32 = arith.constant 0 : i32
    %c0_i32_0 = arith.constant 0 : i32
    %c0_i32_1 = arith.constant 0 : i32
    return %c0_i32, %c0_i32_0 : i32, i32
  }
  func.func @transform_7(%arg0: i32) -> (i32, i32) {
    %c0_i32 = arith.constant 0 : i32
    %c0_i32_0 = arith.constant 0 : i32
    %c0_i32_1 = arith.constant 0 : i32
    return %c0_i32, %c0_i32_0 : i32, i32
  }
  func.func @transform_8(%arg0: i32) -> (i32, i32) {
    %c0_i32 = arith.constant 0 : i32
    %c0_i32_0 = arith.constant 0 : i32
    %c0_i32_1 = arith.constant 0 : i32
    return %c0_i32, %c0_i32_0 : i32, i32
  }
  func.func @transform_9(%arg0: i32) -> (i32, i32) {
    %c0_i32 = arith.constant 0 : i32
    %c0_i32_0 = arith.constant 0 : i32
    %c0_i32_1 = arith.constant 0 : i32
    return %c0_i32, %c0_i32_0 : i32, i32
  }
  func.func @transform_10(%arg0: i32) -> (i32, i32) {
    %c0_i32 = arith.constant 0 : i32
    %c0_i32_0 = arith.constant 0 : i32
    %c0_i32_1 = arith.constant 0 : i32
    return %c0_i32, %c0_i32_0 : i32, i32
  }
  func.func @transform_11(%arg0: i32) -> (i32, i32) {
    %c0_i32 = arith.constant 0 : i32
    %c0_i32_0 = arith.constant 0 : i32
    return %arg0, %c0_i32 : i32, i32
  }
}

</mosaic_0001>

<bundles_post_ra>
// kernel: tpu_custom_call.1
= control target key start
LH: loop header
LB: loop body
LE: loop exit
PB: predicated region body
PF: predicated region fallthrough
CT: control target
= control target key end

     0   :  { %16 = vsyncpa [#allocation3], 0  ;;  %s7558_s0 = inlined_call_operand.vmem [shape: bf16[128,16], index: 0, kind: input, shape index: {}]   ;;  %s7559_s1 = inlined_call_operand.vmem [shape: bf16[16,512], index: 1, kind: input, shape index: {}]   ;;  %s7560_s2 = inlined_call_operand.vmem [shape: f32[1,512], index: 2, kind: input, shape index: {}]   ;;  %s7561_s3 = inlined_call_operand.hbm [shape: bf16[512,512], index: 3, kind: input, shape index: {}]   ;;  %s7562_s4 = inlined_call_operand.vmem [shape: f32[1,512], index: 4, kind: input, shape index: {}]   ;;  %s7563_s5 = inlined_call_operand.hbm [shape: bf16[512,512], index: 5, kind: input, shape index: {}]   ;;  %s7564_s6 = inlined_call_operand.vmem [shape: f32[1,512], index: 6, kind: input, shape index: {}]   ;;  %s7565_s7 = inlined_call_operand.hbm [shape: bf16[512,512], index: 7, kind: input, shape index: {}]   ;;  %s7566_s8 = inlined_call_operand.vmem [shape: f32[1,512], index: 8, kind: input, shape index: {}]   ;;  %s7567_s9 = inlined_call_operand.hbm [shape: bf16[512,128], index: 9, kind: input, shape index: {}]   ;;  %s7568_s10 = inlined_call_operand.vmem [shape: f32[1,128], index: 10, kind: input, shape index: {}]   ;;  %s7569_s11 = inlined_call_operand.hbm [shape: f32[128,128], index: 11, kind: output, shape index: {}]  }
   0x1   :  { %17 = vsyncpa [#allocation6], 0 }
   0x2   :  { %18 = vsyncpa [#allocation9], 0 }
   0x3   :  { %19 = vsyncpa [#allocation4], 0  ;;  %s6365_s17 = smov [#allocation5]   ;;  %s6366_s19 = smov [#allocation2]  }
   0x4   :  { %s45_s18 = sshll.u32 %s6365_s17, 4  ;;  %s31_s20 = sshll.u32 %s6366_s19, 4  ;;  %s46_s18 = int_to_ptr.vmem [resolvable:$true] %s45_s18  ;;  %s32_s20 = int_to_ptr.vmem [resolvable:$true] %s31_s20 }
   0x5   :  { %s6265_s21 = scalar_lea.vmem %s46_s18, 16384  ;;  %p6270_p1 = scmp.lt.s32.totalorder %s46_s18, %s46_s18 }
   0x6   :  { %p6266_p0 = scmp.ne.s32.totalorder %s46_s18, %s6265_s21  ;;  %p6271_p2 = scmp.lt.s32.totalorder %s6265_s21, %s6265_s21 }
   0x8   :  { %p6272_p3 = por %p6271_p2, %p6270_p1 }
   0xa   :  { %p6273_p4 = pnand %p6272_p3, %p6266_p0 }
   0xc   :  { %6276 = shalt.err (!%p6273_p4)
}
   0xd   :  { %s6367_s22 = smov 256   ;;  %s6368_s23 = smov 16  }
   0xe   :  { %51 = dma.hbm_to_vmem [thread:$0]  %s7563_s5, 16384, %s46_s18, [#allocation6], %s6367_s22, %s6367_s22, %s6368_s23  }
   0xf   :  { %s6285_s26 = scalar_lea.vmem %s32_s20, 16384  ;;  %p6290_p6 = scmp.lt.s32.totalorder %s32_s20, %s32_s20 }
  0x10   :  { %p6286_p5 = scmp.ne.s32.totalorder %s32_s20, %s6285_s26  ;;  %p6291_p7 = scmp.lt.s32.totalorder %s6285_s26, %s6285_s26 }
  0x12   :  { %p6292_p8 = por %p6291_p7, %p6290_p6 }
  0x14   :  { %p6293_p9 = pnand %p6292_p8, %p6286_p5 }
  0x16   :  { %6296 = shalt.err (!%p6293_p9)
}
  0x17   :  { %37 = dma.hbm_to_vmem [thread:$0]  %s7561_s3, 16384, %s32_s20, [#allocation3], %s6367_s22, %s6367_s22, %s6368_s23  }
  0x18   :  { %s6369_s29 = smov [#allocation7]   ;;  %s6370_s12 = smov [#allocation8]  }
  0x19   :  { %s59_s30 = sshll.u32 %s6369_s29, 4  ;;  %s73_s13 = sshll.u32 %s6370_s12, 4  ;;  %s60_s30 = int_to_ptr.vmem [resolvable:$true] %s59_s30  ;;  %s74_s13 = int_to_ptr.vmem [resolvable:$true] %s73_s13 }
  0x1a   :  { %s6305_s14 = scalar_lea.vmem %s60_s30, 16384  ;;  %p6310_p11 = scmp.lt.s32.totalorder %s60_s30, %s60_s30 }
  0x1b   :  { %p6306_p10 = scmp.ne.s32.totalorder %s60_s30, %s6305_s14  ;;  %p6311_p12 = scmp.lt.s32.totalorder %s6305_s14, %s6305_s14 }
  0x1d   :  { %p6312_p13 = por %p6311_p12, %p6310_p11 }
  0x1f   :  { %p6313_p0 = pnand %p6312_p13, %p6306_p10 }
  0x21   :  { %6316 = shalt.err (!%p6313_p0)
}
  0x22   :  { %65 = dma.hbm_to_vmem [thread:$0]  %s7565_s7, 16384, %s60_s30, [#allocation6], %s6367_s22, %s6367_s22, %s6368_s23  }
  0x23   :  { %s6325_s16 = scalar_lea.vmem %s74_s13, 4096  ;;  %p6330_p2 = scmp.lt.s32.totalorder %s74_s13, %s74_s13 }
  0x24   :  { %p6326_p1 = scmp.ne.s32.totalorder %s74_s13, %s6325_s16  ;;  %p6331_p3 = scmp.lt.s32.totalorder %s6325_s16, %s6325_s16 }
  0x26   :  { %p6332_p4 = por %p6331_p3, %p6330_p2 }
  0x28   :  { %p6333_p5 = pnand %p6332_p4, %p6326_p1 }
  0x2a   :  { %6336 = shalt.err (!%p6333_p5)
}
  0x2b   :  { %s6371_s3 = smov 64   ;;  %s6372_s17 = smov 4  }
  0x2c   :  { %79 = dma.hbm_to_vmem [thread:$0]  %s7567_s9, 4096, %s74_s13, [#allocation9], %s6371_s3, %s6371_s3, %s6372_s17  }
  0x2d   :  { %6357 = dma.done.wait [#allocation3], 16384  }
  0x2e   :  { %6358 = vsyncadd [#allocation3], 4294950912 }
  0x2f   :  { %6359 = dma.done.wait [#allocation6], 32768  }
  0x30   :  { %6360 = vsyncadd [#allocation6], 4294934528 }
  0x31   :  { %6361 = dma.done.wait [#allocation9], 4096  }
  0x32   :  { %6362 = vsyncadd [#allocation9], 4294963200  ;;  %v6373_v0 = vmov 0   ;;  %v5635_v1 = vld [vmem:[%s7559_s1 + $0x4] ss:$16 sps:$4 sm:$0xff]   ;;  %vm197_vm0 = vcmask 130048  }
  0x33   :  { %254 = vmatprep.mubr.bf16.mxu0 %v6373_v0  ;;  %367 = vmatprep.mubr.bf16.mxu1 %v6373_v0  ;;  %v5637_v2 = vld [vmem:[%s7559_s1 + $0xc] ss:$16 sps:$4 sm:$0xff]   ;;  %v5639_v3 = vld [vmem:[%s7559_s1] ss:$16 sps:$4 sm:$0xff]   ;;  %v5640_v4 = vld [vmem:[%s7559_s1 + $0x8] ss:$16 sps:$4 sm:$0xff]  }
  0x34   :  { %236 = vmatprep.subr.bf16.mxu0 %v5635_v1  ;;  %349 = vmatprep.subr.bf16.mxu1 %v5637_v2  ;;  %v5641_v5 = vld [vmem:[%s7558_s0] sm:$0xff]   ;;  %v5642_v6 = vld [vmem:[%s7558_s0 + $0x8] sm:$0xff]   ;;  %v5643_v17 = vld [vmem:[%s7558_s0 + $0x10] sm:$0xff]  }
  0x35   :  { %237 = vmatpush1.bf16.msra.mxu0 %v5639_v3  ;;  %350 = vmatpush1.bf16.msra.mxu1 %v5640_v4  ;;  %v5649_v7 = vld [vmem:[#allocation2 + $0xe0] ss:$16 sps:$4 sm:$0xff]   ;;  %v5651_v8 = vld [vmem:[#allocation2 + $0xe4] ss:$16 sps:$4 sm:$0xff]   ;;  %v5644_v26 = vld [vmem:[%s7558_s0 + $0x18] sm:$0xff]  }
  0x36   :  { %v5652_v9 = vld [vmem:[#allocation2 + $0x2e0] ss:$16 sps:$4 sm:$0xff]   ;;  %1334 = vmatprep.subr.bf16.mxu0 %v5651_v8  ;;  %v5654_v10 = vld [vmem:[#allocation2 + $0x2e4] ss:$16 sps:$4 sm:$0xff]   ;;  %v5646_v44 = vld [vmem:[%s7558_s0 + $0x28] sm:$0xff]  }
  0x37   :  { %v5655_v11 = vld [vmem:[#allocation2 + $0xc0] ss:$16 sps:$4 sm:$0xff]   ;;  %v5657_v12 = vld [vmem:[#allocation2 + $0xc4] ss:$16 sps:$4 sm:$0xff]   ;;  %1447 = vmatprep.subr.bf16.mxu1 %v5654_v10  ;;  %v5648_v62 = vld [vmem:[%s7558_s0 + $0x38] sm:$0xff]  }
  0x38   :  { %5062 = vmatmul.mubr.msk.bf16.vlgmr.msra.gmra.mxu0 %vm197_vm0, %v5641_v5  ;;  %5070 = vmatmul.mubr.msk.bf16.vlgmr.msra.gmra.mxu1 %vm197_vm0, %v5641_v5  ;;  %v5660_v13 = vld [vmem:[#allocation2 + $0x2c4] ss:$16 sps:$4 sm:$0xff]   ;;  %v5658_v15 = vld [vmem:[#allocation2 + $0x2c0] ss:$16 sps:$4 sm:$0xff]  }
  0x39   :  { %264 = vmatprep.mubr.bf16.mxu0 %v6373_v0  ;;  %377 = vmatprep.mubr.bf16.mxu1 %v6373_v0  ;;  %v5663_v14 = vld [vmem:[#allocation2 + $0xa4] ss:$16 sps:$4 sm:$0xff]   ;;  %v5661_v16 = vld [vmem:[#allocation2 + $0xa0] ss:$16 sps:$4 sm:$0xff]  }
  0x3a   :  { %1335 = vmatpush1.bf16.msra.mxu0 %v5649_v7  ;;  %1448 = vmatpush1.bf16.msra.mxu1 %v5652_v9  ;;  %v5666_v18 = vld [vmem:[#allocation2 + $0x2a4] ss:$16 sps:$4 sm:$0xff]   ;;  %v5664_v20 = vld [vmem:[#allocation2 + $0x2a0] ss:$16 sps:$4 sm:$0xff]  }
  0x3b   :  { %1336 = vmatprep.subr.bf16.mxu0 %v5657_v12  ;;  %1449 = vmatprep.subr.bf16.mxu1 %v5660_v13  ;;  %v5669_v19 = vld [vmem:[#allocation2 + $0x84] ss:$16 sps:$4 sm:$0xff]   ;;  %v5667_v21 = vld [vmem:[#allocation2 + $0x80] ss:$16 sps:$4 sm:$0xff]   ;;  %v5747_v13 = vld [vmem:[#allocation2 + $0xec] ss:$16 sps:$4 sm:$0xff]  }
  0x3c   :  { %v5672_v22 = vld [vmem:[#allocation2 + $0x284] ss:$16 sps:$4 sm:$0xff]   ;;  %v5670_v24 = vld [vmem:[#allocation2 + $0x280] ss:$16 sps:$4 sm:$0xff]  }
  0x3d   :  { %v5675_v23 = vld [vmem:[#allocation2 + $0x64] ss:$16 sps:$4 sm:$0xff]   ;;  %v5673_v25 = vld [vmem:[#allocation2 + $0x60] ss:$16 sps:$4 sm:$0xff]  }
  0x3e   :  { %1337 = vmatpush1.bf16.msra.mxu0 %v5655_v11  ;;  %1450 = vmatpush1.bf16.msra.mxu1 %v5658_v15  ;;  %v5678_v27 = vld [vmem:[#allocation2 + $0x264] ss:$16 sps:$4 sm:$0xff]   ;;  %v5676_v29 = vld [vmem:[#allocation2 + $0x260] ss:$16 sps:$4 sm:$0xff]   ;;  %v117_v15 = vlaneseq }
  0x3f   :  { %1338 = vmatprep.subr.bf16.mxu0 %v5663_v14  ;;  %1451 = vmatprep.subr.bf16.mxu1 %v5666_v18  ;;  %v5681_v28 = vld [vmem:[#allocation2 + $0x44] ss:$16 sps:$4 sm:$0xff]   ;;  %v5679_v30 = vld [vmem:[#allocation2 + $0x40] ss:$16 sps:$4 sm:$0xff]   ;;  %v5750_v14 = vld [vmem:[#allocation2 + $0x2ec] ss:$16 sps:$4 sm:$0xff]  }
  0x40   :  { %5063 = vmatmul.mubr.msk.bf16.gmra.mxu0 %vm197_vm0, %v5642_v6  ;;  %5071 = vmatmul.mubr.msk.bf16.gmra.mxu1 %vm197_vm0, %v5642_v6  ;;  %v5684_v31 = vld [vmem:[#allocation2 + $0x244] ss:$16 sps:$4 sm:$0xff]   ;;  %v5682_v33 = vld [vmem:[#allocation2 + $0x240] ss:$16 sps:$4 sm:$0xff]  }
  0x41   :  { %274 = vmatprep.mubr.bf16.mxu0 %v6373_v0  ;;  %387 = vmatprep.mubr.bf16.mxu1 %v6373_v0  ;;  %v5687_v32 = vld [vmem:[#allocation2 + $0x24] ss:$16 sps:$4 sm:$0xff]   ;;  %v5685_v34 = vld [vmem:[#allocation2 + $0x20] ss:$16 sps:$4 sm:$0xff]  }
  0x42   :  { %1339 = vmatpush1.bf16.msra.mxu0 %v5661_v16  ;;  %1452 = vmatpush1.bf16.msra.mxu1 %v5664_v20  ;;  %v5645_v35 = vld [vmem:[%s7558_s0 + $0x20] sm:$0xff]   ;;  %v5647_v53 = vld [vmem:[%s7558_s0 + $0x30] sm:$0xff]   ;;  %v118_v16 = vshrl.u32 %v117_v15, 7 }
  0x43   :  { %1340 = vmatprep.subr.bf16.mxu0 %v5669_v19  ;;  %1453 = vmatprep.subr.bf16.mxu1 %v5672_v22  ;;  %v5690_v36 = vld [vmem:[#allocation2 + $0x224] ss:$16 sps:$4 sm:$0xff]   ;;  %v5688_v38 = vld [vmem:[#allocation2 + $0x220] ss:$16 sps:$4 sm:$0xff]  }
  0x44   :  { %v5693_v37 = vld [vmem:[#allocation2 + $0x4] ss:$16 sps:$4 sm:$0xff]   ;;  %v5691_v39 = vld [vmem:[#allocation2] ss:$16 sps:$4 sm:$0xff]   ;;  %v6519_v18 = vsub.s32 2, %v118_v16  ;;  %v6521_v19 = vsub.s32 1, %v118_v16 }
  0x45   :  { %v5696_v40 = vld [vmem:[#allocation2 + $0x204] ss:$16 sps:$4 sm:$0xff]   ;;  %v5694_v42 = vld [vmem:[#allocation2 + $0x200] ss:$16 sps:$4 sm:$0xff]   ;;  %v6523_v20 = vsub.s32 3, %v118_v16 }
  0x46   :  { %1341 = vmatpush1.bf16.msra.mxu0 %v5667_v21  ;;  %1454 = vmatpush1.bf16.msra.mxu1 %v5670_v24  ;;  %v5699_v41 = vld [vmem:[#allocation2 + $0x1e4] ss:$16 sps:$4 sm:$0xff]   ;;  %v5697_v43 = vld [vmem:[#allocation2 + $0x1e0] ss:$16 sps:$4 sm:$0xff]  }
  0x47   :  { %1342 = vmatprep.subr.bf16.mxu0 %v5675_v23  ;;  %1455 = vmatprep.subr.bf16.mxu1 %v5678_v27  ;;  %v5702_v45 = vld [vmem:[#allocation2 + $0x3e4] ss:$16 sps:$4 sm:$0xff]   ;;  %v5700_v46 = vld [vmem:[#allocation2 + $0x3e0] ss:$16 sps:$4 sm:$0xff]  }
  0x48   :  { %5064 = vmatmul.mubr.msk.bf16.gmra.mxu0 %vm197_vm0, %v5643_v17  ;;  %5072 = vmatmul.mubr.msk.bf16.gmra.mxu1 %vm197_vm0, %v5643_v17  ;;  %v5703_v47 = vld [vmem:[#allocation2 + $0x1c0] ss:$16 sps:$4 sm:$0xff]   ;;  %v5705_v48 = vld [vmem:[#allocation2 + $0x1c4] ss:$16 sps:$4 sm:$0xff]   ;;  %v6517_v17 = vsub.s32 0, %v118_v16 }
  0x49   :  { %284 = vmatprep.mubr.bf16.mxu0 %v6373_v0  ;;  %397 = vmatprep.mubr.bf16.mxu1 %v6373_v0  ;;  %v5708_v49 = vld [vmem:[#allocation2 + $0x3c4] ss:$16 sps:$4 sm:$0xff]   ;;  %v5706_v51 = vld [vmem:[#allocation2 + $0x3c0] ss:$16 sps:$4 sm:$0xff]   ;;  %v5759_v16 = vld [vmem:[#allocation2 + $0xac] ss:$16 sps:$4 sm:$0xff]  }
  0x4a   :  { %1343 = vmatpush1.bf16.msra.mxu0 %v5673_v25  ;;  %1456 = vmatpush1.bf16.msra.mxu1 %v5676_v29  ;;  %v5711_v50 = vld [vmem:[#allocation2 + $0x1a4] ss:$16 sps:$4 sm:$0xff]   ;;  %v5709_v52 = vld [vmem:[#allocation2 + $0x1a0] ss:$16 sps:$4 sm:$0xff]  }
  0x4b   :  { %1344 = vmatprep.subr.bf16.mxu0 %v5681_v28  ;;  %1457 = vmatprep.subr.bf16.mxu1 %v5684_v31  ;;  %v5714_v54 = vld [vmem:[#allocation2 + $0x3a4] ss:$16 sps:$4 sm:$0xff]   ;;  %v5712_v56 = vld [vmem:[#allocation2 + $0x3a0] ss:$16 sps:$4 sm:$0xff]  }
  0x4c   :  { %v5717_v55 = vld [vmem:[#allocation2 + $0x184] ss:$16 sps:$4 sm:$0xff]   ;;  %v5715_v57 = vld [vmem:[#allocation2 + $0x180] ss:$16 sps:$4 sm:$0xff]  }
  0x4d   :  { %v5720_v58 = vld [vmem:[#allocation2 + $0x384] ss:$16 sps:$4 sm:$0xff]   ;;  %v5718_v60 = vld [vmem:[#allocation2 + $0x380] ss:$16 sps:$4 sm:$0xff]  }
  0x4e   :  { %1345 = vmatpush1.bf16.msra.mxu0 %v5679_v30  ;;  %1458 = vmatpush1.bf16.msra.mxu1 %v5682_v33  ;;  %v5723_v59 = vld [vmem:[#allocation2 + $0x164] ss:$16 sps:$4 sm:$0xff]   ;;  %v5721_v61 = vld [vmem:[#allocation2 + $0x160] ss:$16 sps:$4 sm:$0xff]  }
  0x4f   :  { %1346 = vmatprep.subr.bf16.mxu0 %v5687_v32  ;;  %1459 = vmatprep.subr.bf16.mxu1 %v5690_v36  ;;  %v5726_v63 = vld [vmem:[#allocation2 + $0x364] ss:$16 sps:$4 sm:$0xff]   ;;  %v5724_v1 = vld [vmem:[#allocation2 + $0x360] ss:$16 sps:$4 sm:$0xff]  }
  0x50   :  { %5065 = vmatmul.mubr.msk.bf16.gmra.mxu0 %vm197_vm0, %v5644_v26  ;;  %5073 = vmatmul.mubr.msk.bf16.gmra.mxu1 %vm197_vm0, %v5644_v26  ;;  %v5732_v2 = vld [vmem:[#allocation2 + $0x344] ss:$16 sps:$4 sm:$0xff]   ;;  %v5727_v3 = vld [vmem:[#allocation2 + $0x140] ss:$16 sps:$4 sm:$0xff]  }
  0x51   :  { %294 = vmatprep.mubr.bf16.mxu0 %v6373_v0  ;;  %407 = vmatprep.mubr.bf16.mxu1 %v6373_v0  ;;  %v5730_v4 = vld [vmem:[#allocation2 + $0x340] ss:$16 sps:$4 sm:$0xff]   ;;  %v5735_v5 = vld [vmem:[#allocation2 + $0x124] ss:$16 sps:$4 sm:$0xff]  }
  0x52   :  { %1347 = vmatpush1.bf16.msra.mxu0 %v5685_v34  ;;  %1460 = vmatpush1.bf16.msra.mxu1 %v5688_v38  ;;  %v5738_v6 = vld [vmem:[#allocation2 + $0x324] ss:$16 sps:$4 sm:$0xff]   ;;  %v5733_v7 = vld [vmem:[#allocation2 + $0x120] ss:$16 sps:$4 sm:$0xff]  }
  0x53   :  { %1348 = vmatprep.subr.bf16.mxu0 %v5693_v37  ;;  %1461 = vmatprep.subr.bf16.mxu1 %v5696_v40  ;;  %v5736_v8 = vld [vmem:[#allocation2 + $0x320] ss:$16 sps:$4 sm:$0xff]   ;;  %v5741_v9 = vld [vmem:[#allocation2 + $0x104] ss:$16 sps:$4 sm:$0xff]  }
  0x54   :  { %v5744_v10 = vld [vmem:[#allocation2 + $0x304] ss:$16 sps:$4 sm:$0xff]   ;;  %v5739_v11 = vld [vmem:[#allocation2 + $0x100] ss:$16 sps:$4 sm:$0xff]  }
  0x55   :  { %v5742_v12 = vld [vmem:[#allocation2 + $0x300] ss:$16 sps:$4 sm:$0xff]  }
  0x56   :  { %1349 = vmatpush1.bf16.msra.mxu0 %v5691_v39  ;;  %1462 = vmatpush1.bf16.msra.mxu1 %v5694_v42  ;;  %v115_v21 = vld [vmem:[%s7560_s2] sm:$0xf] }
  0x57   :  { %1350 = vmatprep.subr.bf16.mxu0 %v5699_v41  ;;  %1463 = vmatprep.subr.bf16.mxu1 %v5702_v45  ;;  %v6529_v24 = vrot.slane %v115_v21, %v6521_v19  ;;  %v6532_v25 = vrot.slane %v115_v21, %v6523_v20  ;;  %v6535_v26 = vrot.slane %v115_v21, %v6517_v17 }
  0x58   :  { %5066 = vmatmul.mubr.msk.bf16.gmra.mxu0 %vm197_vm0, %v5645_v35  ;;  %5074 = vmatmul.mubr.msk.bf16.gmra.mxu1 %vm197_vm0, %v5645_v35  ;;  %v6538_v27 = vrot.slane %v115_v21, %v6519_v18  ;;  %v5762_v21 = vld [vmem:[#allocation2 + $0x2ac] ss:$16 sps:$4 sm:$0xff]  }
  0x59   :  { %304 = vmatprep.mubr.bf16.mxu0 %v6373_v0  ;;  %417 = vmatprep.mubr.bf16.mxu1 %v6373_v0 }
  0x5a   :  { %1351 = vmatpush2.bf16.msra.mxu0 %v5697_v43  ;;  %1464 = vmatpush2.bf16.msra.mxu1 %v5700_v46 }
  0x5b   :  { %1352 = vmatprep.subr.bf16.mxu0 %v5705_v48  ;;  %1465 = vmatprep.subr.bf16.mxu1 %v5708_v49 }
  0x5e   :  { %1353 = vmatpush2.bf16.msra.mxu0 %v5703_v47  ;;  %1466 = vmatpush2.bf16.msra.mxu1 %v5706_v51 }
  0x5f   :  { %1354 = vmatprep.subr.bf16.mxu0 %v5711_v50  ;;  %1467 = vmatprep.subr.bf16.mxu1 %v5714_v54 }
  0x60   :  { %5067 = vmatmul.mubr.msk.bf16.gmra.mxu0 %vm197_vm0, %v5646_v44  ;;  %5075 = vmatmul.mubr.msk.bf16.gmra.mxu1 %vm197_vm0, %v5646_v44 }
  0x61   :  { %314 = vmatprep.mubr.bf16.mxu0 %v6373_v0  ;;  %427 = vmatprep.mubr.bf16.mxu1 %v6373_v0 }
  0x62   :  { %1355 = vmatpush2.bf16.msra.mxu0 %v5709_v52  ;;  %1468 = vmatpush2.bf16.msra.mxu1 %v5712_v56  ;;  %v5745_v56 = vld [vmem:[#allocation2 + $0xe8] ss:$16 sps:$4 sm:$0xff]  }
  0x63   :  { %1356 = vmatprep.subr.bf16.mxu0 %v5717_v55  ;;  %1469 = vmatprep.subr.bf16.mxu1 %v5720_v58 }
  0x66   :  { %1357 = vmatpush2.bf16.msra.mxu0 %v5715_v57  ;;  %1470 = vmatpush2.bf16.msra.mxu1 %v5718_v60  ;;  %v5748_v57 = vld [vmem:[#allocation2 + $0x2e8] ss:$16 sps:$4 sm:$0xff]  }
  0x67   :  { %1358 = vmatprep.subr.bf16.mxu0 %v5723_v59  ;;  %1471 = vmatprep.subr.bf16.mxu1 %v5726_v63  ;;  %v5756_v63 = vld [vmem:[#allocation2 + $0x2cc] ss:$16 sps:$4 sm:$0xff]  }
  0x68   :  { %5068 = vmatmul.mubr.msk.bf16.gmra.mxu0 %vm197_vm0, %v5647_v53  ;;  %5076 = vmatmul.mubr.msk.bf16.gmra.mxu1 %vm197_vm0, %v5647_v53 }
  0x69   :  { %324 = vmatprep.mubr.bf16.mxu0 %v6373_v0  ;;  %437 = vmatprep.mubr.bf16.mxu1 %v6373_v0  ;;  %v5729_v0 = vld [vmem:[#allocation2 + $0x144] ss:$16 sps:$4 sm:$0xff]  }
  0x6a   :  { %1359 = vmatpush2.bf16.msra.mxu0 %v5721_v61  ;;  %1472 = vmatpush2.bf16.msra.mxu1 %v5724_v1 }
  0x6b   :  { %1360 = vmatprep.subr.bf16.mxu0 %v5729_v0  ;;  %1473 = vmatprep.subr.bf16.mxu1 %v5732_v2 }
  0x6e   :  { %1361 = vmatpush2.bf16.msra.mxu0 %v5727_v3  ;;  %1474 = vmatpush2.bf16.msra.mxu1 %v5730_v4 }
  0x6f   :  { %1362 = vmatprep.subr.bf16.mxu0 %v5735_v5  ;;  %1475 = vmatprep.subr.bf16.mxu1 %v5738_v6 }
  0x70   :  { %5069 = vmatmul.mubr.msk.bf16.gmra.mxu0 %vm197_vm0, %v5648_v62  ;;  %5077 = vmatmul.mubr.msk.bf16.gmra.mxu1 %vm197_vm0, %v5648_v62  ;;  %v5753_v62 = vld [vmem:[#allocation2 + $0xcc] ss:$16 sps:$4 sm:$0xff]  }
  0x72   :  { %1363 = vmatpush2.bf16.msra.mxu0 %v5733_v7  ;;  %1476 = vmatpush2.bf16.msra.mxu1 %v5736_v8 }
  0x73   :  { %1364 = vmatprep.subr.bf16.mxu0 %v5741_v9  ;;  %1477 = vmatprep.subr.bf16.mxu1 %v5744_v10  ;;  %v5751_v10 = vld [vmem:[#allocation2 + $0xc8] ss:$16 sps:$4 sm:$0xff]  }
  0x76   :  { %1365 = vmatpush2.bf16.msra.mxu0 %v5739_v11  ;;  %1478 = vmatpush2.bf16.msra.mxu1 %v5742_v12  ;;  %v5754_v11 = vld [vmem:[#allocation2 + $0x2c8] ss:$16 sps:$4 sm:$0xff]  }
  0x77   :  { %1560 = vmatprep.subr.bf16.mxu0 %v5747_v13  ;;  %1673 = vmatprep.subr.bf16.mxu1 %v5750_v14 }
  0xf8   :  { %v256_v22 = vpop.f32.mrf.mxu0  ;;  %v369_v23 = vpop.f32.mrf.mxu1 }
  0xf9   :  { %v257_v36 = vadd.f32 %v256_v22, %v6535_v26  ;;  %v370_v37 = vadd.f32 %v369_v23, %v6538_v27 }
  0xfa   :  { %v258_v28 = vpop.f32.mrf.mxu0  ;;  %v371_v29 = vpop.f32.mrf.mxu1 }
  0xfb   :  { %v259_v32 = vadd.f32 %v258_v28, %v6529_v24  ;;  %v372_v33 = vadd.f32 %v371_v29, %v6532_v25  ;;  %v448_v50 = vmax.f32 %v257_v36, 0.0  ;;  %v450_v51 = vmax.f32 %v370_v37, 0.0 }
  0xfc   :  { %v260_v30 = vpop.f32.mrf.mxu0  ;;  %v373_v31 = vpop.f32.mrf.mxu1 }
  0xfd   :  { %v261_v34 = vadd.f32 %v260_v30, %v6535_v26  ;;  %v374_v35 = vadd.f32 %v373_v31, %v6538_v27  ;;  %v449_v46 = vmax.f32 %v259_v32, 0.0  ;;  %v451_v47 = vmax.f32 %v372_v33, 0.0 }
  0xfe   :  { %v262_v38 = vpop.f32.mrf.mxu0  ;;  %v375_v39 = vpop.f32.mrf.mxu1 }
  0xff   :  { %v263_v40 = vadd.f32 %v262_v38, %v6529_v24  ;;  %v376_v41 = vadd.f32 %v375_v39, %v6532_v25  ;;  %v452_v42 = vmax.f32 %v261_v34, 0.0  ;;  %v454_v43 = vmax.f32 %v374_v35, 0.0  ;;  %v5757_v35 = vld [vmem:[#allocation2 + $0xa8] ss:$16 sps:$4 sm:$0xff]  }
 0x100   :  { %v266_v44 = vpop.f32.mrf.mxu0  ;;  %v379_v45 = vpop.f32.mrf.mxu1 }
 0x101   :  { %v453_v48 = vmax.f32 %v263_v40, 0.0  ;;  %v455_v49 = vmax.f32 %v376_v41, 0.0  ;;  %v6552_v58 = vpack.c.bf16 %v452_v42, %v448_v50  ;;  %v6554_v59 = vpack.c.bf16 %v454_v43, %v450_v51  ;;  %v5760_v41 = vld [vmem:[#allocation2 + $0x2a8] ss:$16 sps:$4 sm:$0xff]   ;;  %v5765_v42 = vld [vmem:[#allocation2 + $0x8c] ss:$16 sps:$4 sm:$0xff]  }
 0x102   :  { %v268_v52 = vpop.f32.mrf.mxu0  ;;  %v381_v53 = vpop.f32.mrf.mxu1  ;;  %v267_v3 = vadd.f32 %v266_v44, %v6535_v26  ;;  %v380_v4 = vadd.f32 %v379_v45, %v6538_v27 }
 0x103   :  { %v6548_v54 = vpack.c.bf16 %v453_v48, %v449_v46  ;;  %v6550_v55 = vpack.c.bf16 %v455_v49, %v451_v47  ;;  %v269_v1 = vadd.f32 %v268_v52, %v6529_v24  ;;  %v382_v5 = vadd.f32 %v381_v53, %v6532_v25  ;;  %v5768_v47 = vld [vmem:[#allocation2 + $0x28c] ss:$16 sps:$4 sm:$0xff]  }
 0x104   :  { %v270_v60 = vpop.f32.mrf.mxu0  ;;  %v383_v61 = vpop.f32.mrf.mxu1  ;;  %v456_v29 = vmax.f32 %v267_v3, 0.0  ;;  %v458_v30 = vmax.f32 %v380_v4, 0.0 }
 0x105   :  { %v271_v0 = vadd.f32 %v270_v60, %v6535_v26  ;;  %v384_v2 = vadd.f32 %v383_v61, %v6538_v27  ;;  %1366 = vmatprep.mubr.bf16.mxu0 %v6548_v54  ;;  %1479 = vmatprep.mubr.bf16.mxu1 %v6550_v55  ;;  %v457_v22 = vmax.f32 %v269_v1, 0.0  ;;  %v459_v31 = vmax.f32 %v382_v5, 0.0  ;;  %v5771_v1 = vld [vmem:[#allocation2 + $0x6c] ss:$16 sps:$4 sm:$0xff]  }
 0x106   :  { %v272_v6 = vpop.f32.mrf.mxu0  ;;  %v385_v7 = vpop.f32.mrf.mxu1  ;;  %1367 = vmatmul.mubr.bf16.vlgmr.msra.gmra.mxu0 %v6552_v58  ;;  %1480 = vmatmul.mubr.bf16.vlgmr.msra.gmra.mxu1 %v6554_v59 }
 0x107   :  { %v273_v8 = vadd.f32 %v272_v6, %v6529_v24  ;;  %v386_v9 = vadd.f32 %v385_v7, %v6532_v25  ;;  %1561 = vmatpush1.bf16.msra.mxu0 %v5745_v56  ;;  %1674 = vmatpush1.bf16.msra.mxu1 %v5748_v57  ;;  %v460_v12 = vmax.f32 %v271_v0, 0.0  ;;  %v462_v13 = vmax.f32 %v384_v2, 0.0  ;;  %v5763_v56 = vld [vmem:[#allocation2 + $0x88] ss:$16 sps:$4 sm:$0xff]  }
 0x108   :  { %v276_v14 = vpop.f32.mrf.mxu0  ;;  %v389_v15 = vpop.f32.mrf.mxu1  ;;  %1562 = vmatprep.subr.bf16.mxu0 %v5753_v62  ;;  %1675 = vmatprep.subr.bf16.mxu1 %v5756_v63  ;;  %v5766_v63 = vld [vmem:[#allocation2 + $0x288] ss:$16 sps:$4 sm:$0xff]  }
 0x109   :  { %v461_v23 = vmax.f32 %v273_v8, 0.0  ;;  %v463_v28 = vmax.f32 %v386_v9, 0.0  ;;  %v6570_v36 = vpack.c.bf16 %v460_v12, %v456_v29  ;;  %v6572_v37 = vpack.c.bf16 %v462_v13, %v458_v30  ;;  %v5774_v9 = vld [vmem:[#allocation2 + $0x26c] ss:$16 sps:$4 sm:$0xff]   ;;  %v5769_v12 = vld [vmem:[#allocation2 + $0x68] ss:$16 sps:$4 sm:$0xff]  }
 0x10a   :  { %v278_v32 = vpop.f32.mrf.mxu0  ;;  %v391_v33 = vpop.f32.mrf.mxu1  ;;  %v277_v48 = vadd.f32 %v276_v14, %v6535_v26  ;;  %v390_v49 = vadd.f32 %v389_v15, %v6538_v27 }
 0x10b   :  { %1563 = vmatpush1.bf16.msra.mxu0 %v5751_v10  ;;  %1676 = vmatpush1.bf16.msra.mxu1 %v5754_v11  ;;  %v6568_v34 = vpack.c.bf16 %v461_v23, %v457_v22  ;;  %v6574_v40 = vpack.c.bf16 %v463_v28, %v459_v31  ;;  %v279_v43 = vadd.f32 %v278_v32, %v6529_v24  ;;  %v5772_v22 = vld [vmem:[#allocation2 + $0x268] ss:$16 sps:$4 sm:$0xff]   ;;  %v5777_v23 = vld [vmem:[#allocation2 + $0x4c] ss:$16 sps:$4 sm:$0xff]  }
 0x10c   :  { %v280_v38 = vpop.f32.mrf.mxu0  ;;  %v393_v39 = vpop.f32.mrf.mxu1  ;;  %1564 = vmatprep.subr.bf16.mxu0 %v5759_v16  ;;  %1677 = vmatprep.subr.bf16.mxu1 %v5762_v21  ;;  %v392_v44 = vadd.f32 %v391_v33, %v6532_v25  ;;  %v464_v5 = vmax.f32 %v277_v48, 0.0  ;;  %v466_v6 = vmax.f32 %v390_v49, 0.0  ;;  %v5780_v31 = vld [vmem:[#allocation2 + $0x24c] ss:$16 sps:$4 sm:$0xff]  }
 0x10d   :  { %v281_v45 = vadd.f32 %v280_v38, %v6535_v26  ;;  %v394_v46 = vadd.f32 %v393_v39, %v6538_v27  ;;  %1376 = vmatprep.mubr.bf16.mxu0 %v6568_v34  ;;  %1489 = vmatprep.mubr.bf16.mxu1 %v6574_v40  ;;  %v465_v0 = vmax.f32 %v279_v43, 0.0  ;;  %v5783_v48 = vld [vmem:[#allocation2 + $0x2c] ss:$16 sps:$4 sm:$0xff]  }
 0x10e   :  { %v282_v50 = vpop.f32.mrf.mxu0  ;;  %v395_v51 = vpop.f32.mrf.mxu1  ;;  %1377 = vmatmul.mubr.bf16.gmra.mxu0 %v6570_v36  ;;  %1490 = vmatmul.mubr.bf16.gmra.mxu1 %v6572_v37  ;;  %v467_v2 = vmax.f32 %v392_v44, 0.0 }
 0x10f   :  { %v283_v52 = vadd.f32 %v282_v50, %v6529_v24  ;;  %v396_v53 = vadd.f32 %v395_v51, %v6532_v25  ;;  %1565 = vmatpush1.bf16.msra.mxu0 %v5757_v35  ;;  %v468_v57 = vmax.f32 %v281_v45, 0.0  ;;  %v470_v60 = vmax.f32 %v394_v46, 0.0  ;;  %1678 = vmatpush1.bf16.msra.mxu1 %v5760_v41 }
 0x110   :  { %v286_v61 = vpop.f32.mrf.mxu0  ;;  %v399_v62 = vpop.f32.mrf.mxu1  ;;  %1566 = vmatprep.subr.bf16.mxu0 %v5765_v42  ;;  %1679 = vmatprep.subr.bf16.mxu1 %v5768_v47  ;;  %v5775_v42 = vld [vmem:[#allocation2 + $0x48] ss:$16 sps:$4 sm:$0xff]  }
 0x111   :  { %v469_v3 = vmax.f32 %v283_v52, 0.0  ;;  %v471_v4 = vmax.f32 %v396_v53, 0.0  ;;  %v6592_v13 = vpack.c.bf16 %v468_v57, %v464_v5  ;;  %v6594_v14 = vpack.c.bf16 %v470_v60, %v466_v6  ;;  %v5778_v47 = vld [vmem:[#allocation2 + $0x248] ss:$16 sps:$4 sm:$0xff]  }
 0x112   :  { %v288_v7 = vpop.f32.mrf.mxu0  ;;  %v401_v8 = vpop.f32.mrf.mxu1  ;;  %v287_v32 = vadd.f32 %v286_v61, %v6535_v26  ;;  %v400_v33 = vadd.f32 %v399_v62, %v6538_v27  ;;  %v5786_v61 = vld [vmem:[#allocation2 + $0x22c] ss:$16 sps:$4 sm:$0xff]   ;;  %v5784_v6 = vld [vmem:[#allocation2 + $0x228] ss:$16 sps:$4 sm:$0xff]  }
 0x113   :  { %1567 = vmatpush1.bf16.msra.mxu0 %v5763_v56  ;;  %v6588_v10 = vpack.c.bf16 %v469_v3, %v465_v0  ;;  %v6590_v11 = vpack.c.bf16 %v471_v4, %v467_v2  ;;  %v289_v15 = vadd.f32 %v288_v7, %v6529_v24  ;;  %1680 = vmatpush1.bf16.msra.mxu1 %v5766_v63  ;;  %v5789_v7 = vld [vmem:[#allocation2 + $0xc] ss:$16 sps:$4 sm:$0xff]  }
 0x114   :  { %v290_v16 = vpop.f32.mrf.mxu0  ;;  %v403_v21 = vpop.f32.mrf.mxu1  ;;  %1568 = vmatprep.subr.bf16.mxu0 %v5771_v1  ;;  %v402_v28 = vadd.f32 %v401_v8, %v6532_v25  ;;  %1681 = vmatprep.subr.bf16.mxu1 %v5774_v9  ;;  %v472_v53 = vmax.f32 %v287_v32, 0.0  ;;  %v474_v56 = vmax.f32 %v400_v33, 0.0  ;;  %v5781_v1 = vld [vmem:[#allocation2 + $0x28] ss:$16 sps:$4 sm:$0xff]  }
 0x115   :  { %v291_v29 = vadd.f32 %v290_v16, %v6535_v26  ;;  %v404_v30 = vadd.f32 %v403_v21, %v6538_v27  ;;  %1386 = vmatprep.mubr.bf16.mxu0 %v6588_v10  ;;  %1499 = vmatprep.mubr.bf16.mxu1 %v6590_v11  ;;  %v473_v49 = vmax.f32 %v289_v15, 0.0  ;;  %v5792_v15 = vld [vmem:[#allocation2 + $0x20c] ss:$16 sps:$4 sm:$0xff]  }
 0x116   :  { %v292_v35 = vpop.f32.mrf.mxu0  ;;  %v405_v38 = vpop.f32.mrf.mxu1  ;;  %1387 = vmatmul.mubr.bf16.gmra.mxu0 %v6592_v13  ;;  %1500 = vmatmul.mubr.bf16.gmra.mxu1 %v6594_v14  ;;  %v475_v50 = vmax.f32 %v402_v28, 0.0 }
 0x117   :  { %v293_v39 = vadd.f32 %v292_v35, %v6529_v24  ;;  %v406_v41 = vadd.f32 %v405_v38, %v6532_v25  ;;  %1569 = vmatpush1.bf16.msra.mxu0 %v5769_v12  ;;  %v476_v43 = vmax.f32 %v291_v29, 0.0  ;;  %v478_v44 = vmax.f32 %v404_v30, 0.0  ;;  %1682 = vmatpush1.bf16.msra.mxu1 %v5772_v22  ;;  %v5787_v30 = vld [vmem:[#allocation2 + $0x8] ss:$16 sps:$4 sm:$0xff]  }
 0x118   :  { %v296_v45 = vpop.f32.mrf.mxu0  ;;  %v409_v46 = vpop.f32.mrf.mxu1  ;;  %1570 = vmatprep.subr.bf16.mxu0 %v5777_v23  ;;  %1683 = vmatprep.subr.bf16.mxu1 %v5780_v31  ;;  %v5790_v38 = vld [vmem:[#allocation2 + $0x208] ss:$16 sps:$4 sm:$0xff]  }
 0x119   :  { %v477_v51 = vmax.f32 %v293_v39, 0.0  ;;  %v479_v52 = vmax.f32 %v406_v41, 0.0  ;;  %v6612_v0 = vpack.c.bf16 %v476_v43, %v472_v53  ;;  %v6614_v2 = vpack.c.bf16 %v478_v44, %v474_v56  ;;  %v5795_v39 = vld [vmem:[#allocation2 + $0x1ec] ss:$16 sps:$4 sm:$0xff]  }
 0x11a   :  { %v298_v57 = vpop.f32.mrf.mxu0  ;;  %v411_v60 = vpop.f32.mrf.mxu1  ;;  %v297_v16 = vadd.f32 %v296_v45, %v6535_v26  ;;  %v410_v21 = vadd.f32 %v409_v46, %v6538_v27 }
 0x11b   :  { %1571 = vmatpush1.bf16.msra.mxu0 %v5775_v42  ;;  %v6608_v62 = vpack.c.bf16 %v477_v51, %v473_v49  ;;  %v6610_v63 = vpack.c.bf16 %v479_v52, %v475_v50  ;;  %v299_v3 = vadd.f32 %v298_v57, %v6529_v24  ;;  %1684 = vmatpush1.bf16.msra.mxu1 %v5778_v47  ;;  %v5798_v49 = vld [vmem:[#allocation2 + $0x3ec] ss:$16 sps:$4 sm:$0xff]   ;;  %v5793_v52 = vld [vmem:[#allocation2 + $0x1e8] ss:$16 sps:$4 sm:$0xff]  }
 0x11c   :  { %v300_v4 = vpop.f32.mrf.mxu0  ;;  %v413_v5 = vpop.f32.mrf.mxu1  ;;  %1572 = vmatprep.subr.bf16.mxu0 %v5783_v48  ;;  %v412_v8 = vadd.f32 %v411_v60, %v6532_v25  ;;  %1685 = vmatprep.subr.bf16.mxu1 %v5786_v61  ;;  %v480_v45 = vmax.f32 %v297_v16, 0.0  ;;  %v482_v46 = vmax.f32 %v410_v21, 0.0 }
 0x11d   :  { %v301_v9 = vadd.f32 %v300_v4, %v6535_v26  ;;  %v414_v12 = vadd.f32 %v413_v5, %v6538_v27  ;;  %1396 = vmatprep.mubr.bf16.mxu0 %v6608_v62  ;;  %1509 = vmatprep.mubr.bf16.mxu1 %v6610_v63  ;;  %v481_v41 = vmax.f32 %v299_v3, 0.0  ;;  %v5801_v3 = vld [vmem:[#allocation2 + $0x1cc] ss:$16 sps:$4 sm:$0xff]  }
 0x11e   :  { %v302_v22 = vpop.f32.mrf.mxu0  ;;  %v415_v23 = vpop.f32.mrf.mxu1  ;;  %1397 = vmatmul.mubr.bf16.gmra.mxu0 %v6612_v0  ;;  %1510 = vmatmul.mubr.bf16.gmra.mxu1 %v6614_v2  ;;  %v483_v42 = vmax.f32 %v412_v8, 0.0 }
 0x11f   :  { %v303_v28 = vadd.f32 %v302_v22, %v6529_v24  ;;  %v416_v29 = vadd.f32 %v415_v23, %v6532_v25  ;;  %1573 = vmatpush1.bf16.msra.mxu0 %v5781_v1  ;;  %v484_v31 = vmax.f32 %v301_v9, 0.0  ;;  %v486_v32 = vmax.f32 %v414_v12, 0.0  ;;  %1686 = vmatpush1.bf16.msra.mxu1 %v5784_v6  ;;  %v5796_v1 = vld [vmem:[#allocation2 + $0x3e8] ss:$16 sps:$4 sm:$0xff]  }
 0x120   :  { %v306_v33 = vpop.f32.mrf.mxu0  ;;  %v419_v35 = vpop.f32.mrf.mxu1  ;;  %1574 = vmatprep.subr.bf16.mxu0 %v5789_v7  ;;  %1687 = vmatprep.subr.bf16.mxu1 %v5792_v15  ;;  %v5804_v7 = vld [vmem:[#allocation2 + $0x3cc] ss:$16 sps:$4 sm:$0xff]   ;;  %v5799_v22 = vld [vmem:[#allocation2 + $0x1c8] ss:$16 sps:$4 sm:$0xff]  }
 0x121   :  { %v485_v43 = vmax.f32 %v303_v28, 0.0  ;;  %v487_v44 = vmax.f32 %v416_v29, 0.0  ;;  %v6632_v53 = vpack.c.bf16 %v484_v31, %v480_v45  ;;  %v6634_v56 = vpack.c.bf16 %v486_v32, %v482_v46  ;;  %v5802_v31 = vld [vmem:[#allocation2 + $0x3c8] ss:$16 sps:$4 sm:$0xff]   ;;  %v5807_v32 = vld [vmem:[#allocation2 + $0x1ac] ss:$16 sps:$4 sm:$0xff]  }
 0x122   :  { %v308_v47 = vpop.f32.mrf.mxu0  ;;  %v421_v48 = vpop.f32.mrf.mxu1  ;;  %v307_v8 = vadd.f32 %v306_v33, %v6535_v26  ;;  %v420_v9 = vadd.f32 %v419_v35, %v6538_v27  ;;  %v5810_v45 = vld [vmem:[#allocation2 + $0x3ac] ss:$16 sps:$4 sm:$0xff]  }
 0x123   :  { %1575 = vmatpush1.bf16.msra.mxu0 %v5787_v30  ;;  %v6628_v50 = vpack.c.bf16 %v485_v43, %v481_v41  ;;  %v6630_v51 = vpack.c.bf16 %v487_v44, %v483_v42  ;;  %v309_v57 = vadd.f32 %v308_v47, %v6529_v24  ;;  %1688 = vmatpush1.bf16.msra.mxu1 %v5790_v38 }
 0x124   :  { %v310_v60 = vpop.f32.mrf.mxu0  ;;  %v423_v61 = vpop.f32.mrf.mxu1  ;;  %1576 = vmatprep.subr.bf16.mxu0 %v5795_v39  ;;  %v422_v4 = vadd.f32 %v421_v48, %v6532_v25  ;;  %1689 = vmatprep.subr.bf16.mxu1 %v5798_v49  ;;  %v488_v41 = vmax.f32 %v307_v8, 0.0  ;;  %v490_v42 = vmax.f32 %v420_v9, 0.0  ;;  %v5805_v48 = vld [vmem:[#allocation2 + $0x1a8] ss:$16 sps:$4 sm:$0xff]  }
 0x125   :  { %v311_v5 = vadd.f32 %v310_v60, %v6535_v26  ;;  %v424_v6 = vadd.f32 %v423_v61, %v6538_v27  ;;  %1406 = vmatprep.mubr.bf16.mxu0 %v6628_v50  ;;  %1519 = vmatprep.mubr.bf16.mxu1 %v6630_v51  ;;  %v489_v33 = vmax.f32 %v309_v57, 0.0 }
 0x126   :  { %v312_v12 = vpop.f32.mrf.mxu0  ;;  %v425_v15 = vpop.f32.mrf.mxu1  ;;  %1407 = vmatmul.mubr.bf16.gmra.mxu0 %v6632_v53  ;;  %1520 = vmatmul.mubr.bf16.gmra.mxu1 %v6634_v56  ;;  %v491_v35 = vmax.f32 %v422_v4, 0.0 }
 0x127   :  { %v313_v16 = vadd.f32 %v312_v12, %v6529_v24  ;;  %v426_v21 = vadd.f32 %v425_v15, %v6532_v25  ;;  %1577 = vmatpush2.bf16.msra.mxu0 %v5793_v52  ;;  %v492_v23 = vmax.f32 %v311_v5, 0.0  ;;  %v494_v28 = vmax.f32 %v424_v6, 0.0  ;;  %1690 = vmatpush2.bf16.msra.mxu1 %v5796_v1  ;;  %v5808_v1 = vld [vmem:[#allocation2 + $0x3a8] ss:$16 sps:$4 sm:$0xff]  }
 0x128   :  { %v316_v29 = vpop.f32.mrf.mxu0  ;;  %v429_v30 = vpop.f32.mrf.mxu1  ;;  %1578 = vmatprep.subr.bf16.mxu0 %v5801_v3  ;;  %1691 = vmatprep.subr.bf16.mxu1 %v5804_v7  ;;  %v5813_v3 = vld [vmem:[#allocation2 + $0x18c] ss:$16 sps:$4 sm:$0xff]  }
 0x129   :  { %v493_v38 = vmax.f32 %v313_v16, 0.0  ;;  %v495_v39 = vmax.f32 %v426_v21, 0.0  ;;  %v6652_v49 = vpack.c.bf16 %v492_v23, %v488_v41  ;;  %v6654_v52 = vpack.c.bf16 %v494_v28, %v490_v42  ;;  %v5816_v7 = vld [vmem:[#allocation2 + $0x38c] ss:$16 sps:$4 sm:$0xff]  }
 0x12a   :  { %v318_v43 = vpop.f32.mrf.mxu0  ;;  %v431_v44 = vpop.f32.mrf.mxu1  ;;  %v317_v8 = vadd.f32 %v316_v29, %v6535_v26  ;;  %v430_v9 = vadd.f32 %v429_v30, %v6538_v27  ;;  %v5814_v30 = vld [vmem:[#allocation2 + $0x388] ss:$16 sps:$4 sm:$0xff]  }
 0x12b   :  { %1579 = vmatpush2.bf16.msra.mxu0 %v5799_v22  ;;  %v6648_v46 = vpack.c.bf16 %v493_v38, %v489_v33  ;;  %v6650_v47 = vpack.c.bf16 %v495_v39, %v491_v35  ;;  %v319_v57 = vadd.f32 %v318_v43, %v6529_v24  ;;  %1692 = vmatpush2.bf16.msra.mxu1 %v5802_v31  ;;  %v5811_v22 = vld [vmem:[#allocation2 + $0x188] ss:$16 sps:$4 sm:$0xff]  }
 0x12c   :  { %v320_v60 = vpop.f32.mrf.mxu0  ;;  %v433_v61 = vpop.f32.mrf.mxu1  ;;  %1580 = vmatprep.subr.bf16.mxu0 %v5807_v32  ;;  %v432_v4 = vadd.f32 %v431_v44, %v6532_v25  ;;  %1693 = vmatprep.subr.bf16.mxu1 %v5810_v45  ;;  %v5819_v32 = vld [vmem:[#allocation2 + $0x16c] ss:$16 sps:$4 sm:$0xff]   ;;  %v496_v41 = vmax.f32 %v317_v8, 0.0  ;;  %v498_v42 = vmax.f32 %v430_v9, 0.0 }
 0x12d   :  { %v321_v5 = vadd.f32 %v320_v60, %v6535_v26  ;;  %v434_v6 = vadd.f32 %v433_v61, %v6538_v27  ;;  %1416 = vmatprep.mubr.bf16.mxu0 %v6648_v46  ;;  %1529 = vmatprep.mubr.bf16.mxu1 %v6650_v47  ;;  %v497_v33 = vmax.f32 %v319_v57, 0.0  ;;  %v5822_v45 = vld [vmem:[#allocation2 + $0x36c] ss:$16 sps:$4 sm:$0xff]   ;;  %v5817_v61 = vld [vmem:[#allocation2 + $0x168] ss:$16 sps:$4 sm:$0xff]  }
 0x12e   :  { %v322_v12 = vpop.f32.mrf.mxu0  ;;  %v435_v15 = vpop.f32.mrf.mxu1  ;;  %1417 = vmatmul.mubr.bf16.gmra.mxu0 %v6652_v49  ;;  %1530 = vmatmul.mubr.bf16.gmra.mxu1 %v6654_v52  ;;  %v499_v35 = vmax.f32 %v432_v4, 0.0 }
 0x12f   :  { %v323_v16 = vadd.f32 %v322_v12, %v6529_v24  ;;  %v436_v21 = vadd.f32 %v435_v15, %v6532_v25  ;;  %1581 = vmatpush2.bf16.msra.mxu0 %v5805_v48  ;;  %v500_v23 = vmax.f32 %v321_v5, 0.0  ;;  %v502_v28 = vmax.f32 %v434_v6, 0.0  ;;  %1694 = vmatpush2.bf16.msra.mxu1 %v5808_v1  ;;  %v5820_v6 = vld [vmem:[#allocation2 + $0x368] ss:$16 sps:$4 sm:$0xff]   ;;  %v5828_v15 = vld [vmem:[#allocation2 + $0x34c] ss:$16 sps:$4 sm:$0xff]  }
 0x130   :  { %v326_v31 = vpop.f32.mrf.mxu0  ;;  %v439_v29 = vpop.f32.mrf.mxu1  ;;  %1582 = vmatprep.subr.bf16.mxu0 %v5813_v3  ;;  %1695 = vmatprep.subr.bf16.mxu1 %v5816_v7  ;;  %v5825_v7 = vld [vmem:[#allocation2 + $0x14c] ss:$16 sps:$4 sm:$0xff]  }
 0x131   :  { %v501_v38 = vmax.f32 %v323_v16, 0.0  ;;  %v503_v39 = vmax.f32 %v436_v21, 0.0  ;;  %v6672_v1 = vpack.c.bf16 %v500_v23, %v496_v41  ;;  %v6674_v3 = vpack.c.bf16 %v502_v28, %v498_v42 }
 0x132   :  { %v328_v43 = vpop.f32.mrf.mxu0  ;;  %v441_v44 = vpop.f32.mrf.mxu1  ;;  %v327_v16 = vadd.f32 %v326_v31, %v6535_v26  ;;  %v440_v23 = vadd.f32 %v439_v29, %v6538_v27  ;;  %v5831_v31 = vld [vmem:[#allocation2 + $0x12c] ss:$16 sps:$4 sm:$0xff]  }
 0x133   :  { %1583 = vmatpush2.bf16.msra.mxu0 %v5811_v22  ;;  %v6668_v48 = vpack.c.bf16 %v501_v38, %v497_v33  ;;  %v6670_v60 = vpack.c.bf16 %v503_v39, %v499_v35  ;;  %v329_v57 = vadd.f32 %v328_v43, %v6529_v24  ;;  %1696 = vmatpush2.bf16.msra.mxu1 %v5814_v30  ;;  %v5834_v29 = vld [vmem:[#allocation2 + $0x32c] ss:$16 sps:$4 sm:$0xff]  }
 0x134   :  { %v330_v4 = vpop.f32.mrf.mxu0  ;;  %v443_v5 = vpop.f32.mrf.mxu1  ;;  %1584 = vmatprep.subr.bf16.mxu0 %v5819_v32  ;;  %v442_v8 = vadd.f32 %v441_v44, %v6532_v25  ;;  %1697 = vmatprep.subr.bf16.mxu1 %v5822_v45  ;;  %v5823_v32 = vld [vmem:[#allocation2 + $0x148] ss:$16 sps:$4 sm:$0xff]  }
 0x135   :  { %v331_v9 = vadd.f32 %v330_v4, %v6535_v26  ;;  %v444_v12 = vadd.f32 %v443_v5, %v6538_v27  ;;  %1426 = vmatprep.mubr.bf16.mxu0 %v6668_v48  ;;  %1539 = vmatprep.mubr.bf16.mxu1 %v6670_v60  ;;  %v505_v33 = vmax.f32 %v329_v57, 0.0  ;;  %v5826_v26 = vld [vmem:[#allocation2 + $0x348] ss:$16 sps:$4 sm:$0xff]   ;;  %v504_v27 = vmax.f32 %v327_v16, 0.0  ;;  %v5837_v4 = vld [vmem:[#allocation2 + $0x10c] ss:$16 sps:$4 sm:$0xff]  }
 0x136   :  { %v332_v21 = vpop.f32.mrf.mxu0  ;;  %v445_v22 = vpop.f32.mrf.mxu1  ;;  %1427 = vmatmul.mubr.bf16.gmra.mxu0 %v6672_v1  ;;  %1540 = vmatmul.mubr.bf16.gmra.mxu1 %v6674_v3  ;;  %v507_v38 = vmax.f32 %v442_v8, 0.0  ;;  %v5829_v44 = vld [vmem:[#allocation2 + $0x128] ss:$16 sps:$4 sm:$0xff]   ;;  %v5840_v5 = vld [vmem:[#allocation2 + $0x30c] ss:$16 sps:$4 sm:$0xff]  }
 0x137   :  { %v333_v28 = vadd.f32 %v332_v21, %v6529_v24  ;;  %v446_v30 = vadd.f32 %v445_v22, %v6532_v25  ;;  %1585 = vmatpush2.bf16.msra.mxu0 %v5817_v61  ;;  %v508_v35 = vmax.f32 %v331_v9, 0.0  ;;  %1698 = vmatpush2.bf16.msra.mxu1 %v5820_v6  ;;  %v510_v39 = vmax.f32 %v444_v12, 0.0  ;;  %v5832_v61 = vld [vmem:[#allocation2 + $0x328] ss:$16 sps:$4 sm:$0xff]   ;;  %v5843_v8 = vld [vmem:[#allocation5 + $0xe4] ss:$16 sps:$4 sm:$0xff]  }
 0x138   :  { %1586 = vmatprep.subr.bf16.mxu0 %v5825_v7  ;;  %1699 = vmatprep.subr.bf16.mxu1 %v5828_v15  ;;  %v506_v24 = vmax.f32 %v440_v23, 0.0  ;;  %v5835_v6 = vld [vmem:[#allocation2 + $0x108] ss:$16 sps:$4 sm:$0xff]   ;;  %v5841_v9 = vld [vmem:[#allocation5 + $0xe0] ss:$16 sps:$4 sm:$0xff]  }
 0x139   :  { %v509_v41 = vmax.f32 %v333_v28, 0.0  ;;  %v511_v42 = vmax.f32 %v446_v30, 0.0  ;;  %v6692_v45 = vpack.c.bf16 %v508_v35, %v504_v27  ;;  %v5838_v7 = vld [vmem:[#allocation2 + $0x308] ss:$16 sps:$4 sm:$0xff]   ;;  %v5846_v12 = vld [vmem:[#allocation5 + $0xc4] ss:$16 sps:$4 sm:$0xff]  }
 0x13a   :  { %v6694_v57 = vpack.c.bf16 %v510_v39, %v506_v24  ;;  %v5849_v15 = vld [vmem:[#allocation5 + $0xa4] ss:$16 sps:$4 sm:$0xff]   ;;  %v5895_v22 = vld [vmem:[#allocation5 + $0x2c0] ss:$16 sps:$4 sm:$0xff]  }
 0x13b   :  { %1587 = vmatpush2.bf16.msra.mxu0 %v5823_v32  ;;  %v6688_v25 = vpack.c.bf16 %v509_v41, %v505_v33  ;;  %v6690_v43 = vpack.c.bf16 %v511_v42, %v507_v38  ;;  %1700 = vmatpush2.bf16.msra.mxu1 %v5826_v26  ;;  %v5852_v16 = vld [vmem:[#allocation5 + $0x84] ss:$16 sps:$4 sm:$0xff]   ;;  %v5859_v23 = vld [vmem:[#allocation5 + $0x20] ss:$16 sps:$4 sm:$0xff]  }
 0x13c   :  { %1588 = vmatprep.subr.bf16.mxu0 %v5831_v31  ;;  %1701 = vmatprep.subr.bf16.mxu1 %v5834_v29  ;;  %v5891_v21 = vld [vmem:[#allocation5 + $0x2e4] ss:$16 sps:$4 sm:$0xff]   ;;  %v5907_v32 = vld [vmem:[#allocation5 + $0x280] ss:$16 sps:$4 sm:$0xff]  }
 0x13d   :  { %1436 = vmatprep.mubr.bf16.mxu0 %v6688_v25  ;;  %1549 = vmatprep.mubr.bf16.mxu1 %v6690_v43  ;;  %v5867_v28 = vld [vmem:[#allocation5 + $0x1e4] ss:$16 sps:$4 sm:$0xff]   ;;  %v5865_v33 = vld [vmem:[#allocation5 + $0x1e0] ss:$16 sps:$4 sm:$0xff]  }
 0x13e   :  { %1437 = vmatmul.mubr.bf16.gmra.mxu0 %v6692_v45  ;;  %1550 = vmatmul.mubr.bf16.gmra.mxu1 %v6694_v57  ;;  %v5909_v30 = vld [vmem:[#allocation5 + $0x284] ss:$16 sps:$4 sm:$0xff]   ;;  %v5919_v31 = vld [vmem:[#allocation5 + $0x240] ss:$16 sps:$4 sm:$0xff]  }
 0x13f   :  { %1589 = vmatpush2.bf16.msra.mxu0 %v5829_v44  ;;  %1592 = vmatprep.mubr.bf16.mxu0 %v6548_v54  ;;  %v5844_v54 = vld [vmem:[#allocation5 + $0xc0] ss:$16 sps:$4 sm:$0xff]   ;;  %v5873_v35 = vld [vmem:[#allocation5 + $0x1a4] ss:$16 sps:$4 sm:$0xff]  }
 0x140   :  { %1702 = vmatpush2.bf16.msra.mxu1 %v5832_v61  ;;  %1705 = vmatprep.mubr.bf16.mxu1 %v6550_v55  ;;  %v5847_v55 = vld [vmem:[#allocation5 + $0xa0] ss:$16 sps:$4 sm:$0xff]   ;;  %v5921_v26 = vld [vmem:[#allocation5 + $0x244] ss:$16 sps:$4 sm:$0xff]  }
 0x141   :  { %1590 = vmatprep.subr.bf16.mxu0 %v5837_v4  ;;  %1703 = vmatprep.subr.bf16.mxu1 %v5840_v5  ;;  %v5871_v38 = vld [vmem:[#allocation5 + $0x1a0] ss:$16 sps:$4 sm:$0xff]   ;;  %v5879_v39 = vld [vmem:[#allocation5 + $0x164] ss:$16 sps:$4 sm:$0xff]   ;;  %v5894_v4 = vld [vmem:[#allocation5 + $0xec] ss:$16 sps:$4 sm:$0xff]  }
 0x142   :  { %v5933_v41 = vld [vmem:[#allocation5 + $0x204] ss:$16 sps:$4 sm:$0xff]   ;;  %v5931_v42 = vld [vmem:[#allocation5 + $0x200] ss:$16 sps:$4 sm:$0xff]  }
 0x143   :  { %1591 = vmatpush2.bf16.msra.mxu0 %v5835_v6  ;;  %v5877_v27 = vld [vmem:[#allocation5 + $0x160] ss:$16 sps:$4 sm:$0xff]   ;;  %v5885_v29 = vld [vmem:[#allocation5 + $0x124] ss:$16 sps:$4 sm:$0xff]  }
 0x144   :  { %1704 = vmatpush2.bf16.msra.mxu1 %v5838_v7  ;;  %2672 = vmatprep.subr.bf16.mxu0 %v5843_v8  ;;  %v5945_v24 = vld [vmem:[#allocation5 + $0x3c4] ss:$16 sps:$4 sm:$0xff]   ;;  %v5943_v44 = vld [vmem:[#allocation5 + $0x3c0] ss:$16 sps:$4 sm:$0xff]  }
 0x145   :  { %2785 = vmatprep.subr.bf16.mxu1 %v5891_v21  ;;  %v5883_v61 = vld [vmem:[#allocation5 + $0x120] ss:$16 sps:$4 sm:$0xff]   ;;  %v5957_v5 = vld [vmem:[#allocation5 + $0x384] ss:$16 sps:$4 sm:$0xff]  }
 0x146   :  { %1593 = vmatmul.mubr.bf16.vlgmr.msra.gmra.mxu0 %v6552_v58  ;;  %v5850_v58 = vld [vmem:[#allocation5 + $0x80] ss:$16 sps:$4 sm:$0xff]   ;;  %v5963_v7 = vld [vmem:[#allocation5 + $0x364] ss:$16 sps:$4 sm:$0xff]  }
 0x147   :  { %1706 = vmatmul.mubr.bf16.vlgmr.msra.gmra.mxu1 %v6554_v59  ;;  %1602 = vmatprep.mubr.bf16.mxu0 %v6568_v34  ;;  %v5855_v59 = vld [vmem:[#allocation5 + $0x64] ss:$16 sps:$4 sm:$0xff]   ;;  %v5853_v34 = vld [vmem:[#allocation5 + $0x60] ss:$16 sps:$4 sm:$0xff]  }
 0x148   :  { %1715 = vmatprep.mubr.bf16.mxu1 %v6574_v40  ;;  %2673 = vmatpush1.bf16.msra.mxu0 %v5841_v9  ;;  %v5858_v40 = vld [vmem:[#allocation5 + $0x44] ss:$16 sps:$4 sm:$0xff]   ;;  %v5955_v6 = vld [vmem:[#allocation5 + $0x380] ss:$16 sps:$4 sm:$0xff]  }
 0x149   :  { %2674 = vmatprep.subr.bf16.mxu0 %v5846_v12  ;;  %v5961_v8 = vld [vmem:[#allocation5 + $0x360] ss:$16 sps:$4 sm:$0xff]  }
 0x14a   :  { %v5967_v9 = vld [vmem:[#allocation5 + $0x340] ss:$16 sps:$4 sm:$0xff]  }
 0x14b   :  { %v5973_v12 = vld [vmem:[#allocation5 + $0x320] ss:$16 sps:$4 sm:$0xff]  }
 0x14c   :  { %2675 = vmatpush1.bf16.msra.mxu0 %v5844_v54  ;;  %v5981_v54 = vld [vmem:[#allocation5 + $0x304] ss:$16 sps:$4 sm:$0xff]  }
 0x14d   :  { %2676 = vmatprep.subr.bf16.mxu0 %v5849_v15  ;;  %v5979_v15 = vld [vmem:[#allocation5 + $0x300] ss:$16 sps:$4 sm:$0xff]  }
 0x14e   :  { %1603 = vmatmul.mubr.bf16.gmra.mxu0 %v6570_v36  ;;  %v5889_v36 = vld [vmem:[#allocation5 + $0x2e0] ss:$16 sps:$4 sm:$0xff]  }
 0x14f   :  { %1716 = vmatmul.mubr.bf16.gmra.mxu1 %v6572_v37  ;;  %1612 = vmatprep.mubr.bf16.mxu0 %v6588_v10  ;;  %v5856_v37 = vld [vmem:[#allocation5 + $0x40] ss:$16 sps:$4 sm:$0xff]   ;;  %v5861_v10 = vld [vmem:[#allocation5 + $0x24] ss:$16 sps:$4 sm:$0xff]  }
 0x150   :  { %1725 = vmatprep.mubr.bf16.mxu1 %v6590_v11  ;;  %2677 = vmatpush1.bf16.msra.mxu0 %v5847_v55  ;;  %v5897_v11 = vld [vmem:[#allocation5 + $0x2c4] ss:$16 sps:$4 sm:$0xff]   ;;  %v5987_v55 = vld [vmem:[#allocation5 + $0x2ec] ss:$16 sps:$4 sm:$0xff]  }
 0x151   :  { %2678 = vmatprep.subr.bf16.mxu0 %v5852_v16  ;;  %2786 = vmatpush1.bf16.msra.mxu1 %v5889_v36  ;;  %v6735_v16 = vld [vmem:[%s7562_s4] sm:$0xf] }
 0x152   :  { %2787 = vmatprep.subr.bf16.mxu1 %v5897_v11 }
 0x154   :  { %2679 = vmatpush1.bf16.msra.mxu0 %v5850_v58  ;;  %v6739_v58 = vrot.slane %v6735_v16, %v6521_v19 }
 0x155   :  { %2680 = vmatprep.subr.bf16.mxu0 %v5855_v59  ;;  %2788 = vmatpush1.bf16.msra.mxu1 %v5895_v22  ;;  %v6743_v59 = vrot.slane %v6735_v16, %v6517_v17 }
 0x156   :  { %1613 = vmatmul.mubr.bf16.gmra.mxu0 %v6592_v13  ;;  %v5864_v13 = vld [vmem:[#allocation5 + $0x4] ss:$16 sps:$4 sm:$0xff]  }
 0x157   :  { %1726 = vmatmul.mubr.bf16.gmra.mxu1 %v6594_v14  ;;  %1622 = vmatprep.mubr.bf16.mxu0 %v6608_v62  ;;  %v5903_v14 = vld [vmem:[#allocation5 + $0x2a4] ss:$16 sps:$4 sm:$0xff]   ;;  %v5901_v62 = vld [vmem:[#allocation5 + $0x2a0] ss:$16 sps:$4 sm:$0xff]  }
 0x158   :  { %1735 = vmatprep.mubr.bf16.mxu1 %v6610_v63  ;;  %2681 = vmatpush1.bf16.msra.mxu0 %v5853_v34  ;;  %v5862_v63 = vld [vmem:[#allocation5] ss:$16 sps:$4 sm:$0xff]  }
 0x159   :  { %2682 = vmatprep.subr.bf16.mxu0 %v5858_v40  ;;  %2789 = vmatprep.subr.bf16.mxu1 %v5903_v14 }
 0x15a   :  { %2790 = vmatpush1.bf16.msra.mxu1 %v5901_v62 }
 0x15b   :  { %2791 = vmatprep.subr.bf16.mxu1 %v5909_v30 }
 0x15c   :  { %2683 = vmatpush1.bf16.msra.mxu0 %v5856_v37 }
 0x15d   :  { %2684 = vmatprep.subr.bf16.mxu0 %v5861_v10 }
 0x15e   :  { %1623 = vmatmul.mubr.bf16.gmra.mxu0 %v6612_v0  ;;  %v5870_v0 = vld [vmem:[#allocation5 + $0x1c4] ss:$16 sps:$4 sm:$0xff]   ;;  %2792 = vmatpush1.bf16.msra.mxu1 %v5907_v32 }
 0x15f   :  { %1736 = vmatmul.mubr.bf16.gmra.mxu1 %v6614_v2  ;;  %1632 = vmatprep.mubr.bf16.mxu0 %v6628_v50  ;;  %v5915_v2 = vld [vmem:[#allocation5 + $0x264] ss:$16 sps:$4 sm:$0xff]   ;;  %v5913_v50 = vld [vmem:[#allocation5 + $0x260] ss:$16 sps:$4 sm:$0xff]  }
 0x160   :  { %1745 = vmatprep.mubr.bf16.mxu1 %v6630_v51  ;;  %2685 = vmatpush1.bf16.msra.mxu0 %v5859_v23  ;;  %v5868_v51 = vld [vmem:[#allocation5 + $0x1c0] ss:$16 sps:$4 sm:$0xff]  }
 0x161   :  { %2686 = vmatprep.subr.bf16.mxu0 %v5864_v13  ;;  %2793 = vmatprep.subr.bf16.mxu1 %v5915_v2 }
 0x162   :  { %2794 = vmatpush1.bf16.msra.mxu1 %v5913_v50 }
 0x163   :  { %2795 = vmatprep.subr.bf16.mxu1 %v5921_v26 }
 0x164   :  { %2687 = vmatpush1.bf16.msra.mxu0 %v5862_v63 }
 0x165   :  { %2688 = vmatprep.subr.bf16.mxu0 %v5867_v28 }
 0x166   :  { %1633 = vmatmul.mubr.bf16.gmra.mxu0 %v6632_v53  ;;  %v5876_v53 = vld [vmem:[#allocation5 + $0x184] ss:$16 sps:$4 sm:$0xff]   ;;  %2796 = vmatpush1.bf16.msra.mxu1 %v5919_v31 }
 0x167   :  { %1746 = vmatmul.mubr.bf16.gmra.mxu1 %v6634_v56  ;;  %1642 = vmatprep.mubr.bf16.mxu0 %v6648_v46  ;;  %v5927_v56 = vld [vmem:[#allocation5 + $0x224] ss:$16 sps:$4 sm:$0xff]   ;;  %v5925_v46 = vld [vmem:[#allocation5 + $0x220] ss:$16 sps:$4 sm:$0xff]  }
 0x168   :  { %1755 = vmatprep.mubr.bf16.mxu1 %v6650_v47  ;;  %2689 = vmatpush2.bf16.msra.mxu0 %v5865_v33  ;;  %v5874_v47 = vld [vmem:[#allocation5 + $0x180] ss:$16 sps:$4 sm:$0xff]  }
 0x169   :  { %2690 = vmatprep.subr.bf16.mxu0 %v5870_v0  ;;  %2797 = vmatprep.subr.bf16.mxu1 %v5927_v56 }
 0x16a   :  { %2798 = vmatpush1.bf16.msra.mxu1 %v5925_v46 }
 0x16b   :  { %2799 = vmatprep.subr.bf16.mxu1 %v5933_v41  ;;  %v5892_v41 = vld [vmem:[#allocation5 + $0xe8] ss:$16 sps:$4 sm:$0xff]  }
 0x16c   :  { %2691 = vmatpush2.bf16.msra.mxu0 %v5868_v51 }
 0x16d   :  { %2692 = vmatprep.subr.bf16.mxu0 %v5873_v35 }
 0x16e   :  { %1643 = vmatmul.mubr.bf16.gmra.mxu0 %v6652_v49  ;;  %v5882_v49 = vld [vmem:[#allocation5 + $0x144] ss:$16 sps:$4 sm:$0xff]   ;;  %2800 = vmatpush1.bf16.msra.mxu1 %v5931_v42 }
 0x16f   :  { %1756 = vmatmul.mubr.bf16.gmra.mxu1 %v6654_v52  ;;  %1652 = vmatprep.mubr.bf16.mxu0 %v6668_v48  ;;  %v5939_v52 = vld [vmem:[#allocation5 + $0x3e4] ss:$16 sps:$4 sm:$0xff]   ;;  %v5937_v48 = vld [vmem:[#allocation5 + $0x3e0] ss:$16 sps:$4 sm:$0xff]  }
 0x170   :  { %1765 = vmatprep.mubr.bf16.mxu1 %v6670_v60  ;;  %2693 = vmatpush2.bf16.msra.mxu0 %v5871_v38  ;;  %v5880_v60 = vld [vmem:[#allocation5 + $0x140] ss:$16 sps:$4 sm:$0xff]  }
 0x171   :  { %2694 = vmatprep.subr.bf16.mxu0 %v5876_v53  ;;  %2801 = vmatprep.subr.bf16.mxu1 %v5939_v52 }
 0x172   :  { %2802 = vmatpush2.bf16.msra.mxu1 %v5937_v48 }
 0x173   :  { %2803 = vmatprep.subr.bf16.mxu1 %v5945_v24 }
 0x174   :  { %2695 = vmatpush2.bf16.msra.mxu0 %v5874_v47 }
 0x175   :  { %2696 = vmatprep.subr.bf16.mxu0 %v5879_v39 }
 0x176   :  { %1653 = vmatmul.mubr.bf16.gmra.mxu0 %v6672_v1  ;;  %v5888_v1 = vld [vmem:[#allocation5 + $0x104] ss:$16 sps:$4 sm:$0xff]   ;;  %2804 = vmatpush2.bf16.msra.mxu1 %v5943_v44 }
 0x177   :  { %1766 = vmatmul.mubr.bf16.gmra.mxu1 %v6674_v3  ;;  %1662 = vmatprep.mubr.bf16.mxu0 %v6688_v25  ;;  %v5951_v3 = vld [vmem:[#allocation5 + $0x3a4] ss:$16 sps:$4 sm:$0xff]   ;;  %v5949_v25 = vld [vmem:[#allocation5 + $0x3a0] ss:$16 sps:$4 sm:$0xff]  }
 0x178   :  { %1775 = vmatprep.mubr.bf16.mxu1 %v6690_v43  ;;  %2697 = vmatpush2.bf16.msra.mxu0 %v5877_v27  ;;  %v5886_v43 = vld [vmem:[#allocation5 + $0x100] ss:$16 sps:$4 sm:$0xff]  }
 0x179   :  { %2698 = vmatprep.subr.bf16.mxu0 %v5882_v49  ;;  %2805 = vmatprep.subr.bf16.mxu1 %v5951_v3  ;;  %v5900_v49 = vld [vmem:[#allocation5 + $0xcc] ss:$16 sps:$4 sm:$0xff]   ;;  %v5898_v3 = vld [vmem:[#allocation5 + $0xc8] ss:$16 sps:$4 sm:$0xff]  }
 0x17a   :  { %2806 = vmatpush2.bf16.msra.mxu1 %v5949_v25 }
 0x17b   :  { %2807 = vmatprep.subr.bf16.mxu1 %v5957_v5 }
 0x17c   :  { %2699 = vmatpush2.bf16.msra.mxu0 %v5880_v60 }
 0x17d   :  { %2700 = vmatprep.subr.bf16.mxu0 %v5885_v29 }
 0x17e   :  { %1663 = vmatmul.mubr.bf16.gmra.mxu0 %v6692_v45  ;;  %2808 = vmatpush2.bf16.msra.mxu1 %v5955_v6  ;;  %v5969_v45 = vld [vmem:[#allocation5 + $0x344] ss:$16 sps:$4 sm:$0xff]  }
 0x17f   :  { %1776 = vmatmul.mubr.bf16.gmra.mxu1 %v6694_v57  ;;  %2809 = vmatprep.subr.bf16.mxu1 %v5963_v7  ;;  %v5975_v57 = vld [vmem:[#allocation5 + $0x324] ss:$16 sps:$4 sm:$0xff]  }
 0x180   :  { %2701 = vmatpush2.bf16.msra.mxu0 %v5883_v61 }
 0x181   :  { %2702 = vmatprep.subr.bf16.mxu0 %v5888_v1 }
 0x182   :  { %2810 = vmatpush2.bf16.msra.mxu1 %v5961_v8 }
 0x183   :  { %2811 = vmatprep.subr.bf16.mxu1 %v5969_v45 }
 0x184   :  { %2703 = vmatpush2.bf16.msra.mxu0 %v5886_v43 }
 0x185   :  { %2898 = vmatprep.subr.bf16.mxu0 %v5894_v4  ;;  %v5906_v4 = vld [vmem:[#allocation5 + $0xac] ss:$16 sps:$4 sm:$0xff]  }
 0x186   :  { %2812 = vmatpush2.bf16.msra.mxu1 %v5967_v9 }
 0x187   :  { %2813 = vmatprep.subr.bf16.mxu1 %v5975_v57 }
 0x18a   :  { %2814 = vmatpush2.bf16.msra.mxu1 %v5973_v12 }
 0x18b   :  { %2815 = vmatprep.subr.bf16.mxu1 %v5981_v54 }
 0x18e   :  { %2816 = vmatpush2.bf16.msra.mxu1 %v5979_v15 }
 0x18f   :  { %3011 = vmatprep.subr.bf16.mxu1 %v5987_v55  ;;  %v5904_v55 = vld [vmem:[#allocation5 + $0xa8] ss:$16 sps:$4 sm:$0xff]  }
 0x1c6   :  { %v1368_v34 = vpop.f32.mrf.mxu0  ;;  %v1481_v40 = vpop.f32.mrf.mxu1 }
 0x1c7   :  { %v1369_v10 = vadd.f32 %v1368_v34, %v6743_v59 }
 0x1c8   :  { %v1370_v21 = vpop.f32.mrf.mxu0  ;;  %v1483_v36 = vpop.f32.mrf.mxu1 }
 0x1c9   :  { %v1371_v37 = vadd.f32 %v1370_v21, %v6739_v58  ;;  %v1482_v30 = vadd.f32 %v1481_v40, %v1369_v10  ;;  %v5912_v21 = vld [vmem:[#allocation5 + $0x8c] ss:$16 sps:$4 sm:$0xff]  }
 0x1ca   :  { %v1372_v11 = vpop.f32.mrf.mxu0  ;;  %v1485_v22 = vpop.f32.mrf.mxu1 }
 0x1cb   :  { %v1373_v23 = vadd.f32 %v1372_v11, %v6743_v59  ;;  %v1484_v62 = vadd.f32 %v1483_v36, %v1371_v37  ;;  %v1786_v38 = vmax.f32 %v1482_v30, 0.0  ;;  %v5918_v30 = vld [vmem:[#allocation5 + $0x6c] ss:$16 sps:$4 sm:$0xff]  }
 0x1cc   :  { %v1374_v13 = vpop.f32.mrf.mxu0  ;;  %v1487_v14 = vpop.f32.mrf.mxu1 }
 0x1cd   :  { %v1486_v63 = vadd.f32 %v1485_v22, %v1373_v23  ;;  %v1375_v28 = vadd.f32 %v1374_v13, %v6739_v58  ;;  %v1787_v51 = vmax.f32 %v1484_v62, 0.0  ;;  %v5910_v62 = vld [vmem:[#allocation5 + $0x88] ss:$16 sps:$4 sm:$0xff]  }
 0x1ce   :  { %v1378_v32 = vpop.f32.mrf.mxu0  ;;  %v1491_v0 = vpop.f32.mrf.mxu1 }
 0x1cf   :  { %v1488_v33 = vadd.f32 %v1487_v14, %v1375_v28  ;;  %v1790_v2 = vmax.f32 %v1486_v63, 0.0  ;;  %v1379_v53 = vadd.f32 %v1378_v32, %v6743_v59 }
 0x1d0   :  { %v1380_v50 = vpop.f32.mrf.mxu0  ;;  %v1493_v31 = vpop.f32.mrf.mxu1 }
 0x1d1   :  { %v1791_v35 = vmax.f32 %v1488_v33, 0.0  ;;  %v1381_v26 = vadd.f32 %v1380_v50, %v6739_v58  ;;  %v6754_v42 = vpack.c.bf16 %v1790_v2, %v1786_v38  ;;  %v1492_v24 = vadd.f32 %v1491_v0, %v1379_v53  ;;  %v5916_v53 = vld [vmem:[#allocation5 + $0x68] ss:$16 sps:$4 sm:$0xff]  }
 0x1d2   :  { %v1382_v56 = vpop.f32.mrf.mxu0  ;;  %v1495_v47 = vpop.f32.mrf.mxu1 }
 0x1d3   :  { %v1383_v46 = vadd.f32 %v1382_v56, %v6743_v59  ;;  %v6752_v39 = vpack.c.bf16 %v1791_v35, %v1787_v51  ;;  %v1494_v52 = vadd.f32 %v1493_v31, %v1381_v26  ;;  %v1794_v45 = vmax.f32 %v1492_v24, 0.0 }
 0x1d4   :  { %v1384_v27 = vpop.f32.mrf.mxu0  ;;  %v1497_v29 = vpop.f32.mrf.mxu1 }
 0x1d5   :  { %v1496_v48 = vadd.f32 %v1495_v47, %v1383_v46  ;;  %v1385_v60 = vadd.f32 %v1384_v27, %v6739_v58  ;;  %2704 = vmatprep.mubr.bf16.mxu0 %v6752_v39  ;;  %v1795_v5 = vmax.f32 %v1494_v52, 0.0  ;;  %v5924_v47 = vld [vmem:[#allocation5 + $0x4c] ss:$16 sps:$4 sm:$0xff]  }
 0x1d6   :  { %v1388_v44 = vpop.f32.mrf.mxu0  ;;  %2705 = vmatmul.mubr.bf16.vlgmr.msra.gmra.mxu0 %v6754_v42  ;;  %v1501_v1 = vpop.f32.mrf.mxu1 }
 0x1d7   :  { %v1498_v61 = vadd.f32 %v1497_v29, %v1385_v60  ;;  %2899 = vmatpush1.bf16.msra.mxu0 %v5892_v41  ;;  %v1798_v25 = vmax.f32 %v1496_v48, 0.0  ;;  %v1389_v9 = vadd.f32 %v1388_v44, %v6743_v59  ;;  %v5922_v44 = vld [vmem:[#allocation5 + $0x48] ss:$16 sps:$4 sm:$0xff]  }
 0x1d8   :  { %v1390_v43 = vpop.f32.mrf.mxu0  ;;  %2900 = vmatprep.subr.bf16.mxu0 %v5900_v49  ;;  %v1503_v8 = vpop.f32.mrf.mxu1 }
 0x1d9   :  { %v1799_v6 = vmax.f32 %v1498_v61, 0.0  ;;  %v1391_v7 = vadd.f32 %v1390_v43, %v6739_v58  ;;  %v6764_v34 = vpack.c.bf16 %v1798_v25, %v1794_v45  ;;  %v1502_v22 = vadd.f32 %v1501_v1, %v1389_v9 }
 0x1da   :  { %v1392_v57 = vpop.f32.mrf.mxu0  ;;  %v1505_v54 = vpop.f32.mrf.mxu1 }
 0x1db   :  { %v1393_v12 = vadd.f32 %v1392_v57, %v6743_v59  ;;  %2901 = vmatpush1.bf16.msra.mxu0 %v5898_v3  ;;  %v6762_v15 = vpack.c.bf16 %v1799_v6, %v1795_v5  ;;  %v1504_v36 = vadd.f32 %v1503_v8, %v1391_v7  ;;  %v1802_v50 = vmax.f32 %v1502_v22, 0.0  ;;  %v5930_v3 = vld [vmem:[#allocation5 + $0x2c] ss:$16 sps:$4 sm:$0xff]  }
 0x1dc   :  { %v1394_v40 = vpop.f32.mrf.mxu0  ;;  %2902 = vmatprep.subr.bf16.mxu0 %v5906_v4  ;;  %v1507_v11 = vpop.f32.mrf.mxu1 }
 0x1dd   :  { %v1506_v37 = vadd.f32 %v1505_v54, %v1393_v12  ;;  %v1395_v10 = vadd.f32 %v1394_v40, %v6739_v58  ;;  %2714 = vmatprep.mubr.bf16.mxu0 %v6762_v15  ;;  %v1803_v32 = vmax.f32 %v1504_v36, 0.0  ;;  %v5928_v12 = vld [vmem:[#allocation5 + $0x28] ss:$16 sps:$4 sm:$0xff]   ;;  %v5936_v40 = vld [vmem:[#allocation5 + $0xc] ss:$16 sps:$4 sm:$0xff]  }
 0x1de   :  { %v1398_v23 = vpop.f32.mrf.mxu0  ;;  %2715 = vmatmul.mubr.bf16.gmra.mxu0 %v6764_v34  ;;  %v1511_v14 = vpop.f32.mrf.mxu1 }
 0x1df   :  { %v1508_v13 = vadd.f32 %v1507_v11, %v1395_v10  ;;  %2903 = vmatpush1.bf16.msra.mxu0 %v5904_v55  ;;  %v1806_v63 = vmax.f32 %v1506_v37, 0.0  ;;  %v1399_v51 = vadd.f32 %v1398_v23, %v6743_v59 }
 0x1e0   :  { %v1400_v28 = vpop.f32.mrf.mxu0  ;;  %2904 = vmatprep.subr.bf16.mxu0 %v5912_v21  ;;  %v1513_v2 = vpop.f32.mrf.mxu1 }
 0x1e1   :  { %v1807_v33 = vmax.f32 %v1508_v13, 0.0  ;;  %v1401_v0 = vadd.f32 %v1400_v28, %v6739_v58  ;;  %v6774_v56 = vpack.c.bf16 %v1806_v63, %v1802_v50  ;;  %v1512_v48 = vadd.f32 %v1511_v14, %v1399_v51  ;;  %v5934_v14 = vld [vmem:[#allocation5 + $0x8] ss:$16 sps:$4 sm:$0xff]   ;;  %v5942_v28 = vld [vmem:[#allocation5 + $0x1ec] ss:$16 sps:$4 sm:$0xff]  }
 0x1e2   :  { %v1402_v35 = vpop.f32.mrf.mxu0  ;;  %v1515_v31 = vpop.f32.mrf.mxu1 }
 0x1e3   :  { %v1403_v26 = vadd.f32 %v1402_v35, %v6743_v59  ;;  %2905 = vmatpush1.bf16.msra.mxu0 %v5910_v62  ;;  %v6772_v38 = vpack.c.bf16 %v1807_v33, %v1803_v32  ;;  %v1514_v41 = vadd.f32 %v1513_v2, %v1401_v0  ;;  %v1810_v6 = vmax.f32 %v1512_v48, 0.0 }
 0x1e4   :  { %v1404_v46 = vpop.f32.mrf.mxu0  ;;  %2906 = vmatprep.subr.bf16.mxu0 %v5918_v30  ;;  %v1517_v52 = vpop.f32.mrf.mxu1 }
 0x1e5   :  { %v1516_v27 = vadd.f32 %v1515_v31, %v1403_v26  ;;  %v1405_v49 = vadd.f32 %v1404_v46, %v6739_v58  ;;  %2724 = vmatprep.mubr.bf16.mxu0 %v6772_v38  ;;  %v1811_v25 = vmax.f32 %v1514_v41, 0.0  ;;  %v5948_v41 = vld [vmem:[#allocation5 + $0x1cc] ss:$16 sps:$4 sm:$0xff]  }
 0x1e6   :  { %v1408_v60 = vpop.f32.mrf.mxu0  ;;  %2725 = vmatmul.mubr.bf16.gmra.mxu0 %v6774_v56  ;;  %v1521_v24 = vpop.f32.mrf.mxu1 }
 0x1e7   :  { %v1518_v29 = vadd.f32 %v1517_v52, %v1405_v49  ;;  %2907 = vmatpush1.bf16.msra.mxu0 %v5916_v53  ;;  %v1814_v61 = vmax.f32 %v1516_v27, 0.0  ;;  %v1409_v7 = vadd.f32 %v1408_v60, %v6743_v59  ;;  %v5940_v53 = vld [vmem:[#allocation5 + $0x1e8] ss:$16 sps:$4 sm:$0xff]  }
 0x1e8   :  { %v1410_v1 = vpop.f32.mrf.mxu0  ;;  %2908 = vmatprep.subr.bf16.mxu0 %v5924_v47  ;;  %v1523_v5 = vpop.f32.mrf.mxu1 }
 0x1e9   :  { %v1815_v43 = vmax.f32 %v1518_v29, 0.0  ;;  %v1411_v4 = vadd.f32 %v1410_v1, %v6739_v58  ;;  %v6784_v54 = vpack.c.bf16 %v1814_v61, %v1810_v6  ;;  %v1522_v11 = vadd.f32 %v1521_v24, %v1409_v7  ;;  %v5946_v61 = vld [vmem:[#allocation5 + $0x1c8] ss:$16 sps:$4 sm:$0xff]  }
 0x1ea   :  { %v1412_v8 = vpop.f32.mrf.mxu0  ;;  %v1525_v9 = vpop.f32.mrf.mxu1 }
 0x1eb   :  { %v1413_v45 = vadd.f32 %v1412_v8, %v6743_v59  ;;  %2909 = vmatpush1.bf16.msra.mxu0 %v5922_v44  ;;  %v6782_v57 = vpack.c.bf16 %v1815_v43, %v1811_v25  ;;  %v1524_v21 = vadd.f32 %v1523_v5, %v1411_v4  ;;  %v1818_v2 = vmax.f32 %v1522_v11, 0.0  ;;  %v5954_v25 = vld [vmem:[#allocation5 + $0x1ac] ss:$16 sps:$4 sm:$0xff]  }
 0x1ec   :  { %v1414_v55 = vpop.f32.mrf.mxu0  ;;  %2910 = vmatprep.subr.bf16.mxu0 %v5930_v3  ;;  %v1527_v10 = vpop.f32.mrf.mxu1 }
 0x1ed   :  { %v1526_v36 = vadd.f32 %v1525_v9, %v1413_v45  ;;  %v1415_v37 = vadd.f32 %v1414_v55, %v6739_v58  ;;  %2734 = vmatprep.mubr.bf16.mxu0 %v6782_v57  ;;  %v1819_v30 = vmax.f32 %v1524_v21, 0.0 }
 0x1ee   :  { %v1418_v22 = vpop.f32.mrf.mxu0  ;;  %2735 = vmatmul.mubr.bf16.gmra.mxu0 %v6784_v54  ;;  %v1531_v13 = vpop.f32.mrf.mxu1 }
 0x1ef   :  { %v1528_v23 = vadd.f32 %v1527_v10, %v1415_v37  ;;  %2911 = vmatpush1.bf16.msra.mxu0 %v5928_v12  ;;  %v1822_v62 = vmax.f32 %v1526_v36, 0.0  ;;  %v1419_v50 = vadd.f32 %v1418_v22, %v6743_v59  ;;  %v5960_v37 = vld [vmem:[#allocation5 + $0x18c] ss:$16 sps:$4 sm:$0xff]  }
 0x1f0   :  { %v1420_v63 = vpop.f32.mrf.mxu0  ;;  %2912 = vmatprep.subr.bf16.mxu0 %v5936_v40  ;;  %v1533_v0 = vpop.f32.mrf.mxu1  ;;  %v5952_v40 = vld [vmem:[#allocation5 + $0x1a8] ss:$16 sps:$4 sm:$0xff]  }
 0x1f1   :  { %v1823_v32 = vmax.f32 %v1528_v23, 0.0  ;;  %v1421_v33 = vadd.f32 %v1420_v63, %v6739_v58  ;;  %v6794_v46 = vpack.c.bf16 %v1822_v62, %v1818_v2  ;;  %v1532_v60 = vadd.f32 %v1531_v13, %v1419_v50 }
 0x1f2   :  { %v1422_v51 = vpop.f32.mrf.mxu0  ;;  %v1535_v26 = vpop.f32.mrf.mxu1 }
 0x1f3   :  { %v1423_v35 = vadd.f32 %v1422_v51, %v6743_v59  ;;  %2913 = vmatpush1.bf16.msra.mxu0 %v5934_v14  ;;  %v6792_v31 = vpack.c.bf16 %v1823_v32, %v1819_v30  ;;  %v1534_v27 = vadd.f32 %v1533_v0, %v1421_v33  ;;  %v1826_v7 = vmax.f32 %v1532_v60, 0.0  ;;  %v5966_v33 = vld [vmem:[#allocation5 + $0x16c] ss:$16 sps:$4 sm:$0xff]  }
 0x1f4   :  { %v1424_v47 = vpop.f32.mrf.mxu0  ;;  %2914 = vmatprep.subr.bf16.mxu0 %v5942_v28  ;;  %v1537_v48 = vpop.f32.mrf.mxu1  ;;  %v5958_v28 = vld [vmem:[#allocation5 + $0x188] ss:$16 sps:$4 sm:$0xff]   ;;  %v5972_v60 = vld [vmem:[#allocation5 + $0x14c] ss:$16 sps:$4 sm:$0xff]  }
 0x1f5   :  { %v1536_v49 = vadd.f32 %v1535_v26, %v1423_v35  ;;  %v1425_v52 = vadd.f32 %v1424_v47, %v6739_v58  ;;  %2744 = vmatprep.mubr.bf16.mxu0 %v6792_v31  ;;  %v1827_v43 = vmax.f32 %v1534_v27, 0.0 }
 0x1f6   :  { %v1428_v29 = vpop.f32.mrf.mxu0  ;;  %2745 = vmatmul.mubr.bf16.gmra.mxu0 %v6794_v46  ;;  %v1541_v44 = vpop.f32.mrf.mxu1 }
 0x1f7   :  { %v1538_v24 = vadd.f32 %v1537_v48, %v1425_v52  ;;  %2915 = vmatpush2.bf16.msra.mxu0 %v5940_v53  ;;  %v1830_v1 = vmax.f32 %v1536_v49, 0.0  ;;  %v1429_v8 = vadd.f32 %v1428_v29, %v6743_v59  ;;  %v5964_v49 = vld [vmem:[#allocation5 + $0x168] ss:$16 sps:$4 sm:$0xff]  }
 0x1f8   :  { %v1430_v3 = vpop.f32.mrf.mxu0  ;;  %2916 = vmatprep.subr.bf16.mxu0 %v5948_v41  ;;  %v1543_v6 = vpop.f32.mrf.mxu1 }
 0x1f9   :  { %v1831_v4 = vmax.f32 %v1538_v24, 0.0  ;;  %v1431_v5 = vadd.f32 %v1430_v3, %v6739_v58  ;;  %v6804_v21 = vpack.c.bf16 %v1830_v1, %v1826_v7  ;;  %v1542_v13 = vadd.f32 %v1541_v44, %v1429_v8  ;;  %v5978_v7 = vld [vmem:[#allocation5 + $0x12c] ss:$16 sps:$4 sm:$0xff]  }
 0x1fa   :  { %v1432_v45 = vpop.f32.mrf.mxu0  ;;  %v1545_v12 = vpop.f32.mrf.mxu1  ;;  %v6824_v3 = vrot.slane %v6735_v16, %v6519_v18 }
 0x1fb   :  { %v1433_v9 = vadd.f32 %v1432_v45, %v6743_v59  ;;  %2917 = vmatpush2.bf16.msra.mxu0 %v5946_v61  ;;  %v6802_v55 = vpack.c.bf16 %v1831_v4, %v1827_v43  ;;  %v1544_v10 = vadd.f32 %v1543_v6, %v1431_v5  ;;  %v1834_v35 = vmax.f32 %v1542_v13, 0.0  ;;  %v5970_v5 = vld [vmem:[#allocation5 + $0x148] ss:$16 sps:$4 sm:$0xff]  }
 0x1fc   :  { %v1434_v36 = vpop.f32.mrf.mxu0  ;;  %2918 = vmatprep.subr.bf16.mxu0 %v5954_v25  ;;  %v1547_v23 = vpop.f32.mrf.mxu1 }
 0x1fd   :  { %v1546_v11 = vadd.f32 %v1545_v12, %v1433_v9  ;;  %v1435_v22 = vadd.f32 %v1434_v36, %v6739_v58  ;;  %2754 = vmatprep.mubr.bf16.mxu0 %v6802_v55  ;;  %v1835_v0 = vmax.f32 %v1544_v10, 0.0 }
 0x1fe   :  { %v1438_v14 = vpop.f32.mrf.mxu0  ;;  %2755 = vmatmul.mubr.bf16.gmra.mxu0 %v6804_v21  ;;  %v1551_v63 = vpop.f32.mrf.mxu1 }
 0x1ff   :  { %v1548_v62 = vadd.f32 %v1547_v23, %v1435_v22  ;;  %2919 = vmatpush2.bf16.msra.mxu0 %v5952_v40  ;;  %v1838_v30 = vmax.f32 %v1546_v11, 0.0  ;;  %v1439_v26 = vadd.f32 %v1438_v14, %v6743_v59  ;;  %v5976_v22 = vld [vmem:[#allocation5 + $0x128] ss:$16 sps:$4 sm:$0xff]   ;;  %v5984_v14 = vld [vmem:[#allocation5 + $0x10c] ss:$16 sps:$4 sm:$0xff]  }
 0x200   :  { %v1440_v32 = vpop.f32.mrf.mxu0  ;;  %2920 = vmatprep.subr.bf16.mxu0 %v5960_v37  ;;  %v1553_v51 = vpop.f32.mrf.mxu1 }
 0x201   :  { %v1839_v2 = vmax.f32 %v1548_v62, 0.0  ;;  %v1441_v50 = vadd.f32 %v1440_v32, %v6739_v58  ;;  %v6814_v52 = vpack.c.bf16 %v1838_v30, %v1834_v35  ;;  %v1552_v1 = vadd.f32 %v1551_v63, %v1439_v26 }
 0x202   :  { %v1442_v53 = vpop.f32.mrf.mxu0  ;;  %v1555_v41 = vpop.f32.mrf.mxu1 }
 0x203   :  { %v1443_v47 = vadd.f32 %v1442_v53, %v6743_v59  ;;  %2921 = vmatpush2.bf16.msra.mxu0 %v5958_v28  ;;  %v6812_v27 = vpack.c.bf16 %v1839_v2, %v1835_v0  ;;  %v1554_v29 = vadd.f32 %v1553_v51, %v1441_v50  ;;  %v6820_v59 = vrot.slane %v6735_v16, %v6523_v20  ;;  %v5982_v50 = vld [vmem:[#allocation5 + $0x108] ss:$16 sps:$4 sm:$0xff]  }
 0x204   :  { %v1444_v48 = vpop.f32.mrf.mxu0  ;;  %2922 = vmatprep.subr.bf16.mxu0 %v5966_v33  ;;  %v1557_v61 = vpop.f32.mrf.mxu1  ;;  %v1842_v40 = vmax.f32 %v1552_v1, 0.0 }
 0x205   :  { %v1556_v24 = vadd.f32 %v1555_v41, %v1443_v47  ;;  %v1445_v44 = vadd.f32 %v1444_v48, %v6739_v58  ;;  %2764 = vmatprep.mubr.bf16.mxu0 %v6812_v27  ;;  %v1843_v8 = vmax.f32 %v1554_v29, 0.0 }
 0x206   :  { %v1594_v25 = vpop.f32.mrf.mxu0  ;;  %2765 = vmatmul.mubr.bf16.gmra.mxu0 %v6814_v52 }
 0x207   :  { %v1558_v43 = vadd.f32 %v1557_v61, %v1445_v44  ;;  %v1707_v4 = vpop.f32.mrf.mxu1  ;;  %2923 = vmatpush2.bf16.msra.mxu0 %v5964_v49  ;;  %v1846_v58 = vmax.f32 %v1556_v24, 0.0  ;;  %v1595_v16 = vadd.f32 %v1594_v25, %v6824_v3  ;;  %v5990_v25 = vld [vmem:[#allocation5 + $0x2cc] ss:$16 sps:$4 sm:$0xff]  }
 0x208   :  { %v1596_v6 = vpop.f32.mrf.mxu0  ;;  %2924 = vmatprep.subr.bf16.mxu0 %v5972_v60 }
 0x209   :  { %v1847_v45 = vmax.f32 %v1558_v43, 0.0  ;;  %v1597_v9 = vadd.f32 %v1596_v6, %v6820_v59  ;;  %v1709_v12 = vpop.f32.mrf.mxu1  ;;  %v6832_v23 = vpack.c.bf16 %v1846_v58, %v1842_v40  ;;  %v1708_v32 = vadd.f32 %v1707_v4, %v1595_v16  ;;  %v5993_v16 = vld [vmem:[#allocation5 + $0x2ac] ss:$16 sps:$4 sm:$0xff]  }
 0x20a   :  { %v1598_v36 = vpop.f32.mrf.mxu0 }
 0x20b   :  { %v1599_v37 = vadd.f32 %v1598_v36, %v6824_v3  ;;  %v1711_v10 = vpop.f32.mrf.mxu1  ;;  %2925 = vmatpush2.bf16.msra.mxu0 %v5970_v5  ;;  %v6830_v11 = vpack.c.bf16 %v1847_v45, %v1843_v8  ;;  %v1710_v62 = vadd.f32 %v1709_v12, %v1597_v9  ;;  %v1788_v49 = vmax.f32 %v1708_v32, 0.0  ;;  %v5988_v9 = vld [vmem:[#allocation5 + $0x2c8] ss:$16 sps:$4 sm:$0xff]  }
 0x20c   :  { %v1600_v13 = vpop.f32.mrf.mxu0  ;;  %2926 = vmatprep.subr.bf16.mxu0 %v5978_v7 }
 0x20d   :  { %v1712_v63 = vadd.f32 %v1711_v10, %v1599_v37  ;;  %v1601_v28 = vadd.f32 %v1600_v13, %v6820_v59  ;;  %v1713_v30 = vpop.f32.mrf.mxu1  ;;  %2774 = vmatprep.mubr.bf16.mxu0 %v6830_v11  ;;  %v1789_v26 = vmax.f32 %v1710_v62, 0.0 }
 0x20e   :  { %v1604_v33 = vpop.f32.mrf.mxu0  ;;  %2775 = vmatmul.mubr.bf16.gmra.mxu0 %v6832_v23 }
 0x20f   :  { %v1714_v0 = vadd.f32 %v1713_v30, %v1601_v28  ;;  %v1717_v2 = vpop.f32.mrf.mxu1  ;;  %2927 = vmatpush2.bf16.msra.mxu0 %v5976_v22  ;;  %2930 = vmatprep.mubr.bf16.mxu0 %v6752_v39  ;;  %v1792_v51 = vmax.f32 %v1712_v63, 0.0  ;;  %v1605_v48 = vadd.f32 %v1604_v33, %v6824_v3  ;;  %v5985_v39 = vld [vmem:[#allocation5 + $0x2e8] ss:$16 sps:$4 sm:$0xff]   ;;  %v5996_v33 = vld [vmem:[#allocation5 + $0x28c] ss:$16 sps:$4 sm:$0xff]  }
 0x210   :  { %v1606_v35 = vpop.f32.mrf.mxu0  ;;  %2928 = vmatprep.subr.bf16.mxu0 %v5984_v14 }
 0x211   :  { %v1793_v53 = vmax.f32 %v1714_v0, 0.0  ;;  %v1607_v47 = vadd.f32 %v1606_v35, %v6820_v59  ;;  %v1719_v41 = vpop.f32.mrf.mxu1  ;;  %v6843_v61 = vpack.c.bf16 %v1792_v51, %v1788_v49  ;;  %v1718_v6 = vadd.f32 %v1717_v2, %v1605_v48 }
 0x212   :  { %v1608_v60 = vpop.f32.mrf.mxu0 }
 0x213   :  { %v1609_v29 = vadd.f32 %v1608_v60, %v6824_v3  ;;  %v1721_v24 = vpop.f32.mrf.mxu1  ;;  %2929 = vmatpush2.bf16.msra.mxu0 %v5982_v50  ;;  %v6841_v44 = vpack.c.bf16 %v1793_v53, %v1789_v26  ;;  %v1720_v43 = vadd.f32 %v1719_v41, %v1607_v47  ;;  %v1796_v13 = vmax.f32 %v1718_v6, 0.0  ;;  %v5994_v41 = vld [vmem:[#allocation5 + $0x288] ss:$16 sps:$4 sm:$0xff]   ;;  %v5999_v60 = vld [vmem:[#allocation5 + $0x26c] ss:$16 sps:$4 sm:$0xff]  }
 0x214   :  { %v1610_v1 = vpop.f32.mrf.mxu0 }
 0x215   :  { %v1722_v4 = vadd.f32 %v1721_v24, %v1609_v29  ;;  %v1611_v5 = vadd.f32 %v1610_v1, %v6820_v59  ;;  %v1723_v58 = vpop.f32.mrf.mxu1  ;;  %2817 = vmatprep.mubr.bf16.mxu1 %v6841_v44  ;;  %v1797_v36 = vmax.f32 %v1720_v43, 0.0 }
 0x216   :  { %v1614_v7 = vpop.f32.mrf.mxu0  ;;  %2818 = vmatmul.mubr.bf16.vlgmr.msra.gmra.mxu1 %v6843_v61  ;;  %2931 = vmatmul.mubr.bf16.vlgmr.msra.gmra.mxu0 %v6754_v42 }
 0x217   :  { %v1724_v8 = vadd.f32 %v1723_v58, %v1611_v5  ;;  %v1727_v45 = vpop.f32.mrf.mxu1  ;;  %3012 = vmatpush1.bf16.msra.mxu1 %v5985_v39  ;;  %2940 = vmatprep.mubr.bf16.mxu0 %v6762_v15  ;;  %v1800_v12 = vmax.f32 %v1722_v4, 0.0  ;;  %v1615_v14 = vadd.f32 %v1614_v7, %v6824_v3  ;;  %v5991_v15 = vld [vmem:[#allocation5 + $0x2a8] ss:$16 sps:$4 sm:$0xff]  }
 0x218   :  { %v1616_v40 = vpop.f32.mrf.mxu0  ;;  %3013 = vmatprep.subr.bf16.mxu1 %v5990_v25 }
 0x219   :  { %v1801_v37 = vmax.f32 %v1724_v8, 0.0  ;;  %v1617_v10 = vadd.f32 %v1616_v40, %v6820_v59  ;;  %v1729_v22 = vpop.f32.mrf.mxu1  ;;  %v6855_v30 = vpack.c.bf16 %v1800_v12, %v1796_v13  ;;  %v1728_v35 = vadd.f32 %v1727_v45, %v1615_v14  ;;  %v6002_v8 = vld [vmem:[#allocation5 + $0x24c] ss:$16 sps:$4 sm:$0xff]   ;;  %v6035_v45 = vld [vmem:[#allocation7 + $0xe4] ss:$16 sps:$4 sm:$0xff]  }
 0x21a   :  { %v1618_v62 = vpop.f32.mrf.mxu0  ;;  %v6000_v14 = vld [vmem:[#allocation5 + $0x248] ss:$16 sps:$4 sm:$0xff]   ;;  %4010 = vmatprep.subr.bf16.mxu0 %v6035_v45  ;;  %v6011_v45 = vld [vmem:[#allocation5 + $0x3ec] ss:$16 sps:$4 sm:$0xff]  }
 0x21b   :  { %v1619_v42 = vadd.f32 %v1618_v62, %v6824_v3  ;;  %v1731_v63 = vpop.f32.mrf.mxu1  ;;  %3014 = vmatpush1.bf16.msra.mxu1 %v5988_v9  ;;  %v6853_v28 = vpack.c.bf16 %v1801_v37, %v1797_v36  ;;  %v1730_v0 = vadd.f32 %v1729_v22, %v1617_v10  ;;  %v1804_v25 = vmax.f32 %v1728_v35, 0.0  ;;  %v6033_v36 = vld [vmem:[#allocation7 + $0xe0] ss:$16 sps:$4 sm:$0xff]  }
 0x21c   :  { %v1620_v32 = vpop.f32.mrf.mxu0  ;;  %3015 = vmatprep.subr.bf16.mxu1 %v5993_v16  ;;  %4011 = vmatpush1.bf16.msra.mxu0 %v6033_v36 }
 0x21d   :  { %v1732_v2 = vadd.f32 %v1731_v63, %v1619_v42  ;;  %v1621_v50 = vadd.f32 %v1620_v32, %v6820_v59  ;;  %v1733_v51 = vpop.f32.mrf.mxu1  ;;  %2827 = vmatprep.mubr.bf16.mxu1 %v6853_v28  ;;  %v1805_v29 = vmax.f32 %v1730_v0, 0.0  ;;  %v6005_v63 = vld [vmem:[#allocation5 + $0x22c] ss:$16 sps:$4 sm:$0xff]  }
 0x21e   :  { %v1624_v26 = vpop.f32.mrf.mxu0  ;;  %2828 = vmatmul.mubr.bf16.gmra.mxu1 %v6855_v30  ;;  %2941 = vmatmul.mubr.bf16.gmra.mxu0 %v6764_v34 }
 0x21f   :  { %v1734_v53 = vadd.f32 %v1733_v51, %v1621_v50  ;;  %v1737_v47 = vpop.f32.mrf.mxu1  ;;  %3016 = vmatpush1.bf16.msra.mxu1 %v5991_v15  ;;  %2950 = vmatprep.mubr.bf16.mxu0 %v6772_v38  ;;  %v1808_v49 = vmax.f32 %v1732_v2, 0.0  ;;  %v1625_v43 = vadd.f32 %v1624_v26, %v6824_v3  ;;  %v5997_v38 = vld [vmem:[#allocation5 + $0x268] ss:$16 sps:$4 sm:$0xff]   ;;  %v6038_v15 = vld [vmem:[#allocation7 + $0xc4] ss:$16 sps:$4 sm:$0xff]  }
 0x220   :  { %v1626_v48 = vpop.f32.mrf.mxu0  ;;  %3017 = vmatprep.subr.bf16.mxu1 %v5996_v33  ;;  %v6036_v50 = vld [vmem:[#allocation7 + $0xc0] ss:$16 sps:$4 sm:$0xff]   ;;  %4012 = vmatprep.subr.bf16.mxu0 %v6038_v15  ;;  %v6014_v15 = vld [vmem:[#allocation5 + $0x3cc] ss:$16 sps:$4 sm:$0xff]  }
 0x221   :  { %v1809_v24 = vmax.f32 %v1734_v53, 0.0  ;;  %v1627_v39 = vadd.f32 %v1626_v48, %v6820_v59  ;;  %v1739_v1 = vpop.f32.mrf.mxu1  ;;  %v6867_v6 = vpack.c.bf16 %v1808_v49, %v1804_v25  ;;  %v1738_v37 = vadd.f32 %v1737_v47, %v1625_v43  ;;  %v6003_v47 = vld [vmem:[#allocation5 + $0x228] ss:$16 sps:$4 sm:$0xff]   ;;  %v6008_v48 = vld [vmem:[#allocation5 + $0x20c] ss:$16 sps:$4 sm:$0xff]   ;;  %4013 = vmatpush1.bf16.msra.mxu0 %v6036_v50 }
 0x222   :  { %v1628_v4 = vpop.f32.mrf.mxu0  ;;  %v6039_v25 = vld [vmem:[#allocation7 + $0xa0] ss:$16 sps:$4 sm:$0xff]  }
 0x223   :  { %v1629_v34 = vadd.f32 %v1628_v4, %v6824_v3  ;;  %v1741_v5 = vpop.f32.mrf.mxu1  ;;  %3018 = vmatpush1.bf16.msra.mxu1 %v5994_v41  ;;  %v6865_v58 = vpack.c.bf16 %v1809_v24, %v1805_v29  ;;  %v1740_v9 = vadd.f32 %v1739_v1, %v1627_v39 }
 0x224   :  { %v1630_v7 = vpop.f32.mrf.mxu0  ;;  %3019 = vmatprep.subr.bf16.mxu1 %v5999_v60  ;;  %v6041_v60 = vld [vmem:[#allocation7 + $0xa4] ss:$16 sps:$4 sm:$0xff]  }
 0x225   :  { %v1742_v12 = vadd.f32 %v1741_v5, %v1629_v34  ;;  %v1631_v40 = vadd.f32 %v1630_v7, %v6820_v59  ;;  %v1743_v16 = vpop.f32.mrf.mxu1  ;;  %2837 = vmatprep.mubr.bf16.mxu1 %v6865_v58  ;;  %v1813_v32 = vmax.f32 %v1740_v9, 0.0  ;;  %4014 = vmatprep.subr.bf16.mxu0 %v6041_v60  ;;  %v6044_v9 = vld [vmem:[#allocation7 + $0x84] ss:$16 sps:$4 sm:$0xff]   ;;  %v6017_v60 = vld [vmem:[#allocation5 + $0x3ac] ss:$16 sps:$4 sm:$0xff]  }
 0x226   :  { %v1634_v10 = vpop.f32.mrf.mxu0  ;;  %2838 = vmatmul.mubr.bf16.gmra.mxu1 %v6867_v6  ;;  %2951 = vmatmul.mubr.bf16.gmra.mxu0 %v6774_v56  ;;  %v1812_v56 = vmax.f32 %v1738_v37, 0.0  ;;  %v6042_v37 = vld [vmem:[#allocation7 + $0x80] ss:$16 sps:$4 sm:$0xff]  }
 0x227   :  { %v1744_v22 = vadd.f32 %v1743_v16, %v1631_v40  ;;  %v1747_v13 = vpop.f32.mrf.mxu1  ;;  %3020 = vmatpush1.bf16.msra.mxu1 %v5997_v38  ;;  %2960 = vmatprep.mubr.bf16.mxu0 %v6782_v57  ;;  %v1816_v62 = vmax.f32 %v1742_v12, 0.0  ;;  %v1635_v51 = vadd.f32 %v1634_v10, %v6824_v3  ;;  %v6006_v38 = vld [vmem:[#allocation5 + $0x208] ss:$16 sps:$4 sm:$0xff]  }
 0x228   :  { %v1636_v42 = vpop.f32.mrf.mxu0  ;;  %3021 = vmatprep.subr.bf16.mxu1 %v6002_v8  ;;  %4015 = vmatpush1.bf16.msra.mxu0 %v6039_v25 }
 0x229   :  { %v1817_v33 = vmax.f32 %v1744_v22, 0.0  ;;  %v1637_v0 = vadd.f32 %v1636_v42, %v6820_v59  ;;  %v1749_v2 = vpop.f32.mrf.mxu1  ;;  %v6879_v41 = vpack.c.bf16 %v1816_v62, %v1812_v56  ;;  %v1748_v43 = vadd.f32 %v1747_v13, %v1635_v51  ;;  %4016 = vmatprep.subr.bf16.mxu0 %v6044_v9  ;;  %v6009_v62 = vld [vmem:[#allocation5 + $0x3e8] ss:$16 sps:$4 sm:$0xff]   ;;  %v6045_v56 = vld [vmem:[#allocation7 + $0x60] ss:$16 sps:$4 sm:$0xff]  }
 0x22a   :  { %v1638_v35 = vpop.f32.mrf.mxu0  ;;  %v6020_v9 = vld [vmem:[#allocation5 + $0x38c] ss:$16 sps:$4 sm:$0xff]  }
 0x22b   :  { %v1639_v57 = vadd.f32 %v1638_v35, %v6824_v3  ;;  %v1751_v26 = vpop.f32.mrf.mxu1  ;;  %3022 = vmatpush1.bf16.msra.mxu1 %v6000_v14  ;;  %v6877_v53 = vpack.c.bf16 %v1817_v33, %v1813_v32  ;;  %v1750_v29 = vadd.f32 %v1749_v2, %v1637_v0  ;;  %v6047_v32 = vld [vmem:[#allocation7 + $0x64] ss:$16 sps:$4 sm:$0xff]  }
 0x22c   :  { %v1640_v49 = vpop.f32.mrf.mxu0  ;;  %3023 = vmatprep.subr.bf16.mxu1 %v6005_v63  ;;  %4017 = vmatpush1.bf16.msra.mxu0 %v6042_v37 }
 0x22d   :  { %v1752_v24 = vadd.f32 %v1751_v26, %v1639_v57  ;;  %v1641_v39 = vadd.f32 %v1640_v49, %v6820_v59  ;;  %v1753_v1 = vpop.f32.mrf.mxu1  ;;  %2847 = vmatprep.mubr.bf16.mxu1 %v6877_v53  ;;  %v1821_v12 = vmax.f32 %v1750_v29, 0.0  ;;  %4018 = vmatprep.subr.bf16.mxu0 %v6047_v32  ;;  %v6050_v29 = vld [vmem:[#allocation7 + $0x44] ss:$16 sps:$4 sm:$0xff]   ;;  %v6023_v32 = vld [vmem:[#allocation5 + $0x36c] ss:$16 sps:$4 sm:$0xff]  }
 0x22e   :  { %v1644_v4 = vpop.f32.mrf.mxu0  ;;  %2848 = vmatmul.mubr.bf16.gmra.mxu1 %v6879_v41  ;;  %2961 = vmatmul.mubr.bf16.gmra.mxu0 %v6784_v54  ;;  %v1820_v54 = vmax.f32 %v1748_v43, 0.0  ;;  %v6048_v43 = vld [vmem:[#allocation7 + $0x40] ss:$16 sps:$4 sm:$0xff]  }
 0x22f   :  { %v1754_v34 = vadd.f32 %v1753_v1, %v1641_v39  ;;  %v1757_v5 = vpop.f32.mrf.mxu1  ;;  %3024 = vmatpush1.bf16.msra.mxu1 %v6003_v47  ;;  %2970 = vmatprep.mubr.bf16.mxu0 %v6792_v31  ;;  %v1824_v7 = vmax.f32 %v1752_v24, 0.0  ;;  %v1645_v10 = vadd.f32 %v1644_v4, %v6824_v3  ;;  %v6012_v47 = vld [vmem:[#allocation5 + $0x3c8] ss:$16 sps:$4 sm:$0xff]  }
 0x230   :  { %v1646_v8 = vpop.f32.mrf.mxu0  ;;  %3025 = vmatprep.subr.bf16.mxu1 %v6008_v48  ;;  %4019 = vmatpush1.bf16.msra.mxu0 %v6045_v56 }
 0x231   :  { %v1825_v40 = vmax.f32 %v1754_v34, 0.0  ;;  %v1647_v16 = vadd.f32 %v1646_v8, %v6820_v59  ;;  %v1759_v36 = vpop.f32.mrf.mxu1  ;;  %v6891_v42 = vpack.c.bf16 %v1824_v7, %v1820_v54  ;;  %v1758_v51 = vadd.f32 %v1757_v5, %v1645_v10  ;;  %4020 = vmatprep.subr.bf16.mxu0 %v6050_v29  ;;  %v6015_v7 = vld [vmem:[#allocation5 + $0x3a8] ss:$16 sps:$4 sm:$0xff]   ;;  %v6051_v54 = vld [vmem:[#allocation7 + $0x20] ss:$16 sps:$4 sm:$0xff]  }
 0x232   :  { %v1648_v22 = vpop.f32.mrf.mxu0  ;;  %v6026_v29 = vld [vmem:[#allocation5 + $0x34c] ss:$16 sps:$4 sm:$0xff]  }
 0x233   :  { %v1649_v31 = vadd.f32 %v1648_v22, %v6824_v3  ;;  %v1761_v13 = vpop.f32.mrf.mxu1  ;;  %3026 = vmatpush1.bf16.msra.mxu1 %v6006_v38  ;;  %v6889_v14 = vpack.c.bf16 %v1825_v40, %v1821_v12  ;;  %v1760_v33 = vadd.f32 %v1759_v36, %v1647_v16  ;;  %v6053_v12 = vld [vmem:[#allocation7 + $0x24] ss:$16 sps:$4 sm:$0xff]  }
 0x234   :  { %v1650_v63 = vpop.f32.mrf.mxu0  ;;  %3027 = vmatprep.subr.bf16.mxu1 %v6011_v45  ;;  %4021 = vmatpush1.bf16.msra.mxu0 %v6048_v43  ;;  %v6057_v43 = vld [vmem:[#allocation7 + $0x1e0] ss:$16 sps:$4 sm:$0xff]  }
 0x235   :  { %v1762_v0 = vadd.f32 %v1761_v13, %v1649_v31  ;;  %v1651_v2 = vadd.f32 %v1650_v63, %v6820_v59  ;;  %v1763_v50 = vpop.f32.mrf.mxu1  ;;  %2857 = vmatprep.mubr.bf16.mxu1 %v6889_v14  ;;  %v1829_v24 = vmax.f32 %v1760_v33, 0.0  ;;  %4022 = vmatprep.subr.bf16.mxu0 %v6053_v12  ;;  %v6056_v33 = vld [vmem:[#allocation7 + $0x4] ss:$16 sps:$4 sm:$0xff]  }
 0x236   :  { %v1654_v35 = vpop.f32.mrf.mxu0  ;;  %2858 = vmatmul.mubr.bf16.gmra.mxu1 %v6891_v42  ;;  %2971 = vmatmul.mubr.bf16.gmra.mxu0 %v6794_v46  ;;  %v1828_v46 = vmax.f32 %v1758_v51, 0.0  ;;  %v6054_v51 = vld [vmem:[#allocation7] ss:$16 sps:$4 sm:$0xff]  }
 0x237   :  { %v1764_v57 = vadd.f32 %v1763_v50, %v1651_v2  ;;  %v1767_v26 = vpop.f32.mrf.mxu1  ;;  %3028 = vmatpush2.bf16.msra.mxu1 %v6009_v62  ;;  %2980 = vmatprep.mubr.bf16.mxu0 %v6802_v55  ;;  %v1832_v49 = vmax.f32 %v1762_v0, 0.0  ;;  %v1655_v4 = vadd.f32 %v1654_v35, %v6824_v3  ;;  %v6018_v62 = vld [vmem:[#allocation5 + $0x388] ss:$16 sps:$4 sm:$0xff]  }
 0x238   :  { %v1656_v48 = vpop.f32.mrf.mxu0  ;;  %3029 = vmatprep.subr.bf16.mxu1 %v6014_v15  ;;  %4023 = vmatpush1.bf16.msra.mxu0 %v6051_v54  ;;  %v6030_v54 = vld [vmem:[#allocation5 + $0x308] ss:$16 sps:$4 sm:$0xff]  }
 0x239   :  { %v1833_v39 = vmax.f32 %v1764_v57, 0.0  ;;  %v1657_v1 = vadd.f32 %v1656_v48, %v6820_v59  ;;  %v1769_v25 = vpop.f32.mrf.mxu1  ;;  %v6903_v8 = vpack.c.bf16 %v1832_v49, %v1828_v46  ;;  %v1768_v10 = vadd.f32 %v1767_v26, %v1655_v4  ;;  %4024 = vmatprep.subr.bf16.mxu0 %v6056_v33  ;;  %v6021_v49 = vld [vmem:[#allocation5 + $0x368] ss:$16 sps:$4 sm:$0xff]   ;;  %v6086_v33 = vld [vmem:[#allocation7 + $0xec] ss:$16 sps:$4 sm:$0xff]  }
 0x23a   :  { %v1658_v34 = vpop.f32.mrf.mxu0 }
 0x23b   :  { %v1659_v55 = vadd.f32 %v1658_v34, %v6824_v3  ;;  %v1771_v5 = vpop.f32.mrf.mxu1  ;;  %3030 = vmatpush2.bf16.msra.mxu1 %v6012_v47  ;;  %v6901_v38 = vpack.c.bf16 %v1833_v39, %v1829_v24  ;;  %v1770_v40 = vadd.f32 %v1769_v25, %v1657_v1  ;;  %v6059_v24 = vld [vmem:[#allocation7 + $0x1e4] ss:$16 sps:$4 sm:$0xff]   ;;  %v6024_v34 = vld [vmem:[#allocation5 + $0x348] ss:$16 sps:$4 sm:$0xff]  }
 0x23c   :  { %v1660_v45 = vpop.f32.mrf.mxu0  ;;  %3031 = vmatprep.subr.bf16.mxu1 %v6017_v60  ;;  %4025 = vmatpush1.bf16.msra.mxu0 %v6054_v51  ;;  %v6113_v51 = vld [vmem:[#allocation7 + $0x244] ss:$16 sps:$4 sm:$0xff]  }
 0x23d   :  { %v1772_v16 = vadd.f32 %v1771_v5, %v1659_v55  ;;  %v1661_v36 = vadd.f32 %v1660_v45, %v6820_v59  ;;  %v1773_v37 = vpop.f32.mrf.mxu1  ;;  %2867 = vmatprep.mubr.bf16.mxu1 %v6901_v38  ;;  %v1837_v0 = vmax.f32 %v1770_v40, 0.0  ;;  %v6029_v5 = vld [vmem:[#allocation5 + $0x32c] ss:$16 sps:$4 sm:$0xff]   ;;  %4026 = vmatprep.subr.bf16.mxu0 %v6059_v24 }
 0x23e   :  { %v1664_v22 = vpop.f32.mrf.mxu0  ;;  %2868 = vmatmul.mubr.bf16.gmra.mxu1 %v6903_v8  ;;  %2981 = vmatmul.mubr.bf16.gmra.mxu0 %v6804_v21  ;;  %v1836_v21 = vmax.f32 %v1768_v10, 0.0  ;;  %v6068_v10 = vld [vmem:[#allocation7 + $0x184] ss:$16 sps:$4 sm:$0xff]  }
 0x23f   :  { %v1774_v31 = vadd.f32 %v1773_v37, %v1661_v36  ;;  %v1777_v13 = vpop.f32.mrf.mxu1  ;;  %3032 = vmatpush2.bf16.msra.mxu1 %v6015_v7  ;;  %2990 = vmatprep.mubr.bf16.mxu0 %v6812_v27  ;;  %v1840_v63 = vmax.f32 %v1772_v16, 0.0  ;;  %v1665_v35 = vadd.f32 %v1664_v22, %v6824_v3  ;;  %v6065_v36 = vld [vmem:[#allocation7 + $0x1a4] ss:$16 sps:$4 sm:$0xff]   ;;  %v6063_v37 = vld [vmem:[#allocation7 + $0x1a0] ss:$16 sps:$4 sm:$0xff]  }
 0x240   :  { %v1666_v15 = vpop.f32.mrf.mxu0  ;;  %3033 = vmatprep.subr.bf16.mxu1 %v6020_v9  ;;  %4027 = vmatpush2.bf16.msra.mxu0 %v6057_v43  ;;  %v6060_v9 = vld [vmem:[#allocation7 + $0x1c0] ss:$16 sps:$4 sm:$0xff]  }
 0x241   :  { %v1841_v2 = vmax.f32 %v1774_v31, 0.0  ;;  %v1667_v50 = vadd.f32 %v1666_v15, %v6820_v59  ;;  %v1779_v56 = vpop.f32.mrf.mxu1  ;;  %v6915_v48 = vpack.c.bf16 %v1840_v63, %v1836_v21  ;;  %v6066_v22 = vld [vmem:[#allocation7 + $0x180] ss:$16 sps:$4 sm:$0xff]   ;;  %v6071_v31 = vld [vmem:[#allocation7 + $0x164] ss:$16 sps:$4 sm:$0xff]  }
 0x242   :  { %v1668_v57 = vpop.f32.mrf.mxu0  ;;  %v6075_v63 = vld [vmem:[#allocation7 + $0x120] ss:$16 sps:$4 sm:$0xff]   ;;  %v6080_v15 = vld [vmem:[#allocation7 + $0x104] ss:$16 sps:$4 sm:$0xff]  }
 0x243   :  { %v1669_v27 = vadd.f32 %v1668_v57, %v6824_v3  ;;  %v1781_v26 = vpop.f32.mrf.mxu1  ;;  %3034 = vmatpush2.bf16.msra.mxu1 %v6018_v62  ;;  %v6913_v47 = vpack.c.bf16 %v1841_v2, %v1837_v0  ;;  %v1780_v39 = vadd.f32 %v1779_v56, %v1667_v50  ;;  %v1778_v3 = vadd.f32 %v1777_v13, %v1665_v35  ;;  %v6069_v13 = vld [vmem:[#allocation7 + $0x160] ss:$16 sps:$4 sm:$0xff]   ;;  %v6089_v0 = vld [vmem:[#allocation7 + $0x2c4] ss:$16 sps:$4 sm:$0xff]  }
 0x244   :  { %v1670_v60 = vpop.f32.mrf.mxu0  ;;  %3035 = vmatprep.subr.bf16.mxu1 %v6023_v32  ;;  %v6072_v62 = vld [vmem:[#allocation7 + $0x140] ss:$16 sps:$4 sm:$0xff]   ;;  %v6101_v50 = vld [vmem:[#allocation7 + $0x284] ss:$16 sps:$4 sm:$0xff]  }
 0x245   :  { %v1782_v1 = vadd.f32 %v1781_v26, %v1669_v27  ;;  %v1671_v25 = vadd.f32 %v1670_v60, %v6820_v59  ;;  %2877 = vmatprep.mubr.bf16.mxu1 %v6913_v47  ;;  %v1783_v46 = vpop.f32.mrf.mxu1  ;;  %v6062_v59 = vld [vmem:[#allocation7 + $0x1c4] ss:$16 sps:$4 sm:$0xff]   ;;  %v1845_v7 = vmax.f32 %v1780_v39, 0.0  ;;  %v1844_v12 = vmax.f32 %v1778_v3, 0.0  ;;  %v6078_v32 = vld [vmem:[#allocation7 + $0x100] ss:$16 sps:$4 sm:$0xff]  }
 0x246   :  { %2878 = vmatmul.mubr.bf16.gmra.mxu1 %v6915_v48  ;;  %2991 = vmatmul.mubr.bf16.gmra.mxu0 %v6814_v52  ;;  %v6027_v52 = vld [vmem:[#allocation5 + $0x328] ss:$16 sps:$4 sm:$0xff]   ;;  %v6093_v2 = vld [vmem:[#allocation7 + $0x2a0] ss:$16 sps:$4 sm:$0xff]  }
 0x247   :  { %v1784_v4 = vadd.f32 %v1783_v46, %v1671_v25  ;;  %3036 = vmatpush2.bf16.msra.mxu1 %v6021_v49  ;;  %3000 = vmatprep.mubr.bf16.mxu0 %v6830_v11  ;;  %v1848_v55 = vmax.f32 %v1782_v1, 0.0  ;;  %v6032_v11 = vld [vmem:[#allocation5 + $0x30c] ss:$16 sps:$4 sm:$0xff]   ;;  %v6099_v56 = vld [vmem:[#allocation7 + $0x280] ss:$16 sps:$4 sm:$0xff]  }
 0x248   :  { %3037 = vmatprep.subr.bf16.mxu1 %v6026_v29  ;;  %4028 = vmatprep.subr.bf16.mxu0 %v6062_v59  ;;  %v6111_v21 = vld [vmem:[#allocation7 + $0x240] ss:$16 sps:$4 sm:$0xff]   ;;  %v6155_v29 = vld [vmem:[#allocation7 + $0x364] ss:$16 sps:$4 sm:$0xff]  }
 0x249   :  { %v1849_v45 = vmax.f32 %v1784_v4, 0.0  ;;  %v6924_v16 = vpack.c.bf16 %v1848_v55, %v1844_v12  ;;  %4029 = vmatpush2.bf16.msra.mxu0 %v6060_v9  ;;  %v6117_v35 = vld [vmem:[#allocation7 + $0x220] ss:$16 sps:$4 sm:$0xff]   ;;  %v6161_v1 = vld [vmem:[#allocation7 + $0x344] ss:$16 sps:$4 sm:$0xff]  }
 0x24a   :  { %4030 = vmatprep.subr.bf16.mxu0 %v6065_v36  ;;  %v6123_v57 = vld [vmem:[#allocation7 + $0x200] ss:$16 sps:$4 sm:$0xff]   ;;  %v6167_v46 = vld [vmem:[#allocation7 + $0x324] ss:$16 sps:$4 sm:$0xff]   ;;  %v6179_v9 = vld [vmem:[#allocation7 + $0x2ec] ss:$16 sps:$4 sm:$0xff]  }
 0x24b   :  { %3038 = vmatpush2.bf16.msra.mxu1 %v6024_v34  ;;  %v6922_v40 = vpack.c.bf16 %v1849_v45, %v1845_v7  ;;  %v6129_v27 = vld [vmem:[#allocation7 + $0x3e0] ss:$16 sps:$4 sm:$0xff]  }
 0x24c   :  { %3039 = vmatprep.subr.bf16.mxu1 %v6029_v5  ;;  %v6135_v26 = vld [vmem:[#allocation7 + $0x3c0] ss:$16 sps:$4 sm:$0xff]   ;;  %v6173_v5 = vld [vmem:[#allocation7 + $0x304] ss:$16 sps:$4 sm:$0xff]  }
 0x24d   :  { %2887 = vmatprep.mubr.bf16.mxu1 %v6922_v40  ;;  %4031 = vmatpush2.bf16.msra.mxu0 %v6063_v37  ;;  %v6141_v49 = vld [vmem:[#allocation7 + $0x3a0] ss:$16 sps:$4 sm:$0xff]  }
 0x24e   :  { %2888 = vmatmul.mubr.bf16.gmra.mxu1 %v6924_v16  ;;  %3001 = vmatmul.mubr.bf16.gmra.mxu0 %v6832_v23  ;;  %v6074_v23 = vld [vmem:[#allocation7 + $0x144] ss:$16 sps:$4 sm:$0xff]   ;;  %v6147_v60 = vld [vmem:[#allocation7 + $0x380] ss:$16 sps:$4 sm:$0xff]  }
 0x24f   :  { %3040 = vmatpush2.bf16.msra.mxu1 %v6027_v52  ;;  %3043 = vmatprep.mubr.bf16.mxu1 %v6841_v44  ;;  %v6077_v44 = vld [vmem:[#allocation7 + $0x124] ss:$16 sps:$4 sm:$0xff]   ;;  %v6159_v25 = vld [vmem:[#allocation7 + $0x340] ss:$16 sps:$4 sm:$0xff]  }
 0x250   :  { %3041 = vmatprep.subr.bf16.mxu1 %v6032_v11  ;;  %4032 = vmatprep.subr.bf16.mxu0 %v6068_v10  ;;  %v6165_v4 = vld [vmem:[#allocation7 + $0x320] ss:$16 sps:$4 sm:$0xff]  }
 0x251   :  { %4033 = vmatpush2.bf16.msra.mxu0 %v6066_v22  ;;  %v6171_v59 = vld [vmem:[#allocation7 + $0x300] ss:$16 sps:$4 sm:$0xff]  }
 0x252   :  { %4034 = vmatprep.subr.bf16.mxu0 %v6071_v31 }
 0x253   :  { %3042 = vmatpush2.bf16.msra.mxu1 %v6030_v54 }
 0x255   :  { %4035 = vmatpush2.bf16.msra.mxu0 %v6069_v13 }
 0x256   :  { %3044 = vmatmul.mubr.bf16.vlgmr.msra.gmra.mxu1 %v6843_v61  ;;  %4036 = vmatprep.subr.bf16.mxu0 %v6074_v23  ;;  %v6083_v61 = vld [vmem:[#allocation7 + $0x2e4] ss:$16 sps:$4 sm:$0xff]  }
 0x257   :  { %3053 = vmatprep.mubr.bf16.mxu1 %v6853_v28  ;;  %v6081_v28 = vld [vmem:[#allocation7 + $0x2e0] ss:$16 sps:$4 sm:$0xff]   ;;  %4123 = vmatprep.subr.bf16.mxu1 %v6083_v61 }
 0x258   :  { %4124 = vmatpush1.bf16.msra.mxu1 %v6081_v28 }
 0x259   :  { %4037 = vmatpush2.bf16.msra.mxu0 %v6072_v62  ;;  %4125 = vmatprep.subr.bf16.mxu1 %v6089_v0 }
 0x25a   :  { %4038 = vmatprep.subr.bf16.mxu0 %v6077_v44 }
 0x25d   :  { %4039 = vmatpush2.bf16.msra.mxu0 %v6075_v63 }
 0x25e   :  { %3054 = vmatmul.mubr.bf16.gmra.mxu1 %v6855_v30  ;;  %4040 = vmatprep.subr.bf16.mxu0 %v6080_v15  ;;  %v6087_v30 = vld [vmem:[#allocation7 + $0x2c0] ss:$16 sps:$4 sm:$0xff]  }
 0x25f   :  { %3063 = vmatprep.mubr.bf16.mxu1 %v6865_v58  ;;  %4126 = vmatpush1.bf16.msra.mxu1 %v6087_v30  ;;  %v6095_v58 = vld [vmem:[#allocation7 + $0x2a4] ss:$16 sps:$4 sm:$0xff]  }
 0x260   :  { %4127 = vmatprep.subr.bf16.mxu1 %v6095_v58  ;;  %v6996_v58 = vld [vmem:[%s7564_s6] sm:$0xf] }
 0x261   :  { %4041 = vmatpush2.bf16.msra.mxu0 %v6078_v32 }
 0x262   :  { %4236 = vmatprep.subr.bf16.mxu0 %v6086_v33 }
 0x263   :  { %4128 = vmatpush1.bf16.msra.mxu1 %v6093_v2 }
 0x264   :  { %4129 = vmatprep.subr.bf16.mxu1 %v6101_v50  ;;  %v7002_v50 = vrot.slane %v6996_v58, %v6521_v19 }
 0x266   :  { %3064 = vmatmul.mubr.bf16.gmra.mxu1 %v6867_v6  ;;  %v6107_v6 = vld [vmem:[#allocation7 + $0x264] ss:$16 sps:$4 sm:$0xff]  }
 0x267   :  { %3073 = vmatprep.mubr.bf16.mxu1 %v6877_v53  ;;  %4130 = vmatpush1.bf16.msra.mxu1 %v6099_v56  ;;  %v6105_v53 = vld [vmem:[#allocation7 + $0x260] ss:$16 sps:$4 sm:$0xff]   ;;  %v7006_v56 = vrot.slane %v6996_v58, %v6517_v17 }
 0x268   :  { %4131 = vmatprep.subr.bf16.mxu1 %v6107_v6 }
 0x26b   :  { %4132 = vmatpush1.bf16.msra.mxu1 %v6105_v53 }
 0x26c   :  { %4133 = vmatprep.subr.bf16.mxu1 %v6113_v51 }
 0x26e   :  { %3074 = vmatmul.mubr.bf16.gmra.mxu1 %v6879_v41  ;;  %v6119_v41 = vld [vmem:[#allocation7 + $0x224] ss:$16 sps:$4 sm:$0xff]  }
 0x26f   :  { %3083 = vmatprep.mubr.bf16.mxu1 %v6889_v14  ;;  %4134 = vmatpush1.bf16.msra.mxu1 %v6111_v21  ;;  %v6125_v14 = vld [vmem:[#allocation7 + $0x204] ss:$16 sps:$4 sm:$0xff]  }
 0x270   :  { %4135 = vmatprep.subr.bf16.mxu1 %v6119_v41 }
 0x273   :  { %4136 = vmatpush1.bf16.msra.mxu1 %v6117_v35 }
 0x274   :  { %4137 = vmatprep.subr.bf16.mxu1 %v6125_v14 }
 0x276   :  { %3084 = vmatmul.mubr.bf16.gmra.mxu1 %v6891_v42  ;;  %v6131_v42 = vld [vmem:[#allocation7 + $0x3e4] ss:$16 sps:$4 sm:$0xff]  }
 0x277   :  { %3093 = vmatprep.mubr.bf16.mxu1 %v6901_v38  ;;  %4138 = vmatpush1.bf16.msra.mxu1 %v6123_v57  ;;  %v6137_v38 = vld [vmem:[#allocation7 + $0x3c4] ss:$16 sps:$4 sm:$0xff]  }
 0x278   :  { %4139 = vmatprep.subr.bf16.mxu1 %v6131_v42 }
 0x27b   :  { %4140 = vmatpush2.bf16.msra.mxu1 %v6129_v27 }
 0x27c   :  { %4141 = vmatprep.subr.bf16.mxu1 %v6137_v38 }
 0x27e   :  { %3094 = vmatmul.mubr.bf16.gmra.mxu1 %v6903_v8  ;;  %v6143_v8 = vld [vmem:[#allocation7 + $0x3a4] ss:$16 sps:$4 sm:$0xff]  }
 0x27f   :  { %3103 = vmatprep.mubr.bf16.mxu1 %v6913_v47  ;;  %4142 = vmatpush2.bf16.msra.mxu1 %v6135_v26  ;;  %v6149_v47 = vld [vmem:[#allocation7 + $0x384] ss:$16 sps:$4 sm:$0xff]  }
 0x280   :  { %4143 = vmatprep.subr.bf16.mxu1 %v6143_v8 }
 0x283   :  { %4144 = vmatpush2.bf16.msra.mxu1 %v6141_v49 }
 0x284   :  { %4145 = vmatprep.subr.bf16.mxu1 %v6149_v47 }
 0x286   :  { %3104 = vmatmul.mubr.bf16.gmra.mxu1 %v6915_v48  ;;  %v6153_v48 = vld [vmem:[#allocation7 + $0x360] ss:$16 sps:$4 sm:$0xff]  }
 0x287   :  { %3113 = vmatprep.mubr.bf16.mxu1 %v6922_v40  ;;  %4146 = vmatpush2.bf16.msra.mxu1 %v6147_v60 }
 0x288   :  { %4147 = vmatprep.subr.bf16.mxu1 %v6155_v29 }
 0x28b   :  { %4148 = vmatpush2.bf16.msra.mxu1 %v6153_v48 }
 0x28c   :  { %4149 = vmatprep.subr.bf16.mxu1 %v6161_v1 }
 0x28e   :  { %3114 = vmatmul.mubr.bf16.gmra.mxu1 %v6924_v16 }
 0x28f   :  { %4150 = vmatpush2.bf16.msra.mxu1 %v6159_v25 }
 0x290   :  { %4151 = vmatprep.subr.bf16.mxu1 %v6167_v46 }
 0x293   :  { %4152 = vmatpush2.bf16.msra.mxu1 %v6165_v4  ;;  %v6084_v4 = vld [vmem:[#allocation7 + $0xe8] ss:$16 sps:$4 sm:$0xff]  }
 0x294   :  { %4153 = vmatprep.subr.bf16.mxu1 %v6173_v5 }
 0x296   :  { %v2706_v24 = vpop.f32.mrf.mxu0 }
 0x297   :  { %4154 = vmatpush2.bf16.msra.mxu1 %v6171_v59  ;;  %v2707_v14 = vadd.f32 %v2706_v24, %v7006_v56 }
 0x298   :  { %v2708_v39 = vpop.f32.mrf.mxu0  ;;  %4349 = vmatprep.subr.bf16.mxu1 %v6179_v9 }
 0x299   :  { %v2709_v41 = vadd.f32 %v2708_v39, %v7002_v50 }
 0x29a   :  { %v2710_v43 = vpop.f32.mrf.mxu0 }
 0x29b   :  { %v2711_v35 = vadd.f32 %v2710_v43, %v7006_v56 }
 0x29c   :  { %v2712_v3 = vpop.f32.mrf.mxu0 }
 0x29d   :  { %v2713_v42 = vadd.f32 %v2712_v3, %v7002_v50 }
 0x29e   :  { %v6945_v34 = vpop.f32.mrf.mxu0 }
 0x29f   :  { %v2717_v5 = vadd.f32 %v6945_v34, %v7006_v56 }
 0x2a0   :  { %v2718_v55 = vpop.f32.mrf.mxu0 }
 0x2a1   :  { %v2719_v24 = vadd.f32 %v2718_v55, %v7002_v50 }
 0x2a2   :  { %v2720_v7 = vpop.f32.mrf.mxu0 }
 0x2a3   :  { %v2721_v46 = vadd.f32 %v2720_v7, %v7006_v56 }
 0x2a4   :  { %v2722_v45 = vpop.f32.mrf.mxu0 }
 0x2a6   :  { %v6947_v12 = vpop.f32.mrf.mxu0 }
 0x2a8   :  { %v6949_v40 = vpop.f32.mrf.mxu0 }
 0x2aa   :  { %v6951_v52 = vpop.f32.mrf.mxu0 }
 0x2ac   :  { %v6953_v16 = vpop.f32.mrf.mxu0 }
 0x2ae   :  { %v6955_v11 = vpop.f32.mrf.mxu0 }
 0x2b0   :  { %v6957_v36 = vpop.f32.mrf.mxu0 }
 0x2b2   :  { %v6959_v37 = vpop.f32.mrf.mxu0 }
 0x2b4   :  { %v6961_v54 = vpop.f32.mrf.mxu0 }
 0x2b6   :  { %v6963_v10 = vpop.f32.mrf.mxu0 }
 0x2b8   :  { %v6965_v22 = vpop.f32.mrf.mxu0 }
 0x2ba   :  { %v6967_v31 = vpop.f32.mrf.mxu0 }
 0x2bc   :  { %v6969_v13 = vpop.f32.mrf.mxu0 }
 0x2be   :  { %v6971_v23 = vpop.f32.mrf.mxu0 }
 0x2c0   :  { %v6973_v62 = vpop.f32.mrf.mxu0 }
 0x2c2   :  { %v6975_v44 = vpop.f32.mrf.mxu0 }
 0x2c4   :  { %v6977_v63 = vpop.f32.mrf.mxu0 }
 0x2c6   :  { %v6979_v15 = vpop.f32.mrf.mxu0 }
 0x2c8   :  { %v6981_v32 = vpop.f32.mrf.mxu0 }
 0x2ca   :  { %v6983_v61 = vpop.f32.mrf.mxu0 }
 0x2cc   :  { %v6985_v33 = vpop.f32.mrf.mxu0 }
 0x2ce   :  { %v6987_v28 = vpop.f32.mrf.mxu0 }
 0x2d0   :  { %v6989_v0 = vpop.f32.mrf.mxu0 }
 0x2d2   :  { %v6991_v30 = vpop.f32.mrf.mxu0 }
 0x2d4   :  { %v6998_v2 = vpop.f32.mrf.mxu0 }
 0x2d6   :  { %v2819_v6 = vpop.f32.mrf.mxu1  ;;  %v7008_v53 = vpop.f32.mrf.mxu0 }
 0x2d7   :  { %v2820_v26 = vadd.f32 %v2819_v6, %v2707_v14  ;;  %v6092_v6 = vld [vmem:[#allocation7 + $0xcc] ss:$16 sps:$4 sm:$0xff]  }
 0x2d8   :  { %v2821_v51 = vpop.f32.mrf.mxu1  ;;  %v7010_v21 = vpop.f32.mrf.mxu0 }
 0x2d9   :  { %v2822_v27 = vadd.f32 %v2821_v51, %v2709_v41  ;;  %v3124_v25 = vmax.f32 %v2820_v26, 0.0  ;;  %v2723_v51 = vadd.f32 %v2722_v45, %v7002_v50 }
 0x2da   :  { %v2823_v57 = vpop.f32.mrf.mxu1  ;;  %v7016_v8 = vpop.f32.mrf.mxu0 }
 0x2db   :  { %v2824_v38 = vadd.f32 %v2823_v57, %v2711_v35  ;;  %v3125_v48 = vmax.f32 %v2822_v27, 0.0 }
 0x2dc   :  { %v2825_v49 = vpop.f32.mrf.mxu1  ;;  %v7018_v39 = vpop.f32.mrf.mxu0 }
 0x2dd   :  { %v2826_v47 = vadd.f32 %v2825_v49, %v2713_v42  ;;  %v3128_v60 = vmax.f32 %v2824_v38, 0.0  ;;  %v6090_v42 = vld [vmem:[#allocation7 + $0xc8] ss:$16 sps:$4 sm:$0xff]   ;;  %v6098_v38 = vld [vmem:[#allocation7 + $0xac] ss:$16 sps:$4 sm:$0xff]  }
 0x2de   :  { %v2829_v29 = vpop.f32.mrf.mxu1  ;;  %v7030_v55 = vpop.f32.mrf.mxu0 }
 0x2df   :  { %v3129_v1 = vmax.f32 %v2826_v47, 0.0  ;;  %v7026_v59 = vpack.c.bf16 %v3128_v60, %v3124_v25  ;;  %v2830_v14 = vadd.f32 %v2829_v29, %v2717_v5  ;;  %v2729_v29 = vadd.f32 %v6949_v40, %v7002_v50  ;;  %v6096_v25 = vld [vmem:[#allocation7 + $0xa8] ss:$16 sps:$4 sm:$0xff]  }
 0x2e0   :  { %v2831_v43 = vpop.f32.mrf.mxu1  ;;  %v7033_v47 = vpop.f32.mrf.mxu0  ;;  %v2733_v5 = vadd.f32 %v6953_v16, %v7002_v50 }
 0x2e1   :  { %v7022_v3 = vpack.c.bf16 %v3129_v1, %v3125_v48  ;;  %v2832_v41 = vadd.f32 %v2831_v43, %v2719_v24  ;;  %v3132_v45 = vmax.f32 %v2830_v14, 0.0  ;;  %v2731_v48 = vadd.f32 %v6951_v52, %v7006_v56 }
 0x2e2   :  { %v2833_v9 = vpop.f32.mrf.mxu1  ;;  %v2727_v43 = vadd.f32 %v6947_v12, %v7006_v56  ;;  %v7048_v52 = vpop.f32.mrf.mxu0  ;;  %v6102_v12 = vld [vmem:[#allocation7 + $0x88] ss:$16 sps:$4 sm:$0xff]  }
 0x2e3   :  { %v2834_v35 = vadd.f32 %v2833_v9, %v2721_v46  ;;  %4042 = vmatprep.mubr.bf16.mxu0 %v7022_v3  ;;  %v3133_v26 = vmax.f32 %v2832_v41, 0.0 }
 0x2e4   :  { %v2835_v7 = vpop.f32.mrf.mxu1  ;;  %4043 = vmatmul.mubr.bf16.vlgmr.msra.gmra.mxu0 %v7026_v59  ;;  %v7051_v16 = vpop.f32.mrf.mxu0 }
 0x2e5   :  { %v2836_v57 = vadd.f32 %v2835_v7, %v2723_v51  ;;  %4237 = vmatpush1.bf16.msra.mxu0 %v6084_v4  ;;  %v3136_v34 = vmax.f32 %v2834_v35, 0.0  ;;  %v6104_v4 = vld [vmem:[#allocation7 + $0x8c] ss:$16 sps:$4 sm:$0xff]  }
 0x2e6   :  { %v2839_v27 = vpop.f32.mrf.mxu1  ;;  %4238 = vmatprep.subr.bf16.mxu0 %v6092_v6  ;;  %v6110_v7 = vld [vmem:[#allocation7 + $0x6c] ss:$16 sps:$4 sm:$0xff]  }
 0x2e7   :  { %v3137_v49 = vmax.f32 %v2836_v57, 0.0  ;;  %v7043_v24 = vpack.c.bf16 %v3136_v34, %v3132_v45  ;;  %v2840_v6 = vadd.f32 %v2839_v27, %v2727_v43  ;;  %v2741_v27 = vadd.f32 %v6959_v37, %v7006_v56  ;;  %v6108_v45 = vld [vmem:[#allocation7 + $0x68] ss:$16 sps:$4 sm:$0xff]   ;;  %v7066_v37 = vpop.f32.mrf.mxu0 }
 0x2e8   :  { %v2841_v60 = vpop.f32.mrf.mxu1  ;;  %v2743_v43 = vadd.f32 %v6961_v54, %v7002_v50 }
 0x2e9   :  { %4239 = vmatpush1.bf16.msra.mxu0 %v6090_v42  ;;  %v7039_v1 = vpack.c.bf16 %v3137_v49, %v3133_v26  ;;  %v2842_v9 = vadd.f32 %v2841_v60, %v2729_v29  ;;  %v3140_v34 = vmax.f32 %v2840_v6, 0.0  ;;  %v2739_v26 = vadd.f32 %v6957_v36, %v7002_v50  ;;  %v7069_v54 = vpop.f32.mrf.mxu0 }
 0x2ea   :  { %v2843_v46 = vpop.f32.mrf.mxu1  ;;  %4240 = vmatprep.subr.bf16.mxu0 %v6098_v38  ;;  %v2737_v60 = vadd.f32 %v6955_v11, %v7006_v56  ;;  %v6114_v11 = vld [vmem:[#allocation7 + $0x48] ss:$16 sps:$4 sm:$0xff]  }
 0x2eb   :  { %v2844_v40 = vadd.f32 %v2843_v46, %v2731_v48  ;;  %4052 = vmatprep.mubr.bf16.mxu0 %v7039_v1  ;;  %v3141_v57 = vmax.f32 %v2842_v9, 0.0 }
 0x2ec   :  { %v2845_v51 = vpop.f32.mrf.mxu1  ;;  %4053 = vmatmul.mubr.bf16.gmra.mxu0 %v7043_v24 }
 0x2ed   :  { %v2846_v41 = vadd.f32 %v2845_v51, %v2733_v5  ;;  %4241 = vmatpush1.bf16.msra.mxu0 %v6096_v25  ;;  %v3144_v35 = vmax.f32 %v2844_v40, 0.0  ;;  %v6116_v25 = vld [vmem:[#allocation7 + $0x4c] ss:$16 sps:$4 sm:$0xff]  }
 0x2ee   :  { %v2849_v14 = vpop.f32.mrf.mxu1  ;;  %4242 = vmatprep.subr.bf16.mxu0 %v6104_v4  ;;  %v6122_v51 = vld [vmem:[#allocation7 + $0x2c] ss:$16 sps:$4 sm:$0xff]  }
 0x2ef   :  { %v3145_v42 = vmax.f32 %v2846_v41, 0.0  ;;  %v7061_v29 = vpack.c.bf16 %v3144_v35, %v3140_v34  ;;  %v2850_v4 = vadd.f32 %v2849_v14, %v2737_v60  ;;  %v2751_v14 = vadd.f32 %v6967_v31, %v7006_v56  ;;  %v6120_v34 = vld [vmem:[#allocation7 + $0x28] ss:$16 sps:$4 sm:$0xff]   ;;  %v7084_v31 = vpop.f32.mrf.mxu0 }
 0x2f0   :  { %v2851_v38 = vpop.f32.mrf.mxu1  ;;  %v2753_v60 = vadd.f32 %v6969_v13, %v7002_v50 }
 0x2f1   :  { %4243 = vmatpush1.bf16.msra.mxu0 %v6102_v12  ;;  %v7057_v49 = vpack.c.bf16 %v3145_v42, %v3141_v57  ;;  %v2852_v46 = vadd.f32 %v2851_v38, %v2739_v26  ;;  %v3148_v35 = vmax.f32 %v2850_v4, 0.0  ;;  %v2749_v57 = vadd.f32 %v6965_v22, %v7002_v50  ;;  %v7087_v13 = vpop.f32.mrf.mxu0 }
 0x2f2   :  { %v2853_v48 = vpop.f32.mrf.mxu1  ;;  %4244 = vmatprep.subr.bf16.mxu0 %v6110_v7  ;;  %v2747_v38 = vadd.f32 %v6963_v10, %v7006_v56  ;;  %v6126_v10 = vld [vmem:[#allocation7 + $0x8] ss:$16 sps:$4 sm:$0xff]  }
 0x2f3   :  { %v2854_v36 = vadd.f32 %v2853_v48, %v2741_v27  ;;  %4062 = vmatprep.mubr.bf16.mxu0 %v7057_v49  ;;  %v3149_v41 = vmax.f32 %v2852_v46, 0.0 }
 0x2f4   :  { %v2855_v5 = vpop.f32.mrf.mxu1  ;;  %4063 = vmatmul.mubr.bf16.gmra.mxu0 %v7061_v29 }
 0x2f5   :  { %v2856_v9 = vadd.f32 %v2855_v5, %v2743_v43  ;;  %4245 = vmatpush1.bf16.msra.mxu0 %v6108_v45  ;;  %v3152_v40 = vmax.f32 %v2854_v36, 0.0  ;;  %v6128_v45 = vld [vmem:[#allocation7 + $0xc] ss:$16 sps:$4 sm:$0xff]  }
 0x2f6   :  { %v2859_v6 = vpop.f32.mrf.mxu1  ;;  %4246 = vmatprep.subr.bf16.mxu0 %v6116_v25  ;;  %v6134_v5 = vld [vmem:[#allocation7 + $0x1ec] ss:$16 sps:$4 sm:$0xff]  }
 0x2f7   :  { %v3153_v12 = vmax.f32 %v2856_v9, 0.0  ;;  %v7079_v26 = vpack.c.bf16 %v3152_v40, %v3148_v35  ;;  %v2860_v25 = vadd.f32 %v2859_v6, %v2747_v38  ;;  %v2761_v6 = vadd.f32 %v6975_v44, %v7006_v56  ;;  %v6132_v35 = vld [vmem:[#allocation7 + $0x1e8] ss:$16 sps:$4 sm:$0xff]   ;;  %v7102_v44 = vpop.f32.mrf.mxu0 }
 0x2f8   :  { %v2861_v7 = vpop.f32.mrf.mxu1  ;;  %v2763_v38 = vadd.f32 %v6977_v63, %v7002_v50 }
 0x2f9   :  { %4247 = vmatpush1.bf16.msra.mxu0 %v6114_v11  ;;  %v7075_v42 = vpack.c.bf16 %v3153_v12, %v3149_v41  ;;  %v2862_v48 = vadd.f32 %v2861_v7, %v2749_v57  ;;  %v3156_v40 = vmax.f32 %v2860_v25, 0.0  ;;  %v2759_v41 = vadd.f32 %v6973_v62, %v7002_v50  ;;  %v7105_v63 = vpop.f32.mrf.mxu0 }
 0x2fa   :  { %v2863_v27 = vpop.f32.mrf.mxu1  ;;  %4248 = vmatprep.subr.bf16.mxu0 %v6122_v51  ;;  %v2757_v7 = vadd.f32 %v6971_v23, %v7006_v56  ;;  %v6138_v23 = vld [vmem:[#allocation7 + $0x1c8] ss:$16 sps:$4 sm:$0xff]  }
 0x2fb   :  { %v2864_v22 = vadd.f32 %v2863_v27, %v2751_v14  ;;  %4072 = vmatprep.mubr.bf16.mxu0 %v7075_v42  ;;  %v3157_v9 = vmax.f32 %v2862_v48, 0.0 }
 0x2fc   :  { %v2865_v43 = vpop.f32.mrf.mxu1  ;;  %4073 = vmatmul.mubr.bf16.gmra.mxu0 %v7079_v26 }
 0x2fd   :  { %v2866_v46 = vadd.f32 %v2865_v43, %v2753_v60  ;;  %4249 = vmatpush1.bf16.msra.mxu0 %v6120_v34  ;;  %v3160_v36 = vmax.f32 %v2864_v22, 0.0  ;;  %v6140_v34 = vld [vmem:[#allocation7 + $0x1cc] ss:$16 sps:$4 sm:$0xff]  }
 0x2fe   :  { %v2869_v4 = vpop.f32.mrf.mxu1  ;;  %4250 = vmatprep.subr.bf16.mxu0 %v6128_v45  ;;  %v6146_v43 = vld [vmem:[#allocation7 + $0x1ac] ss:$16 sps:$4 sm:$0xff]  }
 0x2ff   :  { %v3161_v11 = vmax.f32 %v2866_v46, 0.0  ;;  %v7097_v57 = vpack.c.bf16 %v3160_v36, %v3156_v40  ;;  %v2870_v45 = vadd.f32 %v2869_v4, %v2757_v7  ;;  %v2771_v4 = vadd.f32 %v6983_v61, %v7006_v56  ;;  %v6144_v40 = vld [vmem:[#allocation7 + $0x1a8] ss:$16 sps:$4 sm:$0xff]   ;;  %v7120_v61 = vpop.f32.mrf.mxu0 }
 0x300   :  { %v2871_v51 = vpop.f32.mrf.mxu1  ;;  %v2773_v7 = vadd.f32 %v6985_v33, %v7002_v50 }
 0x301   :  { %4251 = vmatpush1.bf16.msra.mxu0 %v6126_v10  ;;  %v7093_v12 = vpack.c.bf16 %v3161_v11, %v3157_v9  ;;  %v2872_v27 = vadd.f32 %v2871_v51, %v2759_v41  ;;  %v3164_v36 = vmax.f32 %v2870_v45, 0.0  ;;  %v2769_v9 = vadd.f32 %v6981_v32, %v7002_v50  ;;  %v7123_v33 = vpop.f32.mrf.mxu0 }
 0x302   :  { %v2873_v14 = vpop.f32.mrf.mxu1  ;;  %4252 = vmatprep.subr.bf16.mxu0 %v6134_v5  ;;  %v2767_v51 = vadd.f32 %v6979_v15, %v7006_v56  ;;  %v6150_v15 = vld [vmem:[#allocation7 + $0x188] ss:$16 sps:$4 sm:$0xff]  }
 0x303   :  { %v2874_v62 = vadd.f32 %v2873_v14, %v2761_v6  ;;  %4082 = vmatprep.mubr.bf16.mxu0 %v7093_v12  ;;  %v3165_v46 = vmax.f32 %v2872_v27, 0.0 }
 0x304   :  { %v2875_v60 = vpop.f32.mrf.mxu1  ;;  %4083 = vmatmul.mubr.bf16.gmra.mxu0 %v7097_v57 }
 0x305   :  { %v2876_v48 = vadd.f32 %v2875_v60, %v2763_v38  ;;  %4253 = vmatpush2.bf16.msra.mxu0 %v6132_v35  ;;  %v3168_v22 = vmax.f32 %v2874_v62, 0.0  ;;  %v6152_v35 = vld [vmem:[#allocation7 + $0x18c] ss:$16 sps:$4 sm:$0xff]  }
 0x306   :  { %v2879_v25 = vpop.f32.mrf.mxu1  ;;  %4254 = vmatprep.subr.bf16.mxu0 %v6140_v34  ;;  %v6158_v60 = vld [vmem:[#allocation7 + $0x16c] ss:$16 sps:$4 sm:$0xff]  }
 0x307   :  { %v3169_v10 = vmax.f32 %v2876_v48, 0.0  ;;  %v7115_v41 = vpack.c.bf16 %v3168_v22, %v3164_v36  ;;  %v2880_v34 = vadd.f32 %v2879_v25, %v2767_v51  ;;  %v2781_v25 = vadd.f32 %v6991_v30, %v7006_v56  ;;  %v6156_v36 = vld [vmem:[#allocation7 + $0x168] ss:$16 sps:$4 sm:$0xff]   ;;  %v7138_v30 = vpop.f32.mrf.mxu0 }
 0x308   :  { %v2881_v5 = vpop.f32.mrf.mxu1  ;;  %v2783_v51 = vadd.f32 %v6998_v2, %v7002_v50  ;;  %v7147_v2 = vrot.slane %v6996_v58, %v6519_v18 }
 0x309   :  { %4255 = vmatpush2.bf16.msra.mxu0 %v6138_v23  ;;  %v7111_v11 = vpack.c.bf16 %v3169_v10, %v3165_v46  ;;  %v2882_v14 = vadd.f32 %v2881_v5, %v2769_v9  ;;  %v3172_v22 = vmax.f32 %v2880_v34, 0.0  ;;  %v2779_v46 = vadd.f32 %v6989_v0, %v7002_v50  ;;  %v6170_v34 = vld [vmem:[#allocation7 + $0x12c] ss:$16 sps:$4 sm:$0xff]  }
 0x30a   :  { %v2883_v6 = vpop.f32.mrf.mxu1  ;;  %4256 = vmatprep.subr.bf16.mxu0 %v6146_v43  ;;  %v2777_v5 = vadd.f32 %v6987_v28, %v7006_v56  ;;  %v7143_v28 = vrot.slane %v6996_v58, %v6523_v20  ;;  %v6168_v58 = vld [vmem:[#allocation7 + $0x128] ss:$16 sps:$4 sm:$0xff]  }
 0x30b   :  { %v2884_v32 = vadd.f32 %v2883_v6, %v2771_v4  ;;  %4092 = vmatprep.mubr.bf16.mxu0 %v7111_v11  ;;  %v3173_v48 = vmax.f32 %v2882_v14, 0.0  ;;  %v6162_v14 = vld [vmem:[#allocation7 + $0x148] ss:$16 sps:$4 sm:$0xff]  }
 0x30c   :  { %v2885_v38 = vpop.f32.mrf.mxu1  ;;  %4093 = vmatmul.mubr.bf16.gmra.mxu0 %v7115_v41 }
 0x30d   :  { %v2886_v27 = vadd.f32 %v2885_v38, %v2773_v7  ;;  %4257 = vmatpush2.bf16.msra.mxu0 %v6144_v40  ;;  %v3176_v62 = vmax.f32 %v2884_v32, 0.0  ;;  %v6164_v40 = vld [vmem:[#allocation7 + $0x14c] ss:$16 sps:$4 sm:$0xff]  }
 0x30e   :  { %v2889_v45 = vpop.f32.mrf.mxu1  ;;  %4258 = vmatprep.subr.bf16.mxu0 %v6152_v35 }
 0x30f   :  { %v3177_v23 = vmax.f32 %v2886_v27, 0.0  ;;  %v7133_v9 = vpack.c.bf16 %v3176_v62, %v3172_v22  ;;  %v2890_v35 = vadd.f32 %v2889_v45, %v2777_v5  ;;  %v2933_v22 = vadd.f32 %v7008_v53, %v7147_v2  ;;  %v6174_v53 = vld [vmem:[#allocation7 + $0x108] ss:$16 sps:$4 sm:$0xff]  }
 0x310   :  { %v2891_v43 = vpop.f32.mrf.mxu1 }
 0x311   :  { %4259 = vmatpush2.bf16.msra.mxu0 %v6150_v15  ;;  %v7129_v10 = vpack.c.bf16 %v3177_v23, %v3173_v48  ;;  %v2892_v6 = vadd.f32 %v2891_v43, %v2779_v46  ;;  %v7149_v15 = vpop.f32.mrf.mxu0  ;;  %v3180_v62 = vmax.f32 %v2890_v35, 0.0  ;;  %v2937_v48 = vadd.f32 %v7016_v8, %v7147_v2 }
 0x312   :  { %v2893_v4 = vpop.f32.mrf.mxu1  ;;  %4260 = vmatprep.subr.bf16.mxu0 %v6158_v60  ;;  %v2935_v60 = vadd.f32 %v7010_v21, %v7143_v28 }
 0x313   :  { %v2894_v0 = vadd.f32 %v2893_v4, %v2781_v25  ;;  %4102 = vmatprep.mubr.bf16.mxu0 %v7129_v10  ;;  %v3181_v38 = vmax.f32 %v2892_v6, 0.0  ;;  %v6176_v25 = vld [vmem:[#allocation7 + $0x10c] ss:$16 sps:$4 sm:$0xff]   ;;  %v7164_v8 = vpop.f32.mrf.mxu0 }
 0x314   :  { %v2895_v7 = vpop.f32.mrf.mxu1  ;;  %4103 = vmatmul.mubr.bf16.gmra.mxu0 %v7133_v9 }
 0x315   :  { %v2896_v56 = vadd.f32 %v2895_v7, %v2783_v51  ;;  %4261 = vmatpush2.bf16.msra.mxu0 %v6156_v36  ;;  %v3184_v50 = vmax.f32 %v2894_v0, 0.0  ;;  %v2939_v36 = vadd.f32 %v7018_v39, %v7143_v28  ;;  %v7168_v7 = vpop.f32.mrf.mxu0 }
 0x316   :  { %v3045_v32 = vpop.f32.mrf.mxu1  ;;  %4262 = vmatprep.subr.bf16.mxu0 %v6164_v40 }
 0x317   :  { %v3185_v27 = vmax.f32 %v2896_v56, 0.0  ;;  %v7159_v43 = vpack.c.bf16 %v3184_v50, %v3180_v62  ;;  %v3046_v4 = vadd.f32 %v3045_v32, %v2933_v22  ;;  %v2945_v50 = vadd.f32 %v7033_v47, %v7143_v28  ;;  %v7183_v47 = vpop.f32.mrf.mxu0 }
 0x318   :  { %v3047_v45 = vpop.f32.mrf.mxu1  ;;  %v2947_v32 = vadd.f32 %v7048_v52, %v7147_v2 }
 0x319   :  { %4263 = vmatpush2.bf16.msra.mxu0 %v6162_v14  ;;  %v7155_v23 = vpack.c.bf16 %v3185_v27, %v3181_v38  ;;  %v3048_v5 = vadd.f32 %v3047_v45, %v2935_v60  ;;  %v3126_v56 = vmax.f32 %v3046_v4, 0.0  ;;  %v2943_v38 = vadd.f32 %v7030_v55, %v7147_v2  ;;  %v6182_v45 = vld [vmem:[#allocation7 + $0x2cc] ss:$16 sps:$4 sm:$0xff]   ;;  %v7188_v4 = vpop.f32.mrf.mxu0 }
 0x31a   :  { %v3049_v46 = vpop.f32.mrf.mxu1  ;;  %4264 = vmatprep.subr.bf16.mxu0 %v6170_v34  ;;  %v2949_v60 = vadd.f32 %v7051_v16, %v7143_v28  ;;  %v6185_v16 = vld [vmem:[#allocation7 + $0x2ac] ss:$16 sps:$4 sm:$0xff]  }
 0x31b   :  { %v3050_v21 = vadd.f32 %v3049_v46, %v2937_v48  ;;  %4112 = vmatprep.mubr.bf16.mxu0 %v7155_v23  ;;  %v3127_v35 = vmax.f32 %v3048_v5, 0.0  ;;  %v6180_v46 = vld [vmem:[#allocation7 + $0x2c8] ss:$16 sps:$4 sm:$0xff]  }
 0x31c   :  { %v3051_v40 = vpop.f32.mrf.mxu1  ;;  %4113 = vmatmul.mubr.bf16.gmra.mxu0 %v7159_v43 }
 0x31d   :  { %v3052_v51 = vadd.f32 %v3051_v40, %v2939_v36  ;;  %4265 = vmatpush2.bf16.msra.mxu0 %v6168_v58  ;;  %4268 = vmatprep.mubr.bf16.mxu0 %v7022_v3  ;;  %v3130_v6 = vmax.f32 %v3050_v21, 0.0  ;;  %v6177_v3 = vld [vmem:[#allocation7 + $0x2e8] ss:$16 sps:$4 sm:$0xff]  }
 0x31e   :  { %v3055_v0 = vpop.f32.mrf.mxu1  ;;  %4266 = vmatprep.subr.bf16.mxu0 %v6176_v25 }
 0x31f   :  { %v3131_v39 = vmax.f32 %v3052_v51, 0.0  ;;  %v7178_v27 = vpack.c.bf16 %v3130_v6, %v3126_v56  ;;  %v3056_v52 = vadd.f32 %v3055_v0, %v2943_v38  ;;  %v2953_v0 = vadd.f32 %v7066_v37, %v7147_v2  ;;  %v6188_v56 = vld [vmem:[#allocation7 + $0x28c] ss:$16 sps:$4 sm:$0xff]   ;;  %v6186_v38 = vld [vmem:[#allocation7 + $0x288] ss:$16 sps:$4 sm:$0xff]  }
 0x320   :  { %v3057_v14 = vpop.f32.mrf.mxu1 }
 0x321   :  { %4267 = vmatpush2.bf16.msra.mxu0 %v6174_v53  ;;  %v7174_v34 = vpack.c.bf16 %v3131_v39, %v3127_v35  ;;  %v3058_v48 = vadd.f32 %v3057_v14, %v2945_v50  ;;  %v3134_v40 = vmax.f32 %v3056_v52, 0.0  ;;  %v2955_v53 = vadd.f32 %v7069_v54, %v7143_v28 }
 0x322   :  { %v3059_v62 = vpop.f32.mrf.mxu1  ;;  %v2959_v14 = vadd.f32 %v7087_v13, %v7143_v28  ;;  %v6191_v13 = vld [vmem:[#allocation7 + $0x26c] ss:$16 sps:$4 sm:$0xff]  }
 0x323   :  { %v3060_v58 = vadd.f32 %v3059_v62, %v2947_v32  ;;  %4155 = vmatprep.mubr.bf16.mxu1 %v7174_v34  ;;  %v3135_v5 = vmax.f32 %v3058_v48, 0.0 }
 0x324   :  { %v3061_v22 = vpop.f32.mrf.mxu1  ;;  %4156 = vmatmul.mubr.bf16.vlgmr.msra.gmra.mxu1 %v7178_v27  ;;  %4269 = vmatmul.mubr.bf16.vlgmr.msra.gmra.mxu0 %v7026_v59  ;;  %v2957_v59 = vadd.f32 %v7084_v31, %v7147_v2  ;;  %v7203_v31 = vpop.f32.mrf.mxu0 }
 0x325   :  { %v3062_v55 = vadd.f32 %v3061_v22, %v2949_v60  ;;  %4350 = vmatpush1.bf16.msra.mxu1 %v6177_v3  ;;  %4278 = vmatprep.mubr.bf16.mxu0 %v7039_v1  ;;  %v3138_v25 = vmax.f32 %v3060_v58, 0.0  ;;  %v6183_v1 = vld [vmem:[#allocation7 + $0x2a8] ss:$16 sps:$4 sm:$0xff]  }
 0x326   :  { %v3065_v36 = vpop.f32.mrf.mxu1  ;;  %4351 = vmatprep.subr.bf16.mxu1 %v6182_v45  ;;  %v7208_v58 = vpop.f32.mrf.mxu0 }
 0x327   :  { %v3139_v21 = vmax.f32 %v3062_v55, 0.0  ;;  %v7198_v35 = vpack.c.bf16 %v3138_v25, %v3134_v40  ;;  %v3066_v32 = vadd.f32 %v3065_v36, %v2953_v0  ;;  %v2965_v55 = vadd.f32 %v7105_v63, %v7143_v28 }
 0x328   :  { %v3067_v51 = vpop.f32.mrf.mxu1  ;;  %v2963_v25 = vadd.f32 %v7102_v44, %v7147_v2 }
 0x329   :  { %4352 = vmatpush1.bf16.msra.mxu1 %v6180_v46  ;;  %v7194_v6 = vpack.c.bf16 %v3139_v21, %v3135_v5  ;;  %v3068_v50 = vadd.f32 %v3067_v51, %v2955_v53  ;;  %v3142_v52 = vmax.f32 %v3066_v32, 0.0  ;;  %v6194_v5 = vld [vmem:[#allocation7 + $0x24c] ss:$16 sps:$4 sm:$0xff]   ;;  %v2969_v21 = vadd.f32 %v7123_v33, %v7143_v28 }
 0x32a   :  { %v3069_v39 = vpop.f32.mrf.mxu1  ;;  %4353 = vmatprep.subr.bf16.mxu1 %v6185_v16  ;;  %v6197_v33 = vld [vmem:[#allocation7 + $0x22c] ss:$16 sps:$4 sm:$0xff]   ;;  %v2975_v32 = vadd.f32 %v7149_v15, %v7143_v28 }
 0x32b   :  { %v3070_v54 = vadd.f32 %v3069_v39, %v2957_v59  ;;  %4165 = vmatprep.mubr.bf16.mxu1 %v7194_v6  ;;  %v3143_v60 = vmax.f32 %v3068_v50, 0.0  ;;  %v6192_v59 = vld [vmem:[#allocation7 + $0x248] ss:$16 sps:$4 sm:$0xff]  }
 0x32c   :  { %v3071_v3 = vpop.f32.mrf.mxu1  ;;  %4166 = vmatmul.mubr.bf16.gmra.mxu1 %v7198_v35  ;;  %4279 = vmatmul.mubr.bf16.gmra.mxu0 %v7043_v24  ;;  %v2967_v24 = vadd.f32 %v7120_v61, %v7147_v2  ;;  %v7223_v61 = vpop.f32.mrf.mxu0 }
 0x32d   :  { %v3072_v37 = vadd.f32 %v3071_v3, %v2959_v14  ;;  %4354 = vmatpush1.bf16.msra.mxu1 %v6183_v1  ;;  %4288 = vmatprep.mubr.bf16.mxu0 %v7057_v49  ;;  %v3146_v62 = vmax.f32 %v3070_v54, 0.0  ;;  %v6189_v49 = vld [vmem:[#allocation7 + $0x268] ss:$16 sps:$4 sm:$0xff]  }
 0x32e   :  { %v3075_v45 = vpop.f32.mrf.mxu1  ;;  %4355 = vmatprep.subr.bf16.mxu1 %v6188_v56  ;;  %v7228_v14 = vpop.f32.mrf.mxu0 }
 0x32f   :  { %v3147_v48 = vmax.f32 %v3072_v37, 0.0  ;;  %v7218_v36 = vpack.c.bf16 %v3146_v62, %v3142_v52  ;;  %v3076_v51 = vadd.f32 %v3075_v45, %v2963_v25  ;;  %v2973_v37 = vadd.f32 %v7138_v30, %v7147_v2  ;;  %v6200_v45 = vld [vmem:[#allocation7 + $0x20c] ss:$16 sps:$4 sm:$0xff]  }
 0x330   :  { %v3077_v22 = vpop.f32.mrf.mxu1 }
 0x331   :  { %4356 = vmatpush1.bf16.msra.mxu1 %v6186_v38  ;;  %v7214_v46 = vpack.c.bf16 %v3147_v48, %v3143_v60  ;;  %v3078_v40 = vadd.f32 %v3077_v22, %v2965_v55  ;;  %v3150_v50 = vmax.f32 %v3076_v51, 0.0  ;;  %v6198_v22 = vld [vmem:[#allocation7 + $0x208] ss:$16 sps:$4 sm:$0xff]   ;;  %v2983_v51 = vadd.f32 %v7183_v47, %v7147_v2 }
 0x332   :  { %v3079_v16 = vpop.f32.mrf.mxu1  ;;  %4357 = vmatprep.subr.bf16.mxu1 %v6191_v13  ;;  %v2979_v13 = vadd.f32 %v7168_v7, %v7143_v28  ;;  %v6203_v7 = vld [vmem:[#allocation7 + $0x3ec] ss:$16 sps:$4 sm:$0xff]  }
 0x333   :  { %v3080_v63 = vadd.f32 %v3079_v16, %v2967_v24  ;;  %4175 = vmatprep.mubr.bf16.mxu1 %v7214_v46  ;;  %v3151_v39 = vmax.f32 %v3078_v40, 0.0  ;;  %v2985_v40 = vadd.f32 %v7188_v4, %v7143_v28 }
 0x334   :  { %v3081_v53 = vpop.f32.mrf.mxu1  ;;  %4176 = vmatmul.mubr.bf16.gmra.mxu1 %v7218_v36  ;;  %4289 = vmatmul.mubr.bf16.gmra.mxu0 %v7061_v29  ;;  %v2977_v29 = vadd.f32 %v7164_v8, %v7147_v2  ;;  %v2996_v8 = vpop.f32.mrf.mxu0 }
 0x335   :  { %v3082_v44 = vadd.f32 %v3081_v53, %v2969_v21  ;;  %4358 = vmatpush1.bf16.msra.mxu1 %v6189_v49  ;;  %4298 = vmatprep.mubr.bf16.mxu0 %v7075_v42  ;;  %v3154_v1 = vmax.f32 %v3080_v63, 0.0  ;;  %v6195_v42 = vld [vmem:[#allocation7 + $0x228] ss:$16 sps:$4 sm:$0xff]  }
 0x336   :  { %v3085_v0 = vpop.f32.mrf.mxu1  ;;  %4359 = vmatprep.subr.bf16.mxu1 %v6194_v5  ;;  %v2998_v16 = vpop.f32.mrf.mxu0 }
 0x337   :  { %v3155_v56 = vmax.f32 %v3082_v44, 0.0  ;;  %v7238_v38 = vpack.c.bf16 %v3154_v1, %v3150_v50  ;;  %v3086_v48 = vadd.f32 %v3085_v0, %v2973_v37  ;;  %v2989_v1 = vadd.f32 %v7208_v58, %v7143_v28  ;;  %v6209_v58 = vld [vmem:[#allocation7 + $0x3ac] ss:$16 sps:$4 sm:$0xff]  }
 0x338   :  { %v3087_v54 = vpop.f32.mrf.mxu1 }
 0x339   :  { %4360 = vmatpush1.bf16.msra.mxu1 %v6192_v59  ;;  %v7234_v3 = vpack.c.bf16 %v3155_v56, %v3151_v39  ;;  %v3088_v60 = vadd.f32 %v3087_v54, %v2975_v32  ;;  %v3158_v5 = vmax.f32 %v3086_v48, 0.0  ;;  %v6206_v59 = vld [vmem:[#allocation7 + $0x3cc] ss:$16 sps:$4 sm:$0xff]   ;;  %v6204_v56 = vld [vmem:[#allocation7 + $0x3c8] ss:$16 sps:$4 sm:$0xff]  }
 0x33a   :  { %v3089_v62 = vpop.f32.mrf.mxu1  ;;  %4361 = vmatprep.subr.bf16.mxu1 %v6197_v33 }
 0x33b   :  { %v3090_v15 = vadd.f32 %v3089_v62, %v2977_v29  ;;  %4185 = vmatprep.mubr.bf16.mxu1 %v7234_v3  ;;  %v3159_v49 = vmax.f32 %v3088_v60, 0.0  ;;  %v6207_v60 = vld [vmem:[#allocation7 + $0x3a8] ss:$16 sps:$4 sm:$0xff]  }
 0x33c   :  { %v3091_v52 = vpop.f32.mrf.mxu1  ;;  %4186 = vmatmul.mubr.bf16.gmra.mxu1 %v7238_v38  ;;  %4299 = vmatmul.mubr.bf16.gmra.mxu0 %v7079_v26  ;;  %v2987_v26 = vadd.f32 %v7203_v31, %v7147_v2  ;;  %v3002_v31 = vpop.f32.mrf.mxu0 }
 0x33d   :  { %v3092_v30 = vadd.f32 %v3091_v52, %v2979_v13  ;;  %4362 = vmatpush1.bf16.msra.mxu1 %v6195_v42  ;;  %4308 = vmatprep.mubr.bf16.mxu0 %v7093_v12  ;;  %v3162_v55 = vmax.f32 %v3090_v15, 0.0  ;;  %v6201_v12 = vld [vmem:[#allocation7 + $0x3e8] ss:$16 sps:$4 sm:$0xff]   ;;  %v2997_v13 = vadd.f32 %v2996_v8, %v7147_v2  ;;  %v6212_v52 = vld [vmem:[#allocation7 + $0x38c] ss:$16 sps:$4 sm:$0xff]  }
 0x33e   :  { %v3095_v24 = vpop.f32.mrf.mxu1  ;;  %4363 = vmatprep.subr.bf16.mxu1 %v6200_v45  ;;  %v3004_v42 = vpop.f32.mrf.mxu0  ;;  %v2995_v45 = vadd.f32 %v7228_v14, %v7143_v28 }
 0x33f   :  { %v3163_v25 = vmax.f32 %v3092_v30, 0.0  ;;  %v7254_v53 = vpack.c.bf16 %v3162_v55, %v3158_v5  ;;  %v3096_v33 = vadd.f32 %v3095_v24, %v2983_v51  ;;  %v2999_v30 = vadd.f32 %v2998_v16, %v7143_v28  ;;  %v6215_v16 = vld [vmem:[#allocation7 + $0x36c] ss:$16 sps:$4 sm:$0xff]  }
 0x340   :  { %v3097_v21 = vpop.f32.mrf.mxu1  ;;  %v3006_v14 = vpop.f32.mrf.mxu0  ;;  %v3005_v51 = vadd.f32 %v3004_v42, %v7143_v28 }
 0x341   :  { %v7250_v63 = vpack.c.bf16 %v3163_v25, %v3159_v49  ;;  %4364 = vmatpush1.bf16.msra.mxu1 %v6198_v22  ;;  %v3098_v0 = vadd.f32 %v3097_v21, %v2985_v40  ;;  %v3166_v37 = vmax.f32 %v3096_v33, 0.0  ;;  %v6225_v33 = vld [vmem:[#allocation8 + $0x78] sm:$0xff]  }
 0x342   :  { %v3099_v44 = vpop.f32.mrf.mxu1  ;;  %4365 = vmatprep.subr.bf16.mxu1 %v6203_v7  ;;  %v3008_v40 = vpop.f32.mrf.mxu0  ;;  %5495 = vmatprep.subr.bf16.mxu0 %v6225_v33 }
 0x343   :  { %v3100_v4 = vadd.f32 %v3099_v44, %v2987_v26  ;;  %4195 = vmatprep.mubr.bf16.mxu1 %v7250_v63  ;;  %v3167_v32 = vmax.f32 %v3098_v0, 0.0  ;;  %v3007_v44 = vadd.f32 %v3006_v14, %v7147_v2  ;;  %v6234_v14 = vld [vmem:[#allocation8 + $0x18] sm:$0xff]  }
 0x344   :  { %v3101_v39 = vpop.f32.mrf.mxu1  ;;  %4196 = vmatmul.mubr.bf16.gmra.mxu1 %v7254_v53  ;;  %4309 = vmatmul.mubr.bf16.gmra.mxu0 %v7097_v57 }
 0x345   :  { %v3102_v47 = vadd.f32 %v3101_v39, %v2989_v1  ;;  %4366 = vmatpush2.bf16.msra.mxu1 %v6201_v12  ;;  %4318 = vmatprep.mubr.bf16.mxu0 %v7111_v11  ;;  %v3170_v50 = vmax.f32 %v3100_v4, 0.0  ;;  %v2993_v11 = vadd.f32 %v7223_v61, %v7147_v2  ;;  %v6210_v61 = vld [vmem:[#allocation7 + $0x388] ss:$16 sps:$4 sm:$0xff]   ;;  %v6218_v4 = vld [vmem:[#allocation7 + $0x34c] ss:$16 sps:$4 sm:$0xff]   ;;  %v3009_v39 = vadd.f32 %v3008_v40, %v7143_v28  ;;  %v6227_v28 = vld [vmem:[#allocation8 + $0x70] sm:$0xff]  }
 0x346   :  { %v3105_v54 = vpop.f32.mrf.mxu1  ;;  %4367 = vmatprep.subr.bf16.mxu1 %v6206_v59 }
 0x347   :  { %v3171_v29 = vmax.f32 %v3102_v47, 0.0  ;;  %v7269_v15 = vpack.c.bf16 %v3170_v50, %v3166_v37  ;;  %v3106_v8 = vadd.f32 %v3105_v54, %v2993_v11  ;;  %v6226_v50 = vld [vmem:[#allocation8 + $0x38] sm:$0xff]   ;;  %v6229_v11 = vld [vmem:[#allocation8 + $0x68] sm:$0xff]  }
 0x348   :  { %v3107_v62 = vpop.f32.mrf.mxu1  ;;  %5496 = vmatpush3.bf16.msra.mxu0 %v6226_v50 }
 0x349   :  { %v7265_v57 = vpack.c.bf16 %v3171_v29, %v3167_v32  ;;  %4368 = vmatpush2.bf16.msra.mxu1 %v6204_v56  ;;  %v3108_v22 = vadd.f32 %v3107_v62, %v2995_v45  ;;  %v3174_v26 = vmax.f32 %v3106_v8, 0.0  ;;  %v6221_v29 = vld [vmem:[#allocation7 + $0x32c] ss:$16 sps:$4 sm:$0xff]   ;;  %v6228_v62 = vld [vmem:[#allocation8 + $0x30] sm:$0xff]   ;;  %5497 = vmatprep.subr.bf16.mxu0 %v6227_v28 }
 0x34a   :  { %v3109_v48 = vpop.f32.mrf.mxu1  ;;  %4369 = vmatprep.subr.bf16.mxu1 %v6209_v58  ;;  %v6236_v8 = vld [vmem:[#allocation8 + $0x10] sm:$0xff]  }
 0x34b   :  { %v3110_v55 = vadd.f32 %v3109_v48, %v2997_v13  ;;  %4205 = vmatprep.mubr.bf16.mxu1 %v7265_v57  ;;  %v3175_v5 = vmax.f32 %v3108_v22, 0.0  ;;  %v6230_v48 = vld [vmem:[#allocation8 + $0x28] sm:$0xff]   ;;  %v6232_v22 = vld [vmem:[#allocation8 + $0x20] sm:$0xff]  }
 0x34c   :  { %v3111_v24 = vpop.f32.mrf.mxu1  ;;  %4206 = vmatmul.mubr.bf16.gmra.mxu1 %v7269_v15  ;;  %4319 = vmatmul.mubr.bf16.gmra.mxu0 %v7115_v41  ;;  %v6213_v41 = vld [vmem:[#allocation7 + $0x368] ss:$16 sps:$4 sm:$0xff]  }
 0x34d   :  { %v3112_v7 = vadd.f32 %v3111_v24, %v2999_v30  ;;  %4370 = vmatpush2.bf16.msra.mxu1 %v6207_v60  ;;  %4328 = vmatprep.mubr.bf16.mxu0 %v7129_v10  ;;  %v3178_v49 = vmax.f32 %v3110_v55, 0.0  ;;  %v3003_v10 = vadd.f32 %v3002_v31, %v7147_v2  ;;  %v6216_v31 = vld [vmem:[#allocation7 + $0x348] ss:$16 sps:$4 sm:$0xff]   ;;  %v6231_v30 = vld [vmem:[#allocation8 + $0x60] sm:$0xff]  }
 0x34e   :  { %v3115_v25 = vpop.f32.mrf.mxu1  ;;  %4371 = vmatprep.subr.bf16.mxu1 %v6212_v52  ;;  %5498 = vmatpush3.bf16.msra.mxu0 %v6228_v62  ;;  %v6222_v52 = vld [vmem:[#allocation7 + $0x308] ss:$16 sps:$4 sm:$0xff]  }
 0x34f   :  { %v3179_v21 = vmax.f32 %v3112_v7, 0.0  ;;  %v7281_v1 = vpack.c.bf16 %v3178_v49, %v3174_v26  ;;  %v3116_v54 = vadd.f32 %v3115_v25, %v3003_v10  ;;  %5499 = vmatprep.subr.bf16.mxu0 %v6229_v11  ;;  %v6233_v55 = vld [vmem:[#allocation8 + $0x58] sm:$0xff]   ;;  %v6238_v24 = vld [vmem:[#allocation8 + $0x8] sm:$0xff]   ;;  %v6239_v7 = vld [vmem:[#allocation8 + $0x40] sm:$0xff]  }
 0x350   :  { %v3117_v12 = vpop.f32.mrf.mxu1  ;;  %v6245_v49 = vld [vmem:[#allocation8 + $0xe8] sm:$0xff]   ;;  %v6252_v25 = vld [vmem:[#allocation8 + $0x90] sm:$0xff]   ;;  %v7360_v11 = vld [vmem:[%s7566_s8] sm:$0xf] }
 0x351   :  { %v7278_v59 = vpack.c.bf16 %v3179_v21, %v3175_v5  ;;  %4372 = vmatpush2.bf16.msra.mxu1 %v6210_v61  ;;  %v3118_v47 = vadd.f32 %v3117_v12, %v3005_v51  ;;  %v3182_v45 = vmax.f32 %v3116_v54, 0.0  ;;  %v6240_v61 = vld [vmem:[#allocation8] sm:$0xff]   ;;  %v6254_v21 = vld [vmem:[#allocation8 + $0x88] sm:$0xff]  }
 0x352   :  { %v3119_v0 = vpop.f32.mrf.mxu1  ;;  %4373 = vmatprep.subr.bf16.mxu1 %v6215_v16  ;;  %5500 = vmatpush3.bf16.msra.mxu0 %v6230_v48  ;;  %v6253_v16 = vld [vmem:[#allocation8 + $0xc8] sm:$0xff]   ;;  %v6255_v51 = vld [vmem:[#allocation8 + $0xc0] sm:$0xff]  }
 0x353   :  { %v3120_v56 = vadd.f32 %v3119_v0, %v3007_v44  ;;  %4215 = vmatprep.mubr.bf16.mxu1 %v7278_v59  ;;  %v3183_v42 = vmax.f32 %v3118_v47, 0.0  ;;  %5501 = vmatprep.subr.bf16.mxu0 %v6231_v30  ;;  %v7370_v30 = vrot.slane %v7360_v11, %v6517_v17 }
 0x354   :  { %v3121_v58 = vpop.f32.mrf.mxu1  ;;  %4216 = vmatmul.mubr.bf16.gmra.mxu1 %v7281_v1  ;;  %4329 = vmatmul.mubr.bf16.gmra.mxu0 %v7133_v9  ;;  %v6219_v9 = vld [vmem:[#allocation7 + $0x328] ss:$16 sps:$4 sm:$0xff]  }
 0x355   :  { %v3122_v2 = vadd.f32 %v3121_v58, %v3009_v39  ;;  %4374 = vmatpush2.bf16.msra.mxu1 %v6213_v41  ;;  %4338 = vmatprep.mubr.bf16.mxu0 %v7155_v23  ;;  %v3186_v32 = vmax.f32 %v3120_v56, 0.0  ;;  %v6224_v23 = vld [vmem:[#allocation7 + $0x30c] ss:$16 sps:$4 sm:$0xff]  }
 0x356   :  { %4375 = vmatprep.subr.bf16.mxu1 %v6218_v4  ;;  %5502 = vmatpush3.bf16.msra.mxu0 %v6232_v22 }
 0x357   :  { %v3187_v37 = vmax.f32 %v3122_v2, 0.0  ;;  %v7290_v60 = vpack.c.bf16 %v3186_v32, %v3182_v45  ;;  %5503 = vmatprep.subr.bf16.mxu0 %v6233_v55 }
 0x359   :  { %v7288_v13 = vpack.c.bf16 %v3187_v37, %v3183_v42  ;;  %4376 = vmatpush2.bf16.msra.mxu1 %v6216_v31 }
 0x35a   :  { %4377 = vmatprep.subr.bf16.mxu1 %v6221_v29  ;;  %5504 = vmatpush3.bf16.msra.mxu0 %v6234_v14 }
 0x35b   :  { %4225 = vmatprep.mubr.bf16.mxu1 %v7288_v13 }
 0x35c   :  { %4226 = vmatmul.mubr.bf16.gmra.mxu1 %v7290_v60  ;;  %4339 = vmatmul.mubr.bf16.gmra.mxu0 %v7159_v43  ;;  %v6235_v43 = vld [vmem:[#allocation8 + $0x50] sm:$0xff]  }
 0x35d   :  { %4378 = vmatpush2.bf16.msra.mxu1 %v6219_v9  ;;  %4381 = vmatprep.mubr.bf16.mxu1 %v7174_v34  ;;  %v6237_v34 = vld [vmem:[#allocation8 + $0x48] sm:$0xff]  }
 0x35e   :  { %4379 = vmatprep.subr.bf16.mxu1 %v6224_v23  ;;  %5505 = vmatprep.subr.bf16.mxu0 %v6235_v43 }
 0x35f   :  { %5506 = vmatpush3.bf16.msra.mxu0 %v6236_v8 }
 0x360   :  { %5507 = vmatprep.subr.bf16.mxu0 %v6237_v34 }
 0x361   :  { %4380 = vmatpush2.bf16.msra.mxu1 %v6222_v52  ;;  %v7366_v52 = vrot.slane %v7360_v11, %v6521_v19 }
 0x363   :  { %5508 = vmatpush3.bf16.msra.mxu0 %v6238_v24 }
 0x364   :  { %4382 = vmatmul.mubr.bf16.vlgmr.msra.gmra.mxu1 %v7178_v27  ;;  %5509 = vmatprep.subr.bf16.mxu0 %v6239_v7  ;;  %v6241_v27 = vld [vmem:[#allocation8 + $0xf8] sm:$0xff]  }
 0x365   :  { %4391 = vmatprep.mubr.bf16.mxu1 %v7194_v6  ;;  %5559 = vmatprep.subr.bf16.mxu1 %v6241_v27  ;;  %v6242_v6 = vld [vmem:[#allocation8 + $0xb8] sm:$0xff]  }
 0x366   :  { %5560 = vmatpush3.bf16.msra.mxu1 %v6242_v6 }
 0x367   :  { %5510 = vmatpush3.bf16.msra.mxu0 %v6240_v61 }
 0x36c   :  { %4392 = vmatmul.mubr.bf16.gmra.mxu1 %v7198_v35  ;;  %v6243_v35 = vld [vmem:[#allocation8 + $0xf0] sm:$0xff]  }
 0x36d   :  { %4401 = vmatprep.mubr.bf16.mxu1 %v7214_v46  ;;  %5561 = vmatprep.subr.bf16.mxu1 %v6243_v35  ;;  %v6244_v46 = vld [vmem:[#allocation8 + $0xb0] sm:$0xff]  }
 0x36e   :  { %5562 = vmatpush3.bf16.msra.mxu1 %v6244_v46 }
 0x36f   :  { %5563 = vmatprep.subr.bf16.mxu1 %v6245_v49 }
 0x374   :  { %4402 = vmatmul.mubr.bf16.gmra.mxu1 %v7218_v36  ;;  %v6246_v36 = vld [vmem:[#allocation8 + $0xa8] sm:$0xff]  }
 0x375   :  { %4411 = vmatprep.mubr.bf16.mxu1 %v7234_v3  ;;  %5564 = vmatpush3.bf16.msra.mxu1 %v6246_v36  ;;  %v6247_v3 = vld [vmem:[#allocation8 + $0xe0] sm:$0xff]  }
 0x376   :  { %5565 = vmatprep.subr.bf16.mxu1 %v6247_v3 }
 0x37c   :  { %4412 = vmatmul.mubr.bf16.gmra.mxu1 %v7238_v38  ;;  %v6248_v38 = vld [vmem:[#allocation8 + $0xa0] sm:$0xff]  }
 0x37d   :  { %4421 = vmatprep.mubr.bf16.mxu1 %v7250_v63  ;;  %5566 = vmatpush3.bf16.msra.mxu1 %v6248_v38  ;;  %v6249_v63 = vld [vmem:[#allocation8 + $0xd8] sm:$0xff]  }
 0x37e   :  { %5567 = vmatprep.subr.bf16.mxu1 %v6249_v63 }
 0x384   :  { %4422 = vmatmul.mubr.bf16.gmra.mxu1 %v7254_v53  ;;  %v6250_v53 = vld [vmem:[#allocation8 + $0x98] sm:$0xff]  }
 0x385   :  { %4431 = vmatprep.mubr.bf16.mxu1 %v7265_v57  ;;  %5568 = vmatpush3.bf16.msra.mxu1 %v6250_v53  ;;  %v6251_v57 = vld [vmem:[#allocation8 + $0xd0] sm:$0xff]  }
 0x386   :  { %5569 = vmatprep.subr.bf16.mxu1 %v6251_v57 }
 0x389   :  { %5570 = vmatpush3.bf16.msra.mxu1 %v6252_v25 }
 0x38a   :  { %5571 = vmatprep.subr.bf16.mxu1 %v6253_v16 }
 0x38c   :  { %4432 = vmatmul.mubr.bf16.gmra.mxu1 %v7269_v15 }
 0x38d   :  { %4441 = vmatprep.mubr.bf16.mxu1 %v7278_v59  ;;  %5572 = vmatpush3.bf16.msra.mxu1 %v6254_v21  ;;  %v6256_v59 = vld [vmem:[#allocation8 + $0x80] sm:$0xff]  }
 0x38e   :  { %5573 = vmatprep.subr.bf16.mxu1 %v6255_v51 }
 0x391   :  { %5574 = vmatpush3.bf16.msra.mxu1 %v6256_v59 }
 0x394   :  { %4442 = vmatmul.mubr.bf16.gmra.mxu1 %v7281_v1 }
 0x395   :  { %4451 = vmatprep.mubr.bf16.mxu1 %v7288_v13 }
 0x39c   :  { %4452 = vmatmul.mubr.bf16.gmra.mxu1 %v7290_v60 }
 0x3a4   :  { %v4044_v15 = vpop.f32.mrf.mxu0 }
 0x3a5   :  { %v4045_v24 = vadd.f32 %v4044_v15, %v7370_v30 }
 0x3a6   :  { %v4046_v5 = vpop.f32.mrf.mxu0 }
 0x3a7   :  { %v4047_v8 = vadd.f32 %v4046_v5, %v7366_v52 }
 0x3a8   :  { %v4048_v40 = vpop.f32.mrf.mxu0 }
 0x3a9   :  { %v4049_v34 = vadd.f32 %v4048_v40, %v7370_v30 }
 0x3aa   :  { %v4050_v26 = vpop.f32.mrf.mxu0 }
 0x3ab   :  { %v4051_v19 = vadd.f32 %v4050_v26, %v7366_v52 }
 0x3ac   :  { %v4054_v12 = vpop.f32.mrf.mxu0 }
 0x3ad   :  { %v4055_v5 = vadd.f32 %v4054_v12, %v7370_v30 }
 0x3ae   :  { %v4056_v44 = vpop.f32.mrf.mxu0 }
 0x3af   :  { %v4057_v25 = vadd.f32 %v4056_v44, %v7366_v52 }
 0x3b0   :  { %v4058_v41 = vpop.f32.mrf.mxu0 }
 0x3b1   :  { %v4059_v15 = vadd.f32 %v4058_v41, %v7370_v30 }
 0x3b2   :  { %v4060_v10 = vpop.f32.mrf.mxu0 }
 0x3b3   :  { %v4061_v26 = vadd.f32 %v4060_v10, %v7366_v52 }
 0x3b4   :  { %v7311_v1 = vpop.f32.mrf.mxu0 }
 0x3b6   :  { %v7313_v0 = vpop.f32.mrf.mxu0 }
 0x3b7   :  { %v4067_v10 = vadd.f32 %v7313_v0, %v7366_v52 }
 0x3b8   :  { %v7315_v4 = vpop.f32.mrf.mxu0 }
 0x3ba   :  { %v7317_v33 = vpop.f32.mrf.mxu0 }
 0x3bc   :  { %v7319_v39 = vpop.f32.mrf.mxu0 }
 0x3be   :  { %v7321_v47 = vpop.f32.mrf.mxu0 }
 0x3c0   :  { %v7323_v56 = vpop.f32.mrf.mxu0 }
 0x3c2   :  { %v7325_v50 = vpop.f32.mrf.mxu0 }
 0x3c4   :  { %v7327_v54 = vpop.f32.mrf.mxu0 }
 0x3c6   :  { %v7329_v58 = vpop.f32.mrf.mxu0 }
 0x3c8   :  { %v7331_v2 = vpop.f32.mrf.mxu0 }
 0x3ca   :  { %v7333_v31 = vpop.f32.mrf.mxu0 }
 0x3cc   :  { %v7335_v32 = vpop.f32.mrf.mxu0 }
 0x3ce   :  { %v7337_v29 = vpop.f32.mrf.mxu0 }
 0x3d0   :  { %v7339_v28 = vpop.f32.mrf.mxu0 }
 0x3d2   :  { %v7341_v42 = vpop.f32.mrf.mxu0 }
 0x3d4   :  { %v7343_v37 = vpop.f32.mrf.mxu0 }
 0x3d6   :  { %v7345_v62 = vpop.f32.mrf.mxu0 }
 0x3d8   :  { %v7347_v45 = vpop.f32.mrf.mxu0 }
 0x3da   :  { %v7349_v13 = vpop.f32.mrf.mxu0 }
 0x3dc   :  { %v7351_v9 = vpop.f32.mrf.mxu0 }
 0x3de   :  { %v7353_v60 = vpop.f32.mrf.mxu0 }
 0x3e0   :  { %v7355_v23 = vpop.f32.mrf.mxu0 }
 0x3e2   :  { %v7362_v48 = vpop.f32.mrf.mxu0 }
 0x3e4   :  { %v4157_v22 = vpop.f32.mrf.mxu1  ;;  %v7372_v55 = vpop.f32.mrf.mxu0 }
 0x3e5   :  { %v4158_v6 = vadd.f32 %v4157_v22, %v4045_v24 }
 0x3e6   :  { %v4159_v14 = vpop.f32.mrf.mxu1  ;;  %v7374_v43 = vpop.f32.mrf.mxu0 }
 0x3e7   :  { %v4160_v61 = vadd.f32 %v4159_v14, %v4047_v8  ;;  %v4462_v63 = vmax.f32 %v4158_v6, 0.0 }
 0x3e8   :  { %v4161_v7 = vpop.f32.mrf.mxu1  ;;  %v7380_v17 = vpop.f32.mrf.mxu0 }
 0x3e9   :  { %v4162_v27 = vadd.f32 %v4161_v7, %v4049_v34  ;;  %v4463_v3 = vmax.f32 %v4160_v61, 0.0 }
 0x3ea   :  { %v4163_v35 = vpop.f32.mrf.mxu1  ;;  %v7382_v53 = vpop.f32.mrf.mxu0 }
 0x3eb   :  { %v4164_v46 = vadd.f32 %v4163_v35, %v4051_v19  ;;  %v4466_v49 = vmax.f32 %v4162_v27, 0.0  ;;  %v4069_v27 = vadd.f32 %v7315_v4, %v7370_v30  ;;  %v4065_v35 = vadd.f32 %v7311_v1, %v7370_v30 }
 0x3ec   :  { %v4167_v36 = vpop.f32.mrf.mxu1  ;;  %v7388_v14 = vpop.f32.mrf.mxu0 }
 0x3ed   :  { %v4467_v38 = vmax.f32 %v4164_v46, 0.0  ;;  %v4526_v21 = vpack.c.bf16 %v4466_v49, %v4462_v63  ;;  %v4168_v22 = vadd.f32 %v4167_v36, %v4055_v5  ;;  %v4071_v36 = vadd.f32 %v7317_v33, %v7366_v52 }
 0x3ee   :  { %v4169_v57 = vpop.f32.mrf.mxu1  ;;  %v7390_v61 = vpop.f32.mrf.mxu0  ;;  %v4077_v33 = vadd.f32 %v7321_v47, %v7366_v52 }
 0x3ef   :  { %v4527_v16 = vpack.c.bf16 %v4467_v38, %v4463_v3  ;;  %v4170_v51 = vadd.f32 %v4169_v57, %v4057_v25  ;;  %v4470_v19 = vmax.f32 %v4168_v22, 0.0 }
 0x3f0   :  { %v4171_v40 = vpop.f32.mrf.mxu1  ;;  %v7400_v63 = vpop.f32.mrf.mxu0 }
 0x3f1   :  { %v4172_v59 = vadd.f32 %v4171_v40, %v4059_v15  ;;  %4853 = vmatprep.mubr.bf16.mxu0 %v4527_v16  ;;  %v4471_v7 = vmax.f32 %v4170_v51, 0.0 }
 0x3f2   :  { %v4173_v8 = vpop.f32.mrf.mxu1  ;;  %4854 = vmatmul.mubr.bf16.vlgmr.msra.gmra.mxu0 %v4526_v21  ;;  %v7402_v21 = vpop.f32.mrf.mxu0 }
 0x3f3   :  { %v4174_v34 = vadd.f32 %v4173_v8, %v4061_v26  ;;  %v4474_v24 = vmax.f32 %v4172_v59, 0.0  ;;  %v4079_v26 = vadd.f32 %v7323_v56, %v7370_v30  ;;  %v4075_v59 = vadd.f32 %v7319_v39, %v7370_v30 }
 0x3f4   :  { %v4177_v44 = vpop.f32.mrf.mxu1 }
 0x3f5   :  { %v4475_v41 = vmax.f32 %v4174_v34, 0.0  ;;  %v4530_v46 = vpack.c.bf16 %v4474_v24, %v4470_v19  ;;  %v4178_v57 = vadd.f32 %v4177_v44, %v4065_v35  ;;  %v4081_v34 = vadd.f32 %v7325_v50, %v7366_v52 }
 0x3f6   :  { %v4179_v12 = vpop.f32.mrf.mxu1  ;;  %v4087_v50 = vadd.f32 %v7329_v58, %v7366_v52 }
 0x3f7   :  { %v4531_v6 = vpack.c.bf16 %v4475_v41, %v4471_v7  ;;  %v4180_v3 = vadd.f32 %v4179_v12, %v4067_v10  ;;  %v4478_v1 = vmax.f32 %v4178_v57, 0.0  ;;  %v7412_v7 = vpop.f32.mrf.mxu0  ;;  %v4091_v57 = vadd.f32 %v7333_v31, %v7366_v52 }
 0x3f8   :  { %v4181_v49 = vpop.f32.mrf.mxu1  ;;  %v4097_v31 = vadd.f32 %v7337_v29, %v7366_v52 }
 0x3f9   :  { %v4182_v38 = vadd.f32 %v4181_v49, %v4069_v27  ;;  %4861 = vmatprep.mubr.bf16.mxu0 %v4531_v6  ;;  %v4479_v16 = vmax.f32 %v4180_v3, 0.0  ;;  %v7414_v6 = vpop.f32.mrf.mxu0 }
 0x3fa   :  { %v4183_v25 = vpop.f32.mrf.mxu1  ;;  %4862 = vmatmul.mubr.bf16.gmra.mxu0 %v4530_v46  ;;  %v4089_v46 = vadd.f32 %v7331_v2, %v7370_v30 }
 0x3fb   :  { %v4184_v0 = vadd.f32 %v4183_v25, %v4071_v36  ;;  %v4482_v15 = vmax.f32 %v4182_v38, 0.0  ;;  %v4085_v36 = vadd.f32 %v7327_v54, %v7370_v30 }
 0x3fc   :  { %v4187_v4 = vpop.f32.mrf.mxu1 }
 0x3fd   :  { %v4483_v5 = vmax.f32 %v4184_v0, 0.0  ;;  %v4534_v22 = vpack.c.bf16 %v4482_v15, %v4478_v1  ;;  %v4188_v41 = vadd.f32 %v4187_v4, %v4075_v59  ;;  %v7424_v15 = vpop.f32.mrf.mxu0 }
 0x3fe   :  { %v4189_v40 = vpop.f32.mrf.mxu1 }
 0x3ff   :  { %v4535_v51 = vpack.c.bf16 %v4483_v5, %v4479_v16  ;;  %v4190_v24 = vadd.f32 %v4189_v40, %v4077_v33  ;;  %v4486_v39 = vmax.f32 %v4188_v41, 0.0  ;;  %v7426_v33 = vpop.f32.mrf.mxu0 }
 0x400   :  { %v4191_v8 = vpop.f32.mrf.mxu1 }
 0x401   :  { %v4192_v44 = vadd.f32 %v4191_v8, %v4079_v26  ;;  %4869 = vmatprep.mubr.bf16.mxu0 %v4535_v51  ;;  %v4487_v10 = vmax.f32 %v4190_v24, 0.0  ;;  %v4099_v51 = vadd.f32 %v7339_v28, %v7370_v30  ;;  %v4101_v24 = vadd.f32 %v7341_v42, %v7366_v52 }
 0x402   :  { %v4193_v19 = vpop.f32.mrf.mxu1  ;;  %4870 = vmatmul.mubr.bf16.gmra.mxu0 %v4534_v22  ;;  %v4095_v22 = vadd.f32 %v7335_v32, %v7370_v30  ;;  %v4107_v42 = vadd.f32 %v7345_v62, %v7366_v52 }
 0x403   :  { %v4194_v47 = vadd.f32 %v4193_v19, %v4081_v34  ;;  %v4490_v12 = vmax.f32 %v4192_v44, 0.0  ;;  %v7436_v19 = vpop.f32.mrf.mxu0 }
 0x404   :  { %v4197_v56 = vpop.f32.mrf.mxu1 }
 0x405   :  { %v4491_v27 = vmax.f32 %v4194_v47, 0.0  ;;  %v4538_v3 = vpack.c.bf16 %v4490_v12, %v4486_v39  ;;  %v4198_v4 = vadd.f32 %v4197_v56, %v4085_v36  ;;  %v7438_v39 = vpop.f32.mrf.mxu0 }
 0x406   :  { %v4199_v35 = vpop.f32.mrf.mxu1 }
 0x407   :  { %v4539_v49 = vpack.c.bf16 %v4491_v27, %v4487_v10  ;;  %v4200_v25 = vadd.f32 %v4199_v35, %v4087_v50  ;;  %v4494_v54 = vmax.f32 %v4198_v4, 0.0  ;;  %v4109_v50 = vadd.f32 %v7347_v45, %v7370_v30 }
 0x408   :  { %v4201_v38 = vpop.f32.mrf.mxu1 }
 0x409   :  { %v4202_v0 = vadd.f32 %v4201_v38, %v4089_v46  ;;  %4877 = vmatprep.mubr.bf16.mxu0 %v4539_v49  ;;  %v4495_v1 = vmax.f32 %v4200_v25, 0.0  ;;  %v4105_v49 = vadd.f32 %v7343_v37, %v7370_v30  ;;  %v4111_v38 = vadd.f32 %v7349_v13, %v7366_v52 }
 0x40a   :  { %v4203_v16 = vpop.f32.mrf.mxu1  ;;  %4878 = vmatmul.mubr.bf16.gmra.mxu0 %v4538_v3  ;;  %v4117_v13 = vadd.f32 %v7353_v60, %v7366_v52  ;;  %v7464_v60 = vrot.slane %v7360_v11, %v6523_v20 }
 0x40b   :  { %v4204_v58 = vadd.f32 %v4203_v16, %v4091_v57  ;;  %v4498_v5 = vmax.f32 %v4202_v0, 0.0  ;;  %v7448_v0 = vpop.f32.mrf.mxu0 }
 0x40c   :  { %v4207_v2 = vpop.f32.mrf.mxu1 }
 0x40d   :  { %v4499_v40 = vmax.f32 %v4204_v58, 0.0  ;;  %v4542_v8 = vpack.c.bf16 %v4498_v5, %v4494_v54  ;;  %v4208_v47 = vadd.f32 %v4207_v2, %v4095_v22  ;;  %v4119_v54 = vadd.f32 %v7355_v23, %v7370_v30 }
 0x40e   :  { %v4209_v26 = vpop.f32.mrf.mxu1  ;;  %v4121_v22 = vadd.f32 %v7362_v48, %v7366_v52 }
 0x40f   :  { %v4543_v59 = vpack.c.bf16 %v4499_v40, %v4495_v1  ;;  %v4210_v44 = vadd.f32 %v4209_v26, %v4097_v31  ;;  %v4502_v32 = vmax.f32 %v4208_v47, 0.0  ;;  %v7450_v1 = vpop.f32.mrf.mxu0  ;;  %v4115_v31 = vadd.f32 %v7351_v9, %v7370_v30 }
 0x410   :  { %v4211_v34 = vpop.f32.mrf.mxu1  ;;  %v7468_v9 = vrot.slane %v7360_v11, %v6519_v18 }
 0x411   :  { %v4212_v41 = vadd.f32 %v4211_v34, %v4099_v51  ;;  %4885 = vmatprep.mubr.bf16.mxu0 %v4543_v59  ;;  %v4503_v10 = vmax.f32 %v4210_v44, 0.0 }
 0x412   :  { %v4213_v12 = vpop.f32.mrf.mxu1  ;;  %4886 = vmatmul.mubr.bf16.gmra.mxu0 %v4542_v8  ;;  %v4275_v20 = vadd.f32 %v7380_v17, %v7468_v9 }
 0x413   :  { %v4214_v29 = vadd.f32 %v4213_v12, %v4101_v24  ;;  %v4506_v56 = vmax.f32 %v4212_v41, 0.0  ;;  %v7460_v24 = vpop.f32.mrf.mxu0 }
 0x414   :  { %v4217_v28 = vpop.f32.mrf.mxu1 }
 0x415   :  { %v4507_v27 = vmax.f32 %v4214_v29, 0.0  ;;  %v4546_v36 = vpack.c.bf16 %v4506_v56, %v4502_v32  ;;  %v4218_v4 = vadd.f32 %v4217_v28, %v4105_v49  ;;  %v7470_v12 = vpop.f32.mrf.mxu0  ;;  %v4273_v28 = vadd.f32 %v7374_v43, %v7464_v60 }
 0x416   :  { %v4219_v35 = vpop.f32.mrf.mxu1  ;;  %v4277_v32 = vadd.f32 %v7382_v53, %v7464_v60  ;;  %v4283_v53 = vadd.f32 %v7390_v61, %v7464_v60 }
 0x417   :  { %v4547_v46 = vpack.c.bf16 %v4507_v27, %v4503_v10  ;;  %v4220_v57 = vadd.f32 %v4219_v35, %v4107_v42  ;;  %v4510_v37 = vmax.f32 %v4218_v4, 0.0  ;;  %v4271_v27 = vadd.f32 %v7372_v55, %v7468_v9 }
 0x418   :  { %v4221_v3 = vpop.f32.mrf.mxu1  ;;  %v4285_v4 = vadd.f32 %v7400_v63, %v7468_v9 }
 0x419   :  { %v4222_v25 = vadd.f32 %v4221_v3, %v4109_v50  ;;  %4893 = vmatprep.mubr.bf16.mxu0 %v4547_v46  ;;  %v4511_v5 = vmax.f32 %v4220_v57, 0.0  ;;  %v7480_v50 = vpop.f32.mrf.mxu0 }
 0x41a   :  { %v4223_v16 = vpop.f32.mrf.mxu1  ;;  %4894 = vmatmul.mubr.bf16.gmra.mxu0 %v4546_v36 }
 0x41b   :  { %v4224_v62 = vadd.f32 %v4223_v16, %v4111_v38  ;;  %v4514_v58 = vmax.f32 %v4222_v25, 0.0  ;;  %v7482_v57 = vpop.f32.mrf.mxu0 }
 0x41c   :  { %v4227_v45 = vpop.f32.mrf.mxu1 }
 0x41d   :  { %v4515_v2 = vmax.f32 %v4224_v62, 0.0  ;;  %v4550_v51 = vpack.c.bf16 %v4514_v58, %v4510_v37  ;;  %v4228_v44 = vadd.f32 %v4227_v45, %v4115_v31  ;;  %v4281_v62 = vadd.f32 %v7388_v14, %v7468_v9 }
 0x41e   :  { %v4229_v40 = vpop.f32.mrf.mxu1 }
 0x41f   :  { %v4551_v26 = vpack.c.bf16 %v4515_v2, %v4511_v5  ;;  %v4230_v8 = vadd.f32 %v4229_v40, %v4117_v13  ;;  %v4518_v29 = vmax.f32 %v4228_v44, 0.0  ;;  %v4287_v5 = vadd.f32 %v7402_v21, %v7464_v60  ;;  %v7492_v40 = vpop.f32.mrf.mxu0 }
 0x420   :  { %v4231_v59 = vpop.f32.mrf.mxu1  ;;  %v4293_v21 = vadd.f32 %v7414_v6, %v7464_v60  ;;  %v4291_v44 = vadd.f32 %v7412_v7, %v7468_v9 }
 0x421   :  { %v4232_v34 = vadd.f32 %v4231_v59, %v4119_v54  ;;  %4901 = vmatprep.mubr.bf16.mxu0 %v4551_v26  ;;  %v4519_v48 = vmax.f32 %v4230_v8, 0.0  ;;  %v7494_v59 = vpop.f32.mrf.mxu0  ;;  %v4295_v8 = vadd.f32 %v7424_v15, %v7468_v9 }
 0x422   :  { %v4233_v41 = vpop.f32.mrf.mxu1  ;;  %4902 = vmatmul.mubr.bf16.gmra.mxu0 %v4550_v51 }
 0x423   :  { %v4234_v23 = vadd.f32 %v4233_v41, %v4121_v22  ;;  %v4522_v30 = vmax.f32 %v4232_v34, 0.0 }
 0x424   :  { %v4383_v47 = vpop.f32.mrf.mxu1 }
 0x425   :  { %v4523_v52 = vmax.f32 %v4234_v23, 0.0  ;;  %v4554_v18 = vpack.c.bf16 %v4522_v30, %v4518_v29  ;;  %v4384_v46 = vadd.f32 %v4383_v47, %v4271_v27  ;;  %v4297_v30 = vadd.f32 %v7426_v33, %v7464_v60 }
 0x426   :  { %v4385_v56 = vpop.f32.mrf.mxu1  ;;  %v4305_v33 = vadd.f32 %v7448_v0, %v7468_v9 }
 0x427   :  { %v4555_v10 = vpack.c.bf16 %v4523_v52, %v4519_v48  ;;  %v4386_v35 = vadd.f32 %v4385_v56, %v4273_v28  ;;  %v4464_v55 = vmax.f32 %v4384_v46, 0.0  ;;  %v4324_v52 = vpop.f32.mrf.mxu0 }
 0x428   :  { %v4387_v11 = vpop.f32.mrf.mxu1 }
 0x429   :  { %v4388_v42 = vadd.f32 %v4387_v11, %v4275_v20  ;;  %4909 = vmatprep.mubr.bf16.mxu0 %v4555_v10  ;;  %v4465_v3 = vmax.f32 %v4386_v35, 0.0  ;;  %v4326_v27 = vpop.f32.mrf.mxu0  ;;  %v4303_v11 = vadd.f32 %v7438_v39, %v7464_v60  ;;  %v4301_v35 = vadd.f32 %v7436_v19, %v7468_v9 }
 0x42a   :  { %v4389_v49 = vpop.f32.mrf.mxu1  ;;  %4910 = vmatmul.mubr.bf16.gmra.mxu0 %v4554_v18 }
 0x42b   :  { %v4390_v43 = vadd.f32 %v4389_v49, %v4277_v32  ;;  %v4468_v36 = vmax.f32 %v4388_v42, 0.0  ;;  %v4307_v49 = vadd.f32 %v7450_v1, %v7464_v60  ;;  %v4315_v1 = vadd.f32 %v7480_v50, %v7468_v9 }
 0x42c   :  { %v4393_v17 = vpop.f32.mrf.mxu1 }
 0x42d   :  { %v4469_v38 = vmax.f32 %v4390_v43, 0.0  ;;  %v4528_v58 = vpack.c.bf16 %v4468_v36, %v4464_v55  ;;  %v4394_v13 = vadd.f32 %v4393_v17, %v4281_v62  ;;  %v4330_v17 = vpop.f32.mrf.mxu0  ;;  %v4313_v62 = vadd.f32 %v7470_v12, %v7464_v60 }
 0x42e   :  { %v4395_v25 = vpop.f32.mrf.mxu1 }
 0x42f   :  { %v4529_v16 = vpack.c.bf16 %v4469_v38, %v4465_v3  ;;  %v4396_v2 = vadd.f32 %v4395_v25, %v4283_v53  ;;  %v4472_v14 = vmax.f32 %v4394_v13, 0.0 }
 0x430   :  { %v4397_v45 = vpop.f32.mrf.mxu1 }
 0x431   :  { %v4398_v37 = vadd.f32 %v4397_v45, %v4285_v4  ;;  %4950 = vmatprep.mubr.bf16.mxu1 %v4529_v16  ;;  %v4473_v31 = vmax.f32 %v4396_v2, 0.0  ;;  %v4332_v4 = vpop.f32.mrf.mxu0  ;;  %v4311_v45 = vadd.f32 %v7460_v24, %v7468_v9 }
 0x432   :  { %v4399_v54 = vpop.f32.mrf.mxu1  ;;  %4951 = vmatmul.mubr.bf16.vlgmr.msra.gmra.mxu1 %v4528_v58 }
 0x433   :  { %v4400_v61 = vadd.f32 %v4399_v54, %v4287_v5  ;;  %v4476_v26 = vmax.f32 %v4398_v37, 0.0  ;;  %v4317_v37 = vadd.f32 %v7482_v57, %v7464_v60  ;;  %v4325_v57 = vadd.f32 %v4324_v52, %v7468_v9 }
 0x434   :  { %v4403_v63 = vpop.f32.mrf.mxu1 }
 0x435   :  { %v4477_v51 = vmax.f32 %v4400_v61, 0.0  ;;  %v4532_v41 = vpack.c.bf16 %v4476_v26, %v4472_v14  ;;  %v4404_v29 = vadd.f32 %v4403_v63, %v4291_v44  ;;  %v4334_v61 = vpop.f32.mrf.mxu0  ;;  %v4321_v44 = vadd.f32 %v7492_v40, %v7468_v9 }
 0x436   :  { %v4405_v22 = vpop.f32.mrf.mxu1  ;;  %v4333_v40 = vadd.f32 %v4332_v4, %v7464_v60 }
 0x437   :  { %v4533_v34 = vpack.c.bf16 %v4477_v51, %v4473_v31  ;;  %v4406_v47 = vadd.f32 %v4405_v22, %v4293_v21  ;;  %v4480_v18 = vmax.f32 %v4404_v29, 0.0  ;;  %v4336_v22 = vpop.f32.mrf.mxu0 }
 0x438   :  { %v4407_v23 = vpop.f32.mrf.mxu1 }
 0x439   :  { %v4408_v48 = vadd.f32 %v4407_v23, %v4295_v8  ;;  %4958 = vmatprep.mubr.bf16.mxu1 %v4533_v34  ;;  %v4481_v15 = vmax.f32 %v4406_v47, 0.0  ;;  %v4323_v8 = vadd.f32 %v7494_v59, %v7464_v60  ;;  %v4340_v29 = vpop.f32.mrf.mxu0 }
 0x43a   :  { %v4409_v56 = vpop.f32.mrf.mxu1  ;;  %4959 = vmatmul.mubr.bf16.gmra.mxu1 %v4532_v41 }
 0x43b   :  { %v4410_v6 = vadd.f32 %v4409_v56, %v4297_v30  ;;  %v4484_v28 = vmax.f32 %v4408_v48, 0.0  ;;  %v4327_v30 = vadd.f32 %v4326_v27, %v7464_v60 }
 0x43c   :  { %v4413_v20 = vpop.f32.mrf.mxu1 }
 0x43d   :  { %v4485_v10 = vmax.f32 %v4410_v6, 0.0  ;;  %v4536_v42 = vpack.c.bf16 %v4484_v28, %v4480_v18  ;;  %v4414_v3 = vadd.f32 %v4413_v20, %v4301_v35 }
 0x43e   :  { %v4415_v7 = vpop.f32.mrf.mxu1 }
 0x43f   :  { %v4537_v32 = vpack.c.bf16 %v4485_v10, %v4481_v15  ;;  %v4416_v43 = vadd.f32 %v4415_v7, %v4303_v11  ;;  %v4488_v16 = vmax.f32 %v4414_v3, 0.0  ;;  %v4342_v10 = vpop.f32.mrf.mxu0  ;;  %v4335_v11 = vadd.f32 %v4334_v61, %v7468_v9 }
 0x440   :  { %v4417_v46 = vpop.f32.mrf.mxu1 }
 0x441   :  { %v4418_v36 = vadd.f32 %v4417_v46, %v4305_v33  ;;  %4966 = vmatprep.mubr.bf16.mxu1 %v4537_v32  ;;  %v4489_v0 = vmax.f32 %v4416_v43, 0.0  ;;  %v4331_v33 = vadd.f32 %v4330_v17, %v7468_v9  ;;  %v4344_v43 = vpop.f32.mrf.mxu0  ;;  %v4343_v17 = vadd.f32 %v4342_v10, %v7464_v60 }
 0x442   :  { %v4419_v38 = vpop.f32.mrf.mxu1  ;;  %4967 = vmatmul.mubr.bf16.gmra.mxu1 %v4536_v42  ;;  %v4337_v42 = vadd.f32 %v4336_v22, %v7464_v60 }
 0x443   :  { %v4420_v39 = vadd.f32 %v4419_v38, %v4307_v49  ;;  %v4492_v55 = vmax.f32 %v4418_v36, 0.0 }
 0x444   :  { %v4423_v25 = vpop.f32.mrf.mxu1 }
 0x445   :  { %v4493_v53 = vmax.f32 %v4420_v39, 0.0  ;;  %v4540_v5 = vpack.c.bf16 %v4492_v55, %v4488_v16  ;;  %v4424_v26 = vadd.f32 %v4423_v25, %v4311_v45 }
 0x446   :  { %v4425_v19 = vpop.f32.mrf.mxu1 }
 0x447   :  { %v4541_v58 = vpack.c.bf16 %v4493_v53, %v4489_v0  ;;  %v4426_v13 = vadd.f32 %v4425_v19, %v4313_v62  ;;  %v4496_v21 = vmax.f32 %v4424_v26, 0.0  ;;  %v4346_v53 = vpop.f32.mrf.mxu0  ;;  %v4345_v19 = vadd.f32 %v4344_v43, %v7468_v9 }
 0x448   :  { %v4427_v2 = vpop.f32.mrf.mxu1 }
 0x449   :  { %v4428_v54 = vadd.f32 %v4427_v2, %v4315_v1  ;;  %4974 = vmatprep.mubr.bf16.mxu1 %v4541_v58  ;;  %v4497_v50 = vmax.f32 %v4426_v13, 0.0  ;;  %v4341_v1 = vadd.f32 %v4340_v29, %v7468_v9 }
 0x44a   :  { %v4429_v63 = vpop.f32.mrf.mxu1  ;;  %4975 = vmatmul.mubr.bf16.gmra.mxu1 %v4540_v5  ;;  %v4347_v5 = vadd.f32 %v4346_v53, %v7464_v60 }
 0x44b   :  { %v4430_v12 = vadd.f32 %v4429_v63, %v4317_v37  ;;  %v4500_v31 = vmax.f32 %v4428_v54, 0.0 }
 0x44c   :  { %v4433_v51 = vpop.f32.mrf.mxu1 }
 0x44d   :  { %v4501_v14 = vmax.f32 %v4430_v12, 0.0  ;;  %v4544_v41 = vpack.c.bf16 %v4500_v31, %v4496_v21  ;;  %v4434_v56 = vadd.f32 %v4433_v51, %v4321_v44 }
 0x44e   :  { %v4435_v24 = vpop.f32.mrf.mxu1 }
 0x44f   :  { %v4545_v34 = vpack.c.bf16 %v4501_v14, %v4497_v50  ;;  %v4436_v47 = vadd.f32 %v4435_v24, %v4323_v8  ;;  %v4504_v18 = vmax.f32 %v4434_v56, 0.0 }
 0x450   :  { %v4437_v23 = vpop.f32.mrf.mxu1 }
 0x451   :  { %v4438_v48 = vadd.f32 %v4437_v23, %v4325_v57  ;;  %4982 = vmatprep.mubr.bf16.mxu1 %v4545_v34  ;;  %v4505_v15 = vmax.f32 %v4436_v47, 0.0 }
 0x452   :  { %v4439_v6 = vpop.f32.mrf.mxu1  ;;  %4983 = vmatmul.mubr.bf16.gmra.mxu1 %v4544_v41 }
 0x453   :  { %v4440_v28 = vadd.f32 %v4439_v6, %v4327_v30  ;;  %v4508_v20 = vmax.f32 %v4438_v48, 0.0 }
 0x454   :  { %v4443_v59 = vpop.f32.mrf.mxu1 }
 0x455   :  { %v4509_v52 = vmax.f32 %v4440_v28, 0.0  ;;  %v4548_v32 = vpack.c.bf16 %v4508_v20, %v4504_v18  ;;  %v4444_v36 = vadd.f32 %v4443_v59, %v4331_v33  ;;  %v7537_v28 = vld [vmem:[%s7568_s10] ss:$0 sm:$0xff]  ;;  %s6374_s10 = smov [#allocation10]  }
 0x456   :  { %v4445_v7 = vpop.f32.mrf.mxu1  ;;  %s5036_s23 = sshll.u32 %s6374_s10, 4  ;;  %s5037_s23 = int_to_ptr.vmem [resolvable:$true] %s5036_s23 }
 0x457   :  { %v4549_v27 = vpack.c.bf16 %v4509_v52, %v4505_v15  ;;  %v4446_v46 = vadd.f32 %v4445_v7, %v4333_v40  ;;  %v4512_v4 = vmax.f32 %v4444_v36, 0.0  ;;  %s6337_s24 = scalar_lea.vmem %s5037_s23, 2048  ;;  %p6342_p7 = scmp.lt.s32.totalorder %s5037_s23, %s5037_s23 }
 0x458   :  { %v4447_v35 = vpop.f32.mrf.mxu1  ;;  %p6338_p6 = scmp.ne.s32.totalorder %s5037_s23, %s6337_s24  ;;  %p6343_p8 = scmp.lt.s32.totalorder %s6337_s24, %s6337_s24 }
 0x459   :  { %v4448_v49 = vadd.f32 %v4447_v35, %v4335_v11  ;;  %4990 = vmatprep.mubr.bf16.mxu1 %v4549_v27  ;;  %v4513_v25 = vmax.f32 %v4446_v46, 0.0 }
 0x45a   :  { %v4449_v3 = vpop.f32.mrf.mxu1  ;;  %4991 = vmatmul.mubr.bf16.gmra.mxu1 %v4548_v32  ;;  %p6344_p9 = por %p6343_p8, %p6342_p7 }
 0x45b   :  { %v4450_v38 = vadd.f32 %v4449_v3, %v4337_v42  ;;  %v4516_v39 = vmax.f32 %v4448_v49, 0.0 }
 0x45c   :  { %v4453_v55 = vpop.f32.mrf.mxu1  ;;  %p6345_p10 = pnand %p6344_p9, %p6338_p6 }
 0x45d   :  { %v4517_v0 = vmax.f32 %v4450_v38, 0.0  ;;  %v4552_v58 = vpack.c.bf16 %v4516_v39, %v4512_v4  ;;  %v4454_v13 = vadd.f32 %v4453_v55, %v4341_v1 }
 0x45e   :  { %v4455_v16 = vpop.f32.mrf.mxu1 }
 0x45f   :  { %v4553_v62 = vpack.c.bf16 %v4517_v0, %v4513_v25  ;;  %v4456_v2 = vadd.f32 %v4455_v16, %v4343_v17  ;;  %v4520_v31 = vmax.f32 %v4454_v13, 0.0 }
 0x460   :  { %v4457_v45 = vpop.f32.mrf.mxu1 }
 0x461   :  { %v4458_v37 = vadd.f32 %v4457_v45, %v4345_v19  ;;  %4998 = vmatprep.mubr.bf16.mxu1 %v4553_v62  ;;  %v4521_v63 = vmax.f32 %v4456_v2, 0.0 }
 0x462   :  { %v4459_v54 = vpop.f32.mrf.mxu1  ;;  %4999 = vmatmul.mubr.bf16.gmra.mxu1 %v4552_v58 }
 0x463   :  { %v4460_v61 = vadd.f32 %v4459_v54, %v4347_v5  ;;  %v4524_v26 = vmax.f32 %v4458_v37, 0.0 }
 0x465   :  { %v4525_v12 = vmax.f32 %v4460_v61, 0.0  ;;  %v4556_v50 = vpack.c.bf16 %v4524_v26, %v4520_v31 }
 0x467   :  { %v4557_v51 = vpack.c.bf16 %v4525_v12, %v4521_v63 }
 0x469   :  { %5006 = vmatprep.mubr.bf16.mxu1 %v4557_v51 }
 0x46a   :  { %5007 = vmatmul.mubr.bf16.gmra.mxu1 %v4556_v50 }
 0x4b2   :  { %v5511_v9 = vpop.f32.mrf.mxu0 }
 0x4b4   :  { %v5512_v14 = vpop.f32.mrf.mxu0 }
 0x4b5   :  { %v5513_v6 = vadd.f32 %v5512_v14, %v5511_v9 }
 0x4b6   :  { %v5514_v22 = vpop.f32.mrf.mxu0 }
 0x4b7   :  { %v4856_v52 = vadd.f32 %v5513_v6, %v7537_v28 }
 0x4b8   :  { %v5515_v21 = vpop.f32.mrf.mxu0 }
 0x4b9   :  { %v5516_v10 = vadd.f32 %v5515_v21, %v5514_v22 }
 0x4ba   :  { %v5517_v60 = vpop.f32.mrf.mxu0 }
 0x4bb   :  { %v4859_v33 = vadd.f32 %v5516_v10, %v7537_v28 }
 0x4bc   :  { %v5518_v24 = vpop.f32.mrf.mxu0 }
 0x4bd   :  { %v5519_v32 = vadd.f32 %v5518_v24, %v5517_v60 }
 0x4be   :  { %v5520_v8 = vpop.f32.mrf.mxu0 }
 0x4bf   :  { %v4864_v36 = vadd.f32 %v5519_v32, %v7537_v28 }
 0x4c0   :  { %v5521_v57 = vpop.f32.mrf.mxu0 }
 0x4c1   :  { %v5522_v3 = vadd.f32 %v5521_v57, %v5520_v8 }
 0x4c2   :  { %v5523_v34 = vpop.f32.mrf.mxu0 }
 0x4c3   :  { %v4867_v53 = vadd.f32 %v5522_v3, %v7537_v28 }
 0x4c4   :  { %v5524_v44 = vpop.f32.mrf.mxu0 }
 0x4c5   :  { %v5525_v4 = vadd.f32 %v5524_v44, %v5523_v34 }
 0x4c6   :  { %v5526_v41 = vpop.f32.mrf.mxu0 }
 0x4c7   :  { %v4872_v58 = vadd.f32 %v5525_v4, %v7537_v28 }
 0x4c8   :  { %v5527_v23 = vpop.f32.mrf.mxu0 }
 0x4c9   :  { %v5528_v45 = vadd.f32 %v5527_v23, %v5526_v41 }
 0x4ca   :  { %v5529_v30 = vpop.f32.mrf.mxu0 }
 0x4cb   :  { %v4875_v61 = vadd.f32 %v5528_v45, %v7537_v28 }
 0x4cc   :  { %v5530_v47 = vpop.f32.mrf.mxu0 }
 0x4cd   :  { %v5531_v26 = vadd.f32 %v5530_v47, %v5529_v30 }
 0x4ce   :  { %v5532_v48 = vpop.f32.mrf.mxu0 }
 0x4cf   :  { %v4880_v9 = vadd.f32 %v5531_v26, %v7537_v28 }
 0x4d0   :  { %v5533_v29 = vpop.f32.mrf.mxu0 }
 0x4d1   :  { %v5534_v14 = vadd.f32 %v5533_v29, %v5532_v48 }
 0x4d2   :  { %v5535_v56 = vpop.f32.mrf.mxu0 }
 0x4d3   :  { %v4883_v57 = vadd.f32 %v5534_v14, %v7537_v28 }
 0x4d4   :  { %v5536_v20 = vpop.f32.mrf.mxu0 }
 0x4d5   :  { %v5537_v34 = vadd.f32 %v5536_v20, %v5535_v56 }
 0x4d6   :  { %v5538_v7 = vpop.f32.mrf.mxu0 }
 0x4d7   :  { %v4888_v6 = vadd.f32 %v5537_v34, %v7537_v28 }
 0x4d8   :  { %v5539_v42 = vpop.f32.mrf.mxu0 }
 0x4da   :  { %v5541_v39 = vpop.f32.mrf.mxu0 }
 0x4dc   :  { %v5542_v17 = vpop.f32.mrf.mxu0 }
 0x4de   :  { %v5544_v2 = vpop.f32.mrf.mxu0 }
 0x4e0   :  { %v5545_v12 = vpop.f32.mrf.mxu0 }
 0x4e2   :  { %v5547_v21 = vpop.f32.mrf.mxu0 }
 0x4e4   :  { %v5548_v41 = vpop.f32.mrf.mxu0 }
 0x4e5   :  { %v5549_v3 = vadd.f32 %v5548_v41, %v5547_v21 }
 0x4e6   :  { %v5550_v29 = vpop.f32.mrf.mxu0 }
 0x4e8   :  { %v5551_v20 = vpop.f32.mrf.mxu0 }
 0x4e9   :  { %v5552_v4 = vadd.f32 %v5551_v20, %v5550_v29 }
 0x4f2   :  { %v5575_v59 = vpop.f32.mrf.mxu1 }
 0x4f4   :  { %v5576_v15 = vpop.f32.mrf.mxu1 }
 0x4f5   :  { %v5577_v18 = vadd.f32 %v5576_v15, %v5575_v59  ;;  %v5540_v59 = vadd.f32 %v5539_v42, %v5538_v7  ;;  %v5553_v42 = vpop.f32.mrf.mxu0 }
 0x4f6   :  { %v5578_v40 = vpop.f32.mrf.mxu1 }
 0x4f7   :  { %v4953_v11 = vadd.f32 %v5577_v18, %v4856_v52  ;;  %v4891_v18 = vadd.f32 %v5540_v59, %v7537_v28 }
 0x4f8   :  { %v5579_v27 = vpop.f32.mrf.mxu1 }
 0x4f9   :  { %5015 = vst [vmem:[#allocation10] sm:$0xff] %v4953_v11  ;;  %v5580_v35 = vadd.f32 %v5579_v27, %v5578_v40  ;;  %v5543_v40 = vadd.f32 %v5542_v17, %v5541_v39  ;;  %v5554_v39 = vpop.f32.mrf.mxu0 }
 0x4fa   :  { %v5581_v46 = vpop.f32.mrf.mxu1  ;;  %v5555_v45 = vadd.f32 %v5554_v39, %v5553_v42 }
 0x4fb   :  { %v4956_v49 = vadd.f32 %v5580_v35, %v4859_v33  ;;  %v4896_v32 = vadd.f32 %v5543_v40, %v7537_v28  ;;  %v5546_v35 = vadd.f32 %v5545_v12, %v5544_v2  ;;  %v5556_v17 = vpop.f32.mrf.mxu0 }
 0x4fc   :  { %v5582_v43 = vpop.f32.mrf.mxu1 }
 0x4fd   :  { %5016 = vst [vmem:[#allocation10 + $0x8] sm:$0xff] %v4956_v49  ;;  %v5583_v38 = vadd.f32 %v5582_v43, %v5581_v46  ;;  %v5557_v2 = vpop.f32.mrf.mxu0 }
 0x4fe   :  { %v5584_v55 = vpop.f32.mrf.mxu1  ;;  %v5558_v26 = vadd.f32 %v5557_v2, %v5556_v17 }
 0x4ff   :  { %v4961_v25 = vadd.f32 %v5583_v38, %v4864_v36  ;;  %v4899_v36 = vadd.f32 %v5546_v35, %v7537_v28 }
 0x500   :  { %v5585_v0 = vpop.f32.mrf.mxu1 }
 0x501   :  { %5017 = vst [vmem:[#allocation10 + $0x10] sm:$0xff] %v4961_v25  ;;  %v5586_v16 = vadd.f32 %v5585_v0, %v5584_v55 }
 0x502   :  { %v5587_v19 = vpop.f32.mrf.mxu1 }
 0x503   :  { %v4964_v62 = vadd.f32 %v5586_v16, %v4867_v53  ;;  %v4904_v53 = vadd.f32 %v5549_v3, %v7537_v28 }
 0x504   :  { %v5588_v1 = vpop.f32.mrf.mxu1 }
 0x505   :  { %5018 = vst [vmem:[#allocation10 + $0x18] sm:$0xff] %v4964_v62  ;;  %v5589_v5 = vadd.f32 %v5588_v1, %v5587_v19 }
 0x506   :  { %v5590_v37 = vpop.f32.mrf.mxu1 }
 0x507   :  { %v4969_v13 = vadd.f32 %v5589_v5, %v4872_v58  ;;  %v4907_v58 = vadd.f32 %v5552_v4, %v7537_v28 }
 0x508   :  { %v5591_v54 = vpop.f32.mrf.mxu1 }
 0x509   :  { %5019 = vst [vmem:[#allocation10 + $0x20] sm:$0xff] %v4969_v13  ;;  %v5592_v63 = vadd.f32 %v5591_v54, %v5590_v37 }
 0x50a   :  { %v5593_v31 = vpop.f32.mrf.mxu1 }
 0x50b   :  { %v4972_v51 = vadd.f32 %v5592_v63, %v4875_v61  ;;  %v4912_v61 = vadd.f32 %v5555_v45, %v7537_v28 }
 0x50c   :  { %v5594_v50 = vpop.f32.mrf.mxu1 }
 0x50d   :  { %5020 = vst [vmem:[#allocation10 + $0x28] sm:$0xff] %v4972_v51  ;;  %v5595_v22 = vadd.f32 %v5594_v50, %v5593_v31  ;;  %v4915_v50 = vadd.f32 %v5558_v26, %v7537_v28 }
 0x50e   :  { %v5596_v60 = vpop.f32.mrf.mxu1 }
 0x50f   :  { %v4977_v24 = vadd.f32 %v5595_v22, %v4880_v9 }
 0x510   :  { %v5597_v8 = vpop.f32.mrf.mxu1 }
 0x511   :  { %5021 = vst [vmem:[#allocation10 + $0x30] sm:$0xff] %v4977_v24  ;;  %v5598_v44 = vadd.f32 %v5597_v8, %v5596_v60 }
 0x512   :  { %v5599_v23 = vpop.f32.mrf.mxu1 }
 0x513   :  { %v4980_v30 = vadd.f32 %v5598_v44, %v4883_v57 }
 0x514   :  { %v5600_v47 = vpop.f32.mrf.mxu1 }
 0x515   :  { %5022 = vst [vmem:[#allocation10 + $0x38] sm:$0xff] %v4980_v30  ;;  %v5601_v48 = vadd.f32 %v5600_v47, %v5599_v23 }
 0x516   :  { %v5602_v15 = vpop.f32.mrf.mxu1 }
 0x517   :  { %v4985_v52 = vadd.f32 %v5601_v48, %v4888_v6 }
 0x518   :  { %v5603_v10 = vpop.f32.mrf.mxu1 }
 0x519   :  { %5023 = vst [vmem:[#allocation10 + $0x40] sm:$0xff] %v4985_v52  ;;  %v5604_v56 = vadd.f32 %v5603_v10, %v5602_v15 }
 0x51a   :  { %v5605_v11 = vpop.f32.mrf.mxu1 }
 0x51b   :  { %v4988_v27 = vadd.f32 %v5604_v56, %v4891_v18 }
 0x51c   :  { %v5606_v33 = vpop.f32.mrf.mxu1 }
 0x51d   :  { %5024 = vst [vmem:[#allocation10 + $0x48] sm:$0xff] %v4988_v27  ;;  %v5607_v7 = vadd.f32 %v5606_v33, %v5605_v11 }
 0x51e   :  { %v5608_v46 = vpop.f32.mrf.mxu1 }
 0x51f   :  { %v4993_v49 = vadd.f32 %v5607_v7, %v4896_v32 }
 0x520   :  { %v5609_v43 = vpop.f32.mrf.mxu1 }
 0x521   :  { %5025 = vst [vmem:[#allocation10 + $0x50] sm:$0xff] %v4993_v49  ;;  %v5610_v38 = vadd.f32 %v5609_v43, %v5608_v46 }
 0x522   :  { %v5611_v55 = vpop.f32.mrf.mxu1 }
 0x523   :  { %v4996_v25 = vadd.f32 %v5610_v38, %v4899_v36 }
 0x524   :  { %v5612_v0 = vpop.f32.mrf.mxu1 }
 0x525   :  { %5026 = vst [vmem:[#allocation10 + $0x58] sm:$0xff] %v4996_v25  ;;  %v5613_v16 = vadd.f32 %v5612_v0, %v5611_v55 }
 0x526   :  { %v5614_v19 = vpop.f32.mrf.mxu1 }
 0x527   :  { %v5001_v62 = vadd.f32 %v5613_v16, %v4904_v53 }
 0x528   :  { %v5615_v1 = vpop.f32.mrf.mxu1 }
 0x529   :  { %5027 = vst [vmem:[#allocation10 + $0x60] sm:$0xff] %v5001_v62  ;;  %v5616_v5 = vadd.f32 %v5615_v1, %v5614_v19 }
 0x52a   :  { %v5617_v37 = vpop.f32.mrf.mxu1 }
 0x52b   :  { %v5004_v13 = vadd.f32 %v5616_v5, %v4907_v58 }
 0x52c   :  { %v5618_v54 = vpop.f32.mrf.mxu1 }
 0x52d   :  { %5028 = vst [vmem:[#allocation10 + $0x68] sm:$0xff] %v5004_v13  ;;  %v5619_v63 = vadd.f32 %v5618_v54, %v5617_v37 }
 0x52e   :  { %v5620_v12 = vpop.f32.mrf.mxu1 }
 0x52f   :  { %v5009_v31 = vadd.f32 %v5619_v63, %v4912_v61 }
 0x530   :  { %v5621_v51 = vpop.f32.mrf.mxu1 }
 0x531   :  { %5029 = vst [vmem:[#allocation10 + $0x70] sm:$0xff] %v5009_v31  ;;  %v5622_v9 = vadd.f32 %v5621_v51, %v5620_v12 }
 0x533   :  { %v5012_v14 = vadd.f32 %v5622_v9, %v4915_v50 }
 0x535   :  { %5030 = vst [vmem:[#allocation10 + $0x78] sm:$0xff] %v5012_v14 }
 0x536   :  { %6348 = shalt.err (!%p6345_p10)
}
 0x537   :  { %s6375_s25 = smov 128   ;;  %s6376_s26 = smov 8  }
 0x538   :  { %5042 = dma.vmem_to_hbm [thread:$0]  %s5037_s23, 2048, %s7569_s11, [#allocation4], %s6375_s25, %s6375_s25, %s6376_s26  }
 0x539   :  { %6363 = dma.done.wait [#allocation4], 2048  }
 0x53a   :  { %6364 = vsyncadd [#allocation4], 4294965248 }
 0x53b   :  { %5046 = vsyncpa [#allocation3], 1 }
 0x53c   :  { %5047 = vsyncpa [#allocation6], 1 }
 0x53d   :  { %5048 = vsyncpa [#allocation9], 1 }
 0x53e   :  { %5049 = vsyncpa [#allocation4], 1 }

// kernel: tpu_custom_call.1
= control target key start
LH: loop header
LB: loop body
LE: loop exit
PB: predicated region body
PF: predicated region fallthrough
CT: control target
= control target key end

     0   :  { %16 = vsyncpa [#allocation3], 0  ;;  %s7558_s0 = inlined_call_operand.vmem [shape: bf16[128,16], index: 0, kind: input, shape index: {}]   ;;  %s7559_s1 = inlined_call_operand.vmem [shape: bf16[16,512], index: 1, kind: input, shape index: {}]   ;;  %s7560_s2 = inlined_call_operand.vmem [shape: f32[1,512], index: 2, kind: input, shape index: {}]   ;;  %s7561_s3 = inlined_call_operand.hbm [shape: bf16[512,512], index: 3, kind: input, shape index: {}]   ;;  %s7562_s4 = inlined_call_operand.vmem [shape: f32[1,512], index: 4, kind: input, shape index: {}]   ;;  %s7563_s5 = inlined_call_operand.hbm [shape: bf16[512,512], index: 5, kind: input, shape index: {}]   ;;  %s7564_s6 = inlined_call_operand.vmem [shape: f32[1,512], index: 6, kind: input, shape index: {}]   ;;  %s7565_s7 = inlined_call_operand.hbm [shape: bf16[512,512], index: 7, kind: input, shape index: {}]   ;;  %s7566_s8 = inlined_call_operand.vmem [shape: f32[1,512], index: 8, kind: input, shape index: {}]   ;;  %s7567_s9 = inlined_call_operand.hbm [shape: bf16[512,128], index: 9, kind: input, shape index: {}]   ;;  %s7568_s10 = inlined_call_operand.vmem [shape: f32[1,128], index: 10, kind: input, shape index: {}]   ;;  %s7569_s11 = inlined_call_operand.hbm [shape: f32[128,128], index: 11, kind: output, shape index: {}]  }
   0x1   :  { %17 = vsyncpa [#allocation6], 0 }
   0x2   :  { %18 = vsyncpa [#allocation9], 0 }
   0x3   :  { %19 = vsyncpa [#allocation4], 0  ;;  %s6365_s17 = smov [#allocation5]   ;;  %s6366_s19 = smov [#allocation2]  }
   0x4   :  { %s45_s18 = sshll.u32 %s6365_s17, 4  ;;  %s31_s20 = sshll.u32 %s6366_s19, 4  ;;  %s46_s18 = int_to_ptr.vmem [resolvable:$true] %s45_s18  ;;  %s32_s20 = int_to_ptr.vmem [resolvable:$true] %s31_s20 }
   0x5   :  { %s6265_s21 = scalar_lea.vmem %s46_s18, 16384  ;;  %p6270_p1 = scmp.lt.s32.totalorder %s46_s18, %s46_s18 }
   0x6   :  { %p6266_p0 = scmp.ne.s32.totalorder %s46_s18, %s6265_s21  ;;  %p6271_p2 = scmp.lt.s32.totalorder %s6265_s21, %s6265_s21 }
   0x8   :  { %p6272_p3 = por %p6271_p2, %p6270_p1 }
   0xa   :  { %p6273_p4 = pnand %p6272_p3, %p6266_p0 }
   0xc   :  { %6276 = shalt.err (!%p6273_p4)
}
   0xd   :  { %s6367_s22 = smov 256   ;;  %s6368_s23 = smov 16  }
   0xe   :  { %51 = dma.hbm_to_vmem [thread:$0]  %s7563_s5, 16384, %s46_s18, [#allocation6], %s6367_s22, %s6367_s22, %s6368_s23  }
   0xf   :  { %s6285_s26 = scalar_lea.vmem %s32_s20, 16384  ;;  %p6290_p6 = scmp.lt.s32.totalorder %s32_s20, %s32_s20 }
  0x10   :  { %p6286_p5 = scmp.ne.s32.totalorder %s32_s20, %s6285_s26  ;;  %p6291_p7 = scmp.lt.s32.totalorder %s6285_s26, %s6285_s26 }
  0x12   :  { %p6292_p8 = por %p6291_p7, %p6290_p6 }
  0x14   :  { %p6293_p9 = pnand %p6292_p8, %p6286_p5 }
  0x16   :  { %6296 = shalt.err (!%p6293_p9)
}
  0x17   :  { %37 = dma.hbm_to_vmem [thread:$0]  %s7561_s3, 16384, %s32_s20, [#allocation3], %s6367_s22, %s6367_s22, %s6368_s23  }
  0x18   :  { %s6369_s29 = smov [#allocation7]   ;;  %s6370_s12 = smov [#allocation8]  }
  0x19   :  { %s59_s30 = sshll.u32 %s6369_s29, 4  ;;  %s73_s13 = sshll.u32 %s6370_s12, 4  ;;  %s60_s30 = int_to_ptr.vmem [resolvable:$true] %s59_s30  ;;  %s74_s13 = int_to_ptr.vmem [resolvable:$true] %s73_s13 }
  0x1a   :  { %s6305_s14 = scalar_lea.vmem %s60_s30, 16384  ;;  %p6310_p11 = scmp.lt.s32.totalorder %s60_s30, %s60_s30 }
  0x1b   :  { %p6306_p10 = scmp.ne.s32.totalorder %s60_s30, %s6305_s14  ;;  %p6311_p12 = scmp.lt.s32.totalorder %s6305_s14, %s6305_s14 }
  0x1d   :  { %p6312_p13 = por %p6311_p12, %p6310_p11 }
  0x1f   :  { %p6313_p0 = pnand %p6312_p13, %p6306_p10 }
  0x21   :  { %6316 = shalt.err (!%p6313_p0)
}
  0x22   :  { %65 = dma.hbm_to_vmem [thread:$0]  %s7565_s7, 16384, %s60_s30, [#allocation6], %s6367_s22, %s6367_s22, %s6368_s23  }
  0x23   :  { %s6325_s16 = scalar_lea.vmem %s74_s13, 4096  ;;  %p6330_p2 = scmp.lt.s32.totalorder %s74_s13, %s74_s13 }
  0x24   :  { %p6326_p1 = scmp.ne.s32.totalorder %s74_s13, %s6325_s16  ;;  %p6331_p3 = scmp.lt.s32.totalorder %s6325_s16, %s6325_s16 }
  0x26   :  { %p6332_p4 = por %p6331_p3, %p6330_p2 }
  0x28   :  { %p6333_p5 = pnand %p6332_p4, %p6326_p1 }
  0x2a   :  { %6336 = shalt.err (!%p6333_p5)
}
  0x2b   :  { %s6371_s3 = smov 64   ;;  %s6372_s17 = smov 4  }
  0x2c   :  { %79 = dma.hbm_to_vmem [thread:$0]  %s7567_s9, 4096, %s74_s13, [#allocation9], %s6371_s3, %s6371_s3, %s6372_s17  }
  0x2d   :  { %6357 = dma.done.wait [#allocation3], 16384  }
  0x2e   :  { %6358 = vsyncadd [#allocation3], 4294950912 }
  0x2f   :  { %6359 = dma.done.wait [#allocation6], 32768  }
  0x30   :  { %6360 = vsyncadd [#allocation6], 4294934528 }
  0x31   :  { %6361 = dma.done.wait [#allocation9], 4096  }
  0x32   :  { %6362 = vsyncadd [#allocation9], 4294963200  ;;  %v6373_v0 = vmov 0   ;;  %v5635_v1 = vld [vmem:[%s7559_s1 + $0x4] ss:$16 sps:$4 sm:$0xff]   ;;  %vm197_vm0 = vcmask 130048  }
  0x33   :  { %254 = vmatprep.mubr.bf16.mxu0 %v6373_v0  ;;  %367 = vmatprep.mubr.bf16.mxu1 %v6373_v0  ;;  %v5637_v2 = vld [vmem:[%s7559_s1 + $0xc] ss:$16 sps:$4 sm:$0xff]   ;;  %v5639_v3 = vld [vmem:[%s7559_s1] ss:$16 sps:$4 sm:$0xff]   ;;  %v5640_v4 = vld [vmem:[%s7559_s1 + $0x8] ss:$16 sps:$4 sm:$0xff]  }
  0x34   :  { %236 = vmatprep.subr.bf16.mxu0 %v5635_v1  ;;  %349 = vmatprep.subr.bf16.mxu1 %v5637_v2  ;;  %v5641_v5 = vld [vmem:[%s7558_s0] sm:$0xff]   ;;  %v5642_v6 = vld [vmem:[%s7558_s0 + $0x8] sm:$0xff]   ;;  %v5643_v17 = vld [vmem:[%s7558_s0 + $0x10] sm:$0xff]  }
  0x35   :  { %237 = vmatpush1.bf16.msra.mxu0 %v5639_v3  ;;  %350 = vmatpush1.bf16.msra.mxu1 %v5640_v4  ;;  %v5649_v7 = vld [vmem:[#allocation2 + $0xe0] ss:$16 sps:$4 sm:$0xff]   ;;  %v5651_v8 = vld [vmem:[#allocation2 + $0xe4] ss:$16 sps:$4 sm:$0xff]   ;;  %v5644_v26 = vld [vmem:[%s7558_s0 + $0x18] sm:$0xff]  }
  0x36   :  { %v5652_v9 = vld [vmem:[#allocation2 + $0x2e0] ss:$16 sps:$4 sm:$0xff]   ;;  %1334 = vmatprep.subr.bf16.mxu0 %v5651_v8  ;;  %v5654_v10 = vld [vmem:[#allocation2 + $0x2e4] ss:$16 sps:$4 sm:$0xff]   ;;  %v5646_v44 = vld [vmem:[%s7558_s0 + $0x28] sm:$0xff]  }
  0x37   :  { %v5655_v11 = vld [vmem:[#allocation2 + $0xc0] ss:$16 sps:$4 sm:$0xff]   ;;  %v5657_v12 = vld [vmem:[#allocation2 + $0xc4] ss:$16 sps:$4 sm:$0xff]   ;;  %1447 = vmatprep.subr.bf16.mxu1 %v5654_v10  ;;  %v5648_v62 = vld [vmem:[%s7558_s0 + $0x38] sm:$0xff]  }
  0x38   :  { %5062 = vmatmul.mubr.msk.bf16.vlgmr.msra.gmra.mxu0 %vm197_vm0, %v5641_v5  ;;  %5070 = vmatmul.mubr.msk.bf16.vlgmr.msra.gmra.mxu1 %vm197_vm0, %v5641_v5  ;;  %v5660_v13 = vld [vmem:[#allocation2 + $0x2c4] ss:$16 sps:$4 sm:$0xff]   ;;  %v5658_v15 = vld [vmem:[#allocation2 + $0x2c0] ss:$16 sps:$4 sm:$0xff]  }
  0x39   :  { %264 = vmatprep.mubr.bf16.mxu0 %v6373_v0  ;;  %377 = vmatprep.mubr.bf16.mxu1 %v6373_v0  ;;  %v5663_v14 = vld [vmem:[#allocation2 + $0xa4] ss:$16 sps:$4 sm:$0xff]   ;;  %v5661_v16 = vld [vmem:[#allocation2 + $0xa0] ss:$16 sps:$4 sm:$0xff]  }
  0x3a   :  { %1335 = vmatpush1.bf16.msra.mxu0 %v5649_v7  ;;  %1448 = vmatpush1.bf16.msra.mxu1 %v5652_v9  ;;  %v5666_v18 = vld [vmem:[#allocation2 + $0x2a4] ss:$16 sps:$4 sm:$0xff]   ;;  %v5664_v20 = vld [vmem:[#allocation2 + $0x2a0] ss:$16 sps:$4 sm:$0xff]  }
  0x3b   :  { %1336 = vmatprep.subr.bf16.mxu0 %v5657_v12  ;;  %1449 = vmatprep.subr.bf16.mxu1 %v5660_v13  ;;  %v5669_v19 = vld [vmem:[#allocation2 + $0x84] ss:$16 sps:$4 sm:$0xff]   ;;  %v5667_v21 = vld [vmem:[#allocation2 + $0x80] ss:$16 sps:$4 sm:$0xff]   ;;  %v5747_v13 = vld [vmem:[#allocation2 + $0xec] ss:$16 sps:$4 sm:$0xff]  }
  0x3c   :  { %v5672_v22 = vld [vmem:[#allocation2 + $0x284] ss:$16 sps:$4 sm:$0xff]   ;;  %v5670_v24 = vld [vmem:[#allocation2 + $0x280] ss:$16 sps:$4 sm:$0xff]  }
  0x3d   :  { %v5675_v23 = vld [vmem:[#allocation2 + $0x64] ss:$16 sps:$4 sm:$0xff]   ;;  %v5673_v25 = vld [vmem:[#allocation2 + $0x60] ss:$16 sps:$4 sm:$0xff]  }
  0x3e   :  { %1337 = vmatpush1.bf16.msra.mxu0 %v5655_v11  ;;  %1450 = vmatpush1.bf16.msra.mxu1 %v5658_v15  ;;  %v5678_v27 = vld [vmem:[#allocation2 + $0x264] ss:$16 sps:$4 sm:$0xff]   ;;  %v5676_v29 = vld [vmem:[#allocation2 + $0x260] ss:$16 sps:$4 sm:$0xff]   ;;  %v117_v15 = vlaneseq }
  0x3f   :  { %1338 = vmatprep.subr.bf16.mxu0 %v5663_v14  ;;  %1451 = vmatprep.subr.bf16.mxu1 %v5666_v18  ;;  %v5681_v28 = vld [vmem:[#allocation2 + $0x44] ss:$16 sps:$4 sm:$0xff]   ;;  %v5679_v30 = vld [vmem:[#allocation2 + $0x40] ss:$16 sps:$4 sm:$0xff]   ;;  %v5750_v14 = vld [vmem:[#allocation2 + $0x2ec] ss:$16 sps:$4 sm:$0xff]  }
  0x40   :  { %5063 = vmatmul.mubr.msk.bf16.gmra.mxu0 %vm197_vm0, %v5642_v6  ;;  %5071 = vmatmul.mubr.msk.bf16.gmra.mxu1 %vm197_vm0, %v5642_v6  ;;  %v5684_v31 = vld [vmem:[#allocation2 + $0x244] ss:$16 sps:$4 sm:$0xff]   ;;  %v5682_v33 = vld [vmem:[#allocation2 + $0x240] ss:$16 sps:$4 sm:$0xff]  }
  0x41   :  { %274 = vmatprep.mubr.bf16.mxu0 %v6373_v0  ;;  %387 = vmatprep.mubr.bf16.mxu1 %v6373_v0  ;;  %v5687_v32 = vld [vmem:[#allocation2 + $0x24] ss:$16 sps:$4 sm:$0xff]   ;;  %v5685_v34 = vld [vmem:[#allocation2 + $0x20] ss:$16 sps:$4 sm:$0xff]  }
  0x42   :  { %1339 = vmatpush1.bf16.msra.mxu0 %v5661_v16  ;;  %1452 = vmatpush1.bf16.msra.mxu1 %v5664_v20  ;;  %v5645_v35 = vld [vmem:[%s7558_s0 + $0x20] sm:$0xff]   ;;  %v5647_v53 = vld [vmem:[%s7558_s0 + $0x30] sm:$0xff]   ;;  %v118_v16 = vshrl.u32 %v117_v15, 7 }
  0x43   :  { %1340 = vmatprep.subr.bf16.mxu0 %v5669_v19  ;;  %1453 = vmatprep.subr.bf16.mxu1 %v5672_v22  ;;  %v5690_v36 = vld [vmem:[#allocation2 + $0x224] ss:$16 sps:$4 sm:$0xff]   ;;  %v5688_v38 = vld [vmem:[#allocation2 + $0x220] ss:$16 sps:$4 sm:$0xff]  }
  0x44   :  { %v5693_v37 = vld [vmem:[#allocation2 + $0x4] ss:$16 sps:$4 sm:$0xff]   ;;  %v5691_v39 = vld [vmem:[#allocation2] ss:$16 sps:$4 sm:$0xff]   ;;  %v6519_v18 = vsub.s32 2, %v118_v16  ;;  %v6521_v19 = vsub.s32 1, %v118_v16 }
  0x45   :  { %v5696_v40 = vld [vmem:[#allocation2 + $0x204] ss:$16 sps:$4 sm:$0xff]   ;;  %v5694_v42 = vld [vmem:[#allocation2 + $0x200] ss:$16 sps:$4 sm:$0xff]   ;;  %v6523_v20 = vsub.s32 3, %v118_v16 }
  0x46   :  { %1341 = vmatpush1.bf16.msra.mxu0 %v5667_v21  ;;  %1454 = vmatpush1.bf16.msra.mxu1 %v5670_v24  ;;  %v5699_v41 = vld [vmem:[#allocation2 + $0x1e4] ss:$16 sps:$4 sm:$0xff]   ;;  %v5697_v43 = vld [vmem:[#allocation2 + $0x1e0] ss:$16 sps:$4 sm:$0xff]  }
  0x47   :  { %1342 = vmatprep.subr.bf16.mxu0 %v5675_v23  ;;  %1455 = vmatprep.subr.bf16.mxu1 %v5678_v27  ;;  %v5702_v45 = vld [vmem:[#allocation2 + $0x3e4] ss:$16 sps:$4 sm:$0xff]   ;;  %v5700_v46 = vld [vmem:[#allocation2 + $0x3e0] ss:$16 sps:$4 sm:$0xff]  }
  0x48   :  { %5064 = vmatmul.mubr.msk.bf16.gmra.mxu0 %vm197_vm0, %v5643_v17  ;;  %5072 = vmatmul.mubr.msk.bf16.gmra.mxu1 %vm197_vm0, %v5643_v17  ;;  %v5703_v47 = vld [vmem:[#allocation2 + $0x1c0] ss:$16 sps:$4 sm:$0xff]   ;;  %v5705_v48 = vld [vmem:[#allocation2 + $0x1c4] ss:$16 sps:$4 sm:$0xff]   ;;  %v6517_v17 = vsub.s32 0, %v118_v16 }
  0x49   :  { %284 = vmatprep.mubr.bf16.mxu0 %v6373_v0  ;;  %397 = vmatprep.mubr.bf16.mxu1 %v6373_v0  ;;  %v5708_v49 = vld [vmem:[#allocation2 + $0x3c4] ss:$16 sps:$4 sm:$0xff]   ;;  %v5706_v51 = vld [vmem:[#allocation2 + $0x3c0] ss:$16 sps:$4 sm:$0xff]   ;;  %v5759_v16 = vld [vmem:[#allocation2 + $0xac] ss:$16 sps:$4 sm:$0xff]  }
  0x4a   :  { %1343 = vmatpush1.bf16.msra.mxu0 %v5673_v25  ;;  %1456 = vmatpush1.bf16.msra.mxu1 %v5676_v29  ;;  %v5711_v50 = vld [vmem:[#allocation2 + $0x1a4] ss:$16 sps:$4 sm:$0xff]   ;;  %v5709_v52 = vld [vmem:[#allocation2 + $0x1a0] ss:$16 sps:$4 sm:$0xff]  }
  0x4b   :  { %1344 = vmatprep.subr.bf16.mxu0 %v5681_v28  ;;  %1457 = vmatprep.subr.bf16.mxu1 %v5684_v31  ;;  %v5714_v54 = vld [vmem:[#allocation2 + $0x3a4] ss:$16 sps:$4 sm:$0xff]   ;;  %v5712_v56 = vld [vmem:[#allocation2 + $0x3a0] ss:$16 sps:$4 sm:$0xff]  }
  0x4c   :  { %v5717_v55 = vld [vmem:[#allocation2 + $0x184] ss:$16 sps:$4 sm:$0xff]   ;;  %v5715_v57 = vld [vmem:[#allocation2 + $0x180] ss:$16 sps:$4 sm:$0xff]  }
  0x4d   :  { %v5720_v58 = vld [vmem:[#allocation2 + $0x384] ss:$16 sps:$4 sm:$0xff]   ;;  %v5718_v60 = vld [vmem:[#allocation2 + $0x380] ss:$16 sps:$4 sm:$0xff]  }
  0x4e   :  { %1345 = vmatpush1.bf16.msra.mxu0 %v5679_v30  ;;  %1458 = vmatpush1.bf16.msra.mxu1 %v5682_v33  ;;  %v5723_v59 = vld [vmem:[#allocation2 + $0x164] ss:$16 sps:$4 sm:$0xff]   ;;  %v5721_v61 = vld [vmem:[#allocation2 + $0x160] ss:$16 sps:$4 sm:$0xff]  }
  0x4f   :  { %1346 = vmatprep.subr.bf16.mxu0 %v5687_v32  ;;  %1459 = vmatprep.subr.bf16.mxu1 %v5690_v36  ;;  %v5726_v63 = vld [vmem:[#allocation2 + $0x364] ss:$16 sps:$4 sm:$0xff]   ;;  %v5724_v1 = vld [vmem:[#allocation2 + $0x360] ss:$16 sps:$4 sm:$0xff]  }
  0x50   :  { %5065 = vmatmul.mubr.msk.bf16.gmra.mxu0 %vm197_vm0, %v5644_v26  ;;  %5073 = vmatmul.mubr.msk.bf16.gmra.mxu1 %vm197_vm0, %v5644_v26  ;;  %v5732_v2 = vld [vmem:[#allocation2 + $0x344] ss:$16 sps:$4 sm:$0xff]   ;;  %v5727_v3 = vld [vmem:[#allocation2 + $0x140] ss:$16 sps:$4 sm:$0xff]  }
  0x51   :  { %294 = vmatprep.mubr.bf16.mxu0 %v6373_v0  ;;  %407 = vmatprep.mubr.bf16.mxu1 %v6373_v0  ;;  %v5730_v4 = vld [vmem:[#allocation2 + $0x340] ss:$16 sps:$4 sm:$0xff]   ;;  %v5735_v5 = vld [vmem:[#allocation2 + $0x124] ss:$16 sps:$4 sm:$0xff]  }
  0x52   :  { %1347 = vmatpush1.bf16.msra.mxu0 %v5685_v34  ;;  %1460 = vmatpush1.bf16.msra.mxu1 %v5688_v38  ;;  %v5738_v6 = vld [vmem:[#allocation2 + $0x324] ss:$16 sps:$4 sm:$0xff]   ;;  %v5733_v7 = vld [vmem:[#allocation2 + $0x120] ss:$16 sps:$4 sm:$0xff]  }
  0x53   :  { %1348 = vmatprep.subr.bf16.mxu0 %v5693_v37  ;;  %1461 = vmatprep.subr.bf16.mxu1 %v5696_v40  ;;  %v5736_v8 = vld [vmem:[#allocation2 + $0x320] ss:$16 sps:$4 sm:$0xff]   ;;  %v5741_v9 = vld [vmem:[#allocation2 + $0x104] ss:$16 sps:$4 sm:$0xff]  }
  0x54   :  { %v5744_v10 = vld [vmem:[#allocation2 + $0x304] ss:$16 sps:$4 sm:$0xff]   ;;  %v5739_v11 = vld [vmem:[#allocation2 + $0x100] ss:$16 sps:$4 sm:$0xff]  }
  0x55   :  { %v5742_v12 = vld [vmem:[#allocation2 + $0x300] ss:$16 sps:$4 sm:$0xff]  }
  0x56   :  { %1349 = vmatpush1.bf16.msra.mxu0 %v5691_v39  ;;  %1462 = vmatpush1.bf16.msra.mxu1 %v5694_v42  ;;  %v115_v21 = vld [vmem:[%s7560_s2] sm:$0xf] }
  0x57   :  { %1350 = vmatprep.subr.bf16.mxu0 %v5699_v41  ;;  %1463 = vmatprep.subr.bf16.mxu1 %v5702_v45  ;;  %v6529_v24 = vrot.slane %v115_v21, %v6521_v19  ;;  %v6532_v25 = vrot.slane %v115_v21, %v6523_v20  ;;  %v6535_v26 = vrot.slane %v115_v21, %v6517_v17 }
  0x58   :  { %5066 = vmatmul.mubr.msk.bf16.gmra.mxu0 %vm197_vm0, %v5645_v35  ;;  %5074 = vmatmul.mubr.msk.bf16.gmra.mxu1 %vm197_vm0, %v5645_v35  ;;  %v6538_v27 = vrot.slane %v115_v21, %v6519_v18  ;;  %v5762_v21 = vld [vmem:[#allocation2 + $0x2ac] ss:$16 sps:$4 sm:$0xff]  }
  0x59   :  { %304 = vmatprep.mubr.bf16.mxu0 %v6373_v0  ;;  %417 = vmatprep.mubr.bf16.mxu1 %v6373_v0 }
  0x5a   :  { %1351 = vmatpush2.bf16.msra.mxu0 %v5697_v43  ;;  %1464 = vmatpush2.bf16.msra.mxu1 %v5700_v46 }
  0x5b   :  { %1352 = vmatprep.subr.bf16.mxu0 %v5705_v48  ;;  %1465 = vmatprep.subr.bf16.mxu1 %v5708_v49 }
  0x5e   :  { %1353 = vmatpush2.bf16.msra.mxu0 %v5703_v47  ;;  %1466 = vmatpush2.bf16.msra.mxu1 %v5706_v51 }
  0x5f   :  { %1354 = vmatprep.subr.bf16.mxu0 %v5711_v50  ;;  %1467 = vmatprep.subr.bf16.mxu1 %v5714_v54 }
  0x60   :  { %5067 = vmatmul.mubr.msk.bf16.gmra.mxu0 %vm197_vm0, %v5646_v44  ;;  %5075 = vmatmul.mubr.msk.bf16.gmra.mxu1 %vm197_vm0, %v5646_v44 }
  0x61   :  { %314 = vmatprep.mubr.bf16.mxu0 %v6373_v0  ;;  %427 = vmatprep.mubr.bf16.mxu1 %v6373_v0 }
  0x62   :  { %1355 = vmatpush2.bf16.msra.mxu0 %v5709_v52  ;;  %1468 = vmatpush2.bf16.msra.mxu1 %v5712_v56  ;;  %v5745_v56 = vld [vmem:[#allocation2 + $0xe8] ss:$16 sps:$4 sm:$0xff]  }
  0x63   :  { %1356 = vmatprep.subr.bf16.mxu0 %v5717_v55  ;;  %1469 = vmatprep.subr.bf16.mxu1 %v5720_v58 }
  0x66   :  { %1357 = vmatpush2.bf16.msra.mxu0 %v5715_v57  ;;  %1470 = vmatpush2.bf16.msra.mxu1 %v5718_v60  ;;  %v5748_v57 = vld [vmem:[#allocation2 + $0x2e8] ss:$16 sps:$4 sm:$0xff]  }
  0x67   :  { %1358 = vmatprep.subr.bf16.mxu0 %v5723_v59  ;;  %1471 = vmatprep.subr.bf16.mxu1 %v5726_v63  ;;  %v5756_v63 = vld [vmem:[#allocation2 + $0x2cc] ss:$16 sps:$4 sm:$0xff]  }
  0x68   :  { %5068 = vmatmul.mubr.msk.bf16.gmra.mxu0 %vm197_vm0, %v5647_v53  ;;  %5076 = vmatmul.mubr.msk.bf16.gmra.mxu1 %vm197_vm0, %v5647_v53 }
  0x69   :  { %324 = vmatprep.mubr.bf16.mxu0 %v6373_v0  ;;  %437 = vmatprep.mubr.bf16.mxu1 %v6373_v0  ;;  %v5729_v0 = vld [vmem:[#allocation2 + $0x144] ss:$16 sps:$4 sm:$0xff]  }
  0x6a   :  { %1359 = vmatpush2.bf16.msra.mxu0 %v5721_v61  ;;  %1472 = vmatpush2.bf16.msra.mxu1 %v5724_v1 }
  0x6b   :  { %1360 = vmatprep.subr.bf16.mxu0 %v5729_v0  ;;  %1473 = vmatprep.subr.bf16.mxu1 %v5732_v2 }
  0x6e   :  { %1361 = vmatpush2.bf16.msra.mxu0 %v5727_v3  ;;  %1474 = vmatpush2.bf16.msra.mxu1 %v5730_v4 }
  0x6f   :  { %1362 = vmatprep.subr.bf16.mxu0 %v5735_v5  ;;  %1475 = vmatprep.subr.bf16.mxu1 %v5738_v6 }
  0x70   :  { %5069 = vmatmul.mubr.msk.bf16.gmra.mxu0 %vm197_vm0, %v5648_v62  ;;  %5077 = vmatmul.mubr.msk.bf16.gmra.mxu1 %vm197_vm0, %v5648_v62  ;;  %v5753_v62 = vld [vmem:[#allocation2 + $0xcc] ss:$16 sps:$4 sm:$0xff]  }
  0x72   :  { %1363 = vmatpush2.bf16.msra.mxu0 %v5733_v7  ;;  %1476 = vmatpush2.bf16.msra.mxu1 %v5736_v8 }
  0x73   :  { %1364 = vmatprep.subr.bf16.mxu0 %v5741_v9  ;;  %1477 = vmatprep.subr.bf16.mxu1 %v5744_v10  ;;  %v5751_v10 = vld [vmem:[#allocation2 + $0xc8] ss:$16 sps:$4 sm:$0xff]  }
  0x76   :  { %1365 = vmatpush2.bf16.msra.mxu0 %v5739_v11  ;;  %1478 = vmatpush2.bf16.msra.mxu1 %v5742_v12  ;;  %v5754_v11 = vld [vmem:[#allocation2 + $0x2c8] ss:$16 sps:$4 sm:$0xff]  }
  0x77   :  { %1560 = vmatprep.subr.bf16.mxu0 %v5747_v13  ;;  %1673 = vmatprep.subr.bf16.mxu1 %v5750_v14 }
  0xf8   :  { %v256_v22 = vpop.f32.mrf.mxu0  ;;  %v369_v23 = vpop.f32.mrf.mxu1 }
  0xf9   :  { %v257_v36 = vadd.f32 %v256_v22, %v6535_v26  ;;  %v370_v37 = vadd.f32 %v369_v23, %v6538_v27 }
  0xfa   :  { %v258_v28 = vpop.f32.mrf.mxu0  ;;  %v371_v29 = vpop.f32.mrf.mxu1 }
  0xfb   :  { %v259_v32 = vadd.f32 %v258_v28, %v6529_v24  ;;  %v372_v33 = vadd.f32 %v371_v29, %v6532_v25  ;;  %v448_v50 = vmax.f32 %v257_v36, 0.0  ;;  %v450_v51 = vmax.f32 %v370_v37, 0.0 }
  0xfc   :  { %v260_v30 = vpop.f32.mrf.mxu0  ;;  %v373_v31 = vpop.f32.mrf.mxu1 }
  0xfd   :  { %v261_v34 = vadd.f32 %v260_v30, %v6535_v26  ;;  %v374_v35 = vadd.f32 %v373_v31, %v6538_v27  ;;  %v449_v46 = vmax.f32 %v259_v32, 0.0  ;;  %v451_v47 = vmax.f32 %v372_v33, 0.0 }
  0xfe   :  { %v262_v38 = vpop.f32.mrf.mxu0  ;;  %v375_v39 = vpop.f32.mrf.mxu1 }
  0xff   :  { %v263_v40 = vadd.f32 %v262_v38, %v6529_v24  ;;  %v376_v41 = vadd.f32 %v375_v39, %v6532_v25  ;;  %v452_v42 = vmax.f32 %v261_v34, 0.0  ;;  %v454_v43 = vmax.f32 %v374_v35, 0.0  ;;  %v5757_v35 = vld [vmem:[#allocation2 + $0xa8] ss:$16 sps:$4 sm:$0xff]  }
 0x100   :  { %v266_v44 = vpop.f32.mrf.mxu0  ;;  %v379_v45 = vpop.f32.mrf.mxu1 }
 0x101   :  { %v453_v48 = vmax.f32 %v263_v40, 0.0  ;;  %v455_v49 = vmax.f32 %v376_v41, 0.0  ;;  %v6552_v58 = vpack.c.bf16 %v452_v42, %v448_v50  ;;  %v6554_v59 = vpack.c.bf16 %v454_v43, %v450_v51  ;;  %v5760_v41 = vld [vmem:[#allocation2 + $0x2a8] ss:$16 sps:$4 sm:$0xff]   ;;  %v5765_v42 = vld [vmem:[#allocation2 + $0x8c] ss:$16 sps:$4 sm:$0xff]  }
 0x102   :  { %v268_v52 = vpop.f32.mrf.mxu0  ;;  %v381_v53 = vpop.f32.mrf.mxu1  ;;  %v267_v3 = vadd.f32 %v266_v44, %v6535_v26  ;;  %v380_v4 = vadd.f32 %v379_v45, %v6538_v27 }
 0x103   :  { %v6548_v54 = vpack.c.bf16 %v453_v48, %v449_v46  ;;  %v6550_v55 = vpack.c.bf16 %v455_v49, %v451_v47  ;;  %v269_v1 = vadd.f32 %v268_v52, %v6529_v24  ;;  %v382_v5 = vadd.f32 %v381_v53, %v6532_v25  ;;  %v5768_v47 = vld [vmem:[#allocation2 + $0x28c] ss:$16 sps:$4 sm:$0xff]  }
 0x104   :  { %v270_v60 = vpop.f32.mrf.mxu0  ;;  %v383_v61 = vpop.f32.mrf.mxu1  ;;  %v456_v29 = vmax.f32 %v267_v3, 0.0  ;;  %v458_v30 = vmax.f32 %v380_v4, 0.0 }
 0x105   :  { %v271_v0 = vadd.f32 %v270_v60, %v6535_v26  ;;  %v384_v2 = vadd.f32 %v383_v61, %v6538_v27  ;;  %1366 = vmatprep.mubr.bf16.mxu0 %v6548_v54  ;;  %1479 = vmatprep.mubr.bf16.mxu1 %v6550_v55  ;;  %v457_v22 = vmax.f32 %v269_v1, 0.0  ;;  %v459_v31 = vmax.f32 %v382_v5, 0.0  ;;  %v5771_v1 = vld [vmem:[#allocation2 + $0x6c] ss:$16 sps:$4 sm:$0xff]  }
 0x106   :  { %v272_v6 = vpop.f32.mrf.mxu0  ;;  %v385_v7 = vpop.f32.mrf.mxu1  ;;  %1367 = vmatmul.mubr.bf16.vlgmr.msra.gmra.mxu0 %v6552_v58  ;;  %1480 = vmatmul.mubr.bf16.vlgmr.msra.gmra.mxu1 %v6554_v59 }
 0x107   :  { %v273_v8 = vadd.f32 %v272_v6, %v6529_v24  ;;  %v386_v9 = vadd.f32 %v385_v7, %v6532_v25  ;;  %1561 = vmatpush1.bf16.msra.mxu0 %v5745_v56  ;;  %1674 = vmatpush1.bf16.msra.mxu1 %v5748_v57  ;;  %v460_v12 = vmax.f32 %v271_v0, 0.0  ;;  %v462_v13 = vmax.f32 %v384_v2, 0.0  ;;  %v5763_v56 = vld [vmem:[#allocation2 + $0x88] ss:$16 sps:$4 sm:$0xff]  }
 0x108   :  { %v276_v14 = vpop.f32.mrf.mxu0  ;;  %v389_v15 = vpop.f32.mrf.mxu1  ;;  %1562 = vmatprep.subr.bf16.mxu0 %v5753_v62  ;;  %1675 = vmatprep.subr.bf16.mxu1 %v5756_v63  ;;  %v5766_v63 = vld [vmem:[#allocation2 + $0x288] ss:$16 sps:$4 sm:$0xff]  }
 0x109   :  { %v461_v23 = vmax.f32 %v273_v8, 0.0  ;;  %v463_v28 = vmax.f32 %v386_v9, 0.0  ;;  %v6570_v36 = vpack.c.bf16 %v460_v12, %v456_v29  ;;  %v6572_v37 = vpack.c.bf16 %v462_v13, %v458_v30  ;;  %v5774_v9 = vld [vmem:[#allocation2 + $0x26c] ss:$16 sps:$4 sm:$0xff]   ;;  %v5769_v12 = vld [vmem:[#allocation2 + $0x68] ss:$16 sps:$4 sm:$0xff]  }
 0x10a   :  { %v278_v32 = vpop.f32.mrf.mxu0  ;;  %v391_v33 = vpop.f32.mrf.mxu1  ;;  %v277_v48 = vadd.f32 %v276_v14, %v6535_v26  ;;  %v390_v49 = vadd.f32 %v389_v15, %v6538_v27 }
 0x10b   :  { %1563 = vmatpush1.bf16.msra.mxu0 %v5751_v10  ;;  %1676 = vmatpush1.bf16.msra.mxu1 %v5754_v11  ;;  %v6568_v34 = vpack.c.bf16 %v461_v23, %v457_v22  ;;  %v6574_v40 = vpack.c.bf16 %v463_v28, %v459_v31  ;;  %v279_v43 = vadd.f32 %v278_v32, %v6529_v24  ;;  %v5772_v22 = vld [vmem:[#allocation2 + $0x268] ss:$16 sps:$4 sm:$0xff]   ;;  %v5777_v23 = vld [vmem:[#allocation2 + $0x4c] ss:$16 sps:$4 sm:$0xff]  }
 0x10c   :  { %v280_v38 = vpop.f32.mrf.mxu0  ;;  %v393_v39 = vpop.f32.mrf.mxu1  ;;  %1564 = vmatprep.subr.bf16.mxu0 %v5759_v16  ;;  %1677 = vmatprep.subr.bf16.mxu1 %v5762_v21  ;;  %v392_v44 = vadd.f32 %v391_v33, %v6532_v25  ;;  %v464_v5 = vmax.f32 %v277_v48, 0.0  ;;  %v466_v6 = vmax.f32 %v390_v49, 0.0  ;;  %v5780_v31 = vld [vmem:[#allocation2 + $0x24c] ss:$16 sps:$4 sm:$0xff]  }
 0x10d   :  { %v281_v45 = vadd.f32 %v280_v38, %v6535_v26  ;;  %v394_v46 = vadd.f32 %v393_v39, %v6538_v27  ;;  %1376 = vmatprep.mubr.bf16.mxu0 %v6568_v34  ;;  %1489 = vmatprep.mubr.bf16.mxu1 %v6574_v40  ;;  %v465_v0 = vmax.f32 %v279_v43, 0.0  ;;  %v5783_v48 = vld [vmem:[#allocation2 + $0x2c] ss:$16 sps:$4 sm:$0xff]  }
 0x10e   :  { %v282_v50 = vpop.f32.mrf.mxu0  ;;  %v395_v51 = vpop.f32.mrf.mxu1  ;;  %1377 = vmatmul.mubr.bf16.gmra.mxu0 %v6570_v36  ;;  %1490 = vmatmul.mubr.bf16.gmra.mxu1 %v6572_v37  ;;  %v467_v2 = vmax.f32 %v392_v44, 0.0 }
 0x10f   :  { %v283_v52 = vadd.f32 %v282_v50, %v6529_v24  ;;  %v396_v53 = vadd.f32 %v395_v51, %v6532_v25  ;;  %1565 = vmatpush1.bf16.msra.mxu0 %v5757_v35  ;;  %v468_v57 = vmax.f32 %v281_v45, 0.0  ;;  %v470_v60 = vmax.f32 %v394_v46, 0.0  ;;  %1678 = vmatpush1.bf16.msra.mxu1 %v5760_v41 }
 0x110   :  { %v286_v61 = vpop.f32.mrf.mxu0  ;;  %v399_v62 = vpop.f32.mrf.mxu1  ;;  %1566 = vmatprep.subr.bf16.mxu0 %v5765_v42  ;;  %1679 = vmatprep.subr.bf16.mxu1 %v5768_v47  ;;  %v5775_v42 = vld [vmem:[#allocation2 + $0x48] ss:$16 sps:$4 sm:$0xff]  }
 0x111   :  { %v469_v3 = vmax.f32 %v283_v52, 0.0  ;;  %v471_v4 = vmax.f32 %v396_v53, 0.0  ;;  %v6592_v13 = vpack.c.bf16 %v468_v57, %v464_v5  ;;  %v6594_v14 = vpack.c.bf16 %v470_v60, %v466_v6  ;;  %v5778_v47 = vld [vmem:[#allocation2 + $0x248] ss:$16 sps:$4 sm:$0xff]  }
 0x112   :  { %v288_v7 = vpop.f32.mrf.mxu0  ;;  %v401_v8 = vpop.f32.mrf.mxu1  ;;  %v287_v32 = vadd.f32 %v286_v61, %v6535_v26  ;;  %v400_v33 = vadd.f32 %v399_v62, %v6538_v27  ;;  %v5786_v61 = vld [vmem:[#allocation2 + $0x22c] ss:$16 sps:$4 sm:$0xff]   ;;  %v5784_v6 = vld [vmem:[#allocation2 + $0x228] ss:$16 sps:$4 sm:$0xff]  }
 0x113   :  { %1567 = vmatpush1.bf16.msra.mxu0 %v5763_v56  ;;  %v6588_v10 = vpack.c.bf16 %v469_v3, %v465_v0  ;;  %v6590_v11 = vpack.c.bf16 %v471_v4, %v467_v2  ;;  %v289_v15 = vadd.f32 %v288_v7, %v6529_v24  ;;  %1680 = vmatpush1.bf16.msra.mxu1 %v5766_v63  ;;  %v5789_v7 = vld [vmem:[#allocation2 + $0xc] ss:$16 sps:$4 sm:$0xff]  }
 0x114   :  { %v290_v16 = vpop.f32.mrf.mxu0  ;;  %v403_v21 = vpop.f32.mrf.mxu1  ;;  %1568 = vmatprep.subr.bf16.mxu0 %v5771_v1  ;;  %v402_v28 = vadd.f32 %v401_v8, %v6532_v25  ;;  %1681 = vmatprep.subr.bf16.mxu1 %v5774_v9  ;;  %v472_v53 = vmax.f32 %v287_v32, 0.0  ;;  %v474_v56 = vmax.f32 %v400_v33, 0.0  ;;  %v5781_v1 = vld [vmem:[#allocation2 + $0x28] ss:$16 sps:$4 sm:$0xff]  }
 0x115   :  { %v291_v29 = vadd.f32 %v290_v16, %v6535_v26  ;;  %v404_v30 = vadd.f32 %v403_v21, %v6538_v27  ;;  %1386 = vmatprep.mubr.bf16.mxu0 %v6588_v10  ;;  %1499 = vmatprep.mubr.bf16.mxu1 %v6590_v11  ;;  %v473_v49 = vmax.f32 %v289_v15, 0.0  ;;  %v5792_v15 = vld [vmem:[#allocation2 + $0x20c] ss:$16 sps:$4 sm:$0xff]  }
 0x116   :  { %v292_v35 = vpop.f32.mrf.mxu0  ;;  %v405_v38 = vpop.f32.mrf.mxu1  ;;  %1387 = vmatmul.mubr.bf16.gmra.mxu0 %v6592_v13  ;;  %1500 = vmatmul.mubr.bf16.gmra.mxu1 %v6594_v14  ;;  %v475_v50 = vmax.f32 %v402_v28, 0.0 }
 0x117   :  { %v293_v39 = vadd.f32 %v292_v35, %v6529_v24  ;;  %v406_v41 = vadd.f32 %v405_v38, %v6532_v25  ;;  %1569 = vmatpush1.bf16.msra.mxu0 %v5769_v12  ;;  %v476_v43 = vmax.f32 %v291_v29, 0.0  ;;  %v478_v44 = vmax.f32 %v404_v30, 0.0  ;;  %1682 = vmatpush1.bf16.msra.mxu1 %v5772_v22  ;;  %v5787_v30 = vld [vmem:[#allocation2 + $0x8] ss:$16 sps:$4 sm:$0xff]  }
 0x118   :  { %v296_v45 = vpop.f32.mrf.mxu0  ;;  %v409_v46 = vpop.f32.mrf.mxu1  ;;  %1570 = vmatprep.subr.bf16.mxu0 %v5777_v23  ;;  %1683 = vmatprep.subr.bf16.mxu1 %v5780_v31  ;;  %v5790_v38 = vld [vmem:[#allocation2 + $0x208] ss:$16 sps:$4 sm:$0xff]  }
 0x119   :  { %v477_v51 = vmax.f32 %v293_v39, 0.0  ;;  %v479_v52 = vmax.f32 %v406_v41, 0.0  ;;  %v6612_v0 = vpack.c.bf16 %v476_v43, %v472_v53  ;;  %v6614_v2 = vpack.c.bf16 %v478_v44, %v474_v56  ;;  %v5795_v39 = vld [vmem:[#allocation2 + $0x1ec] ss:$16 sps:$4 sm:$0xff]  }
 0x11a   :  { %v298_v57 = vpop.f32.mrf.mxu0  ;;  %v411_v60 = vpop.f32.mrf.mxu1  ;;  %v297_v16 = vadd.f32 %v296_v45, %v6535_v26  ;;  %v410_v21 = vadd.f32 %v409_v46, %v6538_v27 }
 0x11b   :  { %1571 = vmatpush1.bf16.msra.mxu0 %v5775_v42  ;;  %v6608_v62 = vpack.c.bf16 %v477_v51, %v473_v49  ;;  %v6610_v63 = vpack.c.bf16 %v479_v52, %v475_v50  ;;  %v299_v3 = vadd.f32 %v298_v57, %v6529_v24  ;;  %1684 = vmatpush1.bf16.msra.mxu1 %v5778_v47  ;;  %v5798_v49 = vld [vmem:[#allocation2 + $0x3ec] ss:$16 sps:$4 sm:$0xff]   ;;  %v5793_v52 = vld [vmem:[#allocation2 + $0x1e8] ss:$16 sps:$4 sm:$0xff]  }
 0x11c   :  { %v300_v4 = vpop.f32.mrf.mxu0  ;;  %v413_v5 = vpop.f32.mrf.mxu1  ;;  %1572 = vmatprep.subr.bf16.mxu0 %v5783_v48  ;;  %v412_v8 = vadd.f32 %v411_v60, %v6532_v25  ;;  %1685 = vmatprep.subr.bf16.mxu1 %v5786_v61  ;;  %v480_v45 = vmax.f32 %v297_v16, 0.0  ;;  %v482_v46 = vmax.f32 %v410_v21, 0.0 }
 0x11d   :  { %v301_v9 = vadd.f32 %v300_v4, %v6535_v26  ;;  %v414_v12 = vadd.f32 %v413_v5, %v6538_v27  ;;  %1396 = vmatprep.mubr.bf16.mxu0 %v6608_v62  ;;  %1509 = vmatprep.mubr.bf16.mxu1 %v6610_v63  ;;  %v481_v41 = vmax.f32 %v299_v3, 0.0  ;;  %v5801_v3 = vld [vmem:[#allocation2 + $0x1cc] ss:$16 sps:$4 sm:$0xff]  }
 0x11e   :  { %v302_v22 = vpop.f32.mrf.mxu0  ;;  %v415_v23 = vpop.f32.mrf.mxu1  ;;  %1397 = vmatmul.mubr.bf16.gmra.mxu0 %v6612_v0  ;;  %1510 = vmatmul.mubr.bf16.gmra.mxu1 %v6614_v2  ;;  %v483_v42 = vmax.f32 %v412_v8, 0.0 }
 0x11f   :  { %v303_v28 = vadd.f32 %v302_v22, %v6529_v24  ;;  %v416_v29 = vadd.f32 %v415_v23, %v6532_v25  ;;  %1573 = vmatpush1.bf16.msra.mxu0 %v5781_v1  ;;  %v484_v31 = vmax.f32 %v301_v9, 0.0  ;;  %v486_v32 = vmax.f32 %v414_v12, 0.0  ;;  %1686 = vmatpush1.bf16.msra.mxu1 %v5784_v6  ;;  %v5796_v1 = vld [vmem:[#allocation2 + $0x3e8] ss:$16 sps:$4 sm:$0xff]  }
 0x120   :  { %v306_v33 = vpop.f32.mrf.mxu0  ;;  %v419_v35 = vpop.f32.mrf.mxu1  ;;  %1574 = vmatprep.subr.bf16.mxu0 %v5789_v7  ;;  %1687 = vmatprep.subr.bf16.mxu1 %v5792_v15  ;;  %v5804_v7 = vld [vmem:[#allocation2 + $0x3cc] ss:$16 sps:$4 sm:$0xff]   ;;  %v5799_v22 = vld [vmem:[#allocation2 + $0x1c8] ss:$16 sps:$4 sm:$0xff]  }
 0x121   :  { %v485_v43 = vmax.f32 %v303_v28, 0.0  ;;  %v487_v44 = vmax.f32 %v416_v29, 0.0  ;;  %v6632_v53 = vpack.c.bf16 %v484_v31, %v480_v45  ;;  %v6634_v56 = vpack.c.bf16 %v486_v32, %v482_v46  ;;  %v5802_v31 = vld [vmem:[#allocation2 + $0x3c8] ss:$16 sps:$4 sm:$0xff]   ;;  %v5807_v32 = vld [vmem:[#allocation2 + $0x1ac] ss:$16 sps:$4 sm:$0xff]  }
 0x122   :  { %v308_v47 = vpop.f32.mrf.mxu0  ;;  %v421_v48 = vpop.f32.mrf.mxu1  ;;  %v307_v8 = vadd.f32 %v306_v33, %v6535_v26  ;;  %v420_v9 = vadd.f32 %v419_v35, %v6538_v27  ;;  %v5810_v45 = vld [vmem:[#allocation2 + $0x3ac] ss:$16 sps:$4 sm:$0xff]  }
 0x123   :  { %1575 = vmatpush1.bf16.msra.mxu0 %v5787_v30  ;;  %v6628_v50 = vpack.c.bf16 %v485_v43, %v481_v41  ;;  %v6630_v51 = vpack.c.bf16 %v487_v44, %v483_v42  ;;  %v309_v57 = vadd.f32 %v308_v47, %v6529_v24  ;;  %1688 = vmatpush1.bf16.msra.mxu1 %v5790_v38 }
 0x124   :  { %v310_v60 = vpop.f32.mrf.mxu0  ;;  %v423_v61 = vpop.f32.mrf.mxu1  ;;  %1576 = vmatprep.subr.bf16.mxu0 %v5795_v39  ;;  %v422_v4 = vadd.f32 %v421_v48, %v6532_v25  ;;  %1689 = vmatprep.subr.bf16.mxu1 %v5798_v49  ;;  %v488_v41 = vmax.f32 %v307_v8, 0.0  ;;  %v490_v42 = vmax.f32 %v420_v9, 0.0  ;;  %v5805_v48 = vld [vmem:[#allocation2 + $0x1a8] ss:$16 sps:$4 sm:$0xff]  }
 0x125   :  { %v311_v5 = vadd.f32 %v310_v60, %v6535_v26  ;;  %v424_v6 = vadd.f32 %v423_v61, %v6538_v27  ;;  %1406 = vmatprep.mubr.bf16.mxu0 %v6628_v50  ;;  %1519 = vmatprep.mubr.bf16.mxu1 %v6630_v51  ;;  %v489_v33 = vmax.f32 %v309_v57, 0.0 }
 0x126   :  { %v312_v12 = vpop.f32.mrf.mxu0  ;;  %v425_v15 = vpop.f32.mrf.mxu1  ;;  %1407 = vmatmul.mubr.bf16.gmra.mxu0 %v6632_v53  ;;  %1520 = vmatmul.mubr.bf16.gmra.mxu1 %v6634_v56  ;;  %v491_v35 = vmax.f32 %v422_v4, 0.0 }
 0x127   :  { %v313_v16 = vadd.f32 %v312_v12, %v6529_v24  ;;  %v426_v21 = vadd.f32 %v425_v15, %v6532_v25  ;;  %1577 = vmatpush2.bf16.msra.mxu0 %v5793_v52  ;;  %v492_v23 = vmax.f32 %v311_v5, 0.0  ;;  %v494_v28 = vmax.f32 %v424_v6, 0.0  ;;  %1690 = vmatpush2.bf16.msra.mxu1 %v5796_v1  ;;  %v5808_v1 = vld [vmem:[#allocation2 + $0x3a8] ss:$16 sps:$4 sm:$0xff]  }
 0x128   :  { %v316_v29 = vpop.f32.mrf.mxu0  ;;  %v429_v30 = vpop.f32.mrf.mxu1  ;;  %1578 = vmatprep.subr.bf16.mxu0 %v5801_v3  ;;  %1691 = vmatprep.subr.bf16.mxu1 %v5804_v7  ;;  %v5813_v3 = vld [vmem:[#allocation2 + $0x18c] ss:$16 sps:$4 sm:$0xff]  }
 0x129   :  { %v493_v38 = vmax.f32 %v313_v16, 0.0  ;;  %v495_v39 = vmax.f32 %v426_v21, 0.0  ;;  %v6652_v49 = vpack.c.bf16 %v492_v23, %v488_v41  ;;  %v6654_v52 = vpack.c.bf16 %v494_v28, %v490_v42  ;;  %v5816_v7 = vld [vmem:[#allocation2 + $0x38c] ss:$16 sps:$4 sm:$0xff]  }
 0x12a   :  { %v318_v43 = vpop.f32.mrf.mxu0  ;;  %v431_v44 = vpop.f32.mrf.mxu1  ;;  %v317_v8 = vadd.f32 %v316_v29, %v6535_v26  ;;  %v430_v9 = vadd.f32 %v429_v30, %v6538_v27  ;;  %v5814_v30 = vld [vmem:[#allocation2 + $0x388] ss:$16 sps:$4 sm:$0xff]  }
 0x12b   :  { %1579 = vmatpush2.bf16.msra.mxu0 %v5799_v22  ;;  %v6648_v46 = vpack.c.bf16 %v493_v38, %v489_v33  ;;  %v6650_v47 = vpack.c.bf16 %v495_v39, %v491_v35  ;;  %v319_v57 = vadd.f32 %v318_v43, %v6529_v24  ;;  %1692 = vmatpush2.bf16.msra.mxu1 %v5802_v31  ;;  %v5811_v22 = vld [vmem:[#allocation2 + $0x188] ss:$16 sps:$4 sm:$0xff]  }
 0x12c   :  { %v320_v60 = vpop.f32.mrf.mxu0  ;;  %v433_v61 = vpop.f32.mrf.mxu1  ;;  %1580 = vmatprep.subr.bf16.mxu0 %v5807_v32  ;;  %v432_v4 = vadd.f32 %v431_v44, %v6532_v25  ;;  %1693 = vmatprep.subr.bf16.mxu1 %v5810_v45  ;;  %v5819_v32 = vld [vmem:[#allocation2 + $0x16c] ss:$16 sps:$4 sm:$0xff]   ;;  %v496_v41 = vmax.f32 %v317_v8, 0.0  ;;  %v498_v42 = vmax.f32 %v430_v9, 0.0 }
 0x12d   :  { %v321_v5 = vadd.f32 %v320_v60, %v6535_v26  ;;  %v434_v6 = vadd.f32 %v433_v61, %v6538_v27  ;;  %1416 = vmatprep.mubr.bf16.mxu0 %v6648_v46  ;;  %1529 = vmatprep.mubr.bf16.mxu1 %v6650_v47  ;;  %v497_v33 = vmax.f32 %v319_v57, 0.0  ;;  %v5822_v45 = vld [vmem:[#allocation2 + $0x36c] ss:$16 sps:$4 sm:$0xff]   ;;  %v5817_v61 = vld [vmem:[#allocation2 + $0x168] ss:$16 sps:$4 sm:$0xff]  }
 0x12e   :  { %v322_v12 = vpop.f32.mrf.mxu0  ;;  %v435_v15 = vpop.f32.mrf.mxu1  ;;  %1417 = vmatmul.mubr.bf16.gmra.mxu0 %v6652_v49  ;;  %1530 = vmatmul.mubr.bf16.gmra.mxu1 %v6654_v52  ;;  %v499_v35 = vmax.f32 %v432_v4, 0.0 }
 0x12f   :  { %v323_v16 = vadd.f32 %v322_v12, %v6529_v24  ;;  %v436_v21 = vadd.f32 %v435_v15, %v6532_v25  ;;  %1581 = vmatpush2.bf16.msra.mxu0 %v5805_v48  ;;  %v500_v23 = vmax.f32 %v321_v5, 0.0  ;;  %v502_v28 = vmax.f32 %v434_v6, 0.0  ;;  %1694 = vmatpush2.bf16.msra.mxu1 %v5808_v1  ;;  %v5820_v6 = vld [vmem:[#allocation2 + $0x368] ss:$16 sps:$4 sm:$0xff]   ;;  %v5828_v15 = vld [vmem:[#allocation2 + $0x34c] ss:$16 sps:$4 sm:$0xff]  }
 0x130   :  { %v326_v31 = vpop.f32.mrf.mxu0  ;;  %v439_v29 = vpop.f32.mrf.mxu1  ;;  %1582 = vmatprep.subr.bf16.mxu0 %v5813_v3  ;;  %1695 = vmatprep.subr.bf16.mxu1 %v5816_v7  ;;  %v5825_v7 = vld [vmem:[#allocation2 + $0x14c] ss:$16 sps:$4 sm:$0xff]  }
 0x131   :  { %v501_v38 = vmax.f32 %v323_v16, 0.0  ;;  %v503_v39 = vmax.f32 %v436_v21, 0.0  ;;  %v6672_v1 = vpack.c.bf16 %v500_v23, %v496_v41  ;;  %v6674_v3 = vpack.c.bf16 %v502_v28, %v498_v42 }
 0x132   :  { %v328_v43 = vpop.f32.mrf.mxu0  ;;  %v441_v44 = vpop.f32.mrf.mxu1  ;;  %v327_v16 = vadd.f32 %v326_v31, %v6535_v26  ;;  %v440_v23 = vadd.f32 %v439_v29, %v6538_v27  ;;  %v5831_v31 = vld [vmem:[#allocation2 + $0x12c] ss:$16 sps:$4 sm:$0xff]  }
 0x133   :  { %1583 = vmatpush2.bf16.msra.mxu0 %v5811_v22  ;;  %v6668_v48 = vpack.c.bf16 %v501_v38, %v497_v33  ;;  %v6670_v60 = vpack.c.bf16 %v503_v39, %v499_v35  ;;  %v329_v57 = vadd.f32 %v328_v43, %v6529_v24  ;;  %1696 = vmatpush2.bf16.msra.mxu1 %v5814_v30  ;;  %v5834_v29 = vld [vmem:[#allocation2 + $0x32c] ss:$16 sps:$4 sm:$0xff]  }
 0x134   :  { %v330_v4 = vpop.f32.mrf.mxu0  ;;  %v443_v5 = vpop.f32.mrf.mxu1  ;;  %1584 = vmatprep.subr.bf16.mxu0 %v5819_v32  ;;  %v442_v8 = vadd.f32 %v441_v44, %v6532_v25  ;;  %1697 = vmatprep.subr.bf16.mxu1 %v5822_v45  ;;  %v5823_v32 = vld [vmem:[#allocation2 + $0x148] ss:$16 sps:$4 sm:$0xff]  }
 0x135   :  { %v331_v9 = vadd.f32 %v330_v4, %v6535_v26  ;;  %v444_v12 = vadd.f32 %v443_v5, %v6538_v27  ;;  %1426 = vmatprep.mubr.bf16.mxu0 %v6668_v48  ;;  %1539 = vmatprep.mubr.bf16.mxu1 %v6670_v60  ;;  %v505_v33 = vmax.f32 %v329_v57, 0.0  ;;  %v5826_v26 = vld [vmem:[#allocation2 + $0x348] ss:$16 sps:$4 sm:$0xff]   ;;  %v504_v27 = vmax.f32 %v327_v16, 0.0  ;;  %v5837_v4 = vld [vmem:[#allocation2 + $0x10c] ss:$16 sps:$4 sm:$0xff]  }
 0x136   :  { %v332_v21 = vpop.f32.mrf.mxu0  ;;  %v445_v22 = vpop.f32.mrf.mxu1  ;;  %1427 = vmatmul.mubr.bf16.gmra.mxu0 %v6672_v1  ;;  %1540 = vmatmul.mubr.bf16.gmra.mxu1 %v6674_v3  ;;  %v507_v38 = vmax.f32 %v442_v8, 0.0  ;;  %v5829_v44 = vld [vmem:[#allocation2 + $0x128] ss:$16 sps:$4 sm:$0xff]   ;;  %v5840_v5 = vld [vmem:[#allocation2 + $0x30c] ss:$16 sps:$4 sm:$0xff]  }
 0x137   :  { %v333_v28 = vadd.f32 %v332_v21, %v6529_v24  ;;  %v446_v30 = vadd.f32 %v445_v22, %v6532_v25  ;;  %1585 = vmatpush2.bf16.msra.mxu0 %v5817_v61  ;;  %v508_v35 = vmax.f32 %v331_v9, 0.0  ;;  %1698 = vmatpush2.bf16.msra.mxu1 %v5820_v6  ;;  %v510_v39 = vmax.f32 %v444_v12, 0.0  ;;  %v5832_v61 = vld [vmem:[#allocation2 + $0x328] ss:$16 sps:$4 sm:$0xff]   ;;  %v5843_v8 = vld [vmem:[#allocation5 + $0xe4] ss:$16 sps:$4 sm:$0xff]  }
 0x138   :  { %1586 = vmatprep.subr.bf16.mxu0 %v5825_v7  ;;  %1699 = vmatprep.subr.bf16.mxu1 %v5828_v15  ;;  %v506_v24 = vmax.f32 %v440_v23, 0.0  ;;  %v5835_v6 = vld [vmem:[#allocation2 + $0x108] ss:$16 sps:$4 sm:$0xff]   ;;  %v5841_v9 = vld [vmem:[#allocation5 + $0xe0] ss:$16 sps:$4 sm:$0xff]  }
 0x139   :  { %v509_v41 = vmax.f32 %v333_v28, 0.0  ;;  %v511_v42 = vmax.f32 %v446_v30, 0.0  ;;  %v6692_v45 = vpack.c.bf16 %v508_v35, %v504_v27  ;;  %v5838_v7 = vld [vmem:[#allocation2 + $0x308] ss:$16 sps:$4 sm:$0xff]   ;;  %v5846_v12 = vld [vmem:[#allocation5 + $0xc4] ss:$16 sps:$4 sm:$0xff]  }
 0x13a   :  { %v6694_v57 = vpack.c.bf16 %v510_v39, %v506_v24  ;;  %v5849_v15 = vld [vmem:[#allocation5 + $0xa4] ss:$16 sps:$4 sm:$0xff]   ;;  %v5895_v22 = vld [vmem:[#allocation5 + $0x2c0] ss:$16 sps:$4 sm:$0xff]  }
 0x13b   :  { %1587 = vmatpush2.bf16.msra.mxu0 %v5823_v32  ;;  %v6688_v25 = vpack.c.bf16 %v509_v41, %v505_v33  ;;  %v6690_v43 = vpack.c.bf16 %v511_v42, %v507_v38  ;;  %1700 = vmatpush2.bf16.msra.mxu1 %v5826_v26  ;;  %v5852_v16 = vld [vmem:[#allocation5 + $0x84] ss:$16 sps:$4 sm:$0xff]   ;;  %v5859_v23 = vld [vmem:[#allocation5 + $0x20] ss:$16 sps:$4 sm:$0xff]  }
 0x13c   :  { %1588 = vmatprep.subr.bf16.mxu0 %v5831_v31  ;;  %1701 = vmatprep.subr.bf16.mxu1 %v5834_v29  ;;  %v5891_v21 = vld [vmem:[#allocation5 + $0x2e4] ss:$16 sps:$4 sm:$0xff]   ;;  %v5907_v32 = vld [vmem:[#allocation5 + $0x280] ss:$16 sps:$4 sm:$0xff]  }
 0x13d   :  { %1436 = vmatprep.mubr.bf16.mxu0 %v6688_v25  ;;  %1549 = vmatprep.mubr.bf16.mxu1 %v6690_v43  ;;  %v5867_v28 = vld [vmem:[#allocation5 + $0x1e4] ss:$16 sps:$4 sm:$0xff]   ;;  %v5865_v33 = vld [vmem:[#allocation5 + $0x1e0] ss:$16 sps:$4 sm:$0xff]  }
 0x13e   :  { %1437 = vmatmul.mubr.bf16.gmra.mxu0 %v6692_v45  ;;  %1550 = vmatmul.mubr.bf16.gmra.mxu1 %v6694_v57  ;;  %v5909_v30 = vld [vmem:[#allocation5 + $0x284] ss:$16 sps:$4 sm:$0xff]   ;;  %v5919_v31 = vld [vmem:[#allocation5 + $0x240] ss:$16 sps:$4 sm:$0xff]  }
 0x13f   :  { %1589 = vmatpush2.bf16.msra.mxu0 %v5829_v44  ;;  %1592 = vmatprep.mubr.bf16.mxu0 %v6548_v54  ;;  %v5844_v54 = vld [vmem:[#allocation5 + $0xc0] ss:$16 sps:$4 sm:$0xff]   ;;  %v5873_v35 = vld [vmem:[#allocation5 + $0x1a4] ss:$16 sps:$4 sm:$0xff]  }
 0x140   :  { %1702 = vmatpush2.bf16.msra.mxu1 %v5832_v61  ;;  %1705 = vmatprep.mubr.bf16.mxu1 %v6550_v55  ;;  %v5847_v55 = vld [vmem:[#allocation5 + $0xa0] ss:$16 sps:$4 sm:$0xff]   ;;  %v5921_v26 = vld [vmem:[#allocation5 + $0x244] ss:$16 sps:$4 sm:$0xff]  }
 0x141   :  { %1590 = vmatprep.subr.bf16.mxu0 %v5837_v4  ;;  %1703 = vmatprep.subr.bf16.mxu1 %v5840_v5  ;;  %v5871_v38 = vld [vmem:[#allocation5 + $0x1a0] ss:$16 sps:$4 sm:$0xff]   ;;  %v5879_v39 = vld [vmem:[#allocation5 + $0x164] ss:$16 sps:$4 sm:$0xff]   ;;  %v5894_v4 = vld [vmem:[#allocation5 + $0xec] ss:$16 sps:$4 sm:$0xff]  }
 0x142   :  { %v5933_v41 = vld [vmem:[#allocation5 + $0x204] ss:$16 sps:$4 sm:$0xff]   ;;  %v5931_v42 = vld [vmem:[#allocation5 + $0x200] ss:$16 sps:$4 sm:$0xff]  }
 0x143   :  { %1591 = vmatpush2.bf16.msra.mxu0 %v5835_v6  ;;  %v5877_v27 = vld [vmem:[#allocation5 + $0x160] ss:$16 sps:$4 sm:$0xff]   ;;  %v5885_v29 = vld [vmem:[#allocation5 + $0x124] ss:$16 sps:$4 sm:$0xff]  }
 0x144   :  { %1704 = vmatpush2.bf16.msra.mxu1 %v5838_v7  ;;  %2672 = vmatprep.subr.bf16.mxu0 %v5843_v8  ;;  %v5945_v24 = vld [vmem:[#allocation5 + $0x3c4] ss:$16 sps:$4 sm:$0xff]   ;;  %v5943_v44 = vld [vmem:[#allocation5 + $0x3c0] ss:$16 sps:$4 sm:$0xff]  }
 0x145   :  { %2785 = vmatprep.subr.bf16.mxu1 %v5891_v21  ;;  %v5883_v61 = vld [vmem:[#allocation5 + $0x120] ss:$16 sps:$4 sm:$0xff]   ;;  %v5957_v5 = vld [vmem:[#allocation5 + $0x384] ss:$16 sps:$4 sm:$0xff]  }
 0x146   :  { %1593 = vmatmul.mubr.bf16.vlgmr.msra.gmra.mxu0 %v6552_v58  ;;  %v5850_v58 = vld [vmem:[#allocation5 + $0x80] ss:$16 sps:$4 sm:$0xff]   ;;  %v5963_v7 = vld [vmem:[#allocation5 + $0x364] ss:$16 sps:$4 sm:$0xff]  }
 0x147   :  { %1706 = vmatmul.mubr.bf16.vlgmr.msra.gmra.mxu1 %v6554_v59  ;;  %1602 = vmatprep.mubr.bf16.mxu0 %v6568_v34  ;;  %v5855_v59 = vld [vmem:[#allocation5 + $0x64] ss:$16 sps:$4 sm:$0xff]   ;;  %v5853_v34 = vld [vmem:[#allocation5 + $0x60] ss:$16 sps:$4 sm:$0xff]  }
 0x148   :  { %1715 = vmatprep.mubr.bf16.mxu1 %v6574_v40  ;;  %2673 = vmatpush1.bf16.msra.mxu0 %v5841_v9  ;;  %v5858_v40 = vld [vmem:[#allocation5 + $0x44] ss:$16 sps:$4 sm:$0xff]   ;;  %v5955_v6 = vld [vmem:[#allocation5 + $0x380] ss:$16 sps:$4 sm:$0xff]  }
 0x149   :  { %2674 = vmatprep.subr.bf16.mxu0 %v5846_v12  ;;  %v5961_v8 = vld [vmem:[#allocation5 + $0x360] ss:$16 sps:$4 sm:$0xff]  }
 0x14a   :  { %v5967_v9 = vld [vmem:[#allocation5 + $0x340] ss:$16 sps:$4 sm:$0xff]  }
 0x14b   :  { %v5973_v12 = vld [vmem:[#allocation5 + $0x320] ss:$16 sps:$4 sm:$0xff]  }
 0x14c   :  { %2675 = vmatpush1.bf16.msra.mxu0 %v5844_v54  ;;  %v5981_v54 = vld [vmem:[#allocation5 + $0x304] ss:$16 sps:$4 sm:$0xff]  }
 0x14d   :  { %2676 = vmatprep.subr.bf16.mxu0 %v5849_v15  ;;  %v5979_v15 = vld [vmem:[#allocation5 + $0x300] ss:$16 sps:$4 sm:$0xff]  }
 0x14e   :  { %1603 = vmatmul.mubr.bf16.gmra.mxu0 %v6570_v36  ;;  %v5889_v36 = vld [vmem:[#allocation5 + $0x2e0] ss:$16 sps:$4 sm:$0xff]  }
 0x14f   :  { %1716 = vmatmul.mubr.bf16.gmra.mxu1 %v6572_v37  ;;  %1612 = vmatprep.mubr.bf16.mxu0 %v6588_v10  ;;  %v5856_v37 = vld [vmem:[#allocation5 + $0x40] ss:$16 sps:$4 sm:$0xff]   ;;  %v5861_v10 = vld [vmem:[#allocation5 + $0x24] ss:$16 sps:$4 sm:$0xff]  }
 0x150   :  { %1725 = vmatprep.mubr.bf16.mxu1 %v6590_v11  ;;  %2677 = vmatpush1.bf16.msra.mxu0 %v5847_v55  ;;  %v5897_v11 = vld [vmem:[#allocation5 + $0x2c4] ss:$16 sps:$4 sm:$0xff]   ;;  %v5987_v55 = vld [vmem:[#allocation5 + $0x2ec] ss:$16 sps:$4 sm:$0xff]  }
 0x151   :  { %2678 = vmatprep.subr.bf16.mxu0 %v5852_v16  ;;  %2786 = vmatpush1.bf16.msra.mxu1 %v5889_v36  ;;  %v6735_v16 = vld [vmem:[%s7562_s4] sm:$0xf] }
 0x152   :  { %2787 = vmatprep.subr.bf16.mxu1 %v5897_v11 }
 0x154   :  { %2679 = vmatpush1.bf16.msra.mxu0 %v5850_v58  ;;  %v6739_v58 = vrot.slane %v6735_v16, %v6521_v19 }
 0x155   :  { %2680 = vmatprep.subr.bf16.mxu0 %v5855_v59  ;;  %2788 = vmatpush1.bf16.msra.mxu1 %v5895_v22  ;;  %v6743_v59 = vrot.slane %v6735_v16, %v6517_v17 }
 0x156   :  { %1613 = vmatmul.mubr.bf16.gmra.mxu0 %v6592_v13  ;;  %v5864_v13 = vld [vmem:[#allocation5 + $0x4] ss:$16 sps:$4 sm:$0xff]  }
 0x157   :  { %1726 = vmatmul.mubr.bf16.gmra.mxu1 %v6594_v14  ;;  %1622 = vmatprep.mubr.bf16.mxu0 %v6608_v62  ;;  %v5903_v14 = vld [vmem:[#allocation5 + $0x2a4] ss:$16 sps:$4 sm:$0xff]   ;;  %v5901_v62 = vld [vmem:[#allocation5 + $0x2a0] ss:$16 sps:$4 sm:$0xff]  }
 0x158   :  { %1735 = vmatprep.mubr.bf16.mxu1 %v6610_v63  ;;  %2681 = vmatpush1.bf16.msra.mxu0 %v5853_v34  ;;  %v5862_v63 = vld [vmem:[#allocation5] ss:$16 sps:$4 sm:$0xff]  }
 0x159   :  { %2682 = vmatprep.subr.bf16.mxu0 %v5858_v40  ;;  %2789 = vmatprep.subr.bf16.mxu1 %v5903_v14 }
 0x15a   :  { %2790 = vmatpush1.bf16.msra.mxu1 %v5901_v62 }
 0x15b   :  { %2791 = vmatprep.subr.bf16.mxu1 %v5909_v30 }
 0x15c   :  { %2683 = vmatpush1.bf16.msra.mxu0 %v5856_v37 }
 0x15d   :  { %2684 = vmatprep.subr.bf16.mxu0 %v5861_v10 }
 0x15e   :  { %1623 = vmatmul.mubr.bf16.gmra.mxu0 %v6612_v0  ;;  %v5870_v0 = vld [vmem:[#allocation5 + $0x1c4] ss:$16 sps:$4 sm:$0xff]   ;;  %2792 = vmatpush1.bf16.msra.mxu1 %v5907_v32 }
 0x15f   :  { %1736 = vmatmul.mubr.bf16.gmra.mxu1 %v6614_v2  ;;  %1632 = vmatprep.mubr.bf16.mxu0 %v6628_v50  ;;  %v5915_v2 = vld [vmem:[#allocation5 + $0x264] ss:$16 sps:$4 sm:$0xff]   ;;  %v5913_v50 = vld [vmem:[#allocation5 + $0x260] ss:$16 sps:$4 sm:$0xff]  }
 0x160   :  { %1745 = vmatprep.mubr.bf16.mxu1 %v6630_v51  ;;  %2685 = vmatpush1.bf16.msra.mxu0 %v5859_v23  ;;  %v5868_v51 = vld [vmem:[#allocation5 + $0x1c0] ss:$16 sps:$4 sm:$0xff]  }
 0x161   :  { %2686 = vmatprep.subr.bf16.mxu0 %v5864_v13  ;;  %2793 = vmatprep.subr.bf16.mxu1 %v5915_v2 }
 0x162   :  { %2794 = vmatpush1.bf16.msra.mxu1 %v5913_v50 }
 0x163   :  { %2795 = vmatprep.subr.bf16.mxu1 %v5921_v26 }
 0x164   :  { %2687 = vmatpush1.bf16.msra.mxu0 %v5862_v63 }
 0x165   :  { %2688 = vmatprep.subr.bf16.mxu0 %v5867_v28 }
 0x166   :  { %1633 = vmatmul.mubr.bf16.gmra.mxu0 %v6632_v53  ;;  %v5876_v53 = vld [vmem:[#allocation5 + $0x184] ss:$16 sps:$4 sm:$0xff]   ;;  %2796 = vmatpush1.bf16.msra.mxu1 %v5919_v31 }
 0x167   :  { %1746 = vmatmul.mubr.bf16.gmra.mxu1 %v6634_v56  ;;  %1642 = vmatprep.mubr.bf16.mxu0 %v6648_v46  ;;  %v5927_v56 = vld [vmem:[#allocation5 + $0x224] ss:$16 sps:$4 sm:$0xff]   ;;  %v5925_v46 = vld [vmem:[#allocation5 + $0x220] ss:$16 sps:$4 sm:$0xff]  }
 0x168   :  { %1755 = vmatprep.mubr.bf16.mxu1 %v6650_v47  ;;  %2689 = vmatpush2.bf16.msra.mxu0 %v5865_v33  ;;  %v5874_v47 = vld [vmem:[#allocation5 + $0x180] ss:$16 sps:$4 sm:$0xff]  }
 0x169   :  { %2690 = vmatprep.subr.bf16.mxu0 %v5870_v0  ;;  %2797 = vmatprep.subr.bf16.mxu1 %v5927_v56 }
 0x16a   :  { %2798 = vmatpush1.bf16.msra.mxu1 %v5925_v46 }
 0x16b   :  { %2799 = vmatprep.subr.bf16.mxu1 %v5933_v41  ;;  %v5892_v41 = vld [vmem:[#allocation5 + $0xe8] ss:$16 sps:$4 sm:$0xff]  }
 0x16c   :  { %2691 = vmatpush2.bf16.msra.mxu0 %v5868_v51 }
 0x16d   :  { %2692 = vmatprep.subr.bf16.mxu0 %v5873_v35 }
 0x16e   :  { %1643 = vmatmul.mubr.bf16.gmra.mxu0 %v6652_v49  ;;  %v5882_v49 = vld [vmem:[#allocation5 + $0x144] ss:$16 sps:$4 sm:$0xff]   ;;  %2800 = vmatpush1.bf16.msra.mxu1 %v5931_v42 }
 0x16f   :  { %1756 = vmatmul.mubr.bf16.gmra.mxu1 %v6654_v52  ;;  %1652 = vmatprep.mubr.bf16.mxu0 %v6668_v48  ;;  %v5939_v52 = vld [vmem:[#allocation5 + $0x3e4] ss:$16 sps:$4 sm:$0xff]   ;;  %v5937_v48 = vld [vmem:[#allocation5 + $0x3e0] ss:$16 sps:$4 sm:$0xff]  }
 0x170   :  { %1765 = vmatprep.mubr.bf16.mxu1 %v6670_v60  ;;  %2693 = vmatpush2.bf16.msra.mxu0 %v5871_v38  ;;  %v5880_v60 = vld [vmem:[#allocation5 + $0x140] ss:$16 sps:$4 sm:$0xff]  }
 0x171   :  { %2694 = vmatprep.subr.bf16.mxu0 %v5876_v53  ;;  %2801 = vmatprep.subr.bf16.mxu1 %v5939_v52 }
 0x172   :  { %2802 = vmatpush2.bf16.msra.mxu1 %v5937_v48 }
 0x173   :  { %2803 = vmatprep.subr.bf16.mxu1 %v5945_v24 }
 0x174   :  { %2695 = vmatpush2.bf16.msra.mxu0 %v5874_v47 }
 0x175   :  { %2696 = vmatprep.subr.bf16.mxu0 %v5879_v39 }
 0x176   :  { %1653 = vmatmul.mubr.bf16.gmra.mxu0 %v6672_v1  ;;  %v5888_v1 = vld [vmem:[#allocation5 + $0x104] ss:$16 sps:$4 sm:$0xff]   ;;  %2804 = vmatpush2.bf16.msra.mxu1 %v5943_v44 }
 0x177   :  { %1766 = vmatmul.mubr.bf16.gmra.mxu1 %v6674_v3  ;;  %1662 = vmatprep.mubr.bf16.mxu0 %v6688_v25  ;;  %v5951_v3 = vld [vmem:[#allocation5 + $0x3a4] ss:$16 sps:$4 sm:$0xff]   ;;  %v5949_v25 = vld [vmem:[#allocation5 + $0x3a0] ss:$16 sps:$4 sm:$0xff]  }
 0x178   :  { %1775 = vmatprep.mubr.bf16.mxu1 %v6690_v43  ;;  %2697 = vmatpush2.bf16.msra.mxu0 %v5877_v27  ;;  %v5886_v43 = vld [vmem:[#allocation5 + $0x100] ss:$16 sps:$4 sm:$0xff]  }
 0x179   :  { %2698 = vmatprep.subr.bf16.mxu0 %v5882_v49  ;;  %2805 = vmatprep.subr.bf16.mxu1 %v5951_v3  ;;  %v5900_v49 = vld [vmem:[#allocation5 + $0xcc] ss:$16 sps:$4 sm:$0xff]   ;;  %v5898_v3 = vld [vmem:[#allocation5 + $0xc8] ss:$16 sps:$4 sm:$0xff]  }
 0x17a   :  { %2806 = vmatpush2.bf16.msra.mxu1 %v5949_v25 }
 0x17b   :  { %2807 = vmatprep.subr.bf16.mxu1 %v5957_v5 }
 0x17c   :  { %2699 = vmatpush2.bf16.msra.mxu0 %v5880_v60 }
 0x17d   :  { %2700 = vmatprep.subr.bf16.mxu0 %v5885_v29 }
 0x17e   :  { %1663 = vmatmul.mubr.bf16.gmra.mxu0 %v6692_v45  ;;  %2808 = vmatpush2.bf16.msra.mxu1 %v5955_v6  ;;  %v5969_v45 = vld [vmem:[#allocation5 + $0x344] ss:$16 sps:$4 sm:$0xff]  }
 0x17f   :  { %1776 = vmatmul.mubr.bf16.gmra.mxu1 %v6694_v57  ;;  %2809 = vmatprep.subr.bf16.mxu1 %v5963_v7  ;;  %v5975_v57 = vld [vmem:[#allocation5 + $0x324] ss:$16 sps:$4 sm:$0xff]  }
 0x180   :  { %2701 = vmatpush2.bf16.msra.mxu0 %v5883_v61 }
 0x181   :  { %2702 = vmatprep.subr.bf16.mxu0 %v5888_v1 }
 0x182   :  { %2810 = vmatpush2.bf16.msra.mxu1 %v5961_v8 }
 0x183   :  { %2811 = vmatprep.subr.bf16.mxu1 %v5969_v45 }
 0x184   :  { %2703 = vmatpush2.bf16.msra.mxu0 %v5886_v43 }
 0x185   :  { %2898 = vmatprep.subr.bf16.mxu0 %v5894_v4  ;;  %v5906_v4 = vld [vmem:[#allocation5 + $0xac] ss:$16 sps:$4 sm:$0xff]  }
 0x186   :  { %2812 = vmatpush2.bf16.msra.mxu1 %v5967_v9 }
 0x187   :  { %2813 = vmatprep.subr.bf16.mxu1 %v5975_v57 }
 0x18a   :  { %2814 = vmatpush2.bf16.msra.mxu1 %v5973_v12 }
 0x18b   :  { %2815 = vmatprep.subr.bf16.mxu1 %v5981_v54 }
 0x18e   :  { %2816 = vmatpush2.bf16.msra.mxu1 %v5979_v15 }
 0x18f   :  { %3011 = vmatprep.subr.bf16.mxu1 %v5987_v55  ;;  %v5904_v55 = vld [vmem:[#allocation5 + $0xa8] ss:$16 sps:$4 sm:$0xff]  }
 0x1c6   :  { %v1368_v34 = vpop.f32.mrf.mxu0  ;;  %v1481_v40 = vpop.f32.mrf.mxu1 }
 0x1c7   :  { %v1369_v10 = vadd.f32 %v1368_v34, %v6743_v59 }
 0x1c8   :  { %v1370_v21 = vpop.f32.mrf.mxu0  ;;  %v1483_v36 = vpop.f32.mrf.mxu1 }
 0x1c9   :  { %v1371_v37 = vadd.f32 %v1370_v21, %v6739_v58  ;;  %v1482_v30 = vadd.f32 %v1481_v40, %v1369_v10  ;;  %v5912_v21 = vld [vmem:[#allocation5 + $0x8c] ss:$16 sps:$4 sm:$0xff]  }
 0x1ca   :  { %v1372_v11 = vpop.f32.mrf.mxu0  ;;  %v1485_v22 = vpop.f32.mrf.mxu1 }
 0x1cb   :  { %v1373_v23 = vadd.f32 %v1372_v11, %v6743_v59  ;;  %v1484_v62 = vadd.f32 %v1483_v36, %v1371_v37  ;;  %v1786_v38 = vmax.f32 %v1482_v30, 0.0  ;;  %v5918_v30 = vld [vmem:[#allocation5 + $0x6c] ss:$16 sps:$4 sm:$0xff]  }
 0x1cc   :  { %v1374_v13 = vpop.f32.mrf.mxu0  ;;  %v1487_v14 = vpop.f32.mrf.mxu1 }
 0x1cd   :  { %v1486_v63 = vadd.f32 %v1485_v22, %v1373_v23  ;;  %v1375_v28 = vadd.f32 %v1374_v13, %v6739_v58  ;;  %v1787_v51 = vmax.f32 %v1484_v62, 0.0  ;;  %v5910_v62 = vld [vmem:[#allocation5 + $0x88] ss:$16 sps:$4 sm:$0xff]  }
 0x1ce   :  { %v1378_v32 = vpop.f32.mrf.mxu0  ;;  %v1491_v0 = vpop.f32.mrf.mxu1 }
 0x1cf   :  { %v1488_v33 = vadd.f32 %v1487_v14, %v1375_v28  ;;  %v1790_v2 = vmax.f32 %v1486_v63, 0.0  ;;  %v1379_v53 = vadd.f32 %v1378_v32, %v6743_v59 }
 0x1d0   :  { %v1380_v50 = vpop.f32.mrf.mxu0  ;;  %v1493_v31 = vpop.f32.mrf.mxu1 }
 0x1d1   :  { %v1791_v35 = vmax.f32 %v1488_v33, 0.0  ;;  %v1381_v26 = vadd.f32 %v1380_v50, %v6739_v58  ;;  %v6754_v42 = vpack.c.bf16 %v1790_v2, %v1786_v38  ;;  %v1492_v24 = vadd.f32 %v1491_v0, %v1379_v53  ;;  %v5916_v53 = vld [vmem:[#allocation5 + $0x68] ss:$16 sps:$4 sm:$0xff]  }
 0x1d2   :  { %v1382_v56 = vpop.f32.mrf.mxu0  ;;  %v1495_v47 = vpop.f32.mrf.mxu1 }
 0x1d3   :  { %v1383_v46 = vadd.f32 %v1382_v56, %v6743_v59  ;;  %v6752_v39 = vpack.c.bf16 %v1791_v35, %v1787_v51  ;;  %v1494_v52 = vadd.f32 %v1493_v31, %v1381_v26  ;;  %v1794_v45 = vmax.f32 %v1492_v24, 0.0 }
 0x1d4   :  { %v1384_v27 = vpop.f32.mrf.mxu0  ;;  %v1497_v29 = vpop.f32.mrf.mxu1 }
 0x1d5   :  { %v1496_v48 = vadd.f32 %v1495_v47, %v1383_v46  ;;  %v1385_v60 = vadd.f32 %v1384_v27, %v6739_v58  ;;  %2704 = vmatprep.mubr.bf16.mxu0 %v6752_v39  ;;  %v1795_v5 = vmax.f32 %v1494_v52, 0.0  ;;  %v5924_v47 = vld [vmem:[#allocation5 + $0x4c] ss:$16 sps:$4 sm:$0xff]  }
 0x1d6   :  { %v1388_v44 = vpop.f32.mrf.mxu0  ;;  %2705 = vmatmul.mubr.bf16.vlgmr.msra.gmra.mxu0 %v6754_v42  ;;  %v1501_v1 = vpop.f32.mrf.mxu1 }
 0x1d7   :  { %v1498_v61 = vadd.f32 %v1497_v29, %v1385_v60  ;;  %2899 = vmatpush1.bf16.msra.mxu0 %v5892_v41  ;;  %v1798_v25 = vmax.f32 %v1496_v48, 0.0  ;;  %v1389_v9 = vadd.f32 %v1388_v44, %v6743_v59  ;;  %v5922_v44 = vld [vmem:[#allocation5 + $0x48] ss:$16 sps:$4 sm:$0xff]  }
 0x1d8   :  { %v1390_v43 = vpop.f32.mrf.mxu0  ;;  %2900 = vmatprep.subr.bf16.mxu0 %v5900_v49  ;;  %v1503_v8 = vpop.f32.mrf.mxu1 }
 0x1d9   :  { %v1799_v6 = vmax.f32 %v1498_v61, 0.0  ;;  %v1391_v7 = vadd.f32 %v1390_v43, %v6739_v58  ;;  %v6764_v34 = vpack.c.bf16 %v1798_v25, %v1794_v45  ;;  %v1502_v22 = vadd.f32 %v1501_v1, %v1389_v9 }
 0x1da   :  { %v1392_v57 = vpop.f32.mrf.mxu0  ;;  %v1505_v54 = vpop.f32.mrf.mxu1 }
 0x1db   :  { %v1393_v12 = vadd.f32 %v1392_v57, %v6743_v59  ;;  %2901 = vmatpush1.bf16.msra.mxu0 %v5898_v3  ;;  %v6762_v15 = vpack.c.bf16 %v1799_v6, %v1795_v5  ;;  %v1504_v36 = vadd.f32 %v1503_v8, %v1391_v7  ;;  %v1802_v50 = vmax.f32 %v1502_v22, 0.0  ;;  %v5930_v3 = vld [vmem:[#allocation5 + $0x2c] ss:$16 sps:$4 sm:$0xff]  }
 0x1dc   :  { %v1394_v40 = vpop.f32.mrf.mxu0  ;;  %2902 = vmatprep.subr.bf16.mxu0 %v5906_v4  ;;  %v1507_v11 = vpop.f32.mrf.mxu1 }
 0x1dd   :  { %v1506_v37 = vadd.f32 %v1505_v54, %v1393_v12  ;;  %v1395_v10 = vadd.f32 %v1394_v40, %v6739_v58  ;;  %2714 = vmatprep.mubr.bf16.mxu0 %v6762_v15  ;;  %v1803_v32 = vmax.f32 %v1504_v36, 0.0  ;;  %v5928_v12 = vld [vmem:[#allocation5 + $0x28] ss:$16 sps:$4 sm:$0xff]   ;;  %v5936_v40 = vld [vmem:[#allocation5 + $0xc] ss:$16 sps:$4 sm:$0xff]  }
 0x1de   :  { %v1398_v23 = vpop.f32.mrf.mxu0  ;;  %2715 = vmatmul.mubr.bf16.gmra.mxu0 %v6764_v34  ;;  %v1511_v14 = vpop.f32.mrf.mxu1 }
 0x1df   :  { %v1508_v13 = vadd.f32 %v1507_v11, %v1395_v10  ;;  %2903 = vmatpush1.bf16.msra.mxu0 %v5904_v55  ;;  %v1806_v63 = vmax.f32 %v1506_v37, 0.0  ;;  %v1399_v51 = vadd.f32 %v1398_v23, %v6743_v59 }
 0x1e0   :  { %v1400_v28 = vpop.f32.mrf.mxu0  ;;  %2904 = vmatprep.subr.bf16.mxu0 %v5912_v21  ;;  %v1513_v2 = vpop.f32.mrf.mxu1 }
 0x1e1   :  { %v1807_v33 = vmax.f32 %v1508_v13, 0.0  ;;  %v1401_v0 = vadd.f32 %v1400_v28, %v6739_v58  ;;  %v6774_v56 = vpack.c.bf16 %v1806_v63, %v1802_v50  ;;  %v1512_v48 = vadd.f32 %v1511_v14, %v1399_v51  ;;  %v5934_v14 = vld [vmem:[#allocation5 + $0x8] ss:$16 sps:$4 sm:$0xff]   ;;  %v5942_v28 = vld [vmem:[#allocation5 + $0x1ec] ss:$16 sps:$4 sm:$0xff]  }
 0x1e2   :  { %v1402_v35 = vpop.f32.mrf.mxu0  ;;  %v1515_v31 = vpop.f32.mrf.mxu1 }
 0x1e3   :  { %v1403_v26 = vadd.f32 %v1402_v35, %v6743_v59  ;;  %2905 = vmatpush1.bf16.msra.mxu0 %v5910_v62  ;;  %v6772_v38 = vpack.c.bf16 %v1807_v33, %v1803_v32  ;;  %v1514_v41 = vadd.f32 %v1513_v2, %v1401_v0  ;;  %v1810_v6 = vmax.f32 %v1512_v48, 0.0 }
 0x1e4   :  { %v1404_v46 = vpop.f32.mrf.mxu0  ;;  %2906 = vmatprep.subr.bf16.mxu0 %v5918_v30  ;;  %v1517_v52 = vpop.f32.mrf.mxu1 }
 0x1e5   :  { %v1516_v27 = vadd.f32 %v1515_v31, %v1403_v26  ;;  %v1405_v49 = vadd.f32 %v1404_v46, %v6739_v58  ;;  %2724 = vmatprep.mubr.bf16.mxu0 %v6772_v38  ;;  %v1811_v25 = vmax.f32 %v1514_v41, 0.0  ;;  %v5948_v41 = vld [vmem:[#allocation5 + $0x1cc] ss:$16 sps:$4 sm:$0xff]  }
 0x1e6   :  { %v1408_v60 = vpop.f32.mrf.mxu0  ;;  %2725 = vmatmul.mubr.bf16.gmra.mxu0 %v6774_v56  ;;  %v1521_v24 = vpop.f32.mrf.mxu1 }
 0x1e7   :  { %v1518_v29 = vadd.f32 %v1517_v52, %v1405_v49  ;;  %2907 = vmatpush1.bf16.msra.mxu0 %v5916_v53  ;;  %v1814_v61 = vmax.f32 %v1516_v27, 0.0  ;;  %v1409_v7 = vadd.f32 %v1408_v60, %v6743_v59  ;;  %v5940_v53 = vld [vmem:[#allocation5 + $0x1e8] ss:$16 sps:$4 sm:$0xff]  }
 0x1e8   :  { %v1410_v1 = vpop.f32.mrf.mxu0  ;;  %2908 = vmatprep.subr.bf16.mxu0 %v5924_v47  ;;  %v1523_v5 = vpop.f32.mrf.mxu1 }
 0x1e9   :  { %v1815_v43 = vmax.f32 %v1518_v29, 0.0  ;;  %v1411_v4 = vadd.f32 %v1410_v1, %v6739_v58  ;;  %v6784_v54 = vpack.c.bf16 %v1814_v61, %v1810_v6  ;;  %v1522_v11 = vadd.f32 %v1521_v24, %v1409_v7  ;;  %v5946_v61 = vld [vmem:[#allocation5 + $0x1c8] ss:$16 sps:$4 sm:$0xff]  }
 0x1ea   :  { %v1412_v8 = vpop.f32.mrf.mxu0  ;;  %v1525_v9 = vpop.f32.mrf.mxu1 }
 0x1eb   :  { %v1413_v45 = vadd.f32 %v1412_v8, %v6743_v59  ;;  %2909 = vmatpush1.bf16.msra.mxu0 %v5922_v44  ;;  %v6782_v57 = vpack.c.bf16 %v1815_v43, %v1811_v25  ;;  %v1524_v21 = vadd.f32 %v1523_v5, %v1411_v4  ;;  %v1818_v2 = vmax.f32 %v1522_v11, 0.0  ;;  %v5954_v25 = vld [vmem:[#allocation5 + $0x1ac] ss:$16 sps:$4 sm:$0xff]  }
 0x1ec   :  { %v1414_v55 = vpop.f32.mrf.mxu0  ;;  %2910 = vmatprep.subr.bf16.mxu0 %v5930_v3  ;;  %v1527_v10 = vpop.f32.mrf.mxu1 }
 0x1ed   :  { %v1526_v36 = vadd.f32 %v1525_v9, %v1413_v45  ;;  %v1415_v37 = vadd.f32 %v1414_v55, %v6739_v58  ;;  %2734 = vmatprep.mubr.bf16.mxu0 %v6782_v57  ;;  %v1819_v30 = vmax.f32 %v1524_v21, 0.0 }
 0x1ee   :  { %v1418_v22 = vpop.f32.mrf.mxu0  ;;  %2735 = vmatmul.mubr.bf16.gmra.mxu0 %v6784_v54  ;;  %v1531_v13 = vpop.f32.mrf.mxu1 }
 0x1ef   :  { %v1528_v23 = vadd.f32 %v1527_v10, %v1415_v37  ;;  %2911 = vmatpush1.bf16.msra.mxu0 %v5928_v12  ;;  %v1822_v62 = vmax.f32 %v1526_v36, 0.0  ;;  %v1419_v50 = vadd.f32 %v1418_v22, %v6743_v59  ;;  %v5960_v37 = vld [vmem:[#allocation5 + $0x18c] ss:$16 sps:$4 sm:$0xff]  }
 0x1f0   :  { %v1420_v63 = vpop.f32.mrf.mxu0  ;;  %2912 = vmatprep.subr.bf16.mxu0 %v5936_v40  ;;  %v1533_v0 = vpop.f32.mrf.mxu1  ;;  %v5952_v40 = vld [vmem:[#allocation5 + $0x1a8] ss:$16 sps:$4 sm:$0xff]  }
 0x1f1   :  { %v1823_v32 = vmax.f32 %v1528_v23, 0.0  ;;  %v1421_v33 = vadd.f32 %v1420_v63, %v6739_v58  ;;  %v6794_v46 = vpack.c.bf16 %v1822_v62, %v1818_v2  ;;  %v1532_v60 = vadd.f32 %v1531_v13, %v1419_v50 }
 0x1f2   :  { %v1422_v51 = vpop.f32.mrf.mxu0  ;;  %v1535_v26 = vpop.f32.mrf.mxu1 }
 0x1f3   :  { %v1423_v35 = vadd.f32 %v1422_v51, %v6743_v59  ;;  %2913 = vmatpush1.bf16.msra.mxu0 %v5934_v14  ;;  %v6792_v31 = vpack.c.bf16 %v1823_v32, %v1819_v30  ;;  %v1534_v27 = vadd.f32 %v1533_v0, %v1421_v33  ;;  %v1826_v7 = vmax.f32 %v1532_v60, 0.0  ;;  %v5966_v33 = vld [vmem:[#allocation5 + $0x16c] ss:$16 sps:$4 sm:$0xff]  }
 0x1f4   :  { %v1424_v47 = vpop.f32.mrf.mxu0  ;;  %2914 = vmatprep.subr.bf16.mxu0 %v5942_v28  ;;  %v1537_v48 = vpop.f32.mrf.mxu1  ;;  %v5958_v28 = vld [vmem:[#allocation5 + $0x188] ss:$16 sps:$4 sm:$0xff]   ;;  %v5972_v60 = vld [vmem:[#allocation5 + $0x14c] ss:$16 sps:$4 sm:$0xff]  }
 0x1f5   :  { %v1536_v49 = vadd.f32 %v1535_v26, %v1423_v35  ;;  %v1425_v52 = vadd.f32 %v1424_v47, %v6739_v58  ;;  %2744 = vmatprep.mubr.bf16.mxu0 %v6792_v31  ;;  %v1827_v43 = vmax.f32 %v1534_v27, 0.0 }
 0x1f6   :  { %v1428_v29 = vpop.f32.mrf.mxu0  ;;  %2745 = vmatmul.mubr.bf16.gmra.mxu0 %v6794_v46  ;;  %v1541_v44 = vpop.f32.mrf.mxu1 }
 0x1f7   :  { %v1538_v24 = vadd.f32 %v1537_v48, %v1425_v52  ;;  %2915 = vmatpush2.bf16.msra.mxu0 %v5940_v53  ;;  %v1830_v1 = vmax.f32 %v1536_v49, 0.0  ;;  %v1429_v8 = vadd.f32 %v1428_v29, %v6743_v59  ;;  %v5964_v49 = vld [vmem:[#allocation5 + $0x168] ss:$16 sps:$4 sm:$0xff]  }
 0x1f8   :  { %v1430_v3 = vpop.f32.mrf.mxu0  ;;  %2916 = vmatprep.subr.bf16.mxu0 %v5948_v41  ;;  %v1543_v6 = vpop.f32.mrf.mxu1 }
 0x1f9   :  { %v1831_v4 = vmax.f32 %v1538_v24, 0.0  ;;  %v1431_v5 = vadd.f32 %v1430_v3, %v6739_v58  ;;  %v6804_v21 = vpack.c.bf16 %v1830_v1, %v1826_v7  ;;  %v1542_v13 = vadd.f32 %v1541_v44, %v1429_v8  ;;  %v5978_v7 = vld [vmem:[#allocation5 + $0x12c] ss:$16 sps:$4 sm:$0xff]  }
 0x1fa   :  { %v1432_v45 = vpop.f32.mrf.mxu0  ;;  %v1545_v12 = vpop.f32.mrf.mxu1  ;;  %v6824_v3 = vrot.slane %v6735_v16, %v6519_v18 }
 0x1fb   :  { %v1433_v9 = vadd.f32 %v1432_v45, %v6743_v59  ;;  %2917 = vmatpush2.bf16.msra.mxu0 %v5946_v61  ;;  %v6802_v55 = vpack.c.bf16 %v1831_v4, %v1827_v43  ;;  %v1544_v10 = vadd.f32 %v1543_v6, %v1431_v5  ;;  %v1834_v35 = vmax.f32 %v1542_v13, 0.0  ;;  %v5970_v5 = vld [vmem:[#allocation5 + $0x148] ss:$16 sps:$4 sm:$0xff]  }
 0x1fc   :  { %v1434_v36 = vpop.f32.mrf.mxu0  ;;  %2918 = vmatprep.subr.bf16.mxu0 %v5954_v25  ;;  %v1547_v23 = vpop.f32.mrf.mxu1 }
 0x1fd   :  { %v1546_v11 = vadd.f32 %v1545_v12, %v1433_v9  ;;  %v1435_v22 = vadd.f32 %v1434_v36, %v6739_v58  ;;  %2754 = vmatprep.mubr.bf16.mxu0 %v6802_v55  ;;  %v1835_v0 = vmax.f32 %v1544_v10, 0.0 }
 0x1fe   :  { %v1438_v14 = vpop.f32.mrf.mxu0  ;;  %2755 = vmatmul.mubr.bf16.gmra.mxu0 %v6804_v21  ;;  %v1551_v63 = vpop.f32.mrf.mxu1 }
 0x1ff   :  { %v1548_v62 = vadd.f32 %v1547_v23, %v1435_v22  ;;  %2919 = vmatpush2.bf16.msra.mxu0 %v5952_v40  ;;  %v1838_v30 = vmax.f32 %v1546_v11, 0.0  ;;  %v1439_v26 = vadd.f32 %v1438_v14, %v6743_v59  ;;  %v5976_v22 = vld [vmem:[#allocation5 + $0x128] ss:$16 sps:$4 sm:$0xff]   ;;  %v5984_v14 = vld [vmem:[#allocation5 + $0x10c] ss:$16 sps:$4 sm:$0xff]  }
 0x200   :  { %v1440_v32 = vpop.f32.mrf.mxu0  ;;  %2920 = vmatprep.subr.bf16.mxu0 %v5960_v37  ;;  %v1553_v51 = vpop.f32.mrf.mxu1 }
 0x201   :  { %v1839_v2 = vmax.f32 %v1548_v62, 0.0  ;;  %v1441_v50 = vadd.f32 %v1440_v32, %v6739_v58  ;;  %v6814_v52 = vpack.c.bf16 %v1838_v30, %v1834_v35  ;;  %v1552_v1 = vadd.f32 %v1551_v63, %v1439_v26 }
 0x202   :  { %v1442_v53 = vpop.f32.mrf.mxu0  ;;  %v1555_v41 = vpop.f32.mrf.mxu1 }
 0x203   :  { %v1443_v47 = vadd.f32 %v1442_v53, %v6743_v59  ;;  %2921 = vmatpush2.bf16.msra.mxu0 %v5958_v28  ;;  %v6812_v27 = vpack.c.bf16 %v1839_v2, %v1835_v0  ;;  %v1554_v29 = vadd.f32 %v1553_v51, %v1441_v50  ;;  %v6820_v59 = vrot.slane %v6735_v16, %v6523_v20  ;;  %v5982_v50 = vld [vmem:[#allocation5 + $0x108] ss:$16 sps:$4 sm:$0xff]  }
 0x204   :  { %v1444_v48 = vpop.f32.mrf.mxu0  ;;  %2922 = vmatprep.subr.bf16.mxu0 %v5966_v33  ;;  %v1557_v61 = vpop.f32.mrf.mxu1  ;;  %v1842_v40 = vmax.f32 %v1552_v1, 0.0 }
 0x205   :  { %v1556_v24 = vadd.f32 %v1555_v41, %v1443_v47  ;;  %v1445_v44 = vadd.f32 %v1444_v48, %v6739_v58  ;;  %2764 = vmatprep.mubr.bf16.mxu0 %v6812_v27  ;;  %v1843_v8 = vmax.f32 %v1554_v29, 0.0 }
 0x206   :  { %v1594_v25 = vpop.f32.mrf.mxu0  ;;  %2765 = vmatmul.mubr.bf16.gmra.mxu0 %v6814_v52 }
 0x207   :  { %v1558_v43 = vadd.f32 %v1557_v61, %v1445_v44  ;;  %v1707_v4 = vpop.f32.mrf.mxu1  ;;  %2923 = vmatpush2.bf16.msra.mxu0 %v5964_v49  ;;  %v1846_v58 = vmax.f32 %v1556_v24, 0.0  ;;  %v1595_v16 = vadd.f32 %v1594_v25, %v6824_v3  ;;  %v5990_v25 = vld [vmem:[#allocation5 + $0x2cc] ss:$16 sps:$4 sm:$0xff]  }
 0x208   :  { %v1596_v6 = vpop.f32.mrf.mxu0  ;;  %2924 = vmatprep.subr.bf16.mxu0 %v5972_v60 }
 0x209   :  { %v1847_v45 = vmax.f32 %v1558_v43, 0.0  ;;  %v1597_v9 = vadd.f32 %v1596_v6, %v6820_v59  ;;  %v1709_v12 = vpop.f32.mrf.mxu1  ;;  %v6832_v23 = vpack.c.bf16 %v1846_v58, %v1842_v40  ;;  %v1708_v32 = vadd.f32 %v1707_v4, %v1595_v16  ;;  %v5993_v16 = vld [vmem:[#allocation5 + $0x2ac] ss:$16 sps:$4 sm:$0xff]  }
 0x20a   :  { %v1598_v36 = vpop.f32.mrf.mxu0 }
 0x20b   :  { %v1599_v37 = vadd.f32 %v1598_v36, %v6824_v3  ;;  %v1711_v10 = vpop.f32.mrf.mxu1  ;;  %2925 = vmatpush2.bf16.msra.mxu0 %v5970_v5  ;;  %v6830_v11 = vpack.c.bf16 %v1847_v45, %v1843_v8  ;;  %v1710_v62 = vadd.f32 %v1709_v12, %v1597_v9  ;;  %v1788_v49 = vmax.f32 %v1708_v32, 0.0  ;;  %v5988_v9 = vld [vmem:[#allocation5 + $0x2c8] ss:$16 sps:$4 sm:$0xff]  }
 0x20c   :  { %v1600_v13 = vpop.f32.mrf.mxu0  ;;  %2926 = vmatprep.subr.bf16.mxu0 %v5978_v7 }
 0x20d   :  { %v1712_v63 = vadd.f32 %v1711_v10, %v1599_v37  ;;  %v1601_v28 = vadd.f32 %v1600_v13, %v6820_v59  ;;  %v1713_v30 = vpop.f32.mrf.mxu1  ;;  %2774 = vmatprep.mubr.bf16.mxu0 %v6830_v11  ;;  %v1789_v26 = vmax.f32 %v1710_v62, 0.0 }
 0x20e   :  { %v1604_v33 = vpop.f32.mrf.mxu0  ;;  %2775 = vmatmul.mubr.bf16.gmra.mxu0 %v6832_v23 }
 0x20f   :  { %v1714_v0 = vadd.f32 %v1713_v30, %v1601_v28  ;;  %v1717_v2 = vpop.f32.mrf.mxu1  ;;  %2927 = vmatpush2.bf16.msra.mxu0 %v5976_v22  ;;  %2930 = vmatprep.mubr.bf16.mxu0 %v6752_v39  ;;  %v1792_v51 = vmax.f32 %v1712_v63, 0.0  ;;  %v1605_v48 = vadd.f32 %v1604_v33, %v6824_v3  ;;  %v5985_v39 = vld [vmem:[#allocation5 + $0x2e8] ss:$16 sps:$4 sm:$0xff]   ;;  %v5996_v33 = vld [vmem:[#allocation5 + $0x28c] ss:$16 sps:$4 sm:$0xff]  }
 0x210   :  { %v1606_v35 = vpop.f32.mrf.mxu0  ;;  %2928 = vmatprep.subr.bf16.mxu0 %v5984_v14 }
 0x211   :  { %v1793_v53 = vmax.f32 %v1714_v0, 0.0  ;;  %v1607_v47 = vadd.f32 %v1606_v35, %v6820_v59  ;;  %v1719_v41 = vpop.f32.mrf.mxu1  ;;  %v6843_v61 = vpack.c.bf16 %v1792_v51, %v1788_v49  ;;  %v1718_v6 = vadd.f32 %v1717_v2, %v1605_v48 }
 0x212   :  { %v1608_v60 = vpop.f32.mrf.mxu0 }
 0x213   :  { %v1609_v29 = vadd.f32 %v1608_v60, %v6824_v3  ;;  %v1721_v24 = vpop.f32.mrf.mxu1  ;;  %2929 = vmatpush2.bf16.msra.mxu0 %v5982_v50  ;;  %v6841_v44 = vpack.c.bf16 %v1793_v53, %v1789_v26  ;;  %v1720_v43 = vadd.f32 %v1719_v41, %v1607_v47  ;;  %v1796_v13 = vmax.f32 %v1718_v6, 0.0  ;;  %v5994_v41 = vld [vmem:[#allocation5 + $0x288] ss:$16 sps:$4 sm:$0xff]   ;;  %v5999_v60 = vld [vmem:[#allocation5 + $0x26c] ss:$16 sps:$4 sm:$0xff]  }
 0x214   :  { %v1610_v1 = vpop.f32.mrf.mxu0 }
 0x215   :  { %v1722_v4 = vadd.f32 %v1721_v24, %v1609_v29  ;;  %v1611_v5 = vadd.f32 %v1610_v1, %v6820_v59  ;;  %v1723_v58 = vpop.f32.mrf.mxu1  ;;  %2817 = vmatprep.mubr.bf16.mxu1 %v6841_v44  ;;  %v1797_v36 = vmax.f32 %v1720_v43, 0.0 }
 0x216   :  { %v1614_v7 = vpop.f32.mrf.mxu0  ;;  %2818 = vmatmul.mubr.bf16.vlgmr.msra.gmra.mxu1 %v6843_v61  ;;  %2931 = vmatmul.mubr.bf16.vlgmr.msra.gmra.mxu0 %v6754_v42 }
 0x217   :  { %v1724_v8 = vadd.f32 %v1723_v58, %v1611_v5  ;;  %v1727_v45 = vpop.f32.mrf.mxu1  ;;  %3012 = vmatpush1.bf16.msra.mxu1 %v5985_v39  ;;  %2940 = vmatprep.mubr.bf16.mxu0 %v6762_v15  ;;  %v1800_v12 = vmax.f32 %v1722_v4, 0.0  ;;  %v1615_v14 = vadd.f32 %v1614_v7, %v6824_v3  ;;  %v5991_v15 = vld [vmem:[#allocation5 + $0x2a8] ss:$16 sps:$4 sm:$0xff]  }
 0x218   :  { %v1616_v40 = vpop.f32.mrf.mxu0  ;;  %3013 = vmatprep.subr.bf16.mxu1 %v5990_v25 }
 0x219   :  { %v1801_v37 = vmax.f32 %v1724_v8, 0.0  ;;  %v1617_v10 = vadd.f32 %v1616_v40, %v6820_v59  ;;  %v1729_v22 = vpop.f32.mrf.mxu1  ;;  %v6855_v30 = vpack.c.bf16 %v1800_v12, %v1796_v13  ;;  %v1728_v35 = vadd.f32 %v1727_v45, %v1615_v14  ;;  %v6002_v8 = vld [vmem:[#allocation5 + $0x24c] ss:$16 sps:$4 sm:$0xff]   ;;  %v6035_v45 = vld [vmem:[#allocation7 + $0xe4] ss:$16 sps:$4 sm:$0xff]  }
 0x21a   :  { %v1618_v62 = vpop.f32.mrf.mxu0  ;;  %v6000_v14 = vld [vmem:[#allocation5 + $0x248] ss:$16 sps:$4 sm:$0xff]   ;;  %4010 = vmatprep.subr.bf16.mxu0 %v6035_v45  ;;  %v6011_v45 = vld [vmem:[#allocation5 + $0x3ec] ss:$16 sps:$4 sm:$0xff]  }
 0x21b   :  { %v1619_v42 = vadd.f32 %v1618_v62, %v6824_v3  ;;  %v1731_v63 = vpop.f32.mrf.mxu1  ;;  %3014 = vmatpush1.bf16.msra.mxu1 %v5988_v9  ;;  %v6853_v28 = vpack.c.bf16 %v1801_v37, %v1797_v36  ;;  %v1730_v0 = vadd.f32 %v1729_v22, %v1617_v10  ;;  %v1804_v25 = vmax.f32 %v1728_v35, 0.0  ;;  %v6033_v36 = vld [vmem:[#allocation7 + $0xe0] ss:$16 sps:$4 sm:$0xff]  }
 0x21c   :  { %v1620_v32 = vpop.f32.mrf.mxu0  ;;  %3015 = vmatprep.subr.bf16.mxu1 %v5993_v16  ;;  %4011 = vmatpush1.bf16.msra.mxu0 %v6033_v36 }
 0x21d   :  { %v1732_v2 = vadd.f32 %v1731_v63, %v1619_v42  ;;  %v1621_v50 = vadd.f32 %v1620_v32, %v6820_v59  ;;  %v1733_v51 = vpop.f32.mrf.mxu1  ;;  %2827 = vmatprep.mubr.bf16.mxu1 %v6853_v28  ;;  %v1805_v29 = vmax.f32 %v1730_v0, 0.0  ;;  %v6005_v63 = vld [vmem:[#allocation5 + $0x22c] ss:$16 sps:$4 sm:$0xff]  }
 0x21e   :  { %v1624_v26 = vpop.f32.mrf.mxu0  ;;  %2828 = vmatmul.mubr.bf16.gmra.mxu1 %v6855_v30  ;;  %2941 = vmatmul.mubr.bf16.gmra.mxu0 %v6764_v34 }
 0x21f   :  { %v1734_v53 = vadd.f32 %v1733_v51, %v1621_v50  ;;  %v1737_v47 = vpop.f32.mrf.mxu1  ;;  %3016 = vmatpush1.bf16.msra.mxu1 %v5991_v15  ;;  %2950 = vmatprep.mubr.bf16.mxu0 %v6772_v38  ;;  %v1808_v49 = vmax.f32 %v1732_v2, 0.0  ;;  %v1625_v43 = vadd.f32 %v1624_v26, %v6824_v3  ;;  %v5997_v38 = vld [vmem:[#allocation5 + $0x268] ss:$16 sps:$4 sm:$0xff]   ;;  %v6038_v15 = vld [vmem:[#allocation7 + $0xc4] ss:$16 sps:$4 sm:$0xff]  }
 0x220   :  { %v1626_v48 = vpop.f32.mrf.mxu0  ;;  %3017 = vmatprep.subr.bf16.mxu1 %v5996_v33  ;;  %v6036_v50 = vld [vmem:[#allocation7 + $0xc0] ss:$16 sps:$4 sm:$0xff]   ;;  %4012 = vmatprep.subr.bf16.mxu0 %v6038_v15  ;;  %v6014_v15 = vld [vmem:[#allocation5 + $0x3cc] ss:$16 sps:$4 sm:$0xff]  }
 0x221   :  { %v1809_v24 = vmax.f32 %v1734_v53, 0.0  ;;  %v1627_v39 = vadd.f32 %v1626_v48, %v6820_v59  ;;  %v1739_v1 = vpop.f32.mrf.mxu1  ;;  %v6867_v6 = vpack.c.bf16 %v1808_v49, %v1804_v25  ;;  %v1738_v37 = vadd.f32 %v1737_v47, %v1625_v43  ;;  %v6003_v47 = vld [vmem:[#allocation5 + $0x228] ss:$16 sps:$4 sm:$0xff]   ;;  %v6008_v48 = vld [vmem:[#allocation5 + $0x20c] ss:$16 sps:$4 sm:$0xff]   ;;  %4013 = vmatpush1.bf16.msra.mxu0 %v6036_v50 }
 0x222   :  { %v1628_v4 = vpop.f32.mrf.mxu0  ;;  %v6039_v25 = vld [vmem:[#allocation7 + $0xa0] ss:$16 sps:$4 sm:$0xff]  }
 0x223   :  { %v1629_v34 = vadd.f32 %v1628_v4, %v6824_v3  ;;  %v1741_v5 = vpop.f32.mrf.mxu1  ;;  %3018 = vmatpush1.bf16.msra.mxu1 %v5994_v41  ;;  %v6865_v58 = vpack.c.bf16 %v1809_v24, %v1805_v29  ;;  %v1740_v9 = vadd.f32 %v1739_v1, %v1627_v39 }
 0x224   :  { %v1630_v7 = vpop.f32.mrf.mxu0  ;;  %3019 = vmatprep.subr.bf16.mxu1 %v5999_v60  ;;  %v6041_v60 = vld [vmem:[#allocation7 + $0xa4] ss:$16 sps:$4 sm:$0xff]  }
 0x225   :  { %v1742_v12 = vadd.f32 %v1741_v5, %v1629_v34  ;;  %v1631_v40 = vadd.f32 %v1630_v7, %v6820_v59  ;;  %v1743_v16 = vpop.f32.mrf.mxu1  ;;  %2837 = vmatprep.mubr.bf16.mxu1 %v6865_v58  ;;  %v1813_v32 = vmax.f32 %v1740_v9, 0.0  ;;  %4014 = vmatprep.subr.bf16.mxu0 %v6041_v60  ;;  %v6044_v9 = vld [vmem:[#allocation7 + $0x84] ss:$16 sps:$4 sm:$0xff]   ;;  %v6017_v60 = vld [vmem:[#allocation5 + $0x3ac] ss:$16 sps:$4 sm:$0xff]  }
 0x226   :  { %v1634_v10 = vpop.f32.mrf.mxu0  ;;  %2838 = vmatmul.mubr.bf16.gmra.mxu1 %v6867_v6  ;;  %2951 = vmatmul.mubr.bf16.gmra.mxu0 %v6774_v56  ;;  %v1812_v56 = vmax.f32 %v1738_v37, 0.0  ;;  %v6042_v37 = vld [vmem:[#allocation7 + $0x80] ss:$16 sps:$4 sm:$0xff]  }
 0x227   :  { %v1744_v22 = vadd.f32 %v1743_v16, %v1631_v40  ;;  %v1747_v13 = vpop.f32.mrf.mxu1  ;;  %3020 = vmatpush1.bf16.msra.mxu1 %v5997_v38  ;;  %2960 = vmatprep.mubr.bf16.mxu0 %v6782_v57  ;;  %v1816_v62 = vmax.f32 %v1742_v12, 0.0  ;;  %v1635_v51 = vadd.f32 %v1634_v10, %v6824_v3  ;;  %v6006_v38 = vld [vmem:[#allocation5 + $0x208] ss:$16 sps:$4 sm:$0xff]  }
 0x228   :  { %v1636_v42 = vpop.f32.mrf.mxu0  ;;  %3021 = vmatprep.subr.bf16.mxu1 %v6002_v8  ;;  %4015 = vmatpush1.bf16.msra.mxu0 %v6039_v25 }
 0x229   :  { %v1817_v33 = vmax.f32 %v1744_v22, 0.0  ;;  %v1637_v0 = vadd.f32 %v1636_v42, %v6820_v59  ;;  %v1749_v2 = vpop.f32.mrf.mxu1  ;;  %v6879_v41 = vpack.c.bf16 %v1816_v62, %v1812_v56  ;;  %v1748_v43 = vadd.f32 %v1747_v13, %v1635_v51  ;;  %4016 = vmatprep.subr.bf16.mxu0 %v6044_v9  ;;  %v6009_v62 = vld [vmem:[#allocation5 + $0x3e8] ss:$16 sps:$4 sm:$0xff]   ;;  %v6045_v56 = vld [vmem:[#allocation7 + $0x60] ss:$16 sps:$4 sm:$0xff]  }
 0x22a   :  { %v1638_v35 = vpop.f32.mrf.mxu0  ;;  %v6020_v9 = vld [vmem:[#allocation5 + $0x38c] ss:$16 sps:$4 sm:$0xff]  }
 0x22b   :  { %v1639_v57 = vadd.f32 %v1638_v35, %v6824_v3  ;;  %v1751_v26 = vpop.f32.mrf.mxu1  ;;  %3022 = vmatpush1.bf16.msra.mxu1 %v6000_v14  ;;  %v6877_v53 = vpack.c.bf16 %v1817_v33, %v1813_v32  ;;  %v1750_v29 = vadd.f32 %v1749_v2, %v1637_v0  ;;  %v6047_v32 = vld [vmem:[#allocation7 + $0x64] ss:$16 sps:$4 sm:$0xff]  }
 0x22c   :  { %v1640_v49 = vpop.f32.mrf.mxu0  ;;  %3023 = vmatprep.subr.bf16.mxu1 %v6005_v63  ;;  %4017 = vmatpush1.bf16.msra.mxu0 %v6042_v37 }
 0x22d   :  { %v1752_v24 = vadd.f32 %v1751_v26, %v1639_v57  ;;  %v1641_v39 = vadd.f32 %v1640_v49, %v6820_v59  ;;  %v1753_v1 = vpop.f32.mrf.mxu1  ;;  %2847 = vmatprep.mubr.bf16.mxu1 %v6877_v53  ;;  %v1821_v12 = vmax.f32 %v1750_v29, 0.0  ;;  %4018 = vmatprep.subr.bf16.mxu0 %v6047_v32  ;;  %v6050_v29 = vld [vmem:[#allocation7 + $0x44] ss:$16 sps:$4 sm:$0xff]   ;;  %v6023_v32 = vld [vmem:[#allocation5 + $0x36c] ss:$16 sps:$4 sm:$0xff]  }
 0x22e   :  { %v1644_v4 = vpop.f32.mrf.mxu0  ;;  %2848 = vmatmul.mubr.bf16.gmra.mxu1 %v6879_v41  ;;  %2961 = vmatmul.mubr.bf16.gmra.mxu0 %v6784_v54  ;;  %v1820_v54 = vmax.f32 %v1748_v43, 0.0  ;;  %v6048_v43 = vld [vmem:[#allocation7 + $0x40] ss:$16 sps:$4 sm:$0xff]  }
 0x22f   :  { %v1754_v34 = vadd.f32 %v1753_v1, %v1641_v39  ;;  %v1757_v5 = vpop.f32.mrf.mxu1  ;;  %3024 = vmatpush1.bf16.msra.mxu1 %v6003_v47  ;;  %2970 = vmatprep.mubr.bf16.mxu0 %v6792_v31  ;;  %v1824_v7 = vmax.f32 %v1752_v24, 0.0  ;;  %v1645_v10 = vadd.f32 %v1644_v4, %v6824_v3  ;;  %v6012_v47 = vld [vmem:[#allocation5 + $0x3c8] ss:$16 sps:$4 sm:$0xff]  }
 0x230   :  { %v1646_v8 = vpop.f32.mrf.mxu0  ;;  %3025 = vmatprep.subr.bf16.mxu1 %v6008_v48  ;;  %4019 = vmatpush1.bf16.msra.mxu0 %v6045_v56 }
 0x231   :  { %v1825_v40 = vmax.f32 %v1754_v34, 0.0  ;;  %v1647_v16 = vadd.f32 %v1646_v8, %v6820_v59  ;;  %v1759_v36 = vpop.f32.mrf.mxu1  ;;  %v6891_v42 = vpack.c.bf16 %v1824_v7, %v1820_v54  ;;  %v1758_v51 = vadd.f32 %v1757_v5, %v1645_v10  ;;  %4020 = vmatprep.subr.bf16.mxu0 %v6050_v29  ;;  %v6015_v7 = vld [vmem:[#allocation5 + $0x3a8] ss:$16 sps:$4 sm:$0xff]   ;;  %v6051_v54 = vld [vmem:[#allocation7 + $0x20] ss:$16 sps:$4 sm:$0xff]  }
 0x232   :  { %v1648_v22 = vpop.f32.mrf.mxu0  ;;  %v6026_v29 = vld [vmem:[#allocation5 + $0x34c] ss:$16 sps:$4 sm:$0xff]  }
 0x233   :  { %v1649_v31 = vadd.f32 %v1648_v22, %v6824_v3  ;;  %v1761_v13 = vpop.f32.mrf.mxu1  ;;  %3026 = vmatpush1.bf16.msra.mxu1 %v6006_v38  ;;  %v6889_v14 = vpack.c.bf16 %v1825_v40, %v1821_v12  ;;  %v1760_v33 = vadd.f32 %v1759_v36, %v1647_v16  ;;  %v6053_v12 = vld [vmem:[#allocation7 + $0x24] ss:$16 sps:$4 sm:$0xff]  }
 0x234   :  { %v1650_v63 = vpop.f32.mrf.mxu0  ;;  %3027 = vmatprep.subr.bf16.mxu1 %v6011_v45  ;;  %4021 = vmatpush1.bf16.msra.mxu0 %v6048_v43  ;;  %v6057_v43 = vld [vmem:[#allocation7 + $0x1e0] ss:$16 sps:$4 sm:$0xff]  }
 0x235   :  { %v1762_v0 = vadd.f32 %v1761_v13, %v1649_v31  ;;  %v1651_v2 = vadd.f32 %v1650_v63, %v6820_v59  ;;  %v1763_v50 = vpop.f32.mrf.mxu1  ;;  %2857 = vmatprep.mubr.bf16.mxu1 %v6889_v14  ;;  %v1829_v24 = vmax.f32 %v1760_v33, 0.0  ;;  %4022 = vmatprep.subr.bf16.mxu0 %v6053_v12  ;;  %v6056_v33 = vld [vmem:[#allocation7 + $0x4] ss:$16 sps:$4 sm:$0xff]  }
 0x236   :  { %v1654_v35 = vpop.f32.mrf.mxu0  ;;  %2858 = vmatmul.mubr.bf16.gmra.mxu1 %v6891_v42  ;;  %2971 = vmatmul.mubr.bf16.gmra.mxu0 %v6794_v46  ;;  %v1828_v46 = vmax.f32 %v1758_v51, 0.0  ;;  %v6054_v51 = vld [vmem:[#allocation7] ss:$16 sps:$4 sm:$0xff]  }
 0x237   :  { %v1764_v57 = vadd.f32 %v1763_v50, %v1651_v2  ;;  %v1767_v26 = vpop.f32.mrf.mxu1  ;;  %3028 = vmatpush2.bf16.msra.mxu1 %v6009_v62  ;;  %2980 = vmatprep.mubr.bf16.mxu0 %v6802_v55  ;;  %v1832_v49 = vmax.f32 %v1762_v0, 0.0  ;;  %v1655_v4 = vadd.f32 %v1654_v35, %v6824_v3  ;;  %v6018_v62 = vld [vmem:[#allocation5 + $0x388] ss:$16 sps:$4 sm:$0xff]  }
 0x238   :  { %v1656_v48 = vpop.f32.mrf.mxu0  ;;  %3029 = vmatprep.subr.bf16.mxu1 %v6014_v15  ;;  %4023 = vmatpush1.bf16.msra.mxu0 %v6051_v54  ;;  %v6030_v54 = vld [vmem:[#allocation5 + $0x308] ss:$16 sps:$4 sm:$0xff]  }
 0x239   :  { %v1833_v39 = vmax.f32 %v1764_v57, 0.0  ;;  %v1657_v1 = vadd.f32 %v1656_v48, %v6820_v59  ;;  %v1769_v25 = vpop.f32.mrf.mxu1  ;;  %v6903_v8 = vpack.c.bf16 %v1832_v49, %v1828_v46  ;;  %v1768_v10 = vadd.f32 %v1767_v26, %v1655_v4  ;;  %4024 = vmatprep.subr.bf16.mxu0 %v6056_v33  ;;  %v6021_v49 = vld [vmem:[#allocation5 + $0x368] ss:$16 sps:$4 sm:$0xff]   ;;  %v6086_v33 = vld [vmem:[#allocation7 + $0xec] ss:$16 sps:$4 sm:$0xff]  }
 0x23a   :  { %v1658_v34 = vpop.f32.mrf.mxu0 }
 0x23b   :  { %v1659_v55 = vadd.f32 %v1658_v34, %v6824_v3  ;;  %v1771_v5 = vpop.f32.mrf.mxu1  ;;  %3030 = vmatpush2.bf16.msra.mxu1 %v6012_v47  ;;  %v6901_v38 = vpack.c.bf16 %v1833_v39, %v1829_v24  ;;  %v1770_v40 = vadd.f32 %v1769_v25, %v1657_v1  ;;  %v6059_v24 = vld [vmem:[#allocation7 + $0x1e4] ss:$16 sps:$4 sm:$0xff]   ;;  %v6024_v34 = vld [vmem:[#allocation5 + $0x348] ss:$16 sps:$4 sm:$0xff]  }
 0x23c   :  { %v1660_v45 = vpop.f32.mrf.mxu0  ;;  %3031 = vmatprep.subr.bf16.mxu1 %v6017_v60  ;;  %4025 = vmatpush1.bf16.msra.mxu0 %v6054_v51  ;;  %v6113_v51 = vld [vmem:[#allocation7 + $0x244] ss:$16 sps:$4 sm:$0xff]  }
 0x23d   :  { %v1772_v16 = vadd.f32 %v1771_v5, %v1659_v55  ;;  %v1661_v36 = vadd.f32 %v1660_v45, %v6820_v59  ;;  %v1773_v37 = vpop.f32.mrf.mxu1  ;;  %2867 = vmatprep.mubr.bf16.mxu1 %v6901_v38  ;;  %v1837_v0 = vmax.f32 %v1770_v40, 0.0  ;;  %v6029_v5 = vld [vmem:[#allocation5 + $0x32c] ss:$16 sps:$4 sm:$0xff]   ;;  %4026 = vmatprep.subr.bf16.mxu0 %v6059_v24 }
 0x23e   :  { %v1664_v22 = vpop.f32.mrf.mxu0  ;;  %2868 = vmatmul.mubr.bf16.gmra.mxu1 %v6903_v8  ;;  %2981 = vmatmul.mubr.bf16.gmra.mxu0 %v6804_v21  ;;  %v1836_v21 = vmax.f32 %v1768_v10, 0.0  ;;  %v6068_v10 = vld [vmem:[#allocation7 + $0x184] ss:$16 sps:$4 sm:$0xff]  }
 0x23f   :  { %v1774_v31 = vadd.f32 %v1773_v37, %v1661_v36  ;;  %v1777_v13 = vpop.f32.mrf.mxu1  ;;  %3032 = vmatpush2.bf16.msra.mxu1 %v6015_v7  ;;  %2990 = vmatprep.mubr.bf16.mxu0 %v6812_v27  ;;  %v1840_v63 = vmax.f32 %v1772_v16, 0.0  ;;  %v1665_v35 = vadd.f32 %v1664_v22, %v6824_v3  ;;  %v6065_v36 = vld [vmem:[#allocation7 + $0x1a4] ss:$16 sps:$4 sm:$0xff]   ;;  %v6063_v37 = vld [vmem:[#allocation7 + $0x1a0] ss:$16 sps:$4 sm:$0xff]  }
 0x240   :  { %v1666_v15 = vpop.f32.mrf.mxu0  ;;  %3033 = vmatprep.subr.bf16.mxu1 %v6020_v9  ;;  %4027 = vmatpush2.bf16.msra.mxu0 %v6057_v43  ;;  %v6060_v9 = vld [vmem:[#allocation7 + $0x1c0] ss:$16 sps:$4 sm:$0xff]  }
 0x241   :  { %v1841_v2 = vmax.f32 %v1774_v31, 0.0  ;;  %v1667_v50 = vadd.f32 %v1666_v15, %v6820_v59  ;;  %v1779_v56 = vpop.f32.mrf.mxu1  ;;  %v6915_v48 = vpack.c.bf16 %v1840_v63, %v1836_v21  ;;  %v6066_v22 = vld [vmem:[#allocation7 + $0x180] ss:$16 sps:$4 sm:$0xff]   ;;  %v6071_v31 = vld [vmem:[#allocation7 + $0x164] ss:$16 sps:$4 sm:$0xff]  }
 0x242   :  { %v1668_v57 = vpop.f32.mrf.mxu0  ;;  %v6075_v63 = vld [vmem:[#allocation7 + $0x120] ss:$16 sps:$4 sm:$0xff]   ;;  %v6080_v15 = vld [vmem:[#allocation7 + $0x104] ss:$16 sps:$4 sm:$0xff]  }
 0x243   :  { %v1669_v27 = vadd.f32 %v1668_v57, %v6824_v3  ;;  %v1781_v26 = vpop.f32.mrf.mxu1  ;;  %3034 = vmatpush2.bf16.msra.mxu1 %v6018_v62  ;;  %v6913_v47 = vpack.c.bf16 %v1841_v2, %v1837_v0  ;;  %v1780_v39 = vadd.f32 %v1779_v56, %v1667_v50  ;;  %v1778_v3 = vadd.f32 %v1777_v13, %v1665_v35  ;;  %v6069_v13 = vld [vmem:[#allocation7 + $0x160] ss:$16 sps:$4 sm:$0xff]   ;;  %v6089_v0 = vld [vmem:[#allocation7 + $0x2c4] ss:$16 sps:$4 sm:$0xff]  }
 0x244   :  { %v1670_v60 = vpop.f32.mrf.mxu0  ;;  %3035 = vmatprep.subr.bf16.mxu1 %v6023_v32  ;;  %v6072_v62 = vld [vmem:[#allocation7 + $0x140] ss:$16 sps:$4 sm:$0xff]   ;;  %v6101_v50 = vld [vmem:[#allocation7 + $0x284] ss:$16 sps:$4 sm:$0xff]  }
 0x245   :  { %v1782_v1 = vadd.f32 %v1781_v26, %v1669_v27  ;;  %v1671_v25 = vadd.f32 %v1670_v60, %v6820_v59  ;;  %2877 = vmatprep.mubr.bf16.mxu1 %v6913_v47  ;;  %v1783_v46 = vpop.f32.mrf.mxu1  ;;  %v6062_v59 = vld [vmem:[#allocation7 + $0x1c4] ss:$16 sps:$4 sm:$0xff]   ;;  %v1845_v7 = vmax.f32 %v1780_v39, 0.0  ;;  %v1844_v12 = vmax.f32 %v1778_v3, 0.0  ;;  %v6078_v32 = vld [vmem:[#allocation7 + $0x100] ss:$16 sps:$4 sm:$0xff]  }
 0x246   :  { %2878 = vmatmul.mubr.bf16.gmra.mxu1 %v6915_v48  ;;  %2991 = vmatmul.mubr.bf16.gmra.mxu0 %v6814_v52  ;;  %v6027_v52 = vld [vmem:[#allocation5 + $0x328] ss:$16 sps:$4 sm:$0xff]   ;;  %v6093_v2 = vld [vmem:[#allocation7 + $0x2a0] ss:$16 sps:$4 sm:$0xff]  }
 0x247   :  { %v1784_v4 = vadd.f32 %v1783_v46, %v1671_v25  ;;  %3036 = vmatpush2.bf16.msra.mxu1 %v6021_v49  ;;  %3000 = vmatprep.mubr.bf16.mxu0 %v6830_v11  ;;  %v1848_v55 = vmax.f32 %v1782_v1, 0.0  ;;  %v6032_v11 = vld [vmem:[#allocation5 + $0x30c] ss:$16 sps:$4 sm:$0xff]   ;;  %v6099_v56 = vld [vmem:[#allocation7 + $0x280] ss:$16 sps:$4 sm:$0xff]  }
 0x248   :  { %3037 = vmatprep.subr.bf16.mxu1 %v6026_v29  ;;  %4028 = vmatprep.subr.bf16.mxu0 %v6062_v59  ;;  %v6111_v21 = vld [vmem:[#allocation7 + $0x240] ss:$16 sps:$4 sm:$0xff]   ;;  %v6155_v29 = vld [vmem:[#allocation7 + $0x364] ss:$16 sps:$4 sm:$0xff]  }
 0x249   :  { %v1849_v45 = vmax.f32 %v1784_v4, 0.0  ;;  %v6924_v16 = vpack.c.bf16 %v1848_v55, %v1844_v12  ;;  %4029 = vmatpush2.bf16.msra.mxu0 %v6060_v9  ;;  %v6117_v35 = vld [vmem:[#allocation7 + $0x220] ss:$16 sps:$4 sm:$0xff]   ;;  %v6161_v1 = vld [vmem:[#allocation7 + $0x344] ss:$16 sps:$4 sm:$0xff]  }
 0x24a   :  { %4030 = vmatprep.subr.bf16.mxu0 %v6065_v36  ;;  %v6123_v57 = vld [vmem:[#allocation7 + $0x200] ss:$16 sps:$4 sm:$0xff]   ;;  %v6167_v46 = vld [vmem:[#allocation7 + $0x324] ss:$16 sps:$4 sm:$0xff]   ;;  %v6179_v9 = vld [vmem:[#allocation7 + $0x2ec] ss:$16 sps:$4 sm:$0xff]  }
 0x24b   :  { %3038 = vmatpush2.bf16.msra.mxu1 %v6024_v34  ;;  %v6922_v40 = vpack.c.bf16 %v1849_v45, %v1845_v7  ;;  %v6129_v27 = vld [vmem:[#allocation7 + $0x3e0] ss:$16 sps:$4 sm:$0xff]  }
 0x24c   :  { %3039 = vmatprep.subr.bf16.mxu1 %v6029_v5  ;;  %v6135_v26 = vld [vmem:[#allocation7 + $0x3c0] ss:$16 sps:$4 sm:$0xff]   ;;  %v6173_v5 = vld [vmem:[#allocation7 + $0x304] ss:$16 sps:$4 sm:$0xff]  }
 0x24d   :  { %2887 = vmatprep.mubr.bf16.mxu1 %v6922_v40  ;;  %4031 = vmatpush2.bf16.msra.mxu0 %v6063_v37  ;;  %v6141_v49 = vld [vmem:[#allocation7 + $0x3a0] ss:$16 sps:$4 sm:$0xff]  }
 0x24e   :  { %2888 = vmatmul.mubr.bf16.gmra.mxu1 %v6924_v16  ;;  %3001 = vmatmul.mubr.bf16.gmra.mxu0 %v6832_v23  ;;  %v6074_v23 = vld [vmem:[#allocation7 + $0x144] ss:$16 sps:$4 sm:$0xff]   ;;  %v6147_v60 = vld [vmem:[#allocation7 + $0x380] ss:$16 sps:$4 sm:$0xff]  }
 0x24f   :  { %3040 = vmatpush2.bf16.msra.mxu1 %v6027_v52  ;;  %3043 = vmatprep.mubr.bf16.mxu1 %v6841_v44  ;;  %v6077_v44 = vld [vmem:[#allocation7 + $0x124] ss:$16 sps:$4 sm:$0xff]   ;;  %v6159_v25 = vld [vmem:[#allocation7 + $0x340] ss:$16 sps:$4 sm:$0xff]  }
 0x250   :  { %3041 = vmatprep.subr.bf16.mxu1 %v6032_v11  ;;  %4032 = vmatprep.subr.bf16.mxu0 %v6068_v10  ;;  %v6165_v4 = vld [vmem:[#allocation7 + $0x320] ss:$16 sps:$4 sm:$0xff]  }
 0x251   :  { %4033 = vmatpush2.bf16.msra.mxu0 %v6066_v22  ;;  %v6171_v59 = vld [vmem:[#allocation7 + $0x300] ss:$16 sps:$4 sm:$0xff]  }
 0x252   :  { %4034 = vmatprep.subr.bf16.mxu0 %v6071_v31 }
 0x253   :  { %3042 = vmatpush2.bf16.msra.mxu1 %v6030_v54 }
 0x255   :  { %4035 = vmatpush2.bf16.msra.mxu0 %v6069_v13 }
 0x256   :  { %3044 = vmatmul.mubr.bf16.vlgmr.msra.gmra.mxu1 %v6843_v61  ;;  %4036 = vmatprep.subr.bf16.mxu0 %v6074_v23  ;;  %v6083_v61 = vld [vmem:[#allocation7 + $0x2e4] ss:$16 sps:$4 sm:$0xff]  }
 0x257   :  { %3053 = vmatprep.mubr.bf16.mxu1 %v6853_v28  ;;  %v6081_v28 = vld [vmem:[#allocation7 + $0x2e0] ss:$16 sps:$4 sm:$0xff]   ;;  %4123 = vmatprep.subr.bf16.mxu1 %v6083_v61 }
 0x258   :  { %4124 = vmatpush1.bf16.msra.mxu1 %v6081_v28 }
 0x259   :  { %4037 = vmatpush2.bf16.msra.mxu0 %v6072_v62  ;;  %4125 = vmatprep.subr.bf16.mxu1 %v6089_v0 }
 0x25a   :  { %4038 = vmatprep.subr.bf16.mxu0 %v6077_v44 }
 0x25d   :  { %4039 = vmatpush2.bf16.msra.mxu0 %v6075_v63 }
 0x25e   :  { %3054 = vmatmul.mubr.bf16.gmra.mxu1 %v6855_v30  ;;  %4040 = vmatprep.subr.bf16.mxu0 %v6080_v15  ;;  %v6087_v30 = vld [vmem:[#allocation7 + $0x2c0] ss:$16 sps:$4 sm:$0xff]  }
 0x25f   :  { %3063 = vmatprep.mubr.bf16.mxu1 %v6865_v58  ;;  %4126 = vmatpush1.bf16.msra.mxu1 %v6087_v30  ;;  %v6095_v58 = vld [vmem:[#allocation7 + $0x2a4] ss:$16 sps:$4 sm:$0xff]  }
 0x260   :  { %4127 = vmatprep.subr.bf16.mxu1 %v6095_v58  ;;  %v6996_v58 = vld [vmem:[%s7564_s6] sm:$0xf] }
 0x261   :  { %4041 = vmatpush2.bf16.msra.mxu0 %v6078_v32 }
 0x262   :  { %4236 = vmatprep.subr.bf16.mxu0 %v6086_v33 }
 0x263   :  { %4128 = vmatpush1.bf16.msra.mxu1 %v6093_v2 }
 0x264   :  { %4129 = vmatprep.subr.bf16.mxu1 %v6101_v50  ;;  %v7002_v50 = vrot.slane %v6996_v58, %v6521_v19 }
 0x266   :  { %3064 = vmatmul.mubr.bf16.gmra.mxu1 %v6867_v6  ;;  %v6107_v6 = vld [vmem:[#allocation7 + $0x264] ss:$16 sps:$4 sm:$0xff]  }
 0x267   :  { %3073 = vmatprep.mubr.bf16.mxu1 %v6877_v53  ;;  %4130 = vmatpush1.bf16.msra.mxu1 %v6099_v56  ;;  %v6105_v53 = vld [vmem:[#allocation7 + $0x260] ss:$16 sps:$4 sm:$0xff]   ;;  %v7006_v56 = vrot.slane %v6996_v58, %v6517_v17 }
 0x268   :  { %4131 = vmatprep.subr.bf16.mxu1 %v6107_v6 }
 0x26b   :  { %4132 = vmatpush1.bf16.msra.mxu1 %v6105_v53 }
 0x26c   :  { %4133 = vmatprep.subr.bf16.mxu1 %v6113_v51 }
 0x26e   :  { %3074 = vmatmul.mubr.bf16.gmra.mxu1 %v6879_v41  ;;  %v6119_v41 = vld [vmem:[#allocation7 + $0x224] ss:$16 sps:$4 sm:$0xff]  }
 0x26f   :  { %3083 = vmatprep.mubr.bf16.mxu1 %v6889_v14  ;;  %4134 = vmatpush1.bf16.msra.mxu1 %v6111_v21  ;;  %v6125_v14 = vld [vmem:[#allocation7 + $0x204] ss:$16 sps:$4 sm:$0xff]  }
 0x270   :  { %4135 = vmatprep.subr.bf16.mxu1 %v6119_v41 }
 0x273   :  { %4136 = vmatpush1.bf16.msra.mxu1 %v6117_v35 }
 0x274   :  { %4137 = vmatprep.subr.bf16.mxu1 %v6125_v14 }
 0x276   :  { %3084 = vmatmul.mubr.bf16.gmra.mxu1 %v6891_v42  ;;  %v6131_v42 = vld [vmem:[#allocation7 + $0x3e4] ss:$16 sps:$4 sm:$0xff]  }
 0x277   :  { %3093 = vmatprep.mubr.bf16.mxu1 %v6901_v38  ;;  %4138 = vmatpush1.bf16.msra.mxu1 %v6123_v57  ;;  %v6137_v38 = vld [vmem:[#allocation7 + $0x3c4] ss:$16 sps:$4 sm:$0xff]  }
 0x278   :  { %4139 = vmatprep.subr.bf16.mxu1 %v6131_v42 }
 0x27b   :  { %4140 = vmatpush2.bf16.msra.mxu1 %v6129_v27 }
 0x27c   :  { %4141 = vmatprep.subr.bf16.mxu1 %v6137_v38 }
 0x27e   :  { %3094 = vmatmul.mubr.bf16.gmra.mxu1 %v6903_v8  ;;  %v6143_v8 = vld [vmem:[#allocation7 + $0x3a4] ss:$16 sps:$4 sm:$0xff]  }
 0x27f   :  { %3103 = vmatprep.mubr.bf16.mxu1 %v6913_v47  ;;  %4142 = vmatpush2.bf16.msra.mxu1 %v6135_v26  ;;  %v6149_v47 = vld [vmem:[#allocation7 + $0x384] ss:$16 sps:$4 sm:$0xff]  }
 0x280   :  { %4143 = vmatprep.subr.bf16.mxu1 %v6143_v8 }
 0x283   :  { %4144 = vmatpush2.bf16.msra.mxu1 %v6141_v49 }
 0x284   :  { %4145 = vmatprep.subr.bf16.mxu1 %v6149_v47 }
 0x286   :  { %3104 = vmatmul.mubr.bf16.gmra.mxu1 %v6915_v48  ;;  %v6153_v48 = vld [vmem:[#allocation7 + $0x360] ss:$16 sps:$4 sm:$0xff]  }
 0x287   :  { %3113 = vmatprep.mubr.bf16.mxu1 %v6922_v40  ;;  %4146 = vmatpush2.bf16.msra.mxu1 %v6147_v60 }
 0x288   :  { %4147 = vmatprep.subr.bf16.mxu1 %v6155_v29 }
 0x28b   :  { %4148 = vmatpush2.bf16.msra.mxu1 %v6153_v48 }
 0x28c   :  { %4149 = vmatprep.subr.bf16.mxu1 %v6161_v1 }
 0x28e   :  { %3114 = vmatmul.mubr.bf16.gmra.mxu1 %v6924_v16 }
 0x28f   :  { %4150 = vmatpush2.bf16.msra.mxu1 %v6159_v25 }
 0x290   :  { %4151 = vmatprep.subr.bf16.mxu1 %v6167_v46 }
 0x293   :  { %4152 = vmatpush2.bf16.msra.mxu1 %v6165_v4  ;;  %v6084_v4 = vld [vmem:[#allocation7 + $0xe8] ss:$16 sps:$4 sm:$0xff]  }
 0x294   :  { %4153 = vmatprep.subr.bf16.mxu1 %v6173_v5 }
 0x296   :  { %v2706_v24 = vpop.f32.mrf.mxu0 }
 0x297   :  { %4154 = vmatpush2.bf16.msra.mxu1 %v6171_v59  ;;  %v2707_v14 = vadd.f32 %v2706_v24, %v7006_v56 }
 0x298   :  { %v2708_v39 = vpop.f32.mrf.mxu0  ;;  %4349 = vmatprep.subr.bf16.mxu1 %v6179_v9 }
 0x299   :  { %v2709_v41 = vadd.f32 %v2708_v39, %v7002_v50 }
 0x29a   :  { %v2710_v43 = vpop.f32.mrf.mxu0 }
 0x29b   :  { %v2711_v35 = vadd.f32 %v2710_v43, %v7006_v56 }
 0x29c   :  { %v2712_v3 = vpop.f32.mrf.mxu0 }
 0x29d   :  { %v2713_v42 = vadd.f32 %v2712_v3, %v7002_v50 }
 0x29e   :  { %v6945_v34 = vpop.f32.mrf.mxu0 }
 0x29f   :  { %v2717_v5 = vadd.f32 %v6945_v34, %v7006_v56 }
 0x2a0   :  { %v2718_v55 = vpop.f32.mrf.mxu0 }
 0x2a1   :  { %v2719_v24 = vadd.f32 %v2718_v55, %v7002_v50 }
 0x2a2   :  { %v2720_v7 = vpop.f32.mrf.mxu0 }
 0x2a3   :  { %v2721_v46 = vadd.f32 %v2720_v7, %v7006_v56 }
 0x2a4   :  { %v2722_v45 = vpop.f32.mrf.mxu0 }
 0x2a6   :  { %v6947_v12 = vpop.f32.mrf.mxu0 }
 0x2a8   :  { %v6949_v40 = vpop.f32.mrf.mxu0 }
 0x2aa   :  { %v6951_v52 = vpop.f32.mrf.mxu0 }
 0x2ac   :  { %v6953_v16 = vpop.f32.mrf.mxu0 }
 0x2ae   :  { %v6955_v11 = vpop.f32.mrf.mxu0 }
 0x2b0   :  { %v6957_v36 = vpop.f32.mrf.mxu0 }
 0x2b2   :  { %v6959_v37 = vpop.f32.mrf.mxu0 }
 0x2b4   :  { %v6961_v54 = vpop.f32.mrf.mxu0 }
 0x2b6   :  { %v6963_v10 = vpop.f32.mrf.mxu0 }
 0x2b8   :  { %v6965_v22 = vpop.f32.mrf.mxu0 }
 0x2ba   :  { %v6967_v31 = vpop.f32.mrf.mxu0 }
 0x2bc   :  { %v6969_v13 = vpop.f32.mrf.mxu0 }
 0x2be   :  { %v6971_v23 = vpop.f32.mrf.mxu0 }
 0x2c0   :  { %v6973_v62 = vpop.f32.mrf.mxu0 }
 0x2c2   :  { %v6975_v44 = vpop.f32.mrf.mxu0 }
 0x2c4   :  { %v6977_v63 = vpop.f32.mrf.mxu0 }
 0x2c6   :  { %v6979_v15 = vpop.f32.mrf.mxu0 }
 0x2c8   :  { %v6981_v32 = vpop.f32.mrf.mxu0 }
 0x2ca   :  { %v6983_v61 = vpop.f32.mrf.mxu0 }
 0x2cc   :  { %v6985_v33 = vpop.f32.mrf.mxu0 }
 0x2ce   :  { %v6987_v28 = vpop.f32.mrf.mxu0 }
 0x2d0   :  { %v6989_v0 = vpop.f32.mrf.mxu0 }
 0x2d2   :  { %v6991_v30 = vpop.f32.mrf.mxu0 }
 0x2d4   :  { %v6998_v2 = vpop.f32.mrf.mxu0 }
 0x2d6   :  { %v2819_v6 = vpop.f32.mrf.mxu1  ;;  %v7008_v53 = vpop.f32.mrf.mxu0 }
 0x2d7   :  { %v2820_v26 = vadd.f32 %v2819_v6, %v2707_v14  ;;  %v6092_v6 = vld [vmem:[#allocation7 + $0xcc] ss:$16 sps:$4 sm:$0xff]  }
 0x2d8   :  { %v2821_v51 = vpop.f32.mrf.mxu1  ;;  %v7010_v21 = vpop.f32.mrf.mxu0 }
 0x2d9   :  { %v2822_v27 = vadd.f32 %v2821_v51, %v2709_v41  ;;  %v3124_v25 = vmax.f32 %v2820_v26, 0.0  ;;  %v2723_v51 = vadd.f32 %v2722_v45, %v7002_v50 }
 0x2da   :  { %v2823_v57 = vpop.f32.mrf.mxu1  ;;  %v7016_v8 = vpop.f32.mrf.mxu0 }
 0x2db   :  { %v2824_v38 = vadd.f32 %v2823_v57, %v2711_v35  ;;  %v3125_v48 = vmax.f32 %v2822_v27, 0.0 }
 0x2dc   :  { %v2825_v49 = vpop.f32.mrf.mxu1  ;;  %v7018_v39 = vpop.f32.mrf.mxu0 }
 0x2dd   :  { %v2826_v47 = vadd.f32 %v2825_v49, %v2713_v42  ;;  %v3128_v60 = vmax.f32 %v2824_v38, 0.0  ;;  %v6090_v42 = vld [vmem:[#allocation7 + $0xc8] ss:$16 sps:$4 sm:$0xff]   ;;  %v6098_v38 = vld [vmem:[#allocation7 + $0xac] ss:$16 sps:$4 sm:$0xff]  }
 0x2de   :  { %v2829_v29 = vpop.f32.mrf.mxu1  ;;  %v7030_v55 = vpop.f32.mrf.mxu0 }
 0x2df   :  { %v3129_v1 = vmax.f32 %v2826_v47, 0.0  ;;  %v7026_v59 = vpack.c.bf16 %v3128_v60, %v3124_v25  ;;  %v2830_v14 = vadd.f32 %v2829_v29, %v2717_v5  ;;  %v2729_v29 = vadd.f32 %v6949_v40, %v7002_v50  ;;  %v6096_v25 = vld [vmem:[#allocation7 + $0xa8] ss:$16 sps:$4 sm:$0xff]  }
 0x2e0   :  { %v2831_v43 = vpop.f32.mrf.mxu1  ;;  %v7033_v47 = vpop.f32.mrf.mxu0  ;;  %v2733_v5 = vadd.f32 %v6953_v16, %v7002_v50 }
 0x2e1   :  { %v7022_v3 = vpack.c.bf16 %v3129_v1, %v3125_v48  ;;  %v2832_v41 = vadd.f32 %v2831_v43, %v2719_v24  ;;  %v3132_v45 = vmax.f32 %v2830_v14, 0.0  ;;  %v2731_v48 = vadd.f32 %v6951_v52, %v7006_v56 }
 0x2e2   :  { %v2833_v9 = vpop.f32.mrf.mxu1  ;;  %v2727_v43 = vadd.f32 %v6947_v12, %v7006_v56  ;;  %v7048_v52 = vpop.f32.mrf.mxu0  ;;  %v6102_v12 = vld [vmem:[#allocation7 + $0x88] ss:$16 sps:$4 sm:$0xff]  }
 0x2e3   :  { %v2834_v35 = vadd.f32 %v2833_v9, %v2721_v46  ;;  %4042 = vmatprep.mubr.bf16.mxu0 %v7022_v3  ;;  %v3133_v26 = vmax.f32 %v2832_v41, 0.0 }
 0x2e4   :  { %v2835_v7 = vpop.f32.mrf.mxu1  ;;  %4043 = vmatmul.mubr.bf16.vlgmr.msra.gmra.mxu0 %v7026_v59  ;;  %v7051_v16 = vpop.f32.mrf.mxu0 }
 0x2e5   :  { %v2836_v57 = vadd.f32 %v2835_v7, %v2723_v51  ;;  %4237 = vmatpush1.bf16.msra.mxu0 %v6084_v4  ;;  %v3136_v34 = vmax.f32 %v2834_v35, 0.0  ;;  %v6104_v4 = vld [vmem:[#allocation7 + $0x8c] ss:$16 sps:$4 sm:$0xff]  }
 0x2e6   :  { %v2839_v27 = vpop.f32.mrf.mxu1  ;;  %4238 = vmatprep.subr.bf16.mxu0 %v6092_v6  ;;  %v6110_v7 = vld [vmem:[#allocation7 + $0x6c] ss:$16 sps:$4 sm:$0xff]  }
 0x2e7   :  { %v3137_v49 = vmax.f32 %v2836_v57, 0.0  ;;  %v7043_v24 = vpack.c.bf16 %v3136_v34, %v3132_v45  ;;  %v2840_v6 = vadd.f32 %v2839_v27, %v2727_v43  ;;  %v2741_v27 = vadd.f32 %v6959_v37, %v7006_v56  ;;  %v6108_v45 = vld [vmem:[#allocation7 + $0x68] ss:$16 sps:$4 sm:$0xff]   ;;  %v7066_v37 = vpop.f32.mrf.mxu0 }
 0x2e8   :  { %v2841_v60 = vpop.f32.mrf.mxu1  ;;  %v2743_v43 = vadd.f32 %v6961_v54, %v7002_v50 }
 0x2e9   :  { %4239 = vmatpush1.bf16.msra.mxu0 %v6090_v42  ;;  %v7039_v1 = vpack.c.bf16 %v3137_v49, %v3133_v26  ;;  %v2842_v9 = vadd.f32 %v2841_v60, %v2729_v29  ;;  %v3140_v34 = vmax.f32 %v2840_v6, 0.0  ;;  %v2739_v26 = vadd.f32 %v6957_v36, %v7002_v50  ;;  %v7069_v54 = vpop.f32.mrf.mxu0 }
 0x2ea   :  { %v2843_v46 = vpop.f32.mrf.mxu1  ;;  %4240 = vmatprep.subr.bf16.mxu0 %v6098_v38  ;;  %v2737_v60 = vadd.f32 %v6955_v11, %v7006_v56  ;;  %v6114_v11 = vld [vmem:[#allocation7 + $0x48] ss:$16 sps:$4 sm:$0xff]  }
 0x2eb   :  { %v2844_v40 = vadd.f32 %v2843_v46, %v2731_v48  ;;  %4052 = vmatprep.mubr.bf16.mxu0 %v7039_v1  ;;  %v3141_v57 = vmax.f32 %v2842_v9, 0.0 }
 0x2ec   :  { %v2845_v51 = vpop.f32.mrf.mxu1  ;;  %4053 = vmatmul.mubr.bf16.gmra.mxu0 %v7043_v24 }
 0x2ed   :  { %v2846_v41 = vadd.f32 %v2845_v51, %v2733_v5  ;;  %4241 = vmatpush1.bf16.msra.mxu0 %v6096_v25  ;;  %v3144_v35 = vmax.f32 %v2844_v40, 0.0  ;;  %v6116_v25 = vld [vmem:[#allocation7 + $0x4c] ss:$16 sps:$4 sm:$0xff]  }
 0x2ee   :  { %v2849_v14 = vpop.f32.mrf.mxu1  ;;  %4242 = vmatprep.subr.bf16.mxu0 %v6104_v4  ;;  %v6122_v51 = vld [vmem:[#allocation7 + $0x2c] ss:$16 sps:$4 sm:$0xff]  }
 0x2ef   :  { %v3145_v42 = vmax.f32 %v2846_v41, 0.0  ;;  %v7061_v29 = vpack.c.bf16 %v3144_v35, %v3140_v34  ;;  %v2850_v4 = vadd.f32 %v2849_v14, %v2737_v60  ;;  %v2751_v14 = vadd.f32 %v6967_v31, %v7006_v56  ;;  %v6120_v34 = vld [vmem:[#allocation7 + $0x28] ss:$16 sps:$4 sm:$0xff]   ;;  %v7084_v31 = vpop.f32.mrf.mxu0 }
 0x2f0   :  { %v2851_v38 = vpop.f32.mrf.mxu1  ;;  %v2753_v60 = vadd.f32 %v6969_v13, %v7002_v50 }
 0x2f1   :  { %4243 = vmatpush1.bf16.msra.mxu0 %v6102_v12  ;;  %v7057_v49 = vpack.c.bf16 %v3145_v42, %v3141_v57  ;;  %v2852_v46 = vadd.f32 %v2851_v38, %v2739_v26  ;;  %v3148_v35 = vmax.f32 %v2850_v4, 0.0  ;;  %v2749_v57 = vadd.f32 %v6965_v22, %v7002_v50  ;;  %v7087_v13 = vpop.f32.mrf.mxu0 }
 0x2f2   :  { %v2853_v48 = vpop.f32.mrf.mxu1  ;;  %4244 = vmatprep.subr.bf16.mxu0 %v6110_v7  ;;  %v2747_v38 = vadd.f32 %v6963_v10, %v7006_v56  ;;  %v6126_v10 = vld [vmem:[#allocation7 + $0x8] ss:$16 sps:$4 sm:$0xff]  }
 0x2f3   :  { %v2854_v36 = vadd.f32 %v2853_v48, %v2741_v27  ;;  %4062 = vmatprep.mubr.bf16.mxu0 %v7057_v49  ;;  %v3149_v41 = vmax.f32 %v2852_v46, 0.0 }
 0x2f4   :  { %v2855_v5 = vpop.f32.mrf.mxu1  ;;  %4063 = vmatmul.mubr.bf16.gmra.mxu0 %v7061_v29 }
 0x2f5   :  { %v2856_v9 = vadd.f32 %v2855_v5, %v2743_v43  ;;  %4245 = vmatpush1.bf16.msra.mxu0 %v6108_v45  ;;  %v3152_v40 = vmax.f32 %v2854_v36, 0.0  ;;  %v6128_v45 = vld [vmem:[#allocation7 + $0xc] ss:$16 sps:$4 sm:$0xff]  }
 0x2f6   :  { %v2859_v6 = vpop.f32.mrf.mxu1  ;;  %4246 = vmatprep.subr.bf16.mxu0 %v6116_v25  ;;  %v6134_v5 = vld [vmem:[#allocation7 + $0x1ec] ss:$16 sps:$4 sm:$0xff]  }
 0x2f7   :  { %v3153_v12 = vmax.f32 %v2856_v9, 0.0  ;;  %v7079_v26 = vpack.c.bf16 %v3152_v40, %v3148_v35  ;;  %v2860_v25 = vadd.f32 %v2859_v6, %v2747_v38  ;;  %v2761_v6 = vadd.f32 %v6975_v44, %v7006_v56  ;;  %v6132_v35 = vld [vmem:[#allocation7 + $0x1e8] ss:$16 sps:$4 sm:$0xff]   ;;  %v7102_v44 = vpop.f32.mrf.mxu0 }
 0x2f8   :  { %v2861_v7 = vpop.f32.mrf.mxu1  ;;  %v2763_v38 = vadd.f32 %v6977_v63, %v7002_v50 }
 0x2f9   :  { %4247 = vmatpush1.bf16.msra.mxu0 %v6114_v11  ;;  %v7075_v42 = vpack.c.bf16 %v3153_v12, %v3149_v41  ;;  %v2862_v48 = vadd.f32 %v2861_v7, %v2749_v57  ;;  %v3156_v40 = vmax.f32 %v2860_v25, 0.0  ;;  %v2759_v41 = vadd.f32 %v6973_v62, %v7002_v50  ;;  %v7105_v63 = vpop.f32.mrf.mxu0 }
 0x2fa   :  { %v2863_v27 = vpop.f32.mrf.mxu1  ;;  %4248 = vmatprep.subr.bf16.mxu0 %v6122_v51  ;;  %v2757_v7 = vadd.f32 %v6971_v23, %v7006_v56  ;;  %v6138_v23 = vld [vmem:[#allocation7 + $0x1c8] ss:$16 sps:$4 sm:$0xff]  }
 0x2fb   :  { %v2864_v22 = vadd.f32 %v2863_v27, %v2751_v14  ;;  %4072 = vmatprep.mubr.bf16.mxu0 %v7075_v42  ;;  %v3157_v9 = vmax.f32 %v2862_v48, 0.0 }
 0x2fc   :  { %v2865_v43 = vpop.f32.mrf.mxu1  ;;  %4073 = vmatmul.mubr.bf16.gmra.mxu0 %v7079_v26 }
 0x2fd   :  { %v2866_v46 = vadd.f32 %v2865_v43, %v2753_v60  ;;  %4249 = vmatpush1.bf16.msra.mxu0 %v6120_v34  ;;  %v3160_v36 = vmax.f32 %v2864_v22, 0.0  ;;  %v6140_v34 = vld [vmem:[#allocation7 + $0x1cc] ss:$16 sps:$4 sm:$0xff]  }
 0x2fe   :  { %v2869_v4 = vpop.f32.mrf.mxu1  ;;  %4250 = vmatprep.subr.bf16.mxu0 %v6128_v45  ;;  %v6146_v43 = vld [vmem:[#allocation7 + $0x1ac] ss:$16 sps:$4 sm:$0xff]  }
 0x2ff   :  { %v3161_v11 = vmax.f32 %v2866_v46, 0.0  ;;  %v7097_v57 = vpack.c.bf16 %v3160_v36, %v3156_v40  ;;  %v2870_v45 = vadd.f32 %v2869_v4, %v2757_v7  ;;  %v2771_v4 = vadd.f32 %v6983_v61, %v7006_v56  ;;  %v6144_v40 = vld [vmem:[#allocation7 + $0x1a8] ss:$16 sps:$4 sm:$0xff]   ;;  %v7120_v61 = vpop.f32.mrf.mxu0 }
 0x300   :  { %v2871_v51 = vpop.f32.mrf.mxu1  ;;  %v2773_v7 = vadd.f32 %v6985_v33, %v7002_v50 }
 0x301   :  { %4251 = vmatpush1.bf16.msra.mxu0 %v6126_v10  ;;  %v7093_v12 = vpack.c.bf16 %v3161_v11, %v3157_v9  ;;  %v2872_v27 = vadd.f32 %v2871_v51, %v2759_v41  ;;  %v3164_v36 = vmax.f32 %v2870_v45, 0.0  ;;  %v2769_v9 = vadd.f32 %v6981_v32, %v7002_v50  ;;  %v7123_v33 = vpop.f32.mrf.mxu0 }
 0x302   :  { %v2873_v14 = vpop.f32.mrf.mxu1  ;;  %4252 = vmatprep.subr.bf16.mxu0 %v6134_v5  ;;  %v2767_v51 = vadd.f32 %v6979_v15, %v7006_v56  ;;  %v6150_v15 = vld [vmem:[#allocation7 + $0x188] ss:$16 sps:$4 sm:$0xff]  }
 0x303   :  { %v2874_v62 = vadd.f32 %v2873_v14, %v2761_v6  ;;  %4082 = vmatprep.mubr.bf16.mxu0 %v7093_v12  ;;  %v3165_v46 = vmax.f32 %v2872_v27, 0.0 }
 0x304   :  { %v2875_v60 = vpop.f32.mrf.mxu1  ;;  %4083 = vmatmul.mubr.bf16.gmra.mxu0 %v7097_v57 }
 0x305   :  { %v2876_v48 = vadd.f32 %v2875_v60, %v2763_v38  ;;  %4253 = vmatpush2.bf16.msra.mxu0 %v6132_v35  ;;  %v3168_v22 = vmax.f32 %v2874_v62, 0.0  ;;  %v6152_v35 = vld [vmem:[#allocation7 + $0x18c] ss:$16 sps:$4 sm:$0xff]  }
 0x306   :  { %v2879_v25 = vpop.f32.mrf.mxu1  ;;  %4254 = vmatprep.subr.bf16.mxu0 %v6140_v34  ;;  %v6158_v60 = vld [vmem:[#allocation7 + $0x16c] ss:$16 sps:$4 sm:$0xff]  }
 0x307   :  { %v3169_v10 = vmax.f32 %v2876_v48, 0.0  ;;  %v7115_v41 = vpack.c.bf16 %v3168_v22, %v3164_v36  ;;  %v2880_v34 = vadd.f32 %v2879_v25, %v2767_v51  ;;  %v2781_v25 = vadd.f32 %v6991_v30, %v7006_v56  ;;  %v6156_v36 = vld [vmem:[#allocation7 + $0x168] ss:$16 sps:$4 sm:$0xff]   ;;  %v7138_v30 = vpop.f32.mrf.mxu0 }
 0x308   :  { %v2881_v5 = vpop.f32.mrf.mxu1  ;;  %v2783_v51 = vadd.f32 %v6998_v2, %v7002_v50  ;;  %v7147_v2 = vrot.slane %v6996_v58, %v6519_v18 }
 0x309   :  { %4255 = vmatpush2.bf16.msra.mxu0 %v6138_v23  ;;  %v7111_v11 = vpack.c.bf16 %v3169_v10, %v3165_v46  ;;  %v2882_v14 = vadd.f32 %v2881_v5, %v2769_v9  ;;  %v3172_v22 = vmax.f32 %v2880_v34, 0.0  ;;  %v2779_v46 = vadd.f32 %v6989_v0, %v7002_v50  ;;  %v6170_v34 = vld [vmem:[#allocation7 + $0x12c] ss:$16 sps:$4 sm:$0xff]  }
 0x30a   :  { %v2883_v6 = vpop.f32.mrf.mxu1  ;;  %4256 = vmatprep.subr.bf16.mxu0 %v6146_v43  ;;  %v2777_v5 = vadd.f32 %v6987_v28, %v7006_v56  ;;  %v7143_v28 = vrot.slane %v6996_v58, %v6523_v20  ;;  %v6168_v58 = vld [vmem:[#allocation7 + $0x128] ss:$16 sps:$4 sm:$0xff]  }
 0x30b   :  { %v2884_v32 = vadd.f32 %v2883_v6, %v2771_v4  ;;  %4092 = vmatprep.mubr.bf16.mxu0 %v7111_v11  ;;  %v3173_v48 = vmax.f32 %v2882_v14, 0.0  ;;  %v6162_v14 = vld [vmem:[#allocation7 + $0x148] ss:$16 sps:$4 sm:$0xff]  }
 0x30c   :  { %v2885_v38 = vpop.f32.mrf.mxu1  ;;  %4093 = vmatmul.mubr.bf16.gmra.mxu0 %v7115_v41 }
 0x30d   :  { %v2886_v27 = vadd.f32 %v2885_v38, %v2773_v7  ;;  %4257 = vmatpush2.bf16.msra.mxu0 %v6144_v40  ;;  %v3176_v62 = vmax.f32 %v2884_v32, 0.0  ;;  %v6164_v40 = vld [vmem:[#allocation7 + $0x14c] ss:$16 sps:$4 sm:$0xff]  }
 0x30e   :  { %v2889_v45 = vpop.f32.mrf.mxu1  ;;  %4258 = vmatprep.subr.bf16.mxu0 %v6152_v35 }
 0x30f   :  { %v3177_v23 = vmax.f32 %v2886_v27, 0.0  ;;  %v7133_v9 = vpack.c.bf16 %v3176_v62, %v3172_v22  ;;  %v2890_v35 = vadd.f32 %v2889_v45, %v2777_v5  ;;  %v2933_v22 = vadd.f32 %v7008_v53, %v7147_v2  ;;  %v6174_v53 = vld [vmem:[#allocation7 + $0x108] ss:$16 sps:$4 sm:$0xff]  }
 0x310   :  { %v2891_v43 = vpop.f32.mrf.mxu1 }
 0x311   :  { %4259 = vmatpush2.bf16.msra.mxu0 %v6150_v15  ;;  %v7129_v10 = vpack.c.bf16 %v3177_v23, %v3173_v48  ;;  %v2892_v6 = vadd.f32 %v2891_v43, %v2779_v46  ;;  %v7149_v15 = vpop.f32.mrf.mxu0  ;;  %v3180_v62 = vmax.f32 %v2890_v35, 0.0  ;;  %v2937_v48 = vadd.f32 %v7016_v8, %v7147_v2 }
 0x312   :  { %v2893_v4 = vpop.f32.mrf.mxu1  ;;  %4260 = vmatprep.subr.bf16.mxu0 %v6158_v60  ;;  %v2935_v60 = vadd.f32 %v7010_v21, %v7143_v28 }
 0x313   :  { %v2894_v0 = vadd.f32 %v2893_v4, %v2781_v25  ;;  %4102 = vmatprep.mubr.bf16.mxu0 %v7129_v10  ;;  %v3181_v38 = vmax.f32 %v2892_v6, 0.0  ;;  %v6176_v25 = vld [vmem:[#allocation7 + $0x10c] ss:$16 sps:$4 sm:$0xff]   ;;  %v7164_v8 = vpop.f32.mrf.mxu0 }
 0x314   :  { %v2895_v7 = vpop.f32.mrf.mxu1  ;;  %4103 = vmatmul.mubr.bf16.gmra.mxu0 %v7133_v9 }
 0x315   :  { %v2896_v56 = vadd.f32 %v2895_v7, %v2783_v51  ;;  %4261 = vmatpush2.bf16.msra.mxu0 %v6156_v36  ;;  %v3184_v50 = vmax.f32 %v2894_v0, 0.0  ;;  %v2939_v36 = vadd.f32 %v7018_v39, %v7143_v28  ;;  %v7168_v7 = vpop.f32.mrf.mxu0 }
 0x316   :  { %v3045_v32 = vpop.f32.mrf.mxu1  ;;  %4262 = vmatprep.subr.bf16.mxu0 %v6164_v40 }
 0x317   :  { %v3185_v27 = vmax.f32 %v2896_v56, 0.0  ;;  %v7159_v43 = vpack.c.bf16 %v3184_v50, %v3180_v62  ;;  %v3046_v4 = vadd.f32 %v3045_v32, %v2933_v22  ;;  %v2945_v50 = vadd.f32 %v7033_v47, %v7143_v28  ;;  %v7183_v47 = vpop.f32.mrf.mxu0 }
 0x318   :  { %v3047_v45 = vpop.f32.mrf.mxu1  ;;  %v2947_v32 = vadd.f32 %v7048_v52, %v7147_v2 }
 0x319   :  { %4263 = vmatpush2.bf16.msra.mxu0 %v6162_v14  ;;  %v7155_v23 = vpack.c.bf16 %v3185_v27, %v3181_v38  ;;  %v3048_v5 = vadd.f32 %v3047_v45, %v2935_v60  ;;  %v3126_v56 = vmax.f32 %v3046_v4, 0.0  ;;  %v2943_v38 = vadd.f32 %v7030_v55, %v7147_v2  ;;  %v6182_v45 = vld [vmem:[#allocation7 + $0x2cc] ss:$16 sps:$4 sm:$0xff]   ;;  %v7188_v4 = vpop.f32.mrf.mxu0 }
 0x31a   :  { %v3049_v46 = vpop.f32.mrf.mxu1  ;;  %4264 = vmatprep.subr.bf16.mxu0 %v6170_v34  ;;  %v2949_v60 = vadd.f32 %v7051_v16, %v7143_v28  ;;  %v6185_v16 = vld [vmem:[#allocation7 + $0x2ac] ss:$16 sps:$4 sm:$0xff]  }
 0x31b   :  { %v3050_v21 = vadd.f32 %v3049_v46, %v2937_v48  ;;  %4112 = vmatprep.mubr.bf16.mxu0 %v7155_v23  ;;  %v3127_v35 = vmax.f32 %v3048_v5, 0.0  ;;  %v6180_v46 = vld [vmem:[#allocation7 + $0x2c8] ss:$16 sps:$4 sm:$0xff]  }
 0x31c   :  { %v3051_v40 = vpop.f32.mrf.mxu1  ;;  %4113 = vmatmul.mubr.bf16.gmra.mxu0 %v7159_v43 }
 0x31d   :  { %v3052_v51 = vadd.f32 %v3051_v40, %v2939_v36  ;;  %4265 = vmatpush2.bf16.msra.mxu0 %v6168_v58  ;;  %4268 = vmatprep.mubr.bf16.mxu0 %v7022_v3  ;;  %v3130_v6 = vmax.f32 %v3050_v21, 0.0  ;;  %v6177_v3 = vld [vmem:[#allocation7 + $0x2e8] ss:$16 sps:$4 sm:$0xff]  }
 0x31e   :  { %v3055_v0 = vpop.f32.mrf.mxu1  ;;  %4266 = vmatprep.subr.bf16.mxu0 %v6176_v25 }
 0x31f   :  { %v3131_v39 = vmax.f32 %v3052_v51, 0.0  ;;  %v7178_v27 = vpack.c.bf16 %v3130_v6, %v3126_v56  ;;  %v3056_v52 = vadd.f32 %v3055_v0, %v2943_v38  ;;  %v2953_v0 = vadd.f32 %v7066_v37, %v7147_v2  ;;  %v6188_v56 = vld [vmem:[#allocation7 + $0x28c] ss:$16 sps:$4 sm:$0xff]   ;;  %v6186_v38 = vld [vmem:[#allocation7 + $0x288] ss:$16 sps:$4 sm:$0xff]  }
 0x320   :  { %v3057_v14 = vpop.f32.mrf.mxu1 }
 0x321   :  { %4267 = vmatpush2.bf16.msra.mxu0 %v6174_v53  ;;  %v7174_v34 = vpack.c.bf16 %v3131_v39, %v3127_v35  ;;  %v3058_v48 = vadd.f32 %v3057_v14, %v2945_v50  ;;  %v3134_v40 = vmax.f32 %v3056_v52, 0.0  ;;  %v2955_v53 = vadd.f32 %v7069_v54, %v7143_v28 }
 0x322   :  { %v3059_v62 = vpop.f32.mrf.mxu1  ;;  %v2959_v14 = vadd.f32 %v7087_v13, %v7143_v28  ;;  %v6191_v13 = vld [vmem:[#allocation7 + $0x26c] ss:$16 sps:$4 sm:$0xff]  }
 0x323   :  { %v3060_v58 = vadd.f32 %v3059_v62, %v2947_v32  ;;  %4155 = vmatprep.mubr.bf16.mxu1 %v7174_v34  ;;  %v3135_v5 = vmax.f32 %v3058_v48, 0.0 }
 0x324   :  { %v3061_v22 = vpop.f32.mrf.mxu1  ;;  %4156 = vmatmul.mubr.bf16.vlgmr.msra.gmra.mxu1 %v7178_v27  ;;  %4269 = vmatmul.mubr.bf16.vlgmr.msra.gmra.mxu0 %v7026_v59  ;;  %v2957_v59 = vadd.f32 %v7084_v31, %v7147_v2  ;;  %v7203_v31 = vpop.f32.mrf.mxu0 }
 0x325   :  { %v3062_v55 = vadd.f32 %v3061_v22, %v2949_v60  ;;  %4350 = vmatpush1.bf16.msra.mxu1 %v6177_v3  ;;  %4278 = vmatprep.mubr.bf16.mxu0 %v7039_v1  ;;  %v3138_v25 = vmax.f32 %v3060_v58, 0.0  ;;  %v6183_v1 = vld [vmem:[#allocation7 + $0x2a8] ss:$16 sps:$4 sm:$0xff]  }
 0x326   :  { %v3065_v36 = vpop.f32.mrf.mxu1  ;;  %4351 = vmatprep.subr.bf16.mxu1 %v6182_v45  ;;  %v7208_v58 = vpop.f32.mrf.mxu0 }
 0x327   :  { %v3139_v21 = vmax.f32 %v3062_v55, 0.0  ;;  %v7198_v35 = vpack.c.bf16 %v3138_v25, %v3134_v40  ;;  %v3066_v32 = vadd.f32 %v3065_v36, %v2953_v0  ;;  %v2965_v55 = vadd.f32 %v7105_v63, %v7143_v28 }
 0x328   :  { %v3067_v51 = vpop.f32.mrf.mxu1  ;;  %v2963_v25 = vadd.f32 %v7102_v44, %v7147_v2 }
 0x329   :  { %4352 = vmatpush1.bf16.msra.mxu1 %v6180_v46  ;;  %v7194_v6 = vpack.c.bf16 %v3139_v21, %v3135_v5  ;;  %v3068_v50 = vadd.f32 %v3067_v51, %v2955_v53  ;;  %v3142_v52 = vmax.f32 %v3066_v32, 0.0  ;;  %v6194_v5 = vld [vmem:[#allocation7 + $0x24c] ss:$16 sps:$4 sm:$0xff]   ;;  %v2969_v21 = vadd.f32 %v7123_v33, %v7143_v28 }
 0x32a   :  { %v3069_v39 = vpop.f32.mrf.mxu1  ;;  %4353 = vmatprep.subr.bf16.mxu1 %v6185_v16  ;;  %v6197_v33 = vld [vmem:[#allocation7 + $0x22c] ss:$16 sps:$4 sm:$0xff]   ;;  %v2975_v32 = vadd.f32 %v7149_v15, %v7143_v28 }
 0x32b   :  { %v3070_v54 = vadd.f32 %v3069_v39, %v2957_v59  ;;  %4165 = vmatprep.mubr.bf16.mxu1 %v7194_v6  ;;  %v3143_v60 = vmax.f32 %v3068_v50, 0.0  ;;  %v6192_v59 = vld [vmem:[#allocation7 + $0x248] ss:$16 sps:$4 sm:$0xff]  }
 0x32c   :  { %v3071_v3 = vpop.f32.mrf.mxu1  ;;  %4166 = vmatmul.mubr.bf16.gmra.mxu1 %v7198_v35  ;;  %4279 = vmatmul.mubr.bf16.gmra.mxu0 %v7043_v24  ;;  %v2967_v24 = vadd.f32 %v7120_v61, %v7147_v2  ;;  %v7223_v61 = vpop.f32.mrf.mxu0 }
 0x32d   :  { %v3072_v37 = vadd.f32 %v3071_v3, %v2959_v14  ;;  %4354 = vmatpush1.bf16.msra.mxu1 %v6183_v1  ;;  %4288 = vmatprep.mubr.bf16.mxu0 %v7057_v49  ;;  %v3146_v62 = vmax.f32 %v3070_v54, 0.0  ;;  %v6189_v49 = vld [vmem:[#allocation7 + $0x268] ss:$16 sps:$4 sm:$0xff]  }
 0x32e   :  { %v3075_v45 = vpop.f32.mrf.mxu1  ;;  %4355 = vmatprep.subr.bf16.mxu1 %v6188_v56  ;;  %v7228_v14 = vpop.f32.mrf.mxu0 }
 0x32f   :  { %v3147_v48 = vmax.f32 %v3072_v37, 0.0  ;;  %v7218_v36 = vpack.c.bf16 %v3146_v62, %v3142_v52  ;;  %v3076_v51 = vadd.f32 %v3075_v45, %v2963_v25  ;;  %v2973_v37 = vadd.f32 %v7138_v30, %v7147_v2  ;;  %v6200_v45 = vld [vmem:[#allocation7 + $0x20c] ss:$16 sps:$4 sm:$0xff]  }
 0x330   :  { %v3077_v22 = vpop.f32.mrf.mxu1 }
 0x331   :  { %4356 = vmatpush1.bf16.msra.mxu1 %v6186_v38  ;;  %v7214_v46 = vpack.c.bf16 %v3147_v48, %v3143_v60  ;;  %v3078_v40 = vadd.f32 %v3077_v22, %v2965_v55  ;;  %v3150_v50 = vmax.f32 %v3076_v51, 0.0  ;;  %v6198_v22 = vld [vmem:[#allocation7 + $0x208] ss:$16 sps:$4 sm:$0xff]   ;;  %v2983_v51 = vadd.f32 %v7183_v47, %v7147_v2 }
 0x332   :  { %v3079_v16 = vpop.f32.mrf.mxu1  ;;  %4357 = vmatprep.subr.bf16.mxu1 %v6191_v13  ;;  %v2979_v13 = vadd.f32 %v7168_v7, %v7143_v28  ;;  %v6203_v7 = vld [vmem:[#allocation7 + $0x3ec] ss:$16 sps:$4 sm:$0xff]  }
 0x333   :  { %v3080_v63 = vadd.f32 %v3079_v16, %v2967_v24  ;;  %4175 = vmatprep.mubr.bf16.mxu1 %v7214_v46  ;;  %v3151_v39 = vmax.f32 %v3078_v40, 0.0  ;;  %v2985_v40 = vadd.f32 %v7188_v4, %v7143_v28 }
 0x334   :  { %v3081_v53 = vpop.f32.mrf.mxu1  ;;  %4176 = vmatmul.mubr.bf16.gmra.mxu1 %v7218_v36  ;;  %4289 = vmatmul.mubr.bf16.gmra.mxu0 %v7061_v29  ;;  %v2977_v29 = vadd.f32 %v7164_v8, %v7147_v2  ;;  %v2996_v8 = vpop.f32.mrf.mxu0 }
 0x335   :  { %v3082_v44 = vadd.f32 %v3081_v53, %v2969_v21  ;;  %4358 = vmatpush1.bf16.msra.mxu1 %v6189_v49  ;;  %4298 = vmatprep.mubr.bf16.mxu0 %v7075_v42  ;;  %v3154_v1 = vmax.f32 %v3080_v63, 0.0  ;;  %v6195_v42 = vld [vmem:[#allocation7 + $0x228] ss:$16 sps:$4 sm:$0xff]  }
 0x336   :  { %v3085_v0 = vpop.f32.mrf.mxu1  ;;  %4359 = vmatprep.subr.bf16.mxu1 %v6194_v5  ;;  %v2998_v16 = vpop.f32.mrf.mxu0 }
 0x337   :  { %v3155_v56 = vmax.f32 %v3082_v44, 0.0  ;;  %v7238_v38 = vpack.c.bf16 %v3154_v1, %v3150_v50  ;;  %v3086_v48 = vadd.f32 %v3085_v0, %v2973_v37  ;;  %v2989_v1 = vadd.f32 %v7208_v58, %v7143_v28  ;;  %v6209_v58 = vld [vmem:[#allocation7 + $0x3ac] ss:$16 sps:$4 sm:$0xff]  }
 0x338   :  { %v3087_v54 = vpop.f32.mrf.mxu1 }
 0x339   :  { %4360 = vmatpush1.bf16.msra.mxu1 %v6192_v59  ;;  %v7234_v3 = vpack.c.bf16 %v3155_v56, %v3151_v39  ;;  %v3088_v60 = vadd.f32 %v3087_v54, %v2975_v32  ;;  %v3158_v5 = vmax.f32 %v3086_v48, 0.0  ;;  %v6206_v59 = vld [vmem:[#allocation7 + $0x3cc] ss:$16 sps:$4 sm:$0xff]   ;;  %v6204_v56 = vld [vmem:[#allocation7 + $0x3c8] ss:$16 sps:$4 sm:$0xff]  }
 0x33a   :  { %v3089_v62 = vpop.f32.mrf.mxu1  ;;  %4361 = vmatprep.subr.bf16.mxu1 %v6197_v33 }
 0x33b   :  { %v3090_v15 = vadd.f32 %v3089_v62, %v2977_v29  ;;  %4185 = vmatprep.mubr.bf16.mxu1 %v7234_v3  ;;  %v3159_v49 = vmax.f32 %v3088_v60, 0.0  ;;  %v6207_v60 = vld [vmem:[#allocation7 + $0x3a8] ss:$16 sps:$4 sm:$0xff]  }
 0x33c   :  { %v3091_v52 = vpop.f32.mrf.mxu1  ;;  %4186 = vmatmul.mubr.bf16.gmra.mxu1 %v7238_v38  ;;  %4299 = vmatmul.mubr.bf16.gmra.mxu0 %v7079_v26  ;;  %v2987_v26 = vadd.f32 %v7203_v31, %v7147_v2  ;;  %v3002_v31 = vpop.f32.mrf.mxu0 }
 0x33d   :  { %v3092_v30 = vadd.f32 %v3091_v52, %v2979_v13  ;;  %4362 = vmatpush1.bf16.msra.mxu1 %v6195_v42  ;;  %4308 = vmatprep.mubr.bf16.mxu0 %v7093_v12  ;;  %v3162_v55 = vmax.f32 %v3090_v15, 0.0  ;;  %v6201_v12 = vld [vmem:[#allocation7 + $0x3e8] ss:$16 sps:$4 sm:$0xff]   ;;  %v2997_v13 = vadd.f32 %v2996_v8, %v7147_v2  ;;  %v6212_v52 = vld [vmem:[#allocation7 + $0x38c] ss:$16 sps:$4 sm:$0xff]  }
 0x33e   :  { %v3095_v24 = vpop.f32.mrf.mxu1  ;;  %4363 = vmatprep.subr.bf16.mxu1 %v6200_v45  ;;  %v3004_v42 = vpop.f32.mrf.mxu0  ;;  %v2995_v45 = vadd.f32 %v7228_v14, %v7143_v28 }
 0x33f   :  { %v3163_v25 = vmax.f32 %v3092_v30, 0.0  ;;  %v7254_v53 = vpack.c.bf16 %v3162_v55, %v3158_v5  ;;  %v3096_v33 = vadd.f32 %v3095_v24, %v2983_v51  ;;  %v2999_v30 = vadd.f32 %v2998_v16, %v7143_v28  ;;  %v6215_v16 = vld [vmem:[#allocation7 + $0x36c] ss:$16 sps:$4 sm:$0xff]  }
 0x340   :  { %v3097_v21 = vpop.f32.mrf.mxu1  ;;  %v3006_v14 = vpop.f32.mrf.mxu0  ;;  %v3005_v51 = vadd.f32 %v3004_v42, %v7143_v28 }
 0x341   :  { %v7250_v63 = vpack.c.bf16 %v3163_v25, %v3159_v49  ;;  %4364 = vmatpush1.bf16.msra.mxu1 %v6198_v22  ;;  %v3098_v0 = vadd.f32 %v3097_v21, %v2985_v40  ;;  %v3166_v37 = vmax.f32 %v3096_v33, 0.0  ;;  %v6225_v33 = vld [vmem:[#allocation8 + $0x78] sm:$0xff]  }
 0x342   :  { %v3099_v44 = vpop.f32.mrf.mxu1  ;;  %4365 = vmatprep.subr.bf16.mxu1 %v6203_v7  ;;  %v3008_v40 = vpop.f32.mrf.mxu0  ;;  %5495 = vmatprep.subr.bf16.mxu0 %v6225_v33 }
 0x343   :  { %v3100_v4 = vadd.f32 %v3099_v44, %v2987_v26  ;;  %4195 = vmatprep.mubr.bf16.mxu1 %v7250_v63  ;;  %v3167_v32 = vmax.f32 %v3098_v0, 0.0  ;;  %v3007_v44 = vadd.f32 %v3006_v14, %v7147_v2  ;;  %v6234_v14 = vld [vmem:[#allocation8 + $0x18] sm:$0xff]  }
 0x344   :  { %v3101_v39 = vpop.f32.mrf.mxu1  ;;  %4196 = vmatmul.mubr.bf16.gmra.mxu1 %v7254_v53  ;;  %4309 = vmatmul.mubr.bf16.gmra.mxu0 %v7097_v57 }
 0x345   :  { %v3102_v47 = vadd.f32 %v3101_v39, %v2989_v1  ;;  %4366 = vmatpush2.bf16.msra.mxu1 %v6201_v12  ;;  %4318 = vmatprep.mubr.bf16.mxu0 %v7111_v11  ;;  %v3170_v50 = vmax.f32 %v3100_v4, 0.0  ;;  %v2993_v11 = vadd.f32 %v7223_v61, %v7147_v2  ;;  %v6210_v61 = vld [vmem:[#allocation7 + $0x388] ss:$16 sps:$4 sm:$0xff]   ;;  %v6218_v4 = vld [vmem:[#allocation7 + $0x34c] ss:$16 sps:$4 sm:$0xff]   ;;  %v3009_v39 = vadd.f32 %v3008_v40, %v7143_v28  ;;  %v6227_v28 = vld [vmem:[#allocation8 + $0x70] sm:$0xff]  }
 0x346   :  { %v3105_v54 = vpop.f32.mrf.mxu1  ;;  %4367 = vmatprep.subr.bf16.mxu1 %v6206_v59 }
 0x347   :  { %v3171_v29 = vmax.f32 %v3102_v47, 0.0  ;;  %v7269_v15 = vpack.c.bf16 %v3170_v50, %v3166_v37  ;;  %v3106_v8 = vadd.f32 %v3105_v54, %v2993_v11  ;;  %v6226_v50 = vld [vmem:[#allocation8 + $0x38] sm:$0xff]   ;;  %v6229_v11 = vld [vmem:[#allocation8 + $0x68] sm:$0xff]  }
 0x348   :  { %v3107_v62 = vpop.f32.mrf.mxu1  ;;  %5496 = vmatpush3.bf16.msra.mxu0 %v6226_v50 }
 0x349   :  { %v7265_v57 = vpack.c.bf16 %v3171_v29, %v3167_v32  ;;  %4368 = vmatpush2.bf16.msra.mxu1 %v6204_v56  ;;  %v3108_v22 = vadd.f32 %v3107_v62, %v2995_v45  ;;  %v3174_v26 = vmax.f32 %v3106_v8, 0.0  ;;  %v6221_v29 = vld [vmem:[#allocation7 + $0x32c] ss:$16 sps:$4 sm:$0xff]   ;;  %v6228_v62 = vld [vmem:[#allocation8 + $0x30] sm:$0xff]   ;;  %5497 = vmatprep.subr.bf16.mxu0 %v6227_v28 }
 0x34a   :  { %v3109_v48 = vpop.f32.mrf.mxu1  ;;  %4369 = vmatprep.subr.bf16.mxu1 %v6209_v58  ;;  %v6236_v8 = vld [vmem:[#allocation8 + $0x10] sm:$0xff]  }
 0x34b   :  { %v3110_v55 = vadd.f32 %v3109_v48, %v2997_v13  ;;  %4205 = vmatprep.mubr.bf16.mxu1 %v7265_v57  ;;  %v3175_v5 = vmax.f32 %v3108_v22, 0.0  ;;  %v6230_v48 = vld [vmem:[#allocation8 + $0x28] sm:$0xff]   ;;  %v6232_v22 = vld [vmem:[#allocation8 + $0x20] sm:$0xff]  }
 0x34c   :  { %v3111_v24 = vpop.f32.mrf.mxu1  ;;  %4206 = vmatmul.mubr.bf16.gmra.mxu1 %v7269_v15  ;;  %4319 = vmatmul.mubr.bf16.gmra.mxu0 %v7115_v41  ;;  %v6213_v41 = vld [vmem:[#allocation7 + $0x368] ss:$16 sps:$4 sm:$0xff]  }
 0x34d   :  { %v3112_v7 = vadd.f32 %v3111_v24, %v2999_v30  ;;  %4370 = vmatpush2.bf16.msra.mxu1 %v6207_v60  ;;  %4328 = vmatprep.mubr.bf16.mxu0 %v7129_v10  ;;  %v3178_v49 = vmax.f32 %v3110_v55, 0.0  ;;  %v3003_v10 = vadd.f32 %v3002_v31, %v7147_v2  ;;  %v6216_v31 = vld [vmem:[#allocation7 + $0x348] ss:$16 sps:$4 sm:$0xff]   ;;  %v6231_v30 = vld [vmem:[#allocation8 + $0x60] sm:$0xff]  }
 0x34e   :  { %v3115_v25 = vpop.f32.mrf.mxu1  ;;  %4371 = vmatprep.subr.bf16.mxu1 %v6212_v52  ;;  %5498 = vmatpush3.bf16.msra.mxu0 %v6228_v62  ;;  %v6222_v52 = vld [vmem:[#allocation7 + $0x308] ss:$16 sps:$4 sm:$0xff]  }
 0x34f   :  { %v3179_v21 = vmax.f32 %v3112_v7, 0.0  ;;  %v7281_v1 = vpack.c.bf16 %v3178_v49, %v3174_v26  ;;  %v3116_v54 = vadd.f32 %v3115_v25, %v3003_v10  ;;  %5499 = vmatprep.subr.bf16.mxu0 %v6229_v11  ;;  %v6233_v55 = vld [vmem:[#allocation8 + $0x58] sm:$0xff]   ;;  %v6238_v24 = vld [vmem:[#allocation8 + $0x8] sm:$0xff]   ;;  %v6239_v7 = vld [vmem:[#allocation8 + $0x40] sm:$0xff]  }
 0x350   :  { %v3117_v12 = vpop.f32.mrf.mxu1  ;;  %v6245_v49 = vld [vmem:[#allocation8 + $0xe8] sm:$0xff]   ;;  %v6252_v25 = vld [vmem:[#allocation8 + $0x90] sm:$0xff]   ;;  %v7360_v11 = vld [vmem:[%s7566_s8] sm:$0xf] }
 0x351   :  { %v7278_v59 = vpack.c.bf16 %v3179_v21, %v3175_v5  ;;  %4372 = vmatpush2.bf16.msra.mxu1 %v6210_v61  ;;  %v3118_v47 = vadd.f32 %v3117_v12, %v3005_v51  ;;  %v3182_v45 = vmax.f32 %v3116_v54, 0.0  ;;  %v6240_v61 = vld [vmem:[#allocation8] sm:$0xff]   ;;  %v6254_v21 = vld [vmem:[#allocation8 + $0x88] sm:$0xff]  }
 0x352   :  { %v3119_v0 = vpop.f32.mrf.mxu1  ;;  %4373 = vmatprep.subr.bf16.mxu1 %v6215_v16  ;;  %5500 = vmatpush3.bf16.msra.mxu0 %v6230_v48  ;;  %v6253_v16 = vld [vmem:[#allocation8 + $0xc8] sm:$0xff]   ;;  %v6255_v51 = vld [vmem:[#allocation8 + $0xc0] sm:$0xff]  }
 0x353   :  { %v3120_v56 = vadd.f32 %v3119_v0, %v3007_v44  ;;  %4215 = vmatprep.mubr.bf16.mxu1 %v7278_v59  ;;  %v3183_v42 = vmax.f32 %v3118_v47, 0.0  ;;  %5501 = vmatprep.subr.bf16.mxu0 %v6231_v30  ;;  %v7370_v30 = vrot.slane %v7360_v11, %v6517_v17 }
 0x354   :  { %v3121_v58 = vpop.f32.mrf.mxu1  ;;  %4216 = vmatmul.mubr.bf16.gmra.mxu1 %v7281_v1  ;;  %4329 = vmatmul.mubr.bf16.gmra.mxu0 %v7133_v9  ;;  %v6219_v9 = vld [vmem:[#allocation7 + $0x328] ss:$16 sps:$4 sm:$0xff]  }
 0x355   :  { %v3122_v2 = vadd.f32 %v3121_v58, %v3009_v39  ;;  %4374 = vmatpush2.bf16.msra.mxu1 %v6213_v41  ;;  %4338 = vmatprep.mubr.bf16.mxu0 %v7155_v23  ;;  %v3186_v32 = vmax.f32 %v3120_v56, 0.0  ;;  %v6224_v23 = vld [vmem:[#allocation7 + $0x30c] ss:$16 sps:$4 sm:$0xff]  }
 0x356   :  { %4375 = vmatprep.subr.bf16.mxu1 %v6218_v4  ;;  %5502 = vmatpush3.bf16.msra.mxu0 %v6232_v22 }
 0x357   :  { %v3187_v37 = vmax.f32 %v3122_v2, 0.0  ;;  %v7290_v60 = vpack.c.bf16 %v3186_v32, %v3182_v45  ;;  %5503 = vmatprep.subr.bf16.mxu0 %v6233_v55 }
 0x359   :  { %v7288_v13 = vpack.c.bf16 %v3187_v37, %v3183_v42  ;;  %4376 = vmatpush2.bf16.msra.mxu1 %v6216_v31 }
 0x35a   :  { %4377 = vmatprep.subr.bf16.mxu1 %v6221_v29  ;;  %5504 = vmatpush3.bf16.msra.mxu0 %v6234_v14 }
 0x35b   :  { %4225 = vmatprep.mubr.bf16.mxu1 %v7288_v13 }
 0x35c   :  { %4226 = vmatmul.mubr.bf16.gmra.mxu1 %v7290_v60  ;;  %4339 = vmatmul.mubr.bf16.gmra.mxu0 %v7159_v43  ;;  %v6235_v43 = vld [vmem:[#allocation8 + $0x50] sm:$0xff]  }
 0x35d   :  { %4378 = vmatpush2.bf16.msra.mxu1 %v6219_v9  ;;  %4381 = vmatprep.mubr.bf16.mxu1 %v7174_v34  ;;  %v6237_v34 = vld [vmem:[#allocation8 + $0x48] sm:$0xff]  }
 0x35e   :  { %4379 = vmatprep.subr.bf16.mxu1 %v6224_v23  ;;  %5505 = vmatprep.subr.bf16.mxu0 %v6235_v43 }
 0x35f   :  { %5506 = vmatpush3.bf16.msra.mxu0 %v6236_v8 }
 0x360   :  { %5507 = vmatprep.subr.bf16.mxu0 %v6237_v34 }
 0x361   :  { %4380 = vmatpush2.bf16.msra.mxu1 %v6222_v52  ;;  %v7366_v52 = vrot.slane %v7360_v11, %v6521_v19 }
 0x363   :  { %5508 = vmatpush3.bf16.msra.mxu0 %v6238_v24 }
 0x364   :  { %4382 = vmatmul.mubr.bf16.vlgmr.msra.gmra.mxu1 %v7178_v27  ;;  %5509 = vmatprep.subr.bf16.mxu0 %v6239_v7  ;;  %v6241_v27 = vld [vmem:[#allocation8 + $0xf8] sm:$0xff]  }
 0x365   :  { %4391 = vmatprep.mubr.bf16.mxu1 %v7194_v6  ;;  %5559 = vmatprep.subr.bf16.mxu1 %v6241_v27  ;;  %v6242_v6 = vld [vmem:[#allocation8 + $0xb8] sm:$0xff]  }
 0x366   :  { %5560 = vmatpush3.bf16.msra.mxu1 %v6242_v6 }
 0x367   :  { %5510 = vmatpush3.bf16.msra.mxu0 %v6240_v61 }
 0x36c   :  { %4392 = vmatmul.mubr.bf16.gmra.mxu1 %v7198_v35  ;;  %v6243_v35 = vld [vmem:[#allocation8 + $0xf0] sm:$0xff]  }
 0x36d   :  { %4401 = vmatprep.mubr.bf16.mxu1 %v7214_v46  ;;  %5561 = vmatprep.subr.bf16.mxu1 %v6243_v35  ;;  %v6244_v46 = vld [vmem:[#allocation8 + $0xb0] sm:$0xff]  }
 0x36e   :  { %5562 = vmatpush3.bf16.msra.mxu1 %v6244_v46 }
 0x36f   :  { %5563 = vmatprep.subr.bf16.mxu1 %v6245_v49 }
 0x374   :  { %4402 = vmatmul.mubr.bf16.gmra.mxu1 %v7218_v36  ;;  %v6246_v36 = vld [vmem:[#allocation8 + $0xa8] sm:$0xff]  }
 0x375   :  { %4411 = vmatprep.mubr.bf16.mxu1 %v7234_v3  ;;  %5564 = vmatpush3.bf16.msra.mxu1 %v6246_v36  ;;  %v6247_v3 = vld [vmem:[#allocation8 + $0xe0] sm:$0xff]  }
 0x376   :  { %5565 = vmatprep.subr.bf16.mxu1 %v6247_v3 }
 0x37c   :  { %4412 = vmatmul.mubr.bf16.gmra.mxu1 %v7238_v38  ;;  %v6248_v38 = vld [vmem:[#allocation8 + $0xa0] sm:$0xff]  }
 0x37d   :  { %4421 = vmatprep.mubr.bf16.mxu1 %v7250_v63  ;;  %5566 = vmatpush3.bf16.msra.mxu1 %v6248_v38  ;;  %v6249_v63 = vld [vmem:[#allocation8 + $0xd8] sm:$0xff]  }
 0x37e   :  { %5567 = vmatprep.subr.bf16.mxu1 %v6249_v63 }
 0x384   :  { %4422 = vmatmul.mubr.bf16.gmra.mxu1 %v7254_v53  ;;  %v6250_v53 = vld [vmem:[#allocation8 + $0x98] sm:$0xff]  }
 0x385   :  { %4431 = vmatprep.mubr.bf16.mxu1 %v7265_v57  ;;  %5568 = vmatpush3.bf16.msra.mxu1 %v6250_v53  ;;  %v6251_v57 = vld [vmem:[#allocation8 + $0xd0] sm:$0xff]  }
 0x386   :  { %5569 = vmatprep.subr.bf16.mxu1 %v6251_v57 }
 0x389   :  { %5570 = vmatpush3.bf16.msra.mxu1 %v6252_v25 }
 0x38a   :  { %5571 = vmatprep.subr.bf16.mxu1 %v6253_v16 }
 0x38c   :  { %4432 = vmatmul.mubr.bf16.gmra.mxu1 %v7269_v15 }
 0x38d   :  { %4441 = vmatprep.mubr.bf16.mxu1 %v7278_v59  ;;  %5572 = vmatpush3.bf16.msra.mxu1 %v6254_v21  ;;  %v6256_v59 = vld [vmem:[#allocation8 + $0x80] sm:$0xff]  }
 0x38e   :  { %5573 = vmatprep.subr.bf16.mxu1 %v6255_v51 }
 0x391   :  { %5574 = vmatpush3.bf16.msra.mxu1 %v6256_v59 }
 0x394   :  { %4442 = vmatmul.mubr.bf16.gmra.mxu1 %v7281_v1 }
 0x395   :  { %4451 = vmatprep.mubr.bf16.mxu1 %v7288_v13 }
 0x39c   :  { %4452 = vmatmul.mubr.bf16.gmra.mxu1 %v7290_v60 }
 0x3a4   :  { %v4044_v15 = vpop.f32.mrf.mxu0 }
 0x3a5   :  { %v4045_v24 = vadd.f32 %v4044_v15, %v7370_v30 }
 0x3a6   :  { %v4046_v5 = vpop.f32.mrf.mxu0 }
 0x3a7   :  { %v4047_v8 = vadd.f32 %v4046_v5, %v7366_v52 }
 0x3a8   :  { %v4048_v40 = vpop.f32.mrf.mxu0 }
 0x3a9   :  { %v4049_v34 = vadd.f32 %v4048_v40, %v7370_v30 }
 0x3aa   :  { %v4050_v26 = vpop.f32.mrf.mxu0 }
 0x3ab   :  { %v4051_v19 = vadd.f32 %v4050_v26, %v7366_v52 }
 0x3ac   :  { %v4054_v12 = vpop.f32.mrf.mxu0 }
 0x3ad   :  { %v4055_v5 = vadd.f32 %v4054_v12, %v7370_v30 }
 0x3ae   :  { %v4056_v44 = vpop.f32.mrf.mxu0 }
 0x3af   :  { %v4057_v25 = vadd.f32 %v4056_v44, %v7366_v52 }
 0x3b0   :  { %v4058_v41 = vpop.f32.mrf.mxu0 }
 0x3b1   :  { %v4059_v15 = vadd.f32 %v4058_v41, %v7370_v30 }
 0x3b2   :  { %v4060_v10 = vpop.f32.mrf.mxu0 }
 0x3b3   :  { %v4061_v26 = vadd.f32 %v4060_v10, %v7366_v52 }
 0x3b4   :  { %v7311_v1 = vpop.f32.mrf.mxu0 }
 0x3b6   :  { %v7313_v0 = vpop.f32.mrf.mxu0 }
 0x3b7   :  { %v4067_v10 = vadd.f32 %v7313_v0, %v7366_v52 }
 0x3b8   :  { %v7315_v4 = vpop.f32.mrf.mxu0 }
 0x3ba   :  { %v7317_v33 = vpop.f32.mrf.mxu0 }
 0x3bc   :  { %v7319_v39 = vpop.f32.mrf.mxu0 }
 0x3be   :  { %v7321_v47 = vpop.f32.mrf.mxu0 }
 0x3c0   :  { %v7323_v56 = vpop.f32.mrf.mxu0 }
 0x3c2   :  { %v7325_v50 = vpop.f32.mrf.mxu0 }
 0x3c4   :  { %v7327_v54 = vpop.f32.mrf.mxu0 }
 0x3c6   :  { %v7329_v58 = vpop.f32.mrf.mxu0 }
 0x3c8   :  { %v7331_v2 = vpop.f32.mrf.mxu0 }
 0x3ca   :  { %v7333_v31 = vpop.f32.mrf.mxu0 }
 0x3cc   :  { %v7335_v32 = vpop.f32.mrf.mxu0 }
 0x3ce   :  { %v7337_v29 = vpop.f32.mrf.mxu0 }
 0x3d0   :  { %v7339_v28 = vpop.f32.mrf.mxu0 }
 0x3d2   :  { %v7341_v42 = vpop.f32.mrf.mxu0 }
 0x3d4   :  { %v7343_v37 = vpop.f32.mrf.mxu0 }
 0x3d6   :  { %v7345_v62 = vpop.f32.mrf.mxu0 }
 0x3d8   :  { %v7347_v45 = vpop.f32.mrf.mxu0 }
 0x3da   :  { %v7349_v13 = vpop.f32.mrf.mxu0 }
 0x3dc   :  { %v7351_v9 = vpop.f32.mrf.mxu0 }
 0x3de   :  { %v7353_v60 = vpop.f32.mrf.mxu0 }
 0x3e0   :  { %v7355_v23 = vpop.f32.mrf.mxu0 }
 0x3e2   :  { %v7362_v48 = vpop.f32.mrf.mxu0 }
 0x3e4   :  { %v4157_v22 = vpop.f32.mrf.mxu1  ;;  %v7372_v55 = vpop.f32.mrf.mxu0 }
 0x3e5   :  { %v4158_v6 = vadd.f32 %v4157_v22, %v4045_v24 }
 0x3e6   :  { %v4159_v14 = vpop.f32.mrf.mxu1  ;;  %v7374_v43 = vpop.f32.mrf.mxu0 }
 0x3e7   :  { %v4160_v61 = vadd.f32 %v4159_v14, %v4047_v8  ;;  %v4462_v63 = vmax.f32 %v4158_v6, 0.0 }
 0x3e8   :  { %v4161_v7 = vpop.f32.mrf.mxu1  ;;  %v7380_v17 = vpop.f32.mrf.mxu0 }
 0x3e9   :  { %v4162_v27 = vadd.f32 %v4161_v7, %v4049_v34  ;;  %v4463_v3 = vmax.f32 %v4160_v61, 0.0 }
 0x3ea   :  { %v4163_v35 = vpop.f32.mrf.mxu1  ;;  %v7382_v53 = vpop.f32.mrf.mxu0 }
 0x3eb   :  { %v4164_v46 = vadd.f32 %v4163_v35, %v4051_v19  ;;  %v4466_v49 = vmax.f32 %v4162_v27, 0.0  ;;  %v4069_v27 = vadd.f32 %v7315_v4, %v7370_v30  ;;  %v4065_v35 = vadd.f32 %v7311_v1, %v7370_v30 }
 0x3ec   :  { %v4167_v36 = vpop.f32.mrf.mxu1  ;;  %v7388_v14 = vpop.f32.mrf.mxu0 }
 0x3ed   :  { %v4467_v38 = vmax.f32 %v4164_v46, 0.0  ;;  %v4526_v21 = vpack.c.bf16 %v4466_v49, %v4462_v63  ;;  %v4168_v22 = vadd.f32 %v4167_v36, %v4055_v5  ;;  %v4071_v36 = vadd.f32 %v7317_v33, %v7366_v52 }
 0x3ee   :  { %v4169_v57 = vpop.f32.mrf.mxu1  ;;  %v7390_v61 = vpop.f32.mrf.mxu0  ;;  %v4077_v33 = vadd.f32 %v7321_v47, %v7366_v52 }
 0x3ef   :  { %v4527_v16 = vpack.c.bf16 %v4467_v38, %v4463_v3  ;;  %v4170_v51 = vadd.f32 %v4169_v57, %v4057_v25  ;;  %v4470_v19 = vmax.f32 %v4168_v22, 0.0 }
 0x3f0   :  { %v4171_v40 = vpop.f32.mrf.mxu1  ;;  %v7400_v63 = vpop.f32.mrf.mxu0 }
 0x3f1   :  { %v4172_v59 = vadd.f32 %v4171_v40, %v4059_v15  ;;  %4853 = vmatprep.mubr.bf16.mxu0 %v4527_v16  ;;  %v4471_v7 = vmax.f32 %v4170_v51, 0.0 }
 0x3f2   :  { %v4173_v8 = vpop.f32.mrf.mxu1  ;;  %4854 = vmatmul.mubr.bf16.vlgmr.msra.gmra.mxu0 %v4526_v21  ;;  %v7402_v21 = vpop.f32.mrf.mxu0 }
 0x3f3   :  { %v4174_v34 = vadd.f32 %v4173_v8, %v4061_v26  ;;  %v4474_v24 = vmax.f32 %v4172_v59, 0.0  ;;  %v4079_v26 = vadd.f32 %v7323_v56, %v7370_v30  ;;  %v4075_v59 = vadd.f32 %v7319_v39, %v7370_v30 }
 0x3f4   :  { %v4177_v44 = vpop.f32.mrf.mxu1 }
 0x3f5   :  { %v4475_v41 = vmax.f32 %v4174_v34, 0.0  ;;  %v4530_v46 = vpack.c.bf16 %v4474_v24, %v4470_v19  ;;  %v4178_v57 = vadd.f32 %v4177_v44, %v4065_v35  ;;  %v4081_v34 = vadd.f32 %v7325_v50, %v7366_v52 }
 0x3f6   :  { %v4179_v12 = vpop.f32.mrf.mxu1  ;;  %v4087_v50 = vadd.f32 %v7329_v58, %v7366_v52 }
 0x3f7   :  { %v4531_v6 = vpack.c.bf16 %v4475_v41, %v4471_v7  ;;  %v4180_v3 = vadd.f32 %v4179_v12, %v4067_v10  ;;  %v4478_v1 = vmax.f32 %v4178_v57, 0.0  ;;  %v7412_v7 = vpop.f32.mrf.mxu0  ;;  %v4091_v57 = vadd.f32 %v7333_v31, %v7366_v52 }
 0x3f8   :  { %v4181_v49 = vpop.f32.mrf.mxu1  ;;  %v4097_v31 = vadd.f32 %v7337_v29, %v7366_v52 }
 0x3f9   :  { %v4182_v38 = vadd.f32 %v4181_v49, %v4069_v27  ;;  %4861 = vmatprep.mubr.bf16.mxu0 %v4531_v6  ;;  %v4479_v16 = vmax.f32 %v4180_v3, 0.0  ;;  %v7414_v6 = vpop.f32.mrf.mxu0 }
 0x3fa   :  { %v4183_v25 = vpop.f32.mrf.mxu1  ;;  %4862 = vmatmul.mubr.bf16.gmra.mxu0 %v4530_v46  ;;  %v4089_v46 = vadd.f32 %v7331_v2, %v7370_v30 }
 0x3fb   :  { %v4184_v0 = vadd.f32 %v4183_v25, %v4071_v36  ;;  %v4482_v15 = vmax.f32 %v4182_v38, 0.0  ;;  %v4085_v36 = vadd.f32 %v7327_v54, %v7370_v30 }
 0x3fc   :  { %v4187_v4 = vpop.f32.mrf.mxu1 }
 0x3fd   :  { %v4483_v5 = vmax.f32 %v4184_v0, 0.0  ;;  %v4534_v22 = vpack.c.bf16 %v4482_v15, %v4478_v1  ;;  %v4188_v41 = vadd.f32 %v4187_v4, %v4075_v59  ;;  %v7424_v15 = vpop.f32.mrf.mxu0 }
 0x3fe   :  { %v4189_v40 = vpop.f32.mrf.mxu1 }
 0x3ff   :  { %v4535_v51 = vpack.c.bf16 %v4483_v5, %v4479_v16  ;;  %v4190_v24 = vadd.f32 %v4189_v40, %v4077_v33  ;;  %v4486_v39 = vmax.f32 %v4188_v41, 0.0  ;;  %v7426_v33 = vpop.f32.mrf.mxu0 }
 0x400   :  { %v4191_v8 = vpop.f32.mrf.mxu1 }
 0x401   :  { %v4192_v44 = vadd.f32 %v4191_v8, %v4079_v26  ;;  %4869 = vmatprep.mubr.bf16.mxu0 %v4535_v51  ;;  %v4487_v10 = vmax.f32 %v4190_v24, 0.0  ;;  %v4099_v51 = vadd.f32 %v7339_v28, %v7370_v30  ;;  %v4101_v24 = vadd.f32 %v7341_v42, %v7366_v52 }
 0x402   :  { %v4193_v19 = vpop.f32.mrf.mxu1  ;;  %4870 = vmatmul.mubr.bf16.gmra.mxu0 %v4534_v22  ;;  %v4095_v22 = vadd.f32 %v7335_v32, %v7370_v30  ;;  %v4107_v42 = vadd.f32 %v7345_v62, %v7366_v52 }
 0x403   :  { %v4194_v47 = vadd.f32 %v4193_v19, %v4081_v34  ;;  %v4490_v12 = vmax.f32 %v4192_v44, 0.0  ;;  %v7436_v19 = vpop.f32.mrf.mxu0 }
 0x404   :  { %v4197_v56 = vpop.f32.mrf.mxu1 }
 0x405   :  { %v4491_v27 = vmax.f32 %v4194_v47, 0.0  ;;  %v4538_v3 = vpack.c.bf16 %v4490_v12, %v4486_v39  ;;  %v4198_v4 = vadd.f32 %v4197_v56, %v4085_v36  ;;  %v7438_v39 = vpop.f32.mrf.mxu0 }
 0x406   :  { %v4199_v35 = vpop.f32.mrf.mxu1 }
 0x407   :  { %v4539_v49 = vpack.c.bf16 %v4491_v27, %v4487_v10  ;;  %v4200_v25 = vadd.f32 %v4199_v35, %v4087_v50  ;;  %v4494_v54 = vmax.f32 %v4198_v4, 0.0  ;;  %v4109_v50 = vadd.f32 %v7347_v45, %v7370_v30 }
 0x408   :  { %v4201_v38 = vpop.f32.mrf.mxu1 }
 0x409   :  { %v4202_v0 = vadd.f32 %v4201_v38, %v4089_v46  ;;  %4877 = vmatprep.mubr.bf16.mxu0 %v4539_v49  ;;  %v4495_v1 = vmax.f32 %v4200_v25, 0.0  ;;  %v4105_v49 = vadd.f32 %v7343_v37, %v7370_v30  ;;  %v4111_v38 = vadd.f32 %v7349_v13, %v7366_v52 }
 0x40a   :  { %v4203_v16 = vpop.f32.mrf.mxu1  ;;  %4878 = vmatmul.mubr.bf16.gmra.mxu0 %v4538_v3  ;;  %v4117_v13 = vadd.f32 %v7353_v60, %v7366_v52  ;;  %v7464_v60 = vrot.slane %v7360_v11, %v6523_v20 }
 0x40b   :  { %v4204_v58 = vadd.f32 %v4203_v16, %v4091_v57  ;;  %v4498_v5 = vmax.f32 %v4202_v0, 0.0  ;;  %v7448_v0 = vpop.f32.mrf.mxu0 }
 0x40c   :  { %v4207_v2 = vpop.f32.mrf.mxu1 }
 0x40d   :  { %v4499_v40 = vmax.f32 %v4204_v58, 0.0  ;;  %v4542_v8 = vpack.c.bf16 %v4498_v5, %v4494_v54  ;;  %v4208_v47 = vadd.f32 %v4207_v2, %v4095_v22  ;;  %v4119_v54 = vadd.f32 %v7355_v23, %v7370_v30 }
 0x40e   :  { %v4209_v26 = vpop.f32.mrf.mxu1  ;;  %v4121_v22 = vadd.f32 %v7362_v48, %v7366_v52 }
 0x40f   :  { %v4543_v59 = vpack.c.bf16 %v4499_v40, %v4495_v1  ;;  %v4210_v44 = vadd.f32 %v4209_v26, %v4097_v31  ;;  %v4502_v32 = vmax.f32 %v4208_v47, 0.0  ;;  %v7450_v1 = vpop.f32.mrf.mxu0  ;;  %v4115_v31 = vadd.f32 %v7351_v9, %v7370_v30 }
 0x410   :  { %v4211_v34 = vpop.f32.mrf.mxu1  ;;  %v7468_v9 = vrot.slane %v7360_v11, %v6519_v18 }
 0x411   :  { %v4212_v41 = vadd.f32 %v4211_v34, %v4099_v51  ;;  %4885 = vmatprep.mubr.bf16.mxu0 %v4543_v59  ;;  %v4503_v10 = vmax.f32 %v4210_v44, 0.0 }
 0x412   :  { %v4213_v12 = vpop.f32.mrf.mxu1  ;;  %4886 = vmatmul.mubr.bf16.gmra.mxu0 %v4542_v8  ;;  %v4275_v20 = vadd.f32 %v7380_v17, %v7468_v9 }
 0x413   :  { %v4214_v29 = vadd.f32 %v4213_v12, %v4101_v24  ;;  %v4506_v56 = vmax.f32 %v4212_v41, 0.0  ;;  %v7460_v24 = vpop.f32.mrf.mxu0 }
 0x414   :  { %v4217_v28 = vpop.f32.mrf.mxu1 }
 0x415   :  { %v4507_v27 = vmax.f32 %v4214_v29, 0.0  ;;  %v4546_v36 = vpack.c.bf16 %v4506_v56, %v4502_v32  ;;  %v4218_v4 = vadd.f32 %v4217_v28, %v4105_v49  ;;  %v7470_v12 = vpop.f32.mrf.mxu0  ;;  %v4273_v28 = vadd.f32 %v7374_v43, %v7464_v60 }
 0x416   :  { %v4219_v35 = vpop.f32.mrf.mxu1  ;;  %v4277_v32 = vadd.f32 %v7382_v53, %v7464_v60  ;;  %v4283_v53 = vadd.f32 %v7390_v61, %v7464_v60 }
 0x417   :  { %v4547_v46 = vpack.c.bf16 %v4507_v27, %v4503_v10  ;;  %v4220_v57 = vadd.f32 %v4219_v35, %v4107_v42  ;;  %v4510_v37 = vmax.f32 %v4218_v4, 0.0  ;;  %v4271_v27 = vadd.f32 %v7372_v55, %v7468_v9 }
 0x418   :  { %v4221_v3 = vpop.f32.mrf.mxu1  ;;  %v4285_v4 = vadd.f32 %v7400_v63, %v7468_v9 }
 0x419   :  { %v4222_v25 = vadd.f32 %v4221_v3, %v4109_v50  ;;  %4893 = vmatprep.mubr.bf16.mxu0 %v4547_v46  ;;  %v4511_v5 = vmax.f32 %v4220_v57, 0.0  ;;  %v7480_v50 = vpop.f32.mrf.mxu0 }
 0x41a   :  { %v4223_v16 = vpop.f32.mrf.mxu1  ;;  %4894 = vmatmul.mubr.bf16.gmra.mxu0 %v4546_v36 }
 0x41b   :  { %v4224_v62 = vadd.f32 %v4223_v16, %v4111_v38  ;;  %v4514_v58 = vmax.f32 %v4222_v25, 0.0  ;;  %v7482_v57 = vpop.f32.mrf.mxu0 }
 0x41c   :  { %v4227_v45 = vpop.f32.mrf.mxu1 }
 0x41d   :  { %v4515_v2 = vmax.f32 %v4224_v62, 0.0  ;;  %v4550_v51 = vpack.c.bf16 %v4514_v58, %v4510_v37  ;;  %v4228_v44 = vadd.f32 %v4227_v45, %v4115_v31  ;;  %v4281_v62 = vadd.f32 %v7388_v14, %v7468_v9 }
 0x41e   :  { %v4229_v40 = vpop.f32.mrf.mxu1 }
 0x41f   :  { %v4551_v26 = vpack.c.bf16 %v4515_v2, %v4511_v5  ;;  %v4230_v8 = vadd.f32 %v4229_v40, %v4117_v13  ;;  %v4518_v29 = vmax.f32 %v4228_v44, 0.0  ;;  %v4287_v5 = vadd.f32 %v7402_v21, %v7464_v60  ;;  %v7492_v40 = vpop.f32.mrf.mxu0 }
 0x420   :  { %v4231_v59 = vpop.f32.mrf.mxu1  ;;  %v4293_v21 = vadd.f32 %v7414_v6, %v7464_v60  ;;  %v4291_v44 = vadd.f32 %v7412_v7, %v7468_v9 }
 0x421   :  { %v4232_v34 = vadd.f32 %v4231_v59, %v4119_v54  ;;  %4901 = vmatprep.mubr.bf16.mxu0 %v4551_v26  ;;  %v4519_v48 = vmax.f32 %v4230_v8, 0.0  ;;  %v7494_v59 = vpop.f32.mrf.mxu0  ;;  %v4295_v8 = vadd.f32 %v7424_v15, %v7468_v9 }
 0x422   :  { %v4233_v41 = vpop.f32.mrf.mxu1  ;;  %4902 = vmatmul.mubr.bf16.gmra.mxu0 %v4550_v51 }
 0x423   :  { %v4234_v23 = vadd.f32 %v4233_v41, %v4121_v22  ;;  %v4522_v30 = vmax.f32 %v4232_v34, 0.0 }
 0x424   :  { %v4383_v47 = vpop.f32.mrf.mxu1 }
 0x425   :  { %v4523_v52 = vmax.f32 %v4234_v23, 0.0  ;;  %v4554_v18 = vpack.c.bf16 %v4522_v30, %v4518_v29  ;;  %v4384_v46 = vadd.f32 %v4383_v47, %v4271_v27  ;;  %v4297_v30 = vadd.f32 %v7426_v33, %v7464_v60 }
 0x426   :  { %v4385_v56 = vpop.f32.mrf.mxu1  ;;  %v4305_v33 = vadd.f32 %v7448_v0, %v7468_v9 }
 0x427   :  { %v4555_v10 = vpack.c.bf16 %v4523_v52, %v4519_v48  ;;  %v4386_v35 = vadd.f32 %v4385_v56, %v4273_v28  ;;  %v4464_v55 = vmax.f32 %v4384_v46, 0.0  ;;  %v4324_v52 = vpop.f32.mrf.mxu0 }
 0x428   :  { %v4387_v11 = vpop.f32.mrf.mxu1 }
 0x429   :  { %v4388_v42 = vadd.f32 %v4387_v11, %v4275_v20  ;;  %4909 = vmatprep.mubr.bf16.mxu0 %v4555_v10  ;;  %v4465_v3 = vmax.f32 %v4386_v35, 0.0  ;;  %v4326_v27 = vpop.f32.mrf.mxu0  ;;  %v4303_v11 = vadd.f32 %v7438_v39, %v7464_v60  ;;  %v4301_v35 = vadd.f32 %v7436_v19, %v7468_v9 }
 0x42a   :  { %v4389_v49 = vpop.f32.mrf.mxu1  ;;  %4910 = vmatmul.mubr.bf16.gmra.mxu0 %v4554_v18 }
 0x42b   :  { %v4390_v43 = vadd.f32 %v4389_v49, %v4277_v32  ;;  %v4468_v36 = vmax.f32 %v4388_v42, 0.0  ;;  %v4307_v49 = vadd.f32 %v7450_v1, %v7464_v60  ;;  %v4315_v1 = vadd.f32 %v7480_v50, %v7468_v9 }
 0x42c   :  { %v4393_v17 = vpop.f32.mrf.mxu1 }
 0x42d   :  { %v4469_v38 = vmax.f32 %v4390_v43, 0.0  ;;  %v4528_v58 = vpack.c.bf16 %v4468_v36, %v4464_v55  ;;  %v4394_v13 = vadd.f32 %v4393_v17, %v4281_v62  ;;  %v4330_v17 = vpop.f32.mrf.mxu0  ;;  %v4313_v62 = vadd.f32 %v7470_v12, %v7464_v60 }
 0x42e   :  { %v4395_v25 = vpop.f32.mrf.mxu1 }
 0x42f   :  { %v4529_v16 = vpack.c.bf16 %v4469_v38, %v4465_v3  ;;  %v4396_v2 = vadd.f32 %v4395_v25, %v4283_v53  ;;  %v4472_v14 = vmax.f32 %v4394_v13, 0.0 }
 0x430   :  { %v4397_v45 = vpop.f32.mrf.mxu1 }
 0x431   :  { %v4398_v37 = vadd.f32 %v4397_v45, %v4285_v4  ;;  %4950 = vmatprep.mubr.bf16.mxu1 %v4529_v16  ;;  %v4473_v31 = vmax.f32 %v4396_v2, 0.0  ;;  %v4332_v4 = vpop.f32.mrf.mxu0  ;;  %v4311_v45 = vadd.f32 %v7460_v24, %v7468_v9 }
 0x432   :  { %v4399_v54 = vpop.f32.mrf.mxu1  ;;  %4951 = vmatmul.mubr.bf16.vlgmr.msra.gmra.mxu1 %v4528_v58 }
 0x433   :  { %v4400_v61 = vadd.f32 %v4399_v54, %v4287_v5  ;;  %v4476_v26 = vmax.f32 %v4398_v37, 0.0  ;;  %v4317_v37 = vadd.f32 %v7482_v57, %v7464_v60  ;;  %v4325_v57 = vadd.f32 %v4324_v52, %v7468_v9 }
 0x434   :  { %v4403_v63 = vpop.f32.mrf.mxu1 }
 0x435   :  { %v4477_v51 = vmax.f32 %v4400_v61, 0.0  ;;  %v4532_v41 = vpack.c.bf16 %v4476_v26, %v4472_v14  ;;  %v4404_v29 = vadd.f32 %v4403_v63, %v4291_v44  ;;  %v4334_v61 = vpop.f32.mrf.mxu0  ;;  %v4321_v44 = vadd.f32 %v7492_v40, %v7468_v9 }
 0x436   :  { %v4405_v22 = vpop.f32.mrf.mxu1  ;;  %v4333_v40 = vadd.f32 %v4332_v4, %v7464_v60 }
 0x437   :  { %v4533_v34 = vpack.c.bf16 %v4477_v51, %v4473_v31  ;;  %v4406_v47 = vadd.f32 %v4405_v22, %v4293_v21  ;;  %v4480_v18 = vmax.f32 %v4404_v29, 0.0  ;;  %v4336_v22 = vpop.f32.mrf.mxu0 }
 0x438   :  { %v4407_v23 = vpop.f32.mrf.mxu1 }
 0x439   :  { %v4408_v48 = vadd.f32 %v4407_v23, %v4295_v8  ;;  %4958 = vmatprep.mubr.bf16.mxu1 %v4533_v34  ;;  %v4481_v15 = vmax.f32 %v4406_v47, 0.0  ;;  %v4323_v8 = vadd.f32 %v7494_v59, %v7464_v60  ;;  %v4340_v29 = vpop.f32.mrf.mxu0 }
 0x43a   :  { %v4409_v56 = vpop.f32.mrf.mxu1  ;;  %4959 = vmatmul.mubr.bf16.gmra.mxu1 %v4532_v41 }
 0x43b   :  { %v4410_v6 = vadd.f32 %v4409_v56, %v4297_v30  ;;  %v4484_v28 = vmax.f32 %v4408_v48, 0.0  ;;  %v4327_v30 = vadd.f32 %v4326_v27, %v7464_v60 }
 0x43c   :  { %v4413_v20 = vpop.f32.mrf.mxu1 }
 0x43d   :  { %v4485_v10 = vmax.f32 %v4410_v6, 0.0  ;;  %v4536_v42 = vpack.c.bf16 %v4484_v28, %v4480_v18  ;;  %v4414_v3 = vadd.f32 %v4413_v20, %v4301_v35 }
 0x43e   :  { %v4415_v7 = vpop.f32.mrf.mxu1 }
 0x43f   :  { %v4537_v32 = vpack.c.bf16 %v4485_v10, %v4481_v15  ;;  %v4416_v43 = vadd.f32 %v4415_v7, %v4303_v11  ;;  %v4488_v16 = vmax.f32 %v4414_v3, 0.0  ;;  %v4342_v10 = vpop.f32.mrf.mxu0  ;;  %v4335_v11 = vadd.f32 %v4334_v61, %v7468_v9 }
 0x440   :  { %v4417_v46 = vpop.f32.mrf.mxu1 }
 0x441   :  { %v4418_v36 = vadd.f32 %v4417_v46, %v4305_v33  ;;  %4966 = vmatprep.mubr.bf16.mxu1 %v4537_v32  ;;  %v4489_v0 = vmax.f32 %v4416_v43, 0.0  ;;  %v4331_v33 = vadd.f32 %v4330_v17, %v7468_v9  ;;  %v4344_v43 = vpop.f32.mrf.mxu0  ;;  %v4343_v17 = vadd.f32 %v4342_v10, %v7464_v60 }
 0x442   :  { %v4419_v38 = vpop.f32.mrf.mxu1  ;;  %4967 = vmatmul.mubr.bf16.gmra.mxu1 %v4536_v42  ;;  %v4337_v42 = vadd.f32 %v4336_v22, %v7464_v60 }
 0x443   :  { %v4420_v39 = vadd.f32 %v4419_v38, %v4307_v49  ;;  %v4492_v55 = vmax.f32 %v4418_v36, 0.0 }
 0x444   :  { %v4423_v25 = vpop.f32.mrf.mxu1 }
 0x445   :  { %v4493_v53 = vmax.f32 %v4420_v39, 0.0  ;;  %v4540_v5 = vpack.c.bf16 %v4492_v55, %v4488_v16  ;;  %v4424_v26 = vadd.f32 %v4423_v25, %v4311_v45 }
 0x446   :  { %v4425_v19 = vpop.f32.mrf.mxu1 }
 0x447   :  { %v4541_v58 = vpack.c.bf16 %v4493_v53, %v4489_v0  ;;  %v4426_v13 = vadd.f32 %v4425_v19, %v4313_v62  ;;  %v4496_v21 = vmax.f32 %v4424_v26, 0.0  ;;  %v4346_v53 = vpop.f32.mrf.mxu0  ;;  %v4345_v19 = vadd.f32 %v4344_v43, %v7468_v9 }
 0x448   :  { %v4427_v2 = vpop.f32.mrf.mxu1 }
 0x449   :  { %v4428_v54 = vadd.f32 %v4427_v2, %v4315_v1  ;;  %4974 = vmatprep.mubr.bf16.mxu1 %v4541_v58  ;;  %v4497_v50 = vmax.f32 %v4426_v13, 0.0  ;;  %v4341_v1 = vadd.f32 %v4340_v29, %v7468_v9 }
 0x44a   :  { %v4429_v63 = vpop.f32.mrf.mxu1  ;;  %4975 = vmatmul.mubr.bf16.gmra.mxu1 %v4540_v5  ;;  %v4347_v5 = vadd.f32 %v4346_v53, %v7464_v60 }
 0x44b   :  { %v4430_v12 = vadd.f32 %v4429_v63, %v4317_v37  ;;  %v4500_v31 = vmax.f32 %v4428_v54, 0.0 }
 0x44c   :  { %v4433_v51 = vpop.f32.mrf.mxu1 }
 0x44d   :  { %v4501_v14 = vmax.f32 %v4430_v12, 0.0  ;;  %v4544_v41 = vpack.c.bf16 %v4500_v31, %v4496_v21  ;;  %v4434_v56 = vadd.f32 %v4433_v51, %v4321_v44 }
 0x44e   :  { %v4435_v24 = vpop.f32.mrf.mxu1 }
 0x44f   :  { %v4545_v34 = vpack.c.bf16 %v4501_v14, %v4497_v50  ;;  %v4436_v47 = vadd.f32 %v4435_v24, %v4323_v8  ;;  %v4504_v18 = vmax.f32 %v4434_v56, 0.0 }
 0x450   :  { %v4437_v23 = vpop.f32.mrf.mxu1 }
 0x451   :  { %v4438_v48 = vadd.f32 %v4437_v23, %v4325_v57  ;;  %4982 = vmatprep.mubr.bf16.mxu1 %v4545_v34  ;;  %v4505_v15 = vmax.f32 %v4436_v47, 0.0 }
 0x452   :  { %v4439_v6 = vpop.f32.mrf.mxu1  ;;  %4983 = vmatmul.mubr.bf16.gmra.mxu1 %v4544_v41 }
 0x453   :  { %v4440_v28 = vadd.f32 %v4439_v6, %v4327_v30  ;;  %v4508_v20 = vmax.f32 %v4438_v48, 0.0 }
 0x454   :  { %v4443_v59 = vpop.f32.mrf.mxu1 }
 0x455   :  { %v4509_v52 = vmax.f32 %v4440_v28, 0.0  ;;  %v4548_v32 = vpack.c.bf16 %v4508_v20, %v4504_v18  ;;  %v4444_v36 = vadd.f32 %v4443_v59, %v4331_v33  ;;  %v7537_v28 = vld [vmem:[%s7568_s10] ss:$0 sm:$0xff]  ;;  %s6374_s10 = smov [#allocation10]  }
 0x456   :  { %v4445_v7 = vpop.f32.mrf.mxu1  ;;  %s5036_s23 = sshll.u32 %s6374_s10, 4  ;;  %s5037_s23 = int_to_ptr.vmem [resolvable:$true] %s5036_s23 }
 0x457   :  { %v4549_v27 = vpack.c.bf16 %v4509_v52, %v4505_v15  ;;  %v4446_v46 = vadd.f32 %v4445_v7, %v4333_v40  ;;  %v4512_v4 = vmax.f32 %v4444_v36, 0.0  ;;  %s6337_s24 = scalar_lea.vmem %s5037_s23, 2048  ;;  %p6342_p7 = scmp.lt.s32.totalorder %s5037_s23, %s5037_s23 }
 0x458   :  { %v4447_v35 = vpop.f32.mrf.mxu1  ;;  %p6338_p6 = scmp.ne.s32.totalorder %s5037_s23, %s6337_s24  ;;  %p6343_p8 = scmp.lt.s32.totalorder %s6337_s24, %s6337_s24 }
 0x459   :  { %v4448_v49 = vadd.f32 %v4447_v35, %v4335_v11  ;;  %4990 = vmatprep.mubr.bf16.mxu1 %v4549_v27  ;;  %v4513_v25 = vmax.f32 %v4446_v46, 0.0 }
 0x45a   :  { %v4449_v3 = vpop.f32.mrf.mxu1  ;;  %4991 = vmatmul.mubr.bf16.gmra.mxu1 %v4548_v32  ;;  %p6344_p9 = por %p6343_p8, %p6342_p7 }
 0x45b   :  { %v4450_v38 = vadd.f32 %v4449_v3, %v4337_v42  ;;  %v4516_v39 = vmax.f32 %v4448_v49, 0.0 }
 0x45c   :  { %v4453_v55 = vpop.f32.mrf.mxu1  ;;  %p6345_p10 = pnand %p6344_p9, %p6338_p6 }
 0x45d   :  { %v4517_v0 = vmax.f32 %v4450_v38, 0.0  ;;  %v4552_v58 = vpack.c.bf16 %v4516_v39, %v4512_v4  ;;  %v4454_v13 = vadd.f32 %v4453_v55, %v4341_v1 }
 0x45e   :  { %v4455_v16 = vpop.f32.mrf.mxu1 }
 0x45f   :  { %v4553_v62 = vpack.c.bf16 %v4517_v0, %v4513_v25  ;;  %v4456_v2 = vadd.f32 %v4455_v16, %v4343_v17  ;;  %v4520_v31 = vmax.f32 %v4454_v13, 0.0 }
 0x460   :  { %v4457_v45 = vpop.f32.mrf.mxu1 }
 0x461   :  { %v4458_v37 = vadd.f32 %v4457_v45, %v4345_v19  ;;  %4998 = vmatprep.mubr.bf16.mxu1 %v4553_v62  ;;  %v4521_v63 = vmax.f32 %v4456_v2, 0.0 }
 0x462   :  { %v4459_v54 = vpop.f32.mrf.mxu1  ;;  %4999 = vmatmul.mubr.bf16.gmra.mxu1 %v4552_v58 }
 0x463   :  { %v4460_v61 = vadd.f32 %v4459_v54, %v4347_v5  ;;  %v4524_v26 = vmax.f32 %v4458_v37, 0.0 }
 0x465   :  { %v4525_v12 = vmax.f32 %v4460_v61, 0.0  ;;  %v4556_v50 = vpack.c.bf16 %v4524_v26, %v4520_v31 }
 0x467   :  { %v4557_v51 = vpack.c.bf16 %v4525_v12, %v4521_v63 }
 0x469   :  { %5006 = vmatprep.mubr.bf16.mxu1 %v4557_v51 }
 0x46a   :  { %5007 = vmatmul.mubr.bf16.gmra.mxu1 %v4556_v50 }
 0x4b2   :  { %v5511_v9 = vpop.f32.mrf.mxu0 }
 0x4b4   :  { %v5512_v14 = vpop.f32.mrf.mxu0 }
 0x4b5   :  { %v5513_v6 = vadd.f32 %v5512_v14, %v5511_v9 }
 0x4b6   :  { %v5514_v22 = vpop.f32.mrf.mxu0 }
 0x4b7   :  { %v4856_v52 = vadd.f32 %v5513_v6, %v7537_v28 }
 0x4b8   :  { %v5515_v21 = vpop.f32.mrf.mxu0 }
 0x4b9   :  { %v5516_v10 = vadd.f32 %v5515_v21, %v5514_v22 }
 0x4ba   :  { %v5517_v60 = vpop.f32.mrf.mxu0 }
 0x4bb   :  { %v4859_v33 = vadd.f32 %v5516_v10, %v7537_v28 }
 0x4bc   :  { %v5518_v24 = vpop.f32.mrf.mxu0 }
 0x4bd   :  { %v5519_v32 = vadd.f32 %v5518_v24, %v5517_v60 }
 0x4be   :  { %v5520_v8 = vpop.f32.mrf.mxu0 }
 0x4bf   :  { %v4864_v36 = vadd.f32 %v5519_v32, %v7537_v28 }
 0x4c0   :  { %v5521_v57 = vpop.f32.mrf.mxu0 }
 0x4c1   :  { %v5522_v3 = vadd.f32 %v5521_v57, %v5520_v8 }
 0x4c2   :  { %v5523_v34 = vpop.f32.mrf.mxu0 }
 0x4c3   :  { %v4867_v53 = vadd.f32 %v5522_v3, %v7537_v28 }
 0x4c4   :  { %v5524_v44 = vpop.f32.mrf.mxu0 }
 0x4c5   :  { %v5525_v4 = vadd.f32 %v5524_v44, %v5523_v34 }
 0x4c6   :  { %v5526_v41 = vpop.f32.mrf.mxu0 }
 0x4c7   :  { %v4872_v58 = vadd.f32 %v5525_v4, %v7537_v28 }
 0x4c8   :  { %v5527_v23 = vpop.f32.mrf.mxu0 }
 0x4c9   :  { %v5528_v45 = vadd.f32 %v5527_v23, %v5526_v41 }
 0x4ca   :  { %v5529_v30 = vpop.f32.mrf.mxu0 }
 0x4cb   :  { %v4875_v61 = vadd.f32 %v5528_v45, %v7537_v28 }
 0x4cc   :  { %v5530_v47 = vpop.f32.mrf.mxu0 }
 0x4cd   :  { %v5531_v26 = vadd.f32 %v5530_v47, %v5529_v30 }
 0x4ce   :  { %v5532_v48 = vpop.f32.mrf.mxu0 }
 0x4cf   :  { %v4880_v9 = vadd.f32 %v5531_v26, %v7537_v28 }
 0x4d0   :  { %v5533_v29 = vpop.f32.mrf.mxu0 }
 0x4d1   :  { %v5534_v14 = vadd.f32 %v5533_v29, %v5532_v48 }
 0x4d2   :  { %v5535_v56 = vpop.f32.mrf.mxu0 }
 0x4d3   :  { %v4883_v57 = vadd.f32 %v5534_v14, %v7537_v28 }
 0x4d4   :  { %v5536_v20 = vpop.f32.mrf.mxu0 }
 0x4d5   :  { %v5537_v34 = vadd.f32 %v5536_v20, %v5535_v56 }
 0x4d6   :  { %v5538_v7 = vpop.f32.mrf.mxu0 }
 0x4d7   :  { %v4888_v6 = vadd.f32 %v5537_v34, %v7537_v28 }
 0x4d8   :  { %v5539_v42 = vpop.f32.mrf.mxu0 }
 0x4da   :  { %v5541_v39 = vpop.f32.mrf.mxu0 }
 0x4dc   :  { %v5542_v17 = vpop.f32.mrf.mxu0 }
 0x4de   :  { %v5544_v2 = vpop.f32.mrf.mxu0 }
 0x4e0   :  { %v5545_v12 = vpop.f32.mrf.mxu0 }
 0x4e2   :  { %v5547_v21 = vpop.f32.mrf.mxu0 }
 0x4e4   :  { %v5548_v41 = vpop.f32.mrf.mxu0 }
 0x4e5   :  { %v5549_v3 = vadd.f32 %v5548_v41, %v5547_v21 }
 0x4e6   :  { %v5550_v29 = vpop.f32.mrf.mxu0 }
 0x4e8   :  { %v5551_v20 = vpop.f32.mrf.mxu0 }
 0x4e9   :  { %v5552_v4 = vadd.f32 %v5551_v20, %v5550_v29 }
 0x4f2   :  { %v5575_v59 = vpop.f32.mrf.mxu1 }
 0x4f4   :  { %v5576_v15 = vpop.f32.mrf.mxu1 }
 0x4f5   :  { %v5577_v18 = vadd.f32 %v5576_v15, %v5575_v59  ;;  %v5540_v59 = vadd.f32 %v5539_v42, %v5538_v7  ;;  %v5553_v42 = vpop.f32.mrf.mxu0 }
 0x4f6   :  { %v5578_v40 = vpop.f32.mrf.mxu1 }
 0x4f7   :  { %v4953_v11 = vadd.f32 %v5577_v18, %v4856_v52  ;;  %v4891_v18 = vadd.f32 %v5540_v59, %v7537_v28 }
 0x4f8   :  { %v5579_v27 = vpop.f32.mrf.mxu1 }
 0x4f9   :  { %5015 = vst [vmem:[#allocation10] sm:$0xff] %v4953_v11  ;;  %v5580_v35 = vadd.f32 %v5579_v27, %v5578_v40  ;;  %v5543_v40 = vadd.f32 %v5542_v17, %v5541_v39  ;;  %v5554_v39 = vpop.f32.mrf.mxu0 }
 0x4fa   :  { %v5581_v46 = vpop.f32.mrf.mxu1  ;;  %v5555_v45 = vadd.f32 %v5554_v39, %v5553_v42 }
 0x4fb   :  { %v4956_v49 = vadd.f32 %v5580_v35, %v4859_v33  ;;  %v4896_v32 = vadd.f32 %v5543_v40, %v7537_v28  ;;  %v5546_v35 = vadd.f32 %v5545_v12, %v5544_v2  ;;  %v5556_v17 = vpop.f32.mrf.mxu0 }
 0x4fc   :  { %v5582_v43 = vpop.f32.mrf.mxu1 }
 0x4fd   :  { %5016 = vst [vmem:[#allocation10 + $0x8] sm:$0xff] %v4956_v49  ;;  %v5583_v38 = vadd.f32 %v5582_v43, %v5581_v46  ;;  %v5557_v2 = vpop.f32.mrf.mxu0 }
 0x4fe   :  { %v5584_v55 = vpop.f32.mrf.mxu1  ;;  %v5558_v26 = vadd.f32 %v5557_v2, %v5556_v17 }
 0x4ff   :  { %v4961_v25 = vadd.f32 %v5583_v38, %v4864_v36  ;;  %v4899_v36 = vadd.f32 %v5546_v35, %v7537_v28 }
 0x500   :  { %v5585_v0 = vpop.f32.mrf.mxu1 }
 0x501   :  { %5017 = vst [vmem:[#allocation10 + $0x10] sm:$0xff] %v4961_v25  ;;  %v5586_v16 = vadd.f32 %v5585_v0, %v5584_v55 }
 0x502   :  { %v5587_v19 = vpop.f32.mrf.mxu1 }
 0x503   :  { %v4964_v62 = vadd.f32 %v5586_v16, %v4867_v53  ;;  %v4904_v53 = vadd.f32 %v5549_v3, %v7537_v28 }
 0x504   :  { %v5588_v1 = vpop.f32.mrf.mxu1 }
 0x505   :  { %5018 = vst [vmem:[#allocation10 + $0x18] sm:$0xff] %v4964_v62  ;;  %v5589_v5 = vadd.f32 %v5588_v1, %v5587_v19 }
 0x506   :  { %v5590_v37 = vpop.f32.mrf.mxu1 }
 0x507   :  { %v4969_v13 = vadd.f32 %v5589_v5, %v4872_v58  ;;  %v4907_v58 = vadd.f32 %v5552_v4, %v7537_v28 }
 0x508   :  { %v5591_v54 = vpop.f32.mrf.mxu1 }
 0x509   :  { %5019 = vst [vmem:[#allocation10 + $0x20] sm:$0xff] %v4969_v13  ;;  %v5592_v63 = vadd.f32 %v5591_v54, %v5590_v37 }
 0x50a   :  { %v5593_v31 = vpop.f32.mrf.mxu1 }
 0x50b   :  { %v4972_v51 = vadd.f32 %v5592_v63, %v4875_v61  ;;  %v4912_v61 = vadd.f32 %v5555_v45, %v7537_v28 }
 0x50c   :  { %v5594_v50 = vpop.f32.mrf.mxu1 }
 0x50d   :  { %5020 = vst [vmem:[#allocation10 + $0x28] sm:$0xff] %v4972_v51  ;;  %v5595_v22 = vadd.f32 %v5594_v50, %v5593_v31  ;;  %v4915_v50 = vadd.f32 %v5558_v26, %v7537_v28 }
 0x50e   :  { %v5596_v60 = vpop.f32.mrf.mxu1 }
 0x50f   :  { %v4977_v24 = vadd.f32 %v5595_v22, %v4880_v9 }
 0x510   :  { %v5597_v8 = vpop.f32.mrf.mxu1 }
 0x511   :  { %5021 = vst [vmem:[#allocation10 + $0x30] sm:$0xff] %v4977_v24  ;;  %v5598_v44 = vadd.f32 %v5597_v8, %v5596_v60 }
 0x512   :  { %v5599_v23 = vpop.f32.mrf.mxu1 }
 0x513   :  { %v4980_v30 = vadd.f32 %v5598_v44, %v4883_v57 }
 0x514   :  { %v5600_v47 = vpop.f32.mrf.mxu1 }
 0x515   :  { %5022 = vst [vmem:[#allocation10 + $0x38] sm:$0xff] %v4980_v30  ;;  %v5601_v48 = vadd.f32 %v5600_v47, %v5599_v23 }
 0x516   :  { %v5602_v15 = vpop.f32.mrf.mxu1 }
 0x517   :  { %v4985_v52 = vadd.f32 %v5601_v48, %v4888_v6 }
 0x518   :  { %v5603_v10 = vpop.f32.mrf.mxu1 }
 0x519   :  { %5023 = vst [vmem:[#allocation10 + $0x40] sm:$0xff] %v4985_v52  ;;  %v5604_v56 = vadd.f32 %v5603_v10, %v5602_v15 }
 0x51a   :  { %v5605_v11 = vpop.f32.mrf.mxu1 }
 0x51b   :  { %v4988_v27 = vadd.f32 %v5604_v56, %v4891_v18 }
 0x51c   :  { %v5606_v33 = vpop.f32.mrf.mxu1 }
 0x51d   :  { %5024 = vst [vmem:[#allocation10 + $0x48] sm:$0xff] %v4988_v27  ;;  %v5607_v7 = vadd.f32 %v5606_v33, %v5605_v11 }
 0x51e   :  { %v5608_v46 = vpop.f32.mrf.mxu1 }
 0x51f   :  { %v4993_v49 = vadd.f32 %v5607_v7, %v4896_v32 }
 0x520   :  { %v5609_v43 = vpop.f32.mrf.mxu1 }
 0x521   :  { %5025 = vst [vmem:[#allocation10 + $0x50] sm:$0xff] %v4993_v49  ;;  %v5610_v38 = vadd.f32 %v5609_v43, %v5608_v46 }
 0x522   :  { %v5611_v55 = vpop.f32.mrf.mxu1 }
 0x523   :  { %v4996_v25 = vadd.f32 %v5610_v38, %v4899_v36 }
 0x524   :  { %v5612_v0 = vpop.f32.mrf.mxu1 }
 0x525   :  { %5026 = vst [vmem:[#allocation10 + $0x58] sm:$0xff] %v4996_v25  ;;  %v5613_v16 = vadd.f32 %v5612_v0, %v5611_v55 }
 0x526   :  { %v5614_v19 = vpop.f32.mrf.mxu1 }
 0x527   :  { %v5001_v62 = vadd.f32 %v5613_v16, %v4904_v53 }
 0x528   :  { %v5615_v1 = vpop.f32.mrf.mxu1 }
 0x529   :  { %5027 = vst [vmem:[#allocation10 + $0x60] sm:$0xff] %v5001_v62  ;;  %v5616_v5 = vadd.f32 %v5615_v1, %v5614_v19 }
 0x52a   :  { %v5617_v37 = vpop.f32.mrf.mxu1 }
 0x52b   :  { %v5004_v13 = vadd.f32 %v5616_v5, %v4907_v58 }
 0x52c   :  { %v5618_v54 = vpop.f32.mrf.mxu1 }
 0x52d   :  { %5028 = vst [vmem:[#allocation10 + $0x68] sm:$0xff] %v5004_v13  ;;  %v5619_v63 = vadd.f32 %v5618_v54, %v5617_v37 }
 0x52e   :  { %v5620_v12 = vpop.f32.mrf.mxu1 }
 0x52f   :  { %v5009_v31 = vadd.f32 %v5619_v63, %v4912_v61 }
 0x530   :  { %v5621_v51 = vpop.f32.mrf.mxu1 }
 0x531   :  { %5029 = vst [vmem:[#allocation10 + $0x70] sm:$0xff] %v5009_v31  ;;  %v5622_v9 = vadd.f32 %v5621_v51, %v5620_v12 }
 0x533   :  { %v5012_v14 = vadd.f32 %v5622_v9, %v4915_v50 }
 0x535   :  { %5030 = vst [vmem:[#allocation10 + $0x78] sm:$0xff] %v5012_v14 }
 0x536   :  { %6348 = shalt.err (!%p6345_p10)
}
 0x537   :  { %s6375_s25 = smov 128   ;;  %s6376_s26 = smov 8  }
 0x538   :  { %5042 = dma.vmem_to_hbm [thread:$0]  %s5037_s23, 2048, %s7569_s11, [#allocation4], %s6375_s25, %s6375_s25, %s6376_s26  }
 0x539   :  { %6363 = dma.done.wait [#allocation4], 2048  }
 0x53a   :  { %6364 = vsyncadd [#allocation4], 4294965248 }
 0x53b   :  { %5046 = vsyncpa [#allocation3], 1 }
 0x53c   :  { %5047 = vsyncpa [#allocation6], 1 }
 0x53d   :  { %5048 = vsyncpa [#allocation9], 1 }
 0x53e   :  { %5049 = vsyncpa [#allocation4], 1 }

</bundles_post_ra>
